<compile_context>
chip_gen: v7x
topology: tpu7x:2x2x1
jax: 0.10.0
libtpu: 0.0.40
codegen_flags: <defaults>
</compile_context>

<pallas_src>
import functools

import jax
import jax.numpy as jnp
from jax.experimental import pallas as pl
from jax.experimental.pallas import tpu as pltpu

EPS = 1e-5
_MIB = 1024 * 1024


# ----------------------------------------------------------------------------- kernels

def _stage1_kernel(x_ref, w1_ref, y1_ref, st1_ref):
    # conv1 (1x1) as a row matmul; emit per-tile sum / sumsq for bn1.
    y1 = jnp.dot(x_ref[...], w1_ref[...], preferred_element_type=jnp.float32)
    y1_ref[...] = y1.astype(y1_ref.dtype)
    st1_ref[0, 0:1, :] = jnp.sum(y1, axis=0, keepdims=True)
    st1_ref[0, 1:2, :] = jnp.sum(y1 * y1, axis=0, keepdims=True)


def _stage2_kernel(y1_ref, sc1_ref, sh1_ref, w2_ref, y2_ref, st2_ref,
                   pad_ref, slab_ref, *, H, W, Cmid):
    # bn1 (global stats folded into scale/shift) + relu, in f32.
    h1 = jnp.maximum(
        y1_ref[0].astype(jnp.float32) * sc1_ref[...] + sh1_ref[...], 0.0)

    # padding=1 in VMEM: zero only the 1-wide border (cheap, and correct under
    # any grid scheduling / megacore sharding), then overwrite the interior.
    zrow = jnp.zeros((1, W + 2, Cmid), dtype=pad_ref.dtype)
    pad_ref[0:1, :, :] = zrow
    pad_ref[H + 1:H + 2, :, :] = zrow
    zcol = jnp.zeros((H, 1, Cmid), dtype=pad_ref.dtype)
    pad_ref[1:H + 1, 0:1, :] = zcol
    pad_ref[1:H + 1, W + 1:W + 2, :] = zcol
    pad_ref[1:H + 1, 1:W + 1, :] = h1.astype(pad_ref.dtype)   # single cast

    # im2col slab built with 9 direct tap stores (no concat, matmul dtype),
    # then one big-K (= 9*Cmid) matmul that fills the 256-wide MXU.
    for k in range(9):
        dy, dx = divmod(k, 3)
        slab_ref[:, k * Cmid:(k + 1) * Cmid] = (
            pad_ref[dy:dy + H, dx:dx + W, :].reshape(H * W, Cmid))
    y2 = jnp.dot(slab_ref[...], w2_ref[...], preferred_element_type=jnp.float32)

    y2_ref[...] = y2.reshape(1, H, W, Cmid).astype(y2_ref.dtype)
    st2_ref[0, 0:1, :] = jnp.sum(y2, axis=0, keepdims=True)
    st2_ref[0, 1:2, :] = jnp.sum(y2 * y2, axis=0, keepdims=True)


def _stage3_kernel(y2_ref, sc2_ref, sh2_ref, w3_ref, y3_ref, st3_ref):
    # bn2 + relu fused, then conv3 (1x1) row matmul; emit bn3 partial stats.
    h2 = jnp.maximum(
        y2_ref[...].astype(jnp.float32) * sc2_ref[...] + sh2_ref[...], 0.0)
    y3 = jnp.dot(h2.astype(w3_ref.dtype), w3_ref[...],
                 preferred_element_type=jnp.float32)
    y3_ref[...] = y3.astype(y3_ref.dtype)
    st3_ref[0, 0:1, :] = jnp.sum(y3, axis=0, keepdims=True)
    st3_ref[0, 1:2, :] = jnp.sum(y3 * y3, axis=0, keepdims=True)


def _stage4_kernel(y3_ref, x_ref, wu_ref, bu_ref, sc3_ref, sh3_ref, out_ref):
    # residual = up(x) (1x1 conv + bias), recomputed here so `res` never hits HBM.
    res = jnp.dot(x_ref[...], wu_ref[...],
                  preferred_element_type=jnp.float32) + bu_ref[...]
    y3n = y3_ref[...].astype(jnp.float32) * sc3_ref[...] + sh3_ref[...]
    out_ref[...] = jnp.maximum(y3n + res, 0.0).astype(out_ref.dtype)


# ----------------------------------------------------------------------------- glue

def _pick_tm(m, target):
    """Largest divisor of m that is <= target, preferring multiples of 8."""
    if m <= target:
        return m
    best = None
    for tm in range(min(target, m), 7, -1):
        if m % tm == 0:
            if tm % 8 == 0:
                return tm
            if best is None:
                best = tm
    if best is not None:
        return best
    # TODO(synk): pathological (e.g. prime) M -> cdiv grid with a masked tail.
    return m


def _bn_scale_shift(partials, count, gamma, beta):
    """Fold per-tile (sum, sumsq) partials into per-channel BN scale/shift.

    NOTE: variance via E[x^2]-E[x]^2 from f32 partials; adequate at these
    scales, switch to a Welford-style fold for very large N*H*W.
    """
    s = jnp.sum(partials.astype(jnp.float32), axis=0)     # (2, C)
    mean = s[0] / count
    var = jnp.maximum(s[1] / count - mean * mean, 0.0)     # biased variance
    inv = jax.lax.rsqrt(var + EPS)
    scale = gamma.reshape(-1) * inv
    shift = beta.reshape(-1) - mean * scale
    return scale.reshape(1, -1), shift.reshape(1, -1)


def _cparams(pipelined_bytes, resident_bytes=0):
    """Per-call VMEM budget: double-buffered blocks + resident scratch + headroom."""
    budget = 2 * pipelined_bytes + resident_bytes + 16 * _MIB
    budget = max(24 * _MIB, min(budget, 56 * _MIB))        # < 64 MiB v7x physical
    return pltpu.CompilerParams(
        dimension_semantics=("parallel",),                 # megacore-shardable
        vmem_limit_bytes=int(budget))


@functools.partial(jax.jit, static_argnames=("use_bf16", "tm_target"))
def resnet101_bottleneck(x_nchw, p, *, use_bf16=True, tm_target=None):
    N, Cin, H, W = x_nchw.shape
    Cmid = p["w1"].shape[1]
    Cout = p["w3"].shape[1]
    M = N * H * W
    HW = H * W

    if tm_target is None:
        # ~512 on v7x (64 MiB VMEM), 1024 on v5e/v6e (128 MiB VMEM).
        kind = jax.devices()[0].device_kind.lower()
        tm_target = 512 if "v7" in kind else 1024

    # bf16 feeds the MXU / halves the HBM streams; BN stats, normalization and
    # residual accumulation stay f32 (v5e has no bf16 VPU/EUP).
    mmdt = jnp.bfloat16 if use_bf16 else jnp.float32
    isz = 2 if use_bf16 else 4

    # NCHW -> NHWC rows (glue transpose; the cast fuses into it).
    x2d = jnp.transpose(x_nchw, (0, 2, 3, 1)).reshape(M, Cin).astype(mmdt)

    w1 = p["w1"].astype(mmdt)
    w2 = p["w2"].reshape(9 * Cmid, Cmid).astype(mmdt)      # stacked-tap weights
    w3 = p["w3"].astype(mmdt)
    wu = p["wu"].astype(mmdt)
    bu = p["bu"].astype(jnp.float32)

    TM = _pick_tm(M, tm_target)
    G = M // TM

    wspec = lambda shape: pl.BlockSpec(shape, lambda i, _s=shape: (0,) * len(_s))
    rowspec = lambda c: pl.BlockSpec((TM, c), lambda i: (i, 0))
    statspec = lambda c: pl.BlockSpec((1, 2, c), lambda i: (i, 0, 0))

    # ---- K1: conv1 (1x1) + bn1 partial stats --------------------------------
    k1_bytes = (TM * Cin + Cin * Cmid + TM * Cmid) * isz + 2 * Cmid * 4
    y1, st1 = pl.pallas_call(
        _stage1_kernel,
        grid=(G,),
        in_specs=[rowspec(Cin), wspec((Cin, Cmid))],
        out_specs=[rowspec(Cmid), statspec(Cmid)],
        out_shape=[jax.ShapeDtypeStruct((M, Cmid), mmdt),
                   jax.ShapeDtypeStruct((G, 2, Cmid), jnp.float32)],
        compiler_params=_cparams(k1_bytes),
        cost_estimate=pl.CostEstimate(
            flops=2 * M * Cin * Cmid, transcendentals=0,
            bytes_accessed=(M * (Cin + Cmid) + Cin * Cmid) * isz),
    )(x2d, w1)
    sc1, sh1 = _bn_scale_shift(st1, M, p["g1"], p["be1"])

    # ---- K2: bn1+relu fused, 3x3 conv via slab im2col, bn2 partial stats ----
    y1_img = y1.reshape(N, H, W, Cmid)
    k2_pipelined = (2 * HW * Cmid + 9 * Cmid * Cmid) * isz + 6 * Cmid * 4
    k2_resident = (((H + 2) * (W + 2) * Cmid + HW * 9 * Cmid) * isz
                   + 4 * HW * Cmid * 4)                    # + f32 temporaries
    y2_img, st2 = pl.pallas_call(
        functools.partial(_stage2_kernel, H=H, W=W, Cmid=Cmid),
        grid=(N,),
        in_specs=[pl.BlockSpec((1, H, W, Cmid), lambda n: (n, 0, 0, 0)),
                  wspec((1, Cmid)), wspec((1, Cmid)),
                  wspec((9 * Cmid, Cmid))],
        out_specs=[pl.BlockSpec((1, H, W, Cmid), lambda n: (n, 0, 0, 0)),
                   statspec(Cmid)],
        out_shape=[jax.ShapeDtypeStruct((N, H, W, Cmid), mmdt),
                   jax.ShapeDtypeStruct((N, 2, Cmid), jnp.float32)],
        scratch_shapes=[pltpu.VMEM((H + 2, W + 2, Cmid), mmdt),     # halo
                        pltpu.VMEM((HW, 9 * Cmid), mmdt)],          # im2col slab
        compiler_params=_cparams(k2_pipelined, k2_resident),
        cost_estimate=pl.CostEstimate(
            flops=2 * M * 9 * Cmid * Cmid, transcendentals=0,
            bytes_accessed=(2 * M * Cmid + 9 * Cmid * Cmid) * isz),
    )(y1_img, sc1, sh1, w2)
    sc2, sh2 = _bn_scale_shift(st2, M, p["g2"], p["be2"])

    # ---- K3: bn2+relu fused, conv3 (1x1), bn3 partial stats -----------------
    y2 = y2_img.reshape(M, Cmid)
    k3_bytes = ((TM * Cmid + Cmid * Cout + TM * Cout) * isz
                + 2 * Cmid * 4 + 2 * Cout * 4)
    y3, st3 = pl.pallas_call(
        _stage3_kernel,
        grid=(G,),
        in_specs=[rowspec(Cmid), wspec((1, Cmid)), wspec((1, Cmid)),
                  wspec((Cmid, Cout))],
        out_specs=[rowspec(Cout), statspec(Cout)],
        out_shape=[jax.ShapeDtypeStruct((M, Cout), mmdt),
                   jax.ShapeDtypeStruct((G, 2, Cout), jnp.float32)],
        compiler_params=_cparams(k3_bytes),
        cost_estimate=pl.CostEstimate(
            flops=2 * M * Cmid * Cout, transcendentals=0,
            bytes_accessed=(M * (Cmid + Cout) + Cmid * Cout) * isz),
    )(y2, sc2, sh2, w3)
    sc3, sh3 = _bn_scale_shift(st3, M, p["g3"], p["be3"])

    # ---- K4: bn3 + residual 1x1 conv (from x) + add + relu ------------------
    k4_bytes = (TM * (2 * Cout + Cin) + Cin * Cout) * isz + 3 * Cout * 4
    out2d = pl.pallas_call(
        _stage4_kernel,
        grid=(G,),
        in_specs=[rowspec(Cout), rowspec(Cin), wspec((Cin, Cout)),
                  wspec((1, Cout)), wspec((1, Cout)), wspec((1, Cout))],
        out_specs=rowspec(Cout),
        out_shape=jax.ShapeDtypeStruct((M, Cout), mmdt),
        compiler_params=_cparams(k4_bytes),
        cost_estimate=pl.CostEstimate(
            flops=2 * M * Cin * Cout, transcendentals=0,
            bytes_accessed=(M * (Cin + 2 * Cout) + Cin * Cout) * isz),
    )(y3, x2d, wu, bu, sc3, sh3)

    # rows -> NHWC -> NCHW (glue transpose)
    return jnp.transpose(out2d.reshape(N, H, W, Cout), (0, 3, 1, 2))


# ----------------------------------------------------------------------------- params / reference

def init_params(key, cin, cmid, cout):
    ks = jax.random.split(key, 11)
    n = lambda k, s, sc=0.1: sc * jax.random.normal(k, s, jnp.float32)
    return {
        # conv1: 1x1 Cin->Cmid, stored (Cin, Cmid).  Conv bias omitted: a bias
        # added right before a training-mode BN cancels in the mean subtraction.
        "w1": n(ks[0], (cin, cmid)),
        "g1": 1.0 + n(ks[1], (1, cmid)), "be1": n(ks[2], (1, cmid)),
        # conv2: 3x3 Cmid->Cmid stored (9, Cmid_in, Cmid_out), tap k = ky*3+kx.
        "w2": n(ks[3], (9, cmid, cmid)),
        "g2": 1.0 + n(ks[4], (1, cmid)), "be2": n(ks[5], (1, cmid)),
        # conv3: 1x1 Cmid->Cout.
        "w3": n(ks[6], (cmid, cout)),
        "g3": 1.0 + n(ks[7], (1, cout)), "be3": n(ks[8], (1, cout)),
        # up (residual): 1x1 Cin->Cout with bias (no BN on this branch).
        "wu": n(ks[9], (cin, cout)), "bu": n(ks[10], (1, cout)),
    }


def _reference(x_nchw, p):
    """Pure-JAX reference of the same forward (training-mode BN)."""
    N, Cin, H, W = x_nchw.shape
    Cmid = p["w1"].shape[1]
    x = jnp.transpose(x_nchw, (0, 2, 3, 1))                       # NHWC

    def bn(y, g, b):
        yf = y.reshape(-1, y.shape[-1])
        mean = jnp.mean(yf, axis=0)
        var = jnp.var(yf, axis=0)                                 # biased
        return (y - mean) * jax.lax.rsqrt(var + EPS) * g.reshape(-1) + b.reshape(-1)

    res = jnp.einsum("nhwc,cd->nhwd", x, p["wu"]) + p["bu"].reshape(-1)
    h1 = jax.nn.relu(bn(jnp.einsum("nhwc,cd->nhwd", x, p["w1"]), p["g1"], p["be1"]))
    h1p = jnp.pad(h1, ((0, 0), (1, 1), (1, 1), (0, 0)))
    y2 = jnp.zeros((N, H, W, Cmid), jnp.float32)
    for k, (dy, dx) in enumerate([(a, b) for a in range(3) for b in range(3)]):
        y2 = y2 + jnp.einsum("nhwc,cd->nhwd",
                             h1p[:, dy:dy + H, dx:dx + W, :], p["w2"][k])
    h2 = jax.nn.relu(bn(y2, p["g2"], p["be2"]))
    y3 = bn(jnp.einsum("nhwc,cd->nhwd", h2, p["w3"]), p["g3"], p["be3"])
    return jnp.transpose(jax.nn.relu(y3 + res), (0, 3, 1, 2))


if __name__ == "__main__":
    key = jax.random.PRNGKey(0)
    k_x, k_p = jax.random.split(key)

    N, Cin, Cmid, Cout, H, W = 2, 4, 4, 8, 16, 16
    x = jax.random.normal(k_x, (N, Cin, H, W), jnp.float32)      # NCHW, like PyTorch
    params = init_params(k_p, Cin, Cmid, Cout)

    # f32 path: tolerance-checked against the pure-JAX reference.
    out = jax.block_until_ready(resnet101_bottleneck(x, params, use_bf16=False))
    assert out.shape == (N, Cout, H, W), out.shape
    assert bool(jnp.all(out >= 0.0))                             # final ReLU

    ref = _reference(x, params)
    err = float(jnp.max(jnp.abs(out - ref)))
    assert bool(jnp.allclose(out, ref, atol=1e-3, rtol=1e-3)), err

    # bf16 MXU / halved-HBM-stream fast path (default): compile & sanity run.
    out_bf = jax.block_until_ready(resnet101_bottleneck(x, params))
    assert out_bf.shape == (N, Cout, H, W)
    assert bool(jnp.all(jnp.isfinite(out_bf.astype(jnp.float32))))

    print("KERNEL_OK")
</pallas_src>

<mosaic_0001>
module attributes {stable_mosaic.version = 11 : i64} {
  func.func @_stage1_kernel(%arg0: i32, %arg1: memref<512x4xf32, #tpu.memory_space<vmem>>, %arg2: memref<4x4xf32, #tpu.memory_space<vmem>>, %arg3: memref<512x4xf32, #tpu.memory_space<vmem>>, %arg4: memref<1x2x4xf32, #tpu.memory_space<vmem>>) attributes {dimension_semantics = [#tpu.dimension_semantics<parallel>], iteration_bounds = array<i64: 1>, scalar_prefetch = 0 : i64, scratch_operands = 0 : i64, tpu.core_type = #tpu.core_type<tc>, window_params = [{transform_indices = @transform_0, window_bounds = array<i64: 512, 4>}, {pipeline_mode = #tpu.pipeline_mode<synchronous>, transform_indices = @transform_1, window_bounds = array<i64: 4, 4>}, {transform_indices = @transform_2, window_bounds = array<i64: 512, 4>}, {transform_indices = @transform_3, window_bounds = array<i64: 1, 2, 4>}]} {
    %c0 = arith.constant 0 : index
    %c0_0 = arith.constant 0 : index
    %0 = vector.load %arg1[%c0, %c0_0] : memref<512x4xf32, #tpu.memory_space<vmem>>, vector<512x4xf32>
    %c0_1 = arith.constant 0 : index
    %c0_2 = arith.constant 0 : index
    %1 = vector.load %arg2[%c0_1, %c0_2] : memref<4x4xf32, #tpu.memory_space<vmem>>, vector<4x4xf32>
    %cst = arith.constant dense<0.000000e+00> : vector<512x4xf32>
    %2 = tpu.matmul %0, %1, %cst {dimension_numbers = #tpu.dot_dimension_numbers<[1], [0], [0], [1], [0, 0, 1, 1], [], []>} : vector<512x4xf32>, vector<4x4xf32>, vector<512x4xf32> -> vector<512x4xf32>
    %c0_3 = arith.constant 0 : index
    %c0_4 = arith.constant 0 : index
    %3 = vector.load %arg3[%c0_3, %c0_4] : memref<512x4xf32, #tpu.memory_space<vmem>>, vector<512x4xf32>
    tpu.vector_store %arg3[%c0_3, %c0_4], %2 {strides = array<i32>} : memref<512x4xf32, #tpu.memory_space<vmem>>, vector<512x4xf32>,
    %cst_5 = arith.constant dense<0.000000e+00> : vector<4xf32>
    %4 = vector.multi_reduction <add>, %2, %cst_5 [0] : vector<512x4xf32> to vector<4xf32>
    %5 = vector.shape_cast %4 : vector<4xf32> to vector<1x4xf32>
    %c0_6 = arith.constant 0 : index
    %c0_7 = arith.constant 0 : index
    %c0_8 = arith.constant 0 : index
    %6 = vector.load %arg4[%c0_6, %c0_7, %c0_8] : memref<1x2x4xf32, #tpu.memory_space<vmem>>, vector<1x1x4xf32>
    %7 = vector.shape_cast %6 : vector<1x1x4xf32> to vector<1x4xf32>
    %8 = vector.shape_cast %5 : vector<1x4xf32> to vector<1x1x4xf32>
    tpu.vector_store %arg4[%c0_6, %c0_7, %c0_8], %8 {strides = array<i32>} : memref<1x2x4xf32, #tpu.memory_space<vmem>>, vector<1x1x4xf32>,
    %9 = arith.mulf %2, %2 : vector<512x4xf32>
    %cst_9 = arith.constant dense<0.000000e+00> : vector<4xf32>
    %10 = vector.multi_reduction <add>, %9, %cst_9 [0] : vector<512x4xf32> to vector<4xf32>
    %11 = vector.shape_cast %10 : vector<4xf32> to vector<1x4xf32>
    %c0_10 = arith.constant 0 : index
    %c1 = arith.constant 1 : index
    %c0_11 = arith.constant 0 : index
    %12 = vector.load %arg4[%c0_10, %c1, %c0_11] : memref<1x2x4xf32, #tpu.memory_space<vmem>>, vector<1x1x4xf32>
    %13 = vector.shape_cast %12 : vector<1x1x4xf32> to vector<1x4xf32>
    %14 = vector.shape_cast %11 : vector<1x4xf32> to vector<1x1x4xf32>
    tpu.vector_store %arg4[%c0_10, %c1, %c0_11], %14 {strides = array<i32>} : memref<1x2x4xf32, #tpu.memory_space<vmem>>, vector<1x1x4xf32>,
    return
  }
  func.func @transform_0(%arg0: i32) -> (i32, i32) {
    %c0_i32 = arith.constant 0 : i32
    %c0_i32_0 = arith.constant 0 : i32
    return %arg0, %c0_i32 : i32, i32
  }
  func.func @transform_1(%arg0: i32) -> (i32, i32) {
    %c0_i32 = arith.constant 0 : i32
    %c0_i32_0 = arith.constant 0 : i32
    %c0_i32_1 = arith.constant 0 : i32
    return %c0_i32, %c0_i32_0 : i32, i32
  }
  func.func @transform_2(%arg0: i32) -> (i32, i32) {
    %c0_i32 = arith.constant 0 : i32
    %c0_i32_0 = arith.constant 0 : i32
    return %arg0, %c0_i32 : i32, i32
  }
  func.func @transform_3(%arg0: i32) -> (i32, i32, i32) {
    %c0_i32 = arith.constant 0 : i32
    %c0_i32_0 = arith.constant 0 : i32
    %c0_i32_1 = arith.constant 0 : i32
    return %arg0, %c0_i32, %c0_i32_0 : i32, i32, i32
  }
}

module attributes {stable_mosaic.version = 11 : i64} {
  func.func @_stage2_kernel(%arg0: i32, %arg1: memref<1x16x16x4xf32, #tpu.memory_space<vmem>>, %arg2: memref<1x4xf32, #tpu.memory_space<vmem>>, %arg3: memref<1x4xf32, #tpu.memory_space<vmem>>, %arg4: memref<36x4xf32, #tpu.memory_space<vmem>>, %arg5: memref<1x16x16x4xf32, #tpu.memory_space<vmem>>, %arg6: memref<1x2x4xf32, #tpu.memory_space<vmem>>, %arg7: memref<18x18x4xf32, #tpu.memory_space<vmem>>, %arg8: memref<256x36xf32, #tpu.memory_space<vmem>>) attributes {dimension_semantics = [#tpu.dimension_semantics<parallel>], iteration_bounds = array<i64: 2>, scalar_prefetch = 0 : i64, scratch_operands = 2 : i64, tpu.core_type = #tpu.core_type<tc>, window_params = [{transform_indices = @transform_0, window_bounds = array<i64: 1, 16, 16, 4>}, {pipeline_mode = #tpu.pipeline_mode<synchronous>, transform_indices = @transform_1, window_bounds = array<i64: 1, 4>}, {pipeline_mode = #tpu.pipeline_mode<synchronous>, transform_indices = @transform_2, window_bounds = array<i64: 1, 4>}, {pipeline_mode = #tpu.pipeline_mode<synchronous>, transform_indices = @transform_3, window_bounds = array<i64: 36, 4>}, {transform_indices = @transform_4, window_bounds = array<i64: 1, 16, 16, 4>}, {transform_indices = @transform_5, window_bounds = array<i64: 1, 2, 4>}]} {
    %c0 = arith.constant 0 : index
    %c0_0 = arith.constant 0 : index
    %c0_1 = arith.constant 0 : index
    %c0_2 = arith.constant 0 : index
    %0 = vector.load %arg1[%c0, %c0_0, %c0_1, %c0_2] : memref<1x16x16x4xf32, #tpu.memory_space<vmem>>, vector<1x16x16x4xf32>
    %1 = vector.shape_cast %0 : vector<1x16x16x4xf32> to vector<16x16x4xf32>
    %c0_3 = arith.constant 0 : index
    %c0_4 = arith.constant 0 : index
    %2 = vector.load %arg2[%c0_3, %c0_4] : memref<1x4xf32, #tpu.memory_space<vmem>>, vector<1x4xf32>
    %3 = vector.shape_cast %2 : vector<1x4xf32> to vector<1x1x4xf32>
    %4 = vector.broadcast %3 : vector<1x1x4xf32> to vector<16x16x4xf32>
    %5 = arith.mulf %1, %4 : vector<16x16x4xf32>
    %c0_5 = arith.constant 0 : index
    %c0_6 = arith.constant 0 : index
    %6 = vector.load %arg3[%c0_5, %c0_6] : memref<1x4xf32, #tpu.memory_space<vmem>>, vector<1x4xf32>
    %7 = vector.shape_cast %6 : vector<1x4xf32> to vector<1x1x4xf32>
    %8 = vector.broadcast %7 : vector<1x1x4xf32> to vector<16x16x4xf32>
    %9 = arith.addf %5, %8 : vector<16x16x4xf32>
    %cst = arith.constant 0.000000e+00 : f32
    %10 = vector.broadcast %cst : f32 to vector<16x16x4xf32>
    %11 = arith.maximumf %9, %10 : vector<16x16x4xf32>
    %cst_7 = arith.constant 0.000000e+00 : f32
    %12 = vector.broadcast %cst_7 : f32 to vector<1x18x4xf32>
    %c0_8 = arith.constant 0 : index
    %c0_9 = arith.constant 0 : index
    %c0_10 = arith.constant 0 : index
    %13 = vector.load %arg7[%c0_8, %c0_9, %c0_10] : memref<18x18x4xf32, #tpu.memory_space<vmem>>, vector<1x18x4xf32>
    tpu.vector_store %arg7[%c0_8, %c0_9, %c0_10], %12 {strides = array<i32>} : memref<18x18x4xf32, #tpu.memory_space<vmem>>, vector<1x18x4xf32>,
    %c17 = arith.constant 17 : index
    %c0_11 = arith.constant 0 : index
    %c0_12 = arith.constant 0 : index
    %14 = vector.load %arg7[%c17, %c0_11, %c0_12] : memref<18x18x4xf32, #tpu.memory_space<vmem>>, vector<1x18x4xf32>
    tpu.vector_store %arg7[%c17, %c0_11, %c0_12], %12 {strides = array<i32>} : memref<18x18x4xf32, #tpu.memory_space<vmem>>, vector<1x18x4xf32>,
    %cst_13 = arith.constant 0.000000e+00 : f32
    %15 = vector.broadcast %cst_13 : f32 to vector<16x1x4xf32>
    %c1 = arith.constant 1 : index
    %c0_14 = arith.constant 0 : index
    %c0_15 = arith.constant 0 : index
    %16 = vector.load %arg7[%c1, %c0_14, %c0_15] : memref<18x18x4xf32, #tpu.memory_space<vmem>>, vector<16x1x4xf32>
    tpu.vector_store %arg7[%c1, %c0_14, %c0_15], %15 {strides = array<i32>} : memref<18x18x4xf32, #tpu.memory_space<vmem>>, vector<16x1x4xf32>,
    %c1_16 = arith.constant 1 : index
    %c17_17 = arith.constant 17 : index
    %c0_18 = arith.constant 0 : index
    %17 = vector.load %arg7[%c1_16, %c17_17, %c0_18] : memref<18x18x4xf32, #tpu.memory_space<vmem>>, vector<16x1x4xf32>
    tpu.vector_store %arg7[%c1_16, %c17_17, %c0_18], %15 {strides = array<i32>} : memref<18x18x4xf32, #tpu.memory_space<vmem>>, vector<16x1x4xf32>,
    %c1_19 = arith.constant 1 : index
    %c1_20 = arith.constant 1 : index
    %c0_21 = arith.constant 0 : index
    %18 = vector.load %arg7[%c1_19, %c1_20, %c0_21] : memref<18x18x4xf32, #tpu.memory_space<vmem>>, vector<16x16x4xf32>
    tpu.vector_store %arg7[%c1_19, %c1_20, %c0_21], %11 {strides = array<i32>} : memref<18x18x4xf32, #tpu.memory_space<vmem>>, vector<16x16x4xf32>,
    %c0_22 = arith.constant 0 : index
    %c0_23 = arith.constant 0 : index
    %c0_24 = arith.constant 0 : index
    %19 = vector.load %arg7[%c0_22, %c0_23, %c0_24] : memref<18x18x4xf32, #tpu.memory_space<vmem>>, vector<16x16x4xf32>
    %20 = vector.shape_cast %19 : vector<16x16x4xf32> to vector<256x4xf32>
    %c0_25 = arith.constant 0 : index
    %c0_26 = arith.constant 0 : index
    %21 = vector.load %arg8[%c0_25, %c0_26] : memref<256x36xf32, #tpu.memory_space<vmem>>, vector<256x4xf32>
    tpu.vector_store %arg8[%c0_25, %c0_26], %20 {strides = array<i32>} : memref<256x36xf32, #tpu.memory_space<vmem>>, vector<256x4xf32>,
    %c0_27 = arith.constant 0 : index
    %c1_28 = arith.constant 1 : index
    %c0_29 = arith.constant 0 : index
    %22 = vector.load %arg7[%c0_27, %c1_28, %c0_29] : memref<18x18x4xf32, #tpu.memory_space<vmem>>, vector<16x16x4xf32>
    %23 = vector.shape_cast %22 : vector<16x16x4xf32> to vector<256x4xf32>
    %c0_30 = arith.constant 0 : index
    %c4 = arith.constant 4 : index
    %24 = vector.load %arg8[%c0_30, %c4] : memref<256x36xf32, #tpu.memory_space<vmem>>, vector<256x4xf32>
    tpu.vector_store %arg8[%c0_30, %c4], %23 {strides = array<i32>} : memref<256x36xf32, #tpu.memory_space<vmem>>, vector<256x4xf32>,
    %c0_31 = arith.constant 0 : index
    %c2 = arith.constant 2 : index
    %c0_32 = arith.constant 0 : index
    %25 = vector.load %arg7[%c0_31, %c2, %c0_32] : memref<18x18x4xf32, #tpu.memory_space<vmem>>, vector<16x16x4xf32>
    %26 = vector.shape_cast %25 : vector<16x16x4xf32> to vector<256x4xf32>
    %c0_33 = arith.constant 0 : index
    %c8 = arith.constant 8 : index
    %27 = vector.load %arg8[%c0_33, %c8] : memref<256x36xf32, #tpu.memory_space<vmem>>, vector<256x4xf32>
    tpu.vector_store %arg8[%c0_33, %c8], %26 {strides = array<i32>} : memref<256x36xf32, #tpu.memory_space<vmem>>, vector<256x4xf32>,
    %c1_34 = arith.constant 1 : index
    %c0_35 = arith.constant 0 : index
    %c0_36 = arith.constant 0 : index
    %28 = vector.load %arg7[%c1_34, %c0_35, %c0_36] : memref<18x18x4xf32, #tpu.memory_space<vmem>>, vector<16x16x4xf32>
    %29 = vector.shape_cast %28 : vector<16x16x4xf32> to vector<256x4xf32>
    %c0_37 = arith.constant 0 : index
    %c12 = arith.constant 12 : index
    %30 = vector.load %arg8[%c0_37, %c12] : memref<256x36xf32, #tpu.memory_space<vmem>>, vector<256x4xf32>
    tpu.vector_store %arg8[%c0_37, %c12], %29 {strides = array<i32>} : memref<256x36xf32, #tpu.memory_space<vmem>>, vector<256x4xf32>,
    %c1_38 = arith.constant 1 : index
    %c1_39 = arith.constant 1 : index
    %c0_40 = arith.constant 0 : index
    %31 = vector.load %arg7[%c1_38, %c1_39, %c0_40] : memref<18x18x4xf32, #tpu.memory_space<vmem>>, vector<16x16x4xf32>
    %32 = vector.shape_cast %31 : vector<16x16x4xf32> to vector<256x4xf32>
    %c0_41 = arith.constant 0 : index
    %c16 = arith.constant 16 : index
    %33 = vector.load %arg8[%c0_41, %c16] : memref<256x36xf32, #tpu.memory_space<vmem>>, vector<256x4xf32>
    tpu.vector_store %arg8[%c0_41, %c16], %32 {strides = array<i32>} : memref<256x36xf32, #tpu.memory_space<vmem>>, vector<256x4xf32>,
    %c1_42 = arith.constant 1 : index
    %c2_43 = arith.constant 2 : index
    %c0_44 = arith.constant 0 : index
    %34 = vector.load %arg7[%c1_42, %c2_43, %c0_44] : memref<18x18x4xf32, #tpu.memory_space<vmem>>, vector<16x16x4xf32>
    %35 = vector.shape_cast %34 : vector<16x16x4xf32> to vector<256x4xf32>
    %c0_45 = arith.constant 0 : index
    %c20 = arith.constant 20 : index
    %36 = vector.load %arg8[%c0_45, %c20] : memref<256x36xf32, #tpu.memory_space<vmem>>, vector<256x4xf32>
    tpu.vector_store %arg8[%c0_45, %c20], %35 {strides = array<i32>} : memref<256x36xf32, #tpu.memory_space<vmem>>, vector<256x4xf32>,
    %c2_46 = arith.constant 2 : index
    %c0_47 = arith.constant 0 : index
    %c0_48 = arith.constant 0 : index
    %37 = vector.load %arg7[%c2_46, %c0_47, %c0_48] : memref<18x18x4xf32, #tpu.memory_space<vmem>>, vector<16x16x4xf32>
    %38 = vector.shape_cast %37 : vector<16x16x4xf32> to vector<256x4xf32>
    %c0_49 = arith.constant 0 : index
    %c24 = arith.constant 24 : index
    %39 = vector.load %arg8[%c0_49, %c24] : memref<256x36xf32, #tpu.memory_space<vmem>>, vector<256x4xf32>
    tpu.vector_store %arg8[%c0_49, %c24], %38 {strides = array<i32>} : memref<256x36xf32, #tpu.memory_space<vmem>>, vector<256x4xf32>,
    %c2_50 = arith.constant 2 : index
    %c1_51 = arith.constant 1 : index
    %c0_52 = arith.constant 0 : index
    %40 = vector.load %arg7[%c2_50, %c1_51, %c0_52] : memref<18x18x4xf32, #tpu.memory_space<vmem>>, vector<16x16x4xf32>
    %41 = vector.shape_cast %40 : vector<16x16x4xf32> to vector<256x4xf32>
    %c0_53 = arith.constant 0 : index
    %c28 = arith.constant 28 : index
    %42 = vector.load %arg8[%c0_53, %c28] : memref<256x36xf32, #tpu.memory_space<vmem>>, vector<256x4xf32>
    tpu.vector_store %arg8[%c0_53, %c28], %41 {strides = array<i32>} : memref<256x36xf32, #tpu.memory_space<vmem>>, vector<256x4xf32>,
    %c2_54 = arith.constant 2 : index
    %c2_55 = arith.constant 2 : index
    %c0_56 = arith.constant 0 : index
    %43 = vector.load %arg7[%c2_54, %c2_55, %c0_56] : memref<18x18x4xf32, #tpu.memory_space<vmem>>, vector<16x16x4xf32>
    %44 = vector.shape_cast %43 : vector<16x16x4xf32> to vector<256x4xf32>
    %c0_57 = arith.constant 0 : index
    %c32 = arith.constant 32 : index
    %45 = vector.load %arg8[%c0_57, %c32] : memref<256x36xf32, #tpu.memory_space<vmem>>, vector<256x4xf32>
    tpu.vector_store %arg8[%c0_57, %c32], %44 {strides = array<i32>} : memref<256x36xf32, #tpu.memory_space<vmem>>, vector<256x4xf32>,
    %c0_58 = arith.constant 0 : index
    %c0_59 = arith.constant 0 : index
    %46 = vector.load %arg8[%c0_58, %c0_59] : memref<256x36xf32, #tpu.memory_space<vmem>>, vector<256x36xf32>
    %c0_60 = arith.constant 0 : index
    %c0_61 = arith.constant 0 : index
    %47 = vector.load %arg4[%c0_60, %c0_61] : memref<36x4xf32, #tpu.memory_space<vmem>>, vector<36x4xf32>
    %cst_62 = arith.constant dense<0.000000e+00> : vector<256x4xf32>
    %48 = tpu.matmul %46, %47, %cst_62 {dimension_numbers = #tpu.dot_dimension_numbers<[1], [0], [0], [1], [0, 0, 1, 1], [], []>} : vector<256x36xf32>, vector<36x4xf32>, vector<256x4xf32> -> vector<256x4xf32>
    %49 = vector.shape_cast %48 : vector<256x4xf32> to vector<1x16x16x4xf32>
    %c0_63 = arith.constant 0 : index
    %c0_64 = arith.constant 0 : index
    %c0_65 = arith.constant 0 : index
    %c0_66 = arith.constant 0 : index
    %50 = vector.load %arg5[%c0_63, %c0_64, %c0_65, %c0_66] : memref<1x16x16x4xf32, #tpu.memory_space<vmem>>, vector<1x16x16x4xf32>
    tpu.vector_store %arg5[%c0_63, %c0_64, %c0_65, %c0_66], %49 {strides = array<i32>} : memref<1x16x16x4xf32, #tpu.memory_space<vmem>>, vector<1x16x16x4xf32>,
    %cst_67 = arith.constant dense<0.000000e+00> : vector<4xf32>
    %51 = vector.multi_reduction <add>, %48, %cst_67 [0] : vector<256x4xf32> to vector<4xf32>
    %52 = vector.shape_cast %51 : vector<4xf32> to vector<1x4xf32>
    %c0_68 = arith.constant 0 : index
    %c0_69 = arith.constant 0 : index
    %c0_70 = arith.constant 0 : index
    %53 = vector.load %arg6[%c0_68, %c0_69, %c0_70] : memref<1x2x4xf32, #tpu.memory_space<vmem>>, vector<1x1x4xf32>
    %54 = vector.shape_cast %53 : vector<1x1x4xf32> to vector<1x4xf32>
    %55 = vector.shape_cast %52 : vector<1x4xf32> to vector<1x1x4xf32>
    tpu.vector_store %arg6[%c0_68, %c0_69, %c0_70], %55 {strides = array<i32>} : memref<1x2x4xf32, #tpu.memory_space<vmem>>, vector<1x1x4xf32>,
    %56 = arith.mulf %48, %48 : vector<256x4xf32>
    %cst_71 = arith.constant dense<0.000000e+00> : vector<4xf32>
    %57 = vector.multi_reduction <add>, %56, %cst_71 [0] : vector<256x4xf32> to vector<4xf32>
    %58 = vector.shape_cast %57 : vector<4xf32> to vector<1x4xf32>
    %c0_72 = arith.constant 0 : index
    %c1_73 = arith.constant 1 : index
    %c0_74 = arith.constant 0 : index
    %59 = vector.load %arg6[%c0_72, %c1_73, %c0_74] : memref<1x2x4xf32, #tpu.memory_space<vmem>>, vector<1x1x4xf32>
    %60 = vector.shape_cast %59 : vector<1x1x4xf32> to vector<1x4xf32>
    %61 = vector.shape_cast %58 : vector<1x4xf32> to vector<1x1x4xf32>
    tpu.vector_store %arg6[%c0_72, %c1_73, %c0_74], %61 {strides = array<i32>} : memref<1x2x4xf32, #tpu.memory_space<vmem>>, vector<1x1x4xf32>,
    return
  }
  func.func @transform_0(%arg0: i32) -> (i32, i32, i32, i32) {
    %c0_i32 = arith.constant 0 : i32
    %c0_i32_0 = arith.constant 0 : i32
    %c0_i32_1 = arith.constant 0 : i32
    %c0_i32_2 = arith.constant 0 : i32
    return %arg0, %c0_i32, %c0_i32_0, %c0_i32_1 : i32, i32, i32, i32
  }
  func.func @transform_1(%arg0: i32) -> (i32, i32) {
    %c0_i32 = arith.constant 0 : i32
    %c0_i32_0 = arith.constant 0 : i32
    %c0_i32_1 = arith.constant 0 : i32
    return %c0_i32, %c0_i32_0 : i32, i32
  }
  func.func @transform_2(%arg0: i32) -> (i32, i32) {
    %c0_i32 = arith.constant 0 : i32
    %c0_i32_0 = arith.constant 0 : i32
    %c0_i32_1 = arith.constant 0 : i32
    return %c0_i32, %c0_i32_0 : i32, i32
  }
  func.func @transform_3(%arg0: i32) -> (i32, i32) {
    %c0_i32 = arith.constant 0 : i32
    %c0_i32_0 = arith.constant 0 : i32
    %c0_i32_1 = arith.constant 0 : i32
    return %c0_i32, %c0_i32_0 : i32, i32
  }
  func.func @transform_4(%arg0: i32) -> (i32, i32, i32, i32) {
    %c0_i32 = arith.constant 0 : i32
    %c0_i32_0 = arith.constant 0 : i32
    %c0_i32_1 = arith.constant 0 : i32
    %c0_i32_2 = arith.constant 0 : i32
    return %arg0, %c0_i32, %c0_i32_0, %c0_i32_1 : i32, i32, i32, i32
  }
  func.func @transform_5(%arg0: i32) -> (i32, i32, i32) {
    %c0_i32 = arith.constant 0 : i32
    %c0_i32_0 = arith.constant 0 : i32
    %c0_i32_1 = arith.constant 0 : i32
    return %arg0, %c0_i32, %c0_i32_0 : i32, i32, i32
  }
}

module attributes {stable_mosaic.version = 11 : i64} {
  func.func @_stage3_kernel(%arg0: i32, %arg1: memref<512x4xf32, #tpu.memory_space<vmem>>, %arg2: memref<1x4xf32, #tpu.memory_space<vmem>>, %arg3: memref<1x4xf32, #tpu.memory_space<vmem>>, %arg4: memref<4x8xf32, #tpu.memory_space<vmem>>, %arg5: memref<512x8xf32, #tpu.memory_space<vmem>>, %arg6: memref<1x2x8xf32, #tpu.memory_space<vmem>>) attributes {dimension_semantics = [#tpu.dimension_semantics<parallel>], iteration_bounds = array<i64: 1>, scalar_prefetch = 0 : i64, scratch_operands = 0 : i64, tpu.core_type = #tpu.core_type<tc>, window_params = [{transform_indices = @transform_0, window_bounds = array<i64: 512, 4>}, {pipeline_mode = #tpu.pipeline_mode<synchronous>, transform_indices = @transform_1, window_bounds = array<i64: 1, 4>}, {pipeline_mode = #tpu.pipeline_mode<synchronous>, transform_indices = @transform_2, window_bounds = array<i64: 1, 4>}, {pipeline_mode = #tpu.pipeline_mode<synchronous>, transform_indices = @transform_3, window_bounds = array<i64: 4, 8>}, {transform_indices = @transform_4, window_bounds = array<i64: 512, 8>}, {transform_indices = @transform_5, window_bounds = array<i64: 1, 2, 8>}]} {
    %c0 = arith.constant 0 : index
    %c0_0 = arith.constant 0 : index
    %0 = vector.load %arg1[%c0, %c0_0] : memref<512x4xf32, #tpu.memory_space<vmem>>, vector<512x4xf32>
    %c0_1 = arith.constant 0 : index
    %c0_2 = arith.constant 0 : index
    %1 = vector.load %arg2[%c0_1, %c0_2] : memref<1x4xf32, #tpu.memory_space<vmem>>, vector<1x4xf32>
    %2 = vector.broadcast %1 : vector<1x4xf32> to vector<512x4xf32>
    %3 = arith.mulf %0, %2 : vector<512x4xf32>
    %c0_3 = arith.constant 0 : index
    %c0_4 = arith.constant 0 : index
    %4 = vector.load %arg3[%c0_3, %c0_4] : memref<1x4xf32, #tpu.memory_space<vmem>>, vector<1x4xf32>
    %5 = vector.broadcast %4 : vector<1x4xf32> to vector<512x4xf32>
    %6 = arith.addf %3, %5 : vector<512x4xf32>
    %cst = arith.constant 0.000000e+00 : f32
    %7 = vector.broadcast %cst : f32 to vector<512x4xf32>
    %8 = arith.maximumf %6, %7 : vector<512x4xf32>
    %c0_5 = arith.constant 0 : index
    %c0_6 = arith.constant 0 : index
    %9 = vector.load %arg4[%c0_5, %c0_6] : memref<4x8xf32, #tpu.memory_space<vmem>>, vector<4x8xf32>
    %cst_7 = arith.constant dense<0.000000e+00> : vector<512x8xf32>
    %10 = tpu.matmul %8, %9, %cst_7 {dimension_numbers = #tpu.dot_dimension_numbers<[1], [0], [0], [1], [0, 0, 1, 1], [], []>} : vector<512x4xf32>, vector<4x8xf32>, vector<512x8xf32> -> vector<512x8xf32>
    %c0_8 = arith.constant 0 : index
    %c0_9 = arith.constant 0 : index
    %11 = vector.load %arg5[%c0_8, %c0_9] : memref<512x8xf32, #tpu.memory_space<vmem>>, vector<512x8xf32>
    tpu.vector_store %arg5[%c0_8, %c0_9], %10 {strides = array<i32>} : memref<512x8xf32, #tpu.memory_space<vmem>>, vector<512x8xf32>,
    %cst_10 = arith.constant dense<0.000000e+00> : vector<8xf32>
    %12 = vector.multi_reduction <add>, %10, %cst_10 [0] : vector<512x8xf32> to vector<8xf32>
    %13 = vector.shape_cast %12 : vector<8xf32> to vector<1x8xf32>
    %c0_11 = arith.constant 0 : index
    %c0_12 = arith.constant 0 : index
    %c0_13 = arith.constant 0 : index
    %14 = vector.load %arg6[%c0_11, %c0_12, %c0_13] : memref<1x2x8xf32, #tpu.memory_space<vmem>>, vector<1x1x8xf32>
    %15 = vector.shape_cast %14 : vector<1x1x8xf32> to vector<1x8xf32>
    %16 = vector.shape_cast %13 : vector<1x8xf32> to vector<1x1x8xf32>
    tpu.vector_store %arg6[%c0_11, %c0_12, %c0_13], %16 {strides = array<i32>} : memref<1x2x8xf32, #tpu.memory_space<vmem>>, vector<1x1x8xf32>,
    %17 = arith.mulf %10, %10 : vector<512x8xf32>
    %cst_14 = arith.constant dense<0.000000e+00> : vector<8xf32>
    %18 = vector.multi_reduction <add>, %17, %cst_14 [0] : vector<512x8xf32> to vector<8xf32>
    %19 = vector.shape_cast %18 : vector<8xf32> to vector<1x8xf32>
    %c0_15 = arith.constant 0 : index
    %c1 = arith.constant 1 : index
    %c0_16 = arith.constant 0 : index
    %20 = vector.load %arg6[%c0_15, %c1, %c0_16] : memref<1x2x8xf32, #tpu.memory_space<vmem>>, vector<1x1x8xf32>
    %21 = vector.shape_cast %20 : vector<1x1x8xf32> to vector<1x8xf32>
    %22 = vector.shape_cast %19 : vector<1x8xf32> to vector<1x1x8xf32>
    tpu.vector_store %arg6[%c0_15, %c1, %c0_16], %22 {strides = array<i32>} : memref<1x2x8xf32, #tpu.memory_space<vmem>>, vector<1x1x8xf32>,
    return
  }
  func.func @transform_0(%arg0: i32) -> (i32, i32) {
    %c0_i32 = arith.constant 0 : i32
    %c0_i32_0 = arith.constant 0 : i32
    return %arg0, %c0_i32 : i32, i32
  }
  func.func @transform_1(%arg0: i32) -> (i32, i32) {
    %c0_i32 = arith.constant 0 : i32
    %c0_i32_0 = arith.constant 0 : i32
    %c0_i32_1 = arith.constant 0 : i32
    return %c0_i32, %c0_i32_0 : i32, i32
  }
  func.func @transform_2(%arg0: i32) -> (i32, i32) {
    %c0_i32 = arith.constant 0 : i32
    %c0_i32_0 = arith.constant 0 : i32
    %c0_i32_1 = arith.constant 0 : i32
    return %c0_i32, %c0_i32_0 : i32, i32
  }
  func.func @transform_3(%arg0: i32) -> (i32, i32) {
    %c0_i32 = arith.constant 0 : i32
    %c0_i32_0 = arith.constant 0 : i32
    %c0_i32_1 = arith.constant 0 : i32
    return %c0_i32, %c0_i32_0 : i32, i32
  }
  func.func @transform_4(%arg0: i32) -> (i32, i32) {
    %c0_i32 = arith.constant 0 : i32
    %c0_i32_0 = arith.constant 0 : i32
    return %arg0, %c0_i32 : i32, i32
  }
  func.func @transform_5(%arg0: i32) -> (i32, i32, i32) {
    %c0_i32 = arith.constant 0 : i32
    %c0_i32_0 = arith.constant 0 : i32
    %c0_i32_1 = arith.constant 0 : i32
    return %arg0, %c0_i32, %c0_i32_0 : i32, i32, i32
  }
}

module attributes {stable_mosaic.version = 11 : i64} {
  func.func @_stage4_kernel(%arg0: i32, %arg1: memref<512x8xf32, #tpu.memory_space<vmem>>, %arg2: memref<512x4xf32, #tpu.memory_space<vmem>>, %arg3: memref<4x8xf32, #tpu.memory_space<vmem>>, %arg4: memref<1x8xf32, #tpu.memory_space<vmem>>, %arg5: memref<1x8xf32, #tpu.memory_space<vmem>>, %arg6: memref<1x8xf32, #tpu.memory_space<vmem>>, %arg7: memref<512x8xf32, #tpu.memory_space<vmem>>) attributes {dimension_semantics = [#tpu.dimension_semantics<parallel>], iteration_bounds = array<i64: 1>, scalar_prefetch = 0 : i64, scratch_operands = 0 : i64, tpu.core_type = #tpu.core_type<tc>, window_params = [{transform_indices = @transform_0, window_bounds = array<i64: 512, 8>}, {transform_indices = @transform_1, window_bounds = array<i64: 512, 4>}, {pipeline_mode = #tpu.pipeline_mode<synchronous>, transform_indices = @transform_2, window_bounds = array<i64: 4, 8>}, {pipeline_mode = #tpu.pipeline_mode<synchronous>, transform_indices = @transform_3, window_bounds = array<i64: 1, 8>}, {pipeline_mode = #tpu.pipeline_mode<synchronous>, transform_indices = @transform_4, window_bounds = array<i64: 1, 8>}, {pipeline_mode = #tpu.pipeline_mode<synchronous>, transform_indices = @transform_5, window_bounds = array<i64: 1, 8>}, {transform_indices = @transform_6, window_bounds = array<i64: 512, 8>}]} {
    %c0 = arith.constant 0 : index
    %c0_0 = arith.constant 0 : index
    %0 = vector.load %arg2[%c0, %c0_0] : memref<512x4xf32, #tpu.memory_space<vmem>>, vector<512x4xf32>
    %c0_1 = arith.constant 0 : index
    %c0_2 = arith.constant 0 : index
    %1 = vector.load %arg3[%c0_1, %c0_2] : memref<4x8xf32, #tpu.memory_space<vmem>>, vector<4x8xf32>
    %cst = arith.constant dense<0.000000e+00> : vector<512x8xf32>
    %2 = tpu.matmul %0, %1, %cst {dimension_numbers = #tpu.dot_dimension_numbers<[1], [0], [0], [1], [0, 0, 1, 1], [], []>} : vector<512x4xf32>, vector<4x8xf32>, vector<512x8xf32> -> vector<512x8xf32>
    %c0_3 = arith.constant 0 : index
    %c0_4 = arith.constant 0 : index
    %3 = vector.load %arg4[%c0_3, %c0_4] : memref<1x8xf32, #tpu.memory_space<vmem>>, vector<1x8xf32>
    %4 = vector.broadcast %3 : vector<1x8xf32> to vector<512x8xf32>
    %5 = arith.addf %2, %4 : vector<512x8xf32>
    %c0_5 = arith.constant 0 : index
    %c0_6 = arith.constant 0 : index
    %6 = vector.load %arg1[%c0_5, %c0_6] : memref<512x8xf32, #tpu.memory_space<vmem>>, vector<512x8xf32>
    %c0_7 = arith.constant 0 : index
    %c0_8 = arith.constant 0 : index
    %7 = vector.load %arg5[%c0_7, %c0_8] : memref<1x8xf32, #tpu.memory_space<vmem>>, vector<1x8xf32>
    %8 = vector.broadcast %7 : vector<1x8xf32> to vector<512x8xf32>
    %9 = arith.mulf %6, %8 : vector<512x8xf32>
    %c0_9 = arith.constant 0 : index
    %c0_10 = arith.constant 0 : index
    %10 = vector.load %arg6[%c0_9, %c0_10] : memref<1x8xf32, #tpu.memory_space<vmem>>, vector<1x8xf32>
    %11 = vector.broadcast %10 : vector<1x8xf32> to vector<512x8xf32>
    %12 = arith.addf %9, %11 : vector<512x8xf32>
    %13 = arith.addf %12, %5 : vector<512x8xf32>
    %cst_11 = arith.constant 0.000000e+00 : f32
    %14 = vector.broadcast %cst_11 : f32 to vector<512x8xf32>
    %15 = arith.maximumf %13, %14 : vector<512x8xf32>
    %c0_12 = arith.constant 0 : index
    %c0_13 = arith.constant 0 : index
    %16 = vector.load %arg7[%c0_12, %c0_13] : memref<512x8xf32, #tpu.memory_space<vmem>>, vector<512x8xf32>
    tpu.vector_store %arg7[%c0_12, %c0_13], %15 {strides = array<i32>} : memref<512x8xf32, #tpu.memory_space<vmem>>, vector<512x8xf32>,
    return
  }
  func.func @transform_0(%arg0: i32) -> (i32, i32) {
    %c0_i32 = arith.constant 0 : i32
    %c0_i32_0 = arith.constant 0 : i32
    return %arg0, %c0_i32 : i32, i32
  }
  func.func @transform_1(%arg0: i32) -> (i32, i32) {
    %c0_i32 = arith.constant 0 : i32
    %c0_i32_0 = arith.constant 0 : i32
    return %arg0, %c0_i32 : i32, i32
  }
  func.func @transform_2(%arg0: i32) -> (i32, i32) {
    %c0_i32 = arith.constant 0 : i32
    %c0_i32_0 = arith.constant 0 : i32
    %c0_i32_1 = arith.constant 0 : i32
    return %c0_i32, %c0_i32_0 : i32, i32
  }
  func.func @transform_3(%arg0: i32) -> (i32, i32) {
    %c0_i32 = arith.constant 0 : i32
    %c0_i32_0 = arith.constant 0 : i32
    %c0_i32_1 = arith.constant 0 : i32
    return %c0_i32, %c0_i32_0 : i32, i32
  }
  func.func @transform_4(%arg0: i32) -> (i32, i32) {
    %c0_i32 = arith.constant 0 : i32
    %c0_i32_0 = arith.constant 0 : i32
    %c0_i32_1 = arith.constant 0 : i32
    return %c0_i32, %c0_i32_0 : i32, i32
  }
  func.func @transform_5(%arg0: i32) -> (i32, i32) {
    %c0_i32 = arith.constant 0 : i32
    %c0_i32_0 = arith.constant 0 : i32
    %c0_i32_1 = arith.constant 0 : i32
    return %c0_i32, %c0_i32_0 : i32, i32
  }
  func.func @transform_6(%arg0: i32) -> (i32, i32) {
    %c0_i32 = arith.constant 0 : i32
    %c0_i32_0 = arith.constant 0 : i32
    return %arg0, %c0_i32 : i32, i32
  }
}

</mosaic_0001>

<bundles_post_ra>
// kernel: resnet101_bottleneck.4
= control target key start
LH: loop header
LB: loop body
LE: loop exit
PB: predicated region body
PF: predicated region fallthrough
CT: control target
= control target key end

     0   :  { %vm271_vm0 = vcmask 1043456   ;;  %vm78_vm1 = vcmask 31744   ;;  %vm857_vm2 = vcmask 24576   ;;  %s2156_s1 = inlined_call_operand.vmem [shape: f32[4,4], index: 1, kind: input, shape index: {}]   ;;  %s2157_s0 = inlined_call_operand.vmem [shape: f32[512,4], index: 0, kind: input, shape index: {}]   ;;  %s2158_s2 = inlined_call_operand.vmem [shape: f32[512,4], index: 2, kind: output, shape index: {0}]   ;;  %s2159_s3 = inlined_call_operand.vmem [shape: f32[1,2,4], index: 3, kind: output, shape index: {1}]  }
   0x1   :  { %v77_v0 = vld [vmem:[%s2156_s1] sm:$0xf]  ;;  %v14_v2 = vld [vmem:[%s2157_s0 + $0x8] sm:$0xff]  ;;  %v15_v3 = vld [vmem:[%s2157_s0 + $0x10] sm:$0xff] }
   0x2   :  { %v13_v1 = vld [vmem:[%s2157_s0] sm:$0xff]  ;;  %1195 = vmatprep.subr.msk.mxu0 %vm271_vm0, %v77_v0  ;;  %1293 = vmatprep.subr.msk.mxu1 %vm271_vm0, %v77_v0  ;;  %v16_v4 = vld [vmem:[%s2157_s0 + $0x18] sm:$0xff]  ;;  %v18_v6 = vld [vmem:[%s2157_s0 + $0x28] sm:$0xff] }
   0x3   :  { %1197 = vmatprep.mubr.msk.f32.mxu0 %vm78_vm1, %v13_v1  ;;  %1196 = vmatpush3.msk.msra.mxu0 %vm271_vm0, %v77_v0  ;;  %v17_v5 = vld [vmem:[%s2157_s0 + $0x20] sm:$0xff]  ;;  %v19_v7 = vld [vmem:[%s2157_s0 + $0x30] sm:$0xff]  ;;  %v46_v9 = vld [vmem:[%s2157_s0 + $0x108] sm:$0xff] }
   0x4   :  { %1198 = vmatmul.mubr.msk.f32.vlgmr.msra.gmra.mrb[0].mxu0 %vm78_vm1, %v14_v2  ;;  %1294 = vmatpush3.msk.msra.mxu1 %vm271_vm0, %v77_v0  ;;  %v45_v8 = vld [vmem:[%s2157_s0 + $0x100] sm:$0xff]  ;;  %v47_v10 = vld [vmem:[%s2157_s0 + $0x110] sm:$0xff]  ;;  %v20_v11 = vld [vmem:[%s2157_s0 + $0x38] sm:$0xff] }
   0x5   :  { %1200 = vmatprep.mubr.msk.f32.mxu0 %vm78_vm1, %v15_v3  ;;  %1245 = vmatprep.mubr.msk.f32.mxu1 %vm78_vm1, %v45_v8  ;;  %v21_v12 = vld [vmem:[%s2157_s0 + $0x40] sm:$0xff]  ;;  %v48_v13 = vld [vmem:[%s2157_s0 + $0x118] sm:$0xff]  ;;  %v22_v15 = vld [vmem:[%s2157_s0 + $0x48] sm:$0xff] }
   0x6   :  { %1246 = vmatmul.mubr.msk.f32.vlgmr.msra.gmra.mrb[0].mxu1 %vm78_vm1, %v46_v9  ;;  %v49_v14 = vld [vmem:[%s2157_s0 + $0x120] sm:$0xff]  ;;  %v23_v16 = vld [vmem:[%s2157_s0 + $0x50] sm:$0xff]  ;;  %v50_v17 = vld [vmem:[%s2157_s0 + $0x128] sm:$0xff] }
   0x7   :  { %1248 = vmatprep.mubr.msk.f32.mxu1 %vm78_vm1, %v47_v10  ;;  %v51_v18 = vld [vmem:[%s2157_s0 + $0x130] sm:$0xff]  ;;  %v24_v19 = vld [vmem:[%s2157_s0 + $0x58] sm:$0xff]  ;;  %v25_v20 = vld [vmem:[%s2157_s0 + $0x60] sm:$0xff] }
   0x8   :  { %1201 = vmatmul.mubr.msk.f32.gmra.mrb[2].mxu0 %vm78_vm1, %v16_v4  ;;  %v52_v21 = vld [vmem:[%s2157_s0 + $0x138] sm:$0xff]  ;;  %v53_v22 = vld [vmem:[%s2157_s0 + $0x140] sm:$0xff]  ;;  %v26_v23 = vld [vmem:[%s2157_s0 + $0x68] sm:$0xff] }
   0x9   :  { %1203 = vmatprep.mubr.msk.f32.mxu0 %vm78_vm1, %v17_v5  ;;  %v27_v24 = vld [vmem:[%s2157_s0 + $0x70] sm:$0xff]  ;;  %v54_v25 = vld [vmem:[%s2157_s0 + $0x148] sm:$0xff]  ;;  %v28_v27 = vld [vmem:[%s2157_s0 + $0x78] sm:$0xff] }
   0xa   :  { %1249 = vmatmul.mubr.msk.f32.gmra.mrb[2].mxu1 %vm78_vm1, %v48_v13  ;;  %v55_v26 = vld [vmem:[%s2157_s0 + $0x150] sm:$0xff]  ;;  %v29_v28 = vld [vmem:[%s2157_s0 + $0x80] sm:$0xff]  ;;  %v56_v29 = vld [vmem:[%s2157_s0 + $0x158] sm:$0xff] }
   0xb   :  { %1251 = vmatprep.mubr.msk.f32.mxu1 %vm78_vm1, %v49_v14  ;;  %v57_v30 = vld [vmem:[%s2157_s0 + $0x160] sm:$0xff]  ;;  %v30_v31 = vld [vmem:[%s2157_s0 + $0x88] sm:$0xff]  ;;  %v31_v32 = vld [vmem:[%s2157_s0 + $0x90] sm:$0xff] }
   0xc   :  { %1204 = vmatmul.mubr.msk.f32.gmra.mrb[4].mxu0 %vm78_vm1, %v18_v6  ;;  %v58_v33 = vld [vmem:[%s2157_s0 + $0x168] sm:$0xff]  ;;  %v59_v34 = vld [vmem:[%s2157_s0 + $0x170] sm:$0xff]  ;;  %v32_v35 = vld [vmem:[%s2157_s0 + $0x98] sm:$0xff] }
   0xd   :  { %1206 = vmatprep.mubr.msk.f32.mxu0 %vm78_vm1, %v19_v7  ;;  %v33_v36 = vld [vmem:[%s2157_s0 + $0xa0] sm:$0xff]  ;;  %v60_v37 = vld [vmem:[%s2157_s0 + $0x178] sm:$0xff]  ;;  %v34_v39 = vld [vmem:[%s2157_s0 + $0xa8] sm:$0xff] }
   0xe   :  { %1252 = vmatmul.mubr.msk.f32.gmra.mrb[4].mxu1 %vm78_vm1, %v50_v17  ;;  %v61_v38 = vld [vmem:[%s2157_s0 + $0x180] sm:$0xff]  ;;  %v35_v40 = vld [vmem:[%s2157_s0 + $0xb0] sm:$0xff]  ;;  %v62_v41 = vld [vmem:[%s2157_s0 + $0x188] sm:$0xff] }
   0xf   :  { %1254 = vmatprep.mubr.msk.f32.mxu1 %vm78_vm1, %v51_v18  ;;  %v63_v42 = vld [vmem:[%s2157_s0 + $0x190] sm:$0xff]  ;;  %v36_v43 = vld [vmem:[%s2157_s0 + $0xb8] sm:$0xff]  ;;  %v37_v44 = vld [vmem:[%s2157_s0 + $0xc0] sm:$0xff] }
  0x10   :  { %1207 = vmatmul.mubr.msk.f32.gmra.mrb[6].mxu0 %vm78_vm1, %v20_v11  ;;  %v64_v45 = vld [vmem:[%s2157_s0 + $0x198] sm:$0xff]  ;;  %v65_v46 = vld [vmem:[%s2157_s0 + $0x1a0] sm:$0xff]  ;;  %v38_v47 = vld [vmem:[%s2157_s0 + $0xc8] sm:$0xff] }
  0x11   :  { %1209 = vmatprep.mubr.msk.f32.mxu0 %vm78_vm1, %v21_v12  ;;  %v39_v48 = vld [vmem:[%s2157_s0 + $0xd0] sm:$0xff]  ;;  %v66_v49 = vld [vmem:[%s2157_s0 + $0x1a8] sm:$0xff]  ;;  %v40_v51 = vld [vmem:[%s2157_s0 + $0xd8] sm:$0xff] }
  0x12   :  { %1255 = vmatmul.mubr.msk.f32.gmra.mrb[6].mxu1 %vm78_vm1, %v52_v21  ;;  %v67_v50 = vld [vmem:[%s2157_s0 + $0x1b0] sm:$0xff]  ;;  %v41_v52 = vld [vmem:[%s2157_s0 + $0xe0] sm:$0xff]  ;;  %v68_v53 = vld [vmem:[%s2157_s0 + $0x1b8] sm:$0xff] }
  0x13   :  { %1257 = vmatprep.mubr.msk.f32.mxu1 %vm78_vm1, %v53_v22  ;;  %v69_v54 = vld [vmem:[%s2157_s0 + $0x1c0] sm:$0xff]  ;;  %v42_v55 = vld [vmem:[%s2157_s0 + $0xe8] sm:$0xff]  ;;  %v43_v56 = vld [vmem:[%s2157_s0 + $0xf0] sm:$0xff] }
  0x14   :  { %1210 = vmatmul.mubr.msk.f32.gmra.mrb[8].mxu0 %vm78_vm1, %v22_v15  ;;  %v70_v57 = vld [vmem:[%s2157_s0 + $0x1c8] sm:$0xff]  ;;  %v71_v58 = vld [vmem:[%s2157_s0 + $0x1d0] sm:$0xff]  ;;  %v44_v59 = vld [vmem:[%s2157_s0 + $0xf8] sm:$0xff] }
  0x15   :  { %1212 = vmatprep.mubr.msk.f32.mxu0 %vm78_vm1, %v23_v16  ;;  %v72_v60 = vld [vmem:[%s2157_s0 + $0x1d8] sm:$0xff]  ;;  %v73_v61 = vld [vmem:[%s2157_s0 + $0x1e0] sm:$0xff]  ;;  %v74_v62 = vld [vmem:[%s2157_s0 + $0x1e8] sm:$0xff] }
  0x16   :  { %1258 = vmatmul.mubr.msk.f32.gmra.mrb[8].mxu1 %vm78_vm1, %v54_v25  ;;  %v75_v63 = vld [vmem:[%s2157_s0 + $0x1f0] sm:$0xff]  ;;  %v76_v0 = vld [vmem:[%s2157_s0 + $0x1f8] sm:$0xff] }
  0x17   :  { %1260 = vmatprep.mubr.msk.f32.mxu1 %vm78_vm1, %v55_v26 }
  0x18   :  { %1213 = vmatmul.mubr.msk.f32.gmra.mrb[10].mxu0 %vm78_vm1, %v24_v19 }
  0x19   :  { %1215 = vmatprep.mubr.msk.f32.mxu0 %vm78_vm1, %v25_v20 }
  0x1a   :  { %1261 = vmatmul.mubr.msk.f32.gmra.mrb[10].mxu1 %vm78_vm1, %v56_v29 }
  0x1b   :  { %1263 = vmatprep.mubr.msk.f32.mxu1 %vm78_vm1, %v57_v30 }
  0x1c   :  { %1216 = vmatmul.mubr.msk.f32.gmra.mrb[12].mxu0 %vm78_vm1, %v26_v23 }
  0x1d   :  { %1218 = vmatprep.mubr.msk.f32.mxu0 %vm78_vm1, %v27_v24 }
  0x1e   :  { %1264 = vmatmul.mubr.msk.f32.gmra.mrb[12].mxu1 %vm78_vm1, %v58_v33 }
  0x1f   :  { %1266 = vmatprep.mubr.msk.f32.mxu1 %vm78_vm1, %v59_v34 }
  0x20   :  { %1219 = vmatmul.mubr.msk.f32.gmra.mrb[14].mxu0 %vm78_vm1, %v28_v27 }
  0x21   :  { %1221 = vmatprep.mubr.msk.f32.mxu0 %vm78_vm1, %v29_v28 }
  0x22   :  { %1267 = vmatmul.mubr.msk.f32.gmra.mrb[14].mxu1 %vm78_vm1, %v60_v37 }
  0x23   :  { %1269 = vmatprep.mubr.msk.f32.mxu1 %vm78_vm1, %v61_v38 }
  0x24   :  { %1222 = vmatmul.mubr.msk.f32.gmra.mrb[16].mxu0 %vm78_vm1, %v30_v31 }
  0x25   :  { %1224 = vmatprep.mubr.msk.f32.mxu0 %vm78_vm1, %v31_v32 }
  0x26   :  { %1270 = vmatmul.mubr.msk.f32.gmra.mrb[16].mxu1 %vm78_vm1, %v62_v41 }
  0x27   :  { %1272 = vmatprep.mubr.msk.f32.mxu1 %vm78_vm1, %v63_v42 }
  0x28   :  { %1225 = vmatmul.mubr.msk.f32.gmra.mrb[18].mxu0 %vm78_vm1, %v32_v35 }
  0x29   :  { %1227 = vmatprep.mubr.msk.f32.mxu0 %vm78_vm1, %v33_v36 }
  0x2a   :  { %1273 = vmatmul.mubr.msk.f32.gmra.mrb[18].mxu1 %vm78_vm1, %v64_v45 }
  0x2b   :  { %1275 = vmatprep.mubr.msk.f32.mxu1 %vm78_vm1, %v65_v46 }
  0x2c   :  { %1228 = vmatmul.mubr.msk.f32.gmra.mrb[20].mxu0 %vm78_vm1, %v34_v39 }
  0x2d   :  { %1230 = vmatprep.mubr.msk.f32.mxu0 %vm78_vm1, %v35_v40 }
  0x2e   :  { %1276 = vmatmul.mubr.msk.f32.gmra.mrb[20].mxu1 %vm78_vm1, %v66_v49 }
  0x2f   :  { %1278 = vmatprep.mubr.msk.f32.mxu1 %vm78_vm1, %v67_v50 }
  0x30   :  { %1231 = vmatmul.mubr.msk.f32.gmra.mrb[22].mxu0 %vm78_vm1, %v36_v43 }
  0x31   :  { %1233 = vmatprep.mubr.msk.f32.mxu0 %vm78_vm1, %v37_v44 }
  0x32   :  { %1279 = vmatmul.mubr.msk.f32.gmra.mrb[22].mxu1 %vm78_vm1, %v68_v53 }
  0x33   :  { %1281 = vmatprep.mubr.msk.f32.mxu1 %vm78_vm1, %v69_v54 }
  0x34   :  { %1234 = vmatmul.mubr.msk.f32.gmra.mrb[24].mxu0 %vm78_vm1, %v38_v47 }
  0x35   :  { %1236 = vmatprep.mubr.msk.f32.mxu0 %vm78_vm1, %v39_v48 }
  0x36   :  { %1282 = vmatmul.mubr.msk.f32.gmra.mrb[24].mxu1 %vm78_vm1, %v70_v57 }
  0x37   :  { %1284 = vmatprep.mubr.msk.f32.mxu1 %vm78_vm1, %v71_v58 }
  0x38   :  { %1237 = vmatmul.mubr.msk.f32.gmra.mrb[26].mxu0 %vm78_vm1, %v40_v51 }
  0x39   :  { %1239 = vmatprep.mubr.msk.f32.mxu0 %vm78_vm1, %v41_v52 }
  0x3a   :  { %1285 = vmatmul.mubr.msk.f32.gmra.mrb[26].mxu1 %vm78_vm1, %v72_v60 }
  0x3b   :  { %1287 = vmatprep.mubr.msk.f32.mxu1 %vm78_vm1, %v73_v61 }
  0x3c   :  { %1240 = vmatmul.mubr.msk.f32.gmra.mrb[28].mxu0 %vm78_vm1, %v42_v55 }
  0x3d   :  { %1242 = vmatprep.mubr.msk.f32.mxu0 %vm78_vm1, %v43_v56 }
  0x3e   :  { %1288 = vmatmul.mubr.msk.f32.gmra.mrb[28].mxu1 %vm78_vm1, %v74_v62 }
  0x3f   :  { %1290 = vmatprep.mubr.msk.f32.mxu1 %vm78_vm1, %v75_v63 }
  0x40   :  { %1243 = vmatmul.mubr.msk.f32.gmra.mrb[30].mxu0 %vm78_vm1, %v44_v59 }
  0x42   :  { %1291 = vmatmul.mubr.msk.f32.gmra.mrb[30].mxu1 %vm78_vm1, %v76_v0 }
  0xd7   :  { %v1199_v1 = vpop.f32.mrb[0].mxu0 }
  0xd8   :  { %661 = vst.msk [vmem:[%s2158_s2 + $0x8] sm:$0xff] %vm78_vm1, %v1199_v1  ;;  %v725_v2 = vsel %vm78_vm1, %v1199_v1, 0.0  ;;  %v860_v3 = vmul.f32 %v1199_v1, %v1199_v1  ;;  %v341_v4 = vpop.f32.mrb[1].mxu0 }
  0xd9   :  { %660 = vst.msk [vmem:[%s2158_s2] sm:$0xff] %vm78_vm1, %v341_v4  ;;  %v724_v5 = vsel %vm78_vm1, %v341_v4, 0.0  ;;  %v859_v6 = vmul.f32 %v341_v4, %v341_v4  ;;  %v1607_v27 = vpop.f32.mrb[0].mxu1 }
  0xda   :  { %v924_v7 = vsel %vm78_vm1, %v860_v3, 0.0  ;;  %v726_v8 = vadd.f32 %v725_v2, %v724_v5  ;;  %693 = vst.msk [vmem:[%s2158_s2 + $0x108] sm:$0xff] %vm78_vm1, %v1607_v27  ;;  %v1614_v30 = vpop.f32.mrb[1].mxu1 }
  0xdb   :  { %v923_v9 = vsel %vm78_vm1, %v859_v6, 0.0  ;;  %v1202_v10 = vpop.f32.mrb[2].mxu0  ;;  %692 = vst.msk [vmem:[%s2158_s2 + $0x100] sm:$0xff] %vm78_vm1, %v1614_v30 }
  0xdc   :  { %v925_v11 = vadd.f32 %v924_v7, %v923_v9  ;;  %663 = vst.msk [vmem:[%s2158_s2 + $0x18] sm:$0xff] %vm78_vm1, %v1202_v10  ;;  %v351_v12 = vpop.f32.mrb[3].mxu0  ;;  %v862_v13 = vmul.f32 %v1202_v10, %v1202_v10  ;;  %v729_v17 = vsel %vm78_vm1, %v1202_v10, 0.0 }
  0xdd   :  { %662 = vst.msk [vmem:[%s2158_s2 + $0x10] sm:$0xff] %vm78_vm1, %v351_v12  ;;  %v727_v14 = vsel %vm78_vm1, %v351_v12, 0.0  ;;  %v861_v15 = vmul.f32 %v351_v12, %v351_v12  ;;  %v1633_v41 = vpop.f32.mrb[2].mxu1 }
  0xde   :  { %v728_v16 = vadd.f32 %v727_v14, %v726_v8  ;;  %v928_v23 = vsel %vm78_vm1, %v862_v13, 0.0  ;;  %695 = vst.msk [vmem:[%s2158_s2 + $0x118] sm:$0xff] %vm78_vm1, %v1633_v41  ;;  %v1640_v44 = vpop.f32.mrb[3].mxu1 }
  0xdf   :  { %v926_v18 = vsel %vm78_vm1, %v861_v15, 0.0  ;;  %v1205_v19 = vpop.f32.mrb[4].mxu0  ;;  %694 = vst.msk [vmem:[%s2158_s2 + $0x110] sm:$0xff] %vm78_vm1, %v1640_v44 }
  0xe0   :  { %v927_v20 = vadd.f32 %v926_v18, %v925_v11  ;;  %665 = vst.msk [vmem:[%s2158_s2 + $0x28] sm:$0xff] %vm78_vm1, %v1205_v19  ;;  %v361_v21 = vpop.f32.mrb[5].mxu0  ;;  %v730_v22 = vadd.f32 %v729_v17, %v728_v16  ;;  %v864_v24 = vmul.f32 %v1205_v19, %v1205_v19  ;;  %v733_v31 = vsel %vm78_vm1, %v1205_v19, 0.0 }
  0xe1   :  { %664 = vst.msk [vmem:[%s2158_s2 + $0x20] sm:$0xff] %vm78_vm1, %v361_v21  ;;  %v731_v25 = vsel %vm78_vm1, %v361_v21, 0.0  ;;  %v863_v26 = vmul.f32 %v361_v21, %v361_v21  ;;  %v1659_v55 = vpop.f32.mrb[4].mxu1 }
  0xe2   :  { %v732_v28 = vadd.f32 %v731_v25, %v730_v22  ;;  %v929_v29 = vadd.f32 %v928_v23, %v927_v20  ;;  %v932_v37 = vsel %vm78_vm1, %v864_v24, 0.0  ;;  %697 = vst.msk [vmem:[%s2158_s2 + $0x128] sm:$0xff] %vm78_vm1, %v1659_v55  ;;  %v1666_v58 = vpop.f32.mrb[5].mxu1 }
  0xe3   :  { %v930_v32 = vsel %vm78_vm1, %v863_v26, 0.0  ;;  %v1208_v33 = vpop.f32.mrb[6].mxu0  ;;  %696 = vst.msk [vmem:[%s2158_s2 + $0x120] sm:$0xff] %vm78_vm1, %v1666_v58 }
  0xe4   :  { %v931_v34 = vadd.f32 %v930_v32, %v929_v29  ;;  %667 = vst.msk [vmem:[%s2158_s2 + $0x38] sm:$0xff] %vm78_vm1, %v1208_v33  ;;  %v371_v35 = vpop.f32.mrb[7].mxu0  ;;  %v734_v36 = vadd.f32 %v733_v31, %v732_v28  ;;  %v866_v38 = vmul.f32 %v1208_v33, %v1208_v33  ;;  %v737_v45 = vsel %vm78_vm1, %v1208_v33, 0.0 }
  0xe5   :  { %666 = vst.msk [vmem:[%s2158_s2 + $0x30] sm:$0xff] %vm78_vm1, %v371_v35  ;;  %v735_v39 = vsel %vm78_vm1, %v371_v35, 0.0  ;;  %v865_v40 = vmul.f32 %v371_v35, %v371_v35  ;;  %v1685_v5 = vpop.f32.mrb[6].mxu1 }
  0xe6   :  { %v736_v42 = vadd.f32 %v735_v39, %v734_v36  ;;  %v933_v43 = vadd.f32 %v932_v37, %v931_v34  ;;  %v936_v51 = vsel %vm78_vm1, %v866_v38, 0.0  ;;  %699 = vst.msk [vmem:[%s2158_s2 + $0x138] sm:$0xff] %vm78_vm1, %v1685_v5  ;;  %v1692_v8 = vpop.f32.mrb[7].mxu1 }
  0xe7   :  { %v934_v46 = vsel %vm78_vm1, %v865_v40, 0.0  ;;  %v1211_v47 = vpop.f32.mrb[8].mxu0  ;;  %698 = vst.msk [vmem:[%s2158_s2 + $0x130] sm:$0xff] %vm78_vm1, %v1692_v8 }
  0xe8   :  { %v935_v48 = vadd.f32 %v934_v46, %v933_v43  ;;  %669 = vst.msk [vmem:[%s2158_s2 + $0x48] sm:$0xff] %vm78_vm1, %v1211_v47  ;;  %v381_v49 = vpop.f32.mrb[9].mxu0  ;;  %v738_v50 = vadd.f32 %v737_v45, %v736_v42  ;;  %v868_v52 = vmul.f32 %v1211_v47, %v1211_v47  ;;  %v741_v59 = vsel %vm78_vm1, %v1211_v47, 0.0 }
  0xe9   :  { %668 = vst.msk [vmem:[%s2158_s2 + $0x40] sm:$0xff] %vm78_vm1, %v381_v49  ;;  %v739_v53 = vsel %vm78_vm1, %v381_v49, 0.0  ;;  %v867_v54 = vmul.f32 %v381_v49, %v381_v49  ;;  %v1711_v19 = vpop.f32.mrb[8].mxu1 }
  0xea   :  { %v740_v56 = vadd.f32 %v739_v53, %v738_v50  ;;  %v937_v57 = vadd.f32 %v936_v51, %v935_v48  ;;  %v940_v1 = vsel %vm78_vm1, %v868_v52, 0.0  ;;  %701 = vst.msk [vmem:[%s2158_s2 + $0x148] sm:$0xff] %vm78_vm1, %v1711_v19  ;;  %v1718_v22 = vpop.f32.mrb[9].mxu1 }
  0xeb   :  { %v938_v60 = vsel %vm78_vm1, %v867_v54, 0.0  ;;  %v1214_v61 = vpop.f32.mrb[10].mxu0  ;;  %700 = vst.msk [vmem:[%s2158_s2 + $0x140] sm:$0xff] %vm78_vm1, %v1718_v22 }
  0xec   :  { %v939_v62 = vadd.f32 %v938_v60, %v937_v57  ;;  %671 = vst.msk [vmem:[%s2158_s2 + $0x58] sm:$0xff] %vm78_vm1, %v1214_v61  ;;  %v391_v63 = vpop.f32.mrb[11].mxu0  ;;  %v742_v0 = vadd.f32 %v741_v59, %v740_v56  ;;  %v870_v2 = vmul.f32 %v1214_v61, %v1214_v61  ;;  %v745_v9 = vsel %vm78_vm1, %v1214_v61, 0.0 }
  0xed   :  { %670 = vst.msk [vmem:[%s2158_s2 + $0x50] sm:$0xff] %vm78_vm1, %v391_v63  ;;  %v743_v3 = vsel %vm78_vm1, %v391_v63, 0.0  ;;  %v869_v4 = vmul.f32 %v391_v63, %v391_v63  ;;  %v1737_v35 = vpop.f32.mrb[10].mxu1 }
  0xee   :  { %v744_v6 = vadd.f32 %v743_v3, %v742_v0  ;;  %v941_v7 = vadd.f32 %v940_v1, %v939_v62  ;;  %v944_v15 = vsel %vm78_vm1, %v870_v2, 0.0  ;;  %703 = vst.msk [vmem:[%s2158_s2 + $0x158] sm:$0xff] %vm78_vm1, %v1737_v35  ;;  %v1744_v38 = vpop.f32.mrb[11].mxu1 }
  0xef   :  { %v942_v10 = vsel %vm78_vm1, %v869_v4, 0.0  ;;  %v1217_v11 = vpop.f32.mrb[12].mxu0  ;;  %702 = vst.msk [vmem:[%s2158_s2 + $0x150] sm:$0xff] %vm78_vm1, %v1744_v38 }
  0xf0   :  { %v943_v12 = vadd.f32 %v942_v10, %v941_v7  ;;  %673 = vst.msk [vmem:[%s2158_s2 + $0x68] sm:$0xff] %vm78_vm1, %v1217_v11  ;;  %v401_v13 = vpop.f32.mrb[13].mxu0  ;;  %v746_v14 = vadd.f32 %v745_v9, %v744_v6  ;;  %v872_v16 = vmul.f32 %v1217_v11, %v1217_v11  ;;  %v749_v23 = vsel %vm78_vm1, %v1217_v11, 0.0 }
  0xf1   :  { %672 = vst.msk [vmem:[%s2158_s2 + $0x60] sm:$0xff] %vm78_vm1, %v401_v13  ;;  %v747_v17 = vsel %vm78_vm1, %v401_v13, 0.0  ;;  %v871_v18 = vmul.f32 %v401_v13, %v401_v13  ;;  %v1763_v51 = vpop.f32.mrb[12].mxu1 }
  0xf2   :  { %v748_v20 = vadd.f32 %v747_v17, %v746_v14  ;;  %v945_v21 = vadd.f32 %v944_v15, %v943_v12  ;;  %v948_v31 = vsel %vm78_vm1, %v872_v16, 0.0  ;;  %705 = vst.msk [vmem:[%s2158_s2 + $0x168] sm:$0xff] %vm78_vm1, %v1763_v51  ;;  %v1770_v54 = vpop.f32.mrb[13].mxu1 }
  0xf3   :  { %v946_v24 = vsel %vm78_vm1, %v871_v18, 0.0  ;;  %v1220_v25 = vpop.f32.mrb[14].mxu0  ;;  %704 = vst.msk [vmem:[%s2158_s2 + $0x160] sm:$0xff] %vm78_vm1, %v1770_v54 }
  0xf4   :  { %v947_v26 = vadd.f32 %v946_v24, %v945_v21  ;;  %675 = vst.msk [vmem:[%s2158_s2 + $0x78] sm:$0xff] %vm78_vm1, %v1220_v25  ;;  %v411_v28 = vpop.f32.mrb[15].mxu0  ;;  %v750_v29 = vadd.f32 %v749_v23, %v748_v20  ;;  %v874_v32 = vmul.f32 %v1220_v25, %v1220_v25  ;;  %v753_v39 = vsel %vm78_vm1, %v1220_v25, 0.0 }
  0xf5   :  { %674 = vst.msk [vmem:[%s2158_s2 + $0x70] sm:$0xff] %vm78_vm1, %v411_v28  ;;  %v751_v33 = vsel %vm78_vm1, %v411_v28, 0.0  ;;  %v873_v34 = vmul.f32 %v411_v28, %v411_v28  ;;  %v1789_v3 = vpop.f32.mrb[14].mxu1 }
  0xf6   :  { %v752_v36 = vadd.f32 %v751_v33, %v750_v29  ;;  %v949_v37 = vadd.f32 %v948_v31, %v947_v26  ;;  %v952_v47 = vsel %vm78_vm1, %v874_v32, 0.0  ;;  %707 = vst.msk [vmem:[%s2158_s2 + $0x178] sm:$0xff] %vm78_vm1, %v1789_v3  ;;  %v1796_v7 = vpop.f32.mrb[15].mxu1 }
  0xf7   :  { %v950_v40 = vsel %vm78_vm1, %v873_v34, 0.0  ;;  %v1223_v42 = vpop.f32.mrb[16].mxu0  ;;  %706 = vst.msk [vmem:[%s2158_s2 + $0x170] sm:$0xff] %vm78_vm1, %v1796_v7 }
  0xf8   :  { %v951_v43 = vadd.f32 %v950_v40, %v949_v37  ;;  %677 = vst.msk [vmem:[%s2158_s2 + $0x88] sm:$0xff] %vm78_vm1, %v1223_v42  ;;  %v421_v45 = vpop.f32.mrb[17].mxu0  ;;  %v754_v46 = vadd.f32 %v753_v39, %v752_v36  ;;  %v876_v48 = vmul.f32 %v1223_v42, %v1223_v42  ;;  %v757_v56 = vsel %vm78_vm1, %v1223_v42, 0.0 }
  0xf9   :  { %676 = vst.msk [vmem:[%s2158_s2 + $0x80] sm:$0xff] %vm78_vm1, %v421_v45  ;;  %v755_v49 = vsel %vm78_vm1, %v421_v45, 0.0  ;;  %v875_v50 = vmul.f32 %v421_v45, %v421_v45  ;;  %v1815_v20 = vpop.f32.mrb[16].mxu1 }
  0xfa   :  { %v756_v52 = vadd.f32 %v755_v49, %v754_v46  ;;  %v953_v53 = vadd.f32 %v952_v47, %v951_v43  ;;  %v956_v63 = vsel %vm78_vm1, %v876_v48, 0.0  ;;  %709 = vst.msk [vmem:[%s2158_s2 + $0x188] sm:$0xff] %vm78_vm1, %v1815_v20  ;;  %v1822_v24 = vpop.f32.mrb[17].mxu1 }
  0xfb   :  { %v954_v57 = vsel %vm78_vm1, %v875_v50, 0.0  ;;  %v1226_v59 = vpop.f32.mrb[18].mxu0  ;;  %708 = vst.msk [vmem:[%s2158_s2 + $0x180] sm:$0xff] %vm78_vm1, %v1822_v24 }
  0xfc   :  { %v955_v60 = vadd.f32 %v954_v57, %v953_v53  ;;  %679 = vst.msk [vmem:[%s2158_s2 + $0x98] sm:$0xff] %vm78_vm1, %v1226_v59  ;;  %v431_v61 = vpop.f32.mrb[19].mxu0  ;;  %v758_v62 = vadd.f32 %v757_v56, %v756_v52  ;;  %v878_v0 = vmul.f32 %v1226_v59, %v1226_v59  ;;  %v761_v9 = vsel %vm78_vm1, %v1226_v59, 0.0 }
  0xfd   :  { %678 = vst.msk [vmem:[%s2158_s2 + $0x90] sm:$0xff] %vm78_vm1, %v431_v61  ;;  %v759_v1 = vsel %vm78_vm1, %v431_v61, 0.0  ;;  %v877_v2 = vmul.f32 %v431_v61, %v431_v61  ;;  %v1841_v39 = vpop.f32.mrb[18].mxu1 }
  0xfe   :  { %v760_v4 = vadd.f32 %v759_v1, %v758_v62  ;;  %v957_v6 = vadd.f32 %v956_v63, %v955_v60  ;;  %v960_v15 = vsel %vm78_vm1, %v878_v0, 0.0  ;;  %711 = vst.msk [vmem:[%s2158_s2 + $0x198] sm:$0xff] %vm78_vm1, %v1841_v39  ;;  %v1848_v43 = vpop.f32.mrb[19].mxu1 }
  0xff   :  { %v958_v10 = vsel %vm78_vm1, %v877_v2, 0.0  ;;  %v1229_v11 = vpop.f32.mrb[20].mxu0  ;;  %710 = vst.msk [vmem:[%s2158_s2 + $0x190] sm:$0xff] %vm78_vm1, %v1848_v43 }
 0x100   :  { %v959_v12 = vadd.f32 %v958_v10, %v957_v6  ;;  %681 = vst.msk [vmem:[%s2158_s2 + $0xa8] sm:$0xff] %vm78_vm1, %v1229_v11  ;;  %v441_v13 = vpop.f32.mrb[21].mxu0  ;;  %v762_v14 = vadd.f32 %v761_v9, %v760_v4  ;;  %v880_v16 = vmul.f32 %v1229_v11, %v1229_v11  ;;  %v765_v25 = vsel %vm78_vm1, %v1229_v11, 0.0 }
 0x101   :  { %680 = vst.msk [vmem:[%s2158_s2 + $0xa0] sm:$0xff] %vm78_vm1, %v441_v13  ;;  %v763_v17 = vsel %vm78_vm1, %v441_v13, 0.0  ;;  %v879_v18 = vmul.f32 %v441_v13, %v441_v13  ;;  %v1867_v59 = vpop.f32.mrb[20].mxu1 }
 0x102   :  { %v764_v21 = vadd.f32 %v763_v17, %v762_v14  ;;  %v961_v23 = vadd.f32 %v960_v15, %v959_v12  ;;  %v964_v33 = vsel %vm78_vm1, %v880_v16, 0.0  ;;  %713 = vst.msk [vmem:[%s2158_s2 + $0x1a8] sm:$0xff] %vm78_vm1, %v1867_v59  ;;  %v1874_v62 = vpop.f32.mrb[21].mxu1 }
 0x103   :  { %v962_v26 = vsel %vm78_vm1, %v879_v18, 0.0  ;;  %v1232_v28 = vpop.f32.mrb[22].mxu0  ;;  %712 = vst.msk [vmem:[%s2158_s2 + $0x1a0] sm:$0xff] %vm78_vm1, %v1874_v62 }
 0x104   :  { %v963_v29 = vadd.f32 %v962_v26, %v961_v23  ;;  %683 = vst.msk [vmem:[%s2158_s2 + $0xb8] sm:$0xff] %vm78_vm1, %v1232_v28  ;;  %v451_v31 = vpop.f32.mrb[23].mxu0  ;;  %v766_v32 = vadd.f32 %v765_v25, %v764_v21  ;;  %v882_v34 = vmul.f32 %v1232_v28, %v1232_v28  ;;  %v769_v45 = vsel %vm78_vm1, %v1232_v28, 0.0 }
 0x105   :  { %682 = vst.msk [vmem:[%s2158_s2 + $0xb0] sm:$0xff] %vm78_vm1, %v451_v31  ;;  %v767_v36 = vsel %vm78_vm1, %v451_v31, 0.0  ;;  %v881_v37 = vmul.f32 %v451_v31, %v451_v31  ;;  %v1893_v13 = vpop.f32.mrb[22].mxu1 }
 0x106   :  { %v768_v40 = vadd.f32 %v767_v36, %v766_v32  ;;  %v965_v42 = vadd.f32 %v964_v33, %v963_v29  ;;  %v968_v52 = vsel %vm78_vm1, %v882_v34, 0.0  ;;  %715 = vst.msk [vmem:[%s2158_s2 + $0x1b8] sm:$0xff] %vm78_vm1, %v1893_v13  ;;  %v1900_v16 = vpop.f32.mrb[23].mxu1 }
 0x107   :  { %v966_v46 = vsel %vm78_vm1, %v881_v37, 0.0  ;;  %v1235_v47 = vpop.f32.mrb[24].mxu0  ;;  %714 = vst.msk [vmem:[%s2158_s2 + $0x1b0] sm:$0xff] %vm78_vm1, %v1900_v16 }
 0x108   :  { %v967_v48 = vadd.f32 %v966_v46, %v965_v42  ;;  %685 = vst.msk [vmem:[%s2158_s2 + $0xc8] sm:$0xff] %vm78_vm1, %v1235_v47  ;;  %v461_v49 = vpop.f32.mrb[25].mxu0  ;;  %v770_v50 = vadd.f32 %v769_v45, %v768_v40  ;;  %v884_v53 = vmul.f32 %v1235_v47, %v1235_v47  ;;  %v773_v63 = vsel %vm78_vm1, %v1235_v47, 0.0 }
 0x109   :  { %684 = vst.msk [vmem:[%s2158_s2 + $0xc0] sm:$0xff] %vm78_vm1, %v461_v49  ;;  %v771_v56 = vsel %vm78_vm1, %v461_v49, 0.0  ;;  %v883_v57 = vmul.f32 %v461_v49, %v461_v49  ;;  %v1919_v33 = vpop.f32.mrb[24].mxu1  ;;  %v891_v49 = vmul.f32 %v1614_v30, %v1614_v30 }
 0x10a   :  { %v772_v60 = vadd.f32 %v771_v56, %v770_v50  ;;  %v969_v61 = vadd.f32 %v968_v52, %v967_v48  ;;  %v972_v9 = vsel %vm78_vm1, %v884_v53, 0.0  ;;  %717 = vst.msk [vmem:[%s2158_s2 + $0x1c8] sm:$0xff] %vm78_vm1, %v1919_v33  ;;  %v1926_v37 = vpop.f32.mrb[25].mxu1 }
 0x10b   :  { %v970_v0 = vsel %vm78_vm1, %v883_v57, 0.0  ;;  %v1238_v1 = vpop.f32.mrb[26].mxu0  ;;  %716 = vst.msk [vmem:[%s2158_s2 + $0x1c0] sm:$0xff] %vm78_vm1, %v1926_v37 }
 0x10c   :  { %v971_v2 = vadd.f32 %v970_v0, %v969_v61  ;;  %687 = vst.msk [vmem:[%s2158_s2 + $0xd8] sm:$0xff] %vm78_vm1, %v1238_v1  ;;  %v471_v4 = vpop.f32.mrb[27].mxu0  ;;  %v774_v6 = vadd.f32 %v773_v63, %v772_v60  ;;  %v886_v10 = vmul.f32 %v1238_v1, %v1238_v1  ;;  %v777_v17 = vsel %vm78_vm1, %v1238_v1, 0.0 }
 0x10d   :  { %686 = vst.msk [vmem:[%s2158_s2 + $0xd0] sm:$0xff] %vm78_vm1, %v471_v4  ;;  %v775_v11 = vsel %vm78_vm1, %v471_v4, 0.0  ;;  %v885_v12 = vmul.f32 %v471_v4, %v471_v4  ;;  %v1947_v57 = vpop.f32.mrb[26].mxu1 }
 0x10e   :  { %v776_v14 = vadd.f32 %v775_v11, %v774_v6  ;;  %v973_v15 = vadd.f32 %v972_v9, %v971_v2  ;;  %v976_v28 = vsel %vm78_vm1, %v886_v10, 0.0  ;;  %719 = vst.msk [vmem:[%s2158_s2 + $0x1d8] sm:$0xff] %vm78_vm1, %v1947_v57  ;;  %v1954_v63 = vpop.f32.mrb[27].mxu1  ;;  %v787_v2 = vsel %vm78_vm1, %v1614_v30, 0.0 }
 0x10f   :  { %v974_v18 = vsel %vm78_vm1, %v885_v12, 0.0  ;;  %v1241_v21 = vpop.f32.mrb[28].mxu0  ;;  %718 = vst.msk [vmem:[%s2158_s2 + $0x1d0] sm:$0xff] %vm78_vm1, %v1954_v63  ;;  %v892_v10 = vmul.f32 %v1607_v27, %v1607_v27  ;;  %v986_v11 = vsel %vm78_vm1, %v891_v49, 0.0  ;;  %v893_v12 = vmul.f32 %v1640_v44, %v1640_v44 }
 0x110   :  { %v975_v23 = vadd.f32 %v974_v18, %v973_v15  ;;  %689 = vst.msk [vmem:[%s2158_s2 + $0xe8] sm:$0xff] %vm78_vm1, %v1241_v21  ;;  %v481_v25 = vpop.f32.mrb[29].mxu0  ;;  %v778_v26 = vadd.f32 %v777_v17, %v776_v14  ;;  %v888_v29 = vmul.f32 %v1241_v21, %v1241_v21  ;;  %v781_v40 = vsel %vm78_vm1, %v1241_v21, 0.0 }
 0x111   :  { %688 = vst.msk [vmem:[%s2158_s2 + $0xe0] sm:$0xff] %vm78_vm1, %v481_v25  ;;  %v779_v31 = vsel %vm78_vm1, %v481_v25, 0.0  ;;  %v887_v32 = vmul.f32 %v481_v25, %v481_v25  ;;  %v1971_v14 = vpop.f32.mrb[28].mxu1  ;;  %v789_v18 = vsel %vm78_vm1, %v1607_v27, 0.0  ;;  %v791_v21 = vsel %vm78_vm1, %v1640_v44, 0.0 }
 0x112   :  { %v780_v34 = vadd.f32 %v779_v31, %v778_v26  ;;  %v977_v36 = vadd.f32 %v976_v28, %v975_v23  ;;  %v980_v50 = vsel %vm78_vm1, %v888_v29, 0.0  ;;  %721 = vst.msk [vmem:[%s2158_s2 + $0x1e8] sm:$0xff] %vm78_vm1, %v1971_v14  ;;  %v1978_v17 = vpop.f32.mrb[29].mxu1  ;;  %v988_v26 = vsel %vm78_vm1, %v892_v10, 0.0 }
 0x113   :  { %v978_v42 = vsel %vm78_vm1, %v887_v32, 0.0  ;;  %v1244_v45 = vpop.f32.mrb[30].mxu0  ;;  %720 = vst.msk [vmem:[%s2158_s2 + $0x1e0] sm:$0xff] %vm78_vm1, %v1978_v17  ;;  %v894_v28 = vmul.f32 %v1633_v41, %v1633_v41  ;;  %v990_v29 = vsel %vm78_vm1, %v893_v12, 0.0  ;;  %v895_v27 = vmul.f32 %v1666_v58, %v1666_v58 }
 0x114   :  { %v979_v46 = vadd.f32 %v978_v42, %v977_v36  ;;  %691 = vst.msk [vmem:[%s2158_s2 + $0xf8] sm:$0xff] %vm78_vm1, %v1244_v45  ;;  %v491_v47 = vpop.f32.mrb[31].mxu0  ;;  %v782_v48 = vadd.f32 %v781_v40, %v780_v34  ;;  %v890_v52 = vmul.f32 %v1244_v45, %v1244_v45  ;;  %v785_v0 = vsel %vm78_vm1, %v1244_v45, 0.0 }
 0x115   :  { %690 = vst.msk [vmem:[%s2158_s2 + $0xf0] sm:$0xff] %vm78_vm1, %v491_v47  ;;  %v783_v53 = vsel %vm78_vm1, %v491_v47, 0.0  ;;  %v889_v56 = vmul.f32 %v491_v47, %v491_v47  ;;  %v1995_v31 = vpop.f32.mrb[30].mxu1  ;;  %v793_v36 = vsel %vm78_vm1, %v1633_v41, 0.0  ;;  %v795_v40 = vsel %vm78_vm1, %v1666_v58, 0.0 }
 0x116   :  { %v784_v60 = vadd.f32 %v783_v53, %v782_v48  ;;  %v981_v61 = vadd.f32 %v980_v50, %v979_v46  ;;  %v984_v9 = vsel %vm78_vm1, %v890_v52, 0.0  ;;  %723 = vst.msk [vmem:[%s2158_s2 + $0x1f8] sm:$0xff] %vm78_vm1, %v1995_v31  ;;  %v2002_v34 = vpop.f32.mrb[31].mxu1  ;;  %v992_v46 = vsel %vm78_vm1, %v894_v28, 0.0 }
 0x117   :  { %v982_v1 = vsel %vm78_vm1, %v889_v56, 0.0  ;;  %722 = vst.msk [vmem:[%s2158_s2 + $0x1f0] sm:$0xff] %vm78_vm1, %v2002_v34  ;;  %v896_v47 = vmul.f32 %v1659_v55, %v1659_v55  ;;  %v994_v48 = vsel %vm78_vm1, %v895_v27, 0.0  ;;  %v897_v41 = vmul.f32 %v1692_v8, %v1692_v8 }
 0x118   :  { %v786_v4 = vadd.f32 %v785_v0, %v784_v60  ;;  %v983_v6 = vadd.f32 %v982_v1, %v981_v61  ;;  %v797_v50 = vsel %vm78_vm1, %v1659_v55, 0.0  ;;  %v799_v52 = vsel %vm78_vm1, %v1692_v8, 0.0 }
 0x119   :  { %v996_v60 = vsel %vm78_vm1, %v896_v47, 0.0  ;;  %v898_v61 = vmul.f32 %v1685_v5, %v1685_v5  ;;  %v998_v0 = vsel %vm78_vm1, %v897_v41, 0.0  ;;  %v899_v1 = vmul.f32 %v1718_v22, %v1718_v22 }
 0x11a   :  { %v985_v30 = vadd.f32 %v984_v9, %v983_v6  ;;  %v788_v15 = vadd.f32 %v787_v2, %v786_v4  ;;  %v801_v55 = vsel %vm78_vm1, %v1685_v5, 0.0  ;;  %v803_v8 = vsel %vm78_vm1, %v1718_v22, 0.0 }
 0x11b   :  { %v1000_v10 = vsel %vm78_vm1, %v898_v61, 0.0  ;;  %v1002_v12 = vsel %vm78_vm1, %v899_v1, 0.0  ;;  %v805_v5 = vsel %vm78_vm1, %v1711_v19, 0.0  ;;  %v807_v22 = vsel %vm78_vm1, %v1744_v38, 0.0 }
 0x11c   :  { %v987_v23 = vadd.f32 %v986_v11, %v985_v30  ;;  %v790_v25 = vadd.f32 %v789_v18, %v788_v15  ;;  %v900_v11 = vmul.f32 %v1711_v19, %v1711_v19  ;;  %v901_v30 = vmul.f32 %v1744_v38, %v1744_v38 }
 0x11d   :  { %v809_v19 = vsel %vm78_vm1, %v1737_v35, 0.0  ;;  %v811_v38 = vsel %vm78_vm1, %v1770_v54, 0.0 }
 0x11e   :  { %v792_v44 = vadd.f32 %v791_v21, %v790_v25  ;;  %v989_v32 = vadd.f32 %v988_v26, %v987_v23  ;;  %v1004_v25 = vsel %vm78_vm1, %v900_v11, 0.0  ;;  %v902_v26 = vmul.f32 %v1737_v35, %v1737_v35 }
 0x11f   :  { %v1006_v28 = vsel %vm78_vm1, %v901_v30, 0.0  ;;  %v813_v35 = vsel %vm78_vm1, %v1763_v51, 0.0 }
 0x120   :  { %v991_v42 = vadd.f32 %v990_v29, %v989_v32  ;;  %v794_v45 = vadd.f32 %v793_v36, %v792_v44  ;;  %v903_v29 = vmul.f32 %v1770_v54, %v1770_v54  ;;  %v815_v54 = vsel %vm78_vm1, %v1796_v7, 0.0 }
 0x122   :  { %v796_v49 = vadd.f32 %v795_v40, %v794_v45  ;;  %v993_v58 = vadd.f32 %v992_v46, %v991_v42  ;;  %v1008_v40 = vsel %vm78_vm1, %v902_v26, 0.0  ;;  %v904_v42 = vmul.f32 %v1763_v51, %v1763_v51 }
 0x123   :  { %v1010_v45 = vsel %vm78_vm1, %v903_v29, 0.0  ;;  %v905_v46 = vmul.f32 %v1796_v7, %v1796_v7  ;;  %v817_v51 = vsel %vm78_vm1, %v1789_v3, 0.0  ;;  %v819_v7 = vsel %vm78_vm1, %v1822_v24, 0.0 }
 0x124   :  { %v995_v53 = vadd.f32 %v994_v48, %v993_v58  ;;  %v798_v56 = vadd.f32 %v797_v50, %v796_v49  ;;  %v1012_v58 = vsel %vm78_vm1, %v904_v42, 0.0  ;;  %v906_v50 = vmul.f32 %v1789_v3, %v1789_v3 }
 0x125   :  { %v821_v3 = vsel %vm78_vm1, %v1815_v20, 0.0 }
 0x126   :  { %v800_v2 = vadd.f32 %v799_v52, %v798_v56  ;;  %v997_v4 = vadd.f32 %v996_v60, %v995_v53  ;;  %v1014_v52 = vsel %vm78_vm1, %v905_v46, 0.0  ;;  %v907_v53 = vmul.f32 %v1822_v24, %v1822_v24 }
 0x127   :  { %v1016_v1 = vsel %vm78_vm1, %v906_v50, 0.0  ;;  %v823_v24 = vsel %vm78_vm1, %v1848_v43, 0.0 }
 0x128   :  { %v999_v6 = vadd.f32 %v998_v0, %v997_v4  ;;  %v802_v9 = vadd.f32 %v801_v55, %v800_v2  ;;  %v908_v2 = vmul.f32 %v1815_v20, %v1815_v20  ;;  %v1018_v4 = vsel %vm78_vm1, %v907_v53, 0.0 }
 0x129   :  { %v909_v55 = vmul.f32 %v1848_v43, %v1848_v43  ;;  %v825_v20 = vsel %vm78_vm1, %v1841_v39, 0.0  ;;  %v827_v43 = vsel %vm78_vm1, %v1874_v62, 0.0 }
 0x12a   :  { %v804_v15 = vadd.f32 %v803_v8, %v802_v9  ;;  %v1001_v18 = vadd.f32 %v1000_v10, %v999_v6  ;;  %v1020_v11 = vsel %vm78_vm1, %v908_v2, 0.0 }
 0x12b   :  { %v1022_v30 = vsel %vm78_vm1, %v909_v55, 0.0 }
 0x12c   :  { %v1003_v21 = vadd.f32 %v1002_v12, %v1001_v18  ;;  %v806_v23 = vadd.f32 %v805_v5, %v804_v15  ;;  %v910_v12 = vmul.f32 %v1841_v39, %v1841_v39  ;;  %v911_v15 = vmul.f32 %v1874_v62, %v1874_v62 }
 0x12d   :  { %v829_v39 = vsel %vm78_vm1, %v1867_v59, 0.0  ;;  %v831_v62 = vsel %vm78_vm1, %v1900_v16, 0.0 }
 0x12e   :  { %v808_v27 = vadd.f32 %v807_v22, %v806_v23  ;;  %v1005_v44 = vadd.f32 %v1004_v25, %v1003_v21  ;;  %v1024_v23 = vsel %vm78_vm1, %v910_v12, 0.0  ;;  %v912_v25 = vmul.f32 %v1867_v59, %v1867_v59 }
 0x12f   :  { %v1026_v26 = vsel %vm78_vm1, %v911_v15, 0.0  ;;  %v833_v59 = vsel %vm78_vm1, %v1893_v13, 0.0 }
 0x130   :  { %v1007_v32 = vadd.f32 %v1006_v28, %v1005_v44  ;;  %v810_v36 = vadd.f32 %v809_v19, %v808_v27  ;;  %v913_v28 = vmul.f32 %v1900_v16, %v1900_v16  ;;  %v835_v16 = vsel %vm78_vm1, %v1926_v37, 0.0 }
 0x132   :  { %v812_v47 = vadd.f32 %v811_v38, %v810_v36  ;;  %v1009_v48 = vadd.f32 %v1008_v40, %v1007_v32  ;;  %v1028_v38 = vsel %vm78_vm1, %v912_v25, 0.0  ;;  %v914_v32 = vmul.f32 %v1893_v13, %v1893_v13 }
 0x133   :  { %v1030_v36 = vsel %vm78_vm1, %v913_v28, 0.0  ;;  %v915_v40 = vmul.f32 %v1926_v37, %v1926_v37  ;;  %v837_v13 = vsel %vm78_vm1, %v1919_v33, 0.0  ;;  %v839_v37 = vsel %vm78_vm1, %v1954_v63, 0.0 }
 0x134   :  { %v1011_v41 = vadd.f32 %v1010_v45, %v1009_v48  ;;  %v814_v49 = vadd.f32 %v813_v35, %v812_v47  ;;  %v1032_v48 = vsel %vm78_vm1, %v914_v32, 0.0  ;;  %v916_v35 = vmul.f32 %v1919_v33, %v1919_v33 }
 0x135   :  { %v841_v33 = vsel %vm78_vm1, %v1947_v57, 0.0 }
 0x136   :  { %v816_v56 = vadd.f32 %v815_v54, %v814_v49  ;;  %v1013_v60 = vadd.f32 %v1012_v58, %v1011_v41  ;;  %v1034_v54 = vsel %vm78_vm1, %v915_v40, 0.0  ;;  %v917_v41 = vmul.f32 %v1954_v63, %v1954_v63 }
 0x137   :  { %v1036_v53 = vsel %vm78_vm1, %v916_v35, 0.0  ;;  %v843_v63 = vsel %vm78_vm1, %v1978_v17, 0.0 }
 0x138   :  { %v1015_v61 = vadd.f32 %v1014_v52, %v1013_v60  ;;  %v818_v0 = vadd.f32 %v817_v51, %v816_v56  ;;  %v918_v56 = vmul.f32 %v1947_v57, %v1947_v57  ;;  %v1038_v60 = vsel %vm78_vm1, %v917_v41, 0.0 }
 0x139   :  { %v919_v51 = vmul.f32 %v1978_v17, %v1978_v17  ;;  %v845_v57 = vsel %vm78_vm1, %v1971_v14, 0.0  ;;  %v847_v17 = vsel %vm78_vm1, %v2002_v34, 0.0 }
 0x13a   :  { %v820_v8 = vadd.f32 %v819_v7, %v818_v0  ;;  %v1017_v6 = vadd.f32 %v1016_v1, %v1015_v61  ;;  %v1040_v2 = vsel %vm78_vm1, %v918_v56, 0.0 }
 0x13b   :  { %v1042_v55 = vsel %vm78_vm1, %v919_v51, 0.0 }
 0x13c   :  { %v1019_v9 = vadd.f32 %v1018_v4, %v1017_v6  ;;  %v822_v10 = vadd.f32 %v821_v3, %v820_v8  ;;  %v920_v4 = vmul.f32 %v1971_v14, %v1971_v14  ;;  %v921_v8 = vmul.f32 %v2002_v34, %v2002_v34 }
 0x13e   :  { %v824_v18 = vadd.f32 %v823_v24, %v822_v10  ;;  %v1021_v5 = vadd.f32 %v1020_v11, %v1019_v9  ;;  %v1044_v10 = vsel %vm78_vm1, %v920_v4, 0.0  ;;  %v922_v11 = vmul.f32 %v1995_v31, %v1995_v31 }
 0x13f   :  { %v1046_v12 = vsel %vm78_vm1, %v921_v8, 0.0 }
 0x140   :  { %v1023_v22 = vadd.f32 %v1022_v30, %v1021_v5  ;;  %v826_v21 = vadd.f32 %v825_v20, %v824_v18  ;;  %v849_v18 = vsel %vm78_vm1, %v1995_v31, 0.0  ;;  %v1048_v14 = vsel %vm78_vm1, %v922_v11, 0.0 }
 0x142   :  { %v828_v29 = vadd.f32 %v827_v43, %v826_v21  ;;  %v1025_v27 = vadd.f32 %v1024_v23, %v1023_v22 }
 0x144   :  { %v1027_v44 = vadd.f32 %v1026_v26, %v1025_v27  ;;  %v830_v19 = vadd.f32 %v829_v39, %v828_v29 }
 0x146   :  { %v832_v42 = vadd.f32 %v831_v62, %v830_v19  ;;  %v1029_v45 = vadd.f32 %v1028_v38, %v1027_v44 }
 0x148   :  { %v1031_v46 = vadd.f32 %v1030_v36, %v1029_v45  ;;  %v834_v47 = vadd.f32 %v833_v59, %v832_v42 }
 0x14a   :  { %v836_v49 = vadd.f32 %v835_v16, %v834_v47  ;;  %v1033_v58 = vadd.f32 %v1032_v48, %v1031_v46 }
 0x14c   :  { %v1035_v50 = vadd.f32 %v1034_v54, %v1033_v58  ;;  %v838_v52 = vadd.f32 %v837_v13, %v836_v49 }
 0x14e   :  { %v840_v7 = vadd.f32 %v839_v37, %v838_v52  ;;  %v1037_v61 = vadd.f32 %v1036_v53, %v1035_v50 }
 0x150   :  { %v1039_v0 = vadd.f32 %v1038_v60, %v1037_v61  ;;  %v842_v1 = vadd.f32 %v841_v33, %v840_v7 }
 0x152   :  { %v844_v6 = vadd.f32 %v843_v63, %v842_v1  ;;  %v1041_v3 = vadd.f32 %v1040_v2, %v1039_v0 }
 0x154   :  { %v1043_v24 = vadd.f32 %v1042_v55, %v1041_v3  ;;  %v846_v9 = vadd.f32 %v845_v57, %v844_v6 }
 0x156   :  { %v848_v30 = vadd.f32 %v847_v17, %v846_v9  ;;  %v1045_v15 = vadd.f32 %v1044_v10, %v1043_v24 }
 0x158   :  { %v850_v5 = vadd.f32 %v849_v18, %v848_v30  ;;  %v1047_v20 = vadd.f32 %v1046_v12, %v1045_v15 }
 0x15a   :  { %v851_v43 = vrot.slane %v850_v5, 4  ;;  %v1049_v34 = vadd.f32 %v1048_v14, %v1047_v20 }
 0x15c   :  { %v852_v22 = vadd.f32 %v851_v43, %v850_v5  ;;  %v1050_v21 = vrot.slane %v1049_v34, 4 }
 0x15e   :  { %v853_v23 = vrot.slane %v852_v22, 2  ;;  %v1051_v25 = vadd.f32 %v1050_v21, %v1049_v34 }
 0x160   :  { %v854_v26 = vadd.f32 %v853_v23, %v852_v22  ;;  %v1052_v28 = vrot.slane %v1051_v25, 2 }
 0x162   :  { %v855_v29 = vrot.slane %v854_v26, 1  ;;  %v1053_v27 = vadd.f32 %v1052_v28, %v1051_v25 }
 0x164   :  { %v856_v39 = vadd.f32 %v855_v29, %v854_v26  ;;  %v1054_v62 = vrot.slane %v1053_v27, 1 }
 0x166   :  { %858 = vst.msk [vmem:[%s2159_s3] sm:$0x1] %vm857_vm2, %v856_v39  ;;  %v1055_v31 = vadd.f32 %v1054_v62, %v1053_v27 }
 0x168   :  { %1056 = vst.msk [vmem:[%s2159_s3 + $0x1] sm:$0x1] %vm857_vm2, %v1055_v31 }

// kernel: resnet101_bottleneck.6
= control target key start
LH: loop header
LB: loop body
LE: loop exit
PB: predicated region body
PF: predicated region fallthrough
CT: control target
= control target key end

     0   :  { %vm483_vm0 = vcmask 1043456   ;;  %vm290_vm1 = vcmask 31744   ;;  %vm872_vm2 = vcmask 64512   ;;  %vm1070_vm3 = vcmask 57344   ;;  %s2604_s3 = inlined_call_operand.vmem [shape: f32[4,8], index: 3, kind: input, shape index: {}]   ;;  %s2605_s0 = inlined_call_operand.vmem [shape: f32[512,4], index: 0, kind: input, shape index: {}]   ;;  %s2606_s1 = inlined_call_operand.vmem [shape: f32[1,4], index: 1, kind: input, shape index: {}]   ;;  %s2607_s2 = inlined_call_operand.vmem [shape: f32[1,4], index: 2, kind: input, shape index: {}]   ;;  %s2608_s4 = inlined_call_operand.vmem [shape: f32[512,8], index: 4, kind: output, shape index: {0}]   ;;  %s2609_s5 = inlined_call_operand.vmem [shape: f32[1,2,8], index: 5, kind: output, shape index: {1}]  }
   0x1   :  { %v289_v0 = vld [vmem:[%s2604_s3] sm:$0xf]  ;;  %v20_v5 = vld [vmem:[%s2605_s0 + $0x8] sm:$0xff]  ;;  %v21_v6 = vld [vmem:[%s2605_s0 + $0x10] sm:$0xff] }
   0x2   :  { %v19_v1 = vld [vmem:[%s2605_s0] sm:$0xff]  ;;  %1410 = vmatprep.subr.msk.mxu0 %vm483_vm0, %v289_v0  ;;  %1508 = vmatprep.subr.msk.mxu1 %vm483_vm0, %v289_v0  ;;  %v22_v9 = vld [vmem:[%s2605_s0 + $0x18] sm:$0xff]  ;;  %v24_v11 = vld [vmem:[%s2605_s0 + $0x28] sm:$0xff] }
   0x3   :  { %v1549_v2 = vld [vmem:[%s2606_s1] ss:$0 sm:$0xff]  ;;  %1411 = vmatpush3.msk.msra.mxu0 %vm483_vm0, %v289_v0  ;;  %1509 = vmatpush3.msk.msra.mxu1 %vm483_vm0, %v289_v0  ;;  %v25_v15 = vld [vmem:[%s2605_s0 + $0x30] sm:$0xff]  ;;  %v26_v19 = vld [vmem:[%s2605_s0 + $0x38] sm:$0xff] }
   0x4   :  { %v90_v3 = vmul.f32 %v1549_v2, %v19_v1  ;;  %v1556_v4 = vld [vmem:[%s2607_s2] ss:$0 sm:$0xff]  ;;  %v91_v7 = vmul.f32 %v1549_v2, %v20_v5  ;;  %v92_v8 = vmul.f32 %v1549_v2, %v21_v6  ;;  %v93_v13 = vmul.f32 %v1549_v2, %v22_v9  ;;  %v28_v33 = vld [vmem:[%s2605_s0 + $0x48] sm:$0xff]  ;;  %v29_v34 = vld [vmem:[%s2605_s0 + $0x50] sm:$0xff] }
   0x5   :  { %v23_v10 = vld [vmem:[%s2605_s0 + $0x20] sm:$0xff]  ;;  %v95_v18 = vmul.f32 %v1549_v2, %v24_v11  ;;  %v96_v23 = vmul.f32 %v1549_v2, %v25_v15  ;;  %v97_v27 = vmul.f32 %v1549_v2, %v26_v19  ;;  %v99_v37 = vmul.f32 %v1549_v2, %v28_v33  ;;  %v30_v41 = vld [vmem:[%s2605_s0 + $0x58] sm:$0xff]  ;;  %v32_v43 = vld [vmem:[%s2605_s0 + $0x68] sm:$0xff] }
   0x6   :  { %v161_v12 = vadd.f32 %v1556_v4, %v90_v3  ;;  %v94_v14 = vmul.f32 %v1549_v2, %v23_v10  ;;  %v162_v16 = vadd.f32 %v1556_v4, %v91_v7  ;;  %v163_v17 = vadd.f32 %v1556_v4, %v92_v8  ;;  %v27_v26 = vld [vmem:[%s2605_s0 + $0x40] sm:$0xff]  ;;  %v33_v44 = vld [vmem:[%s2605_s0 + $0x70] sm:$0xff]  ;;  %v34_v50 = vld [vmem:[%s2605_s0 + $0x78] sm:$0xff] }
   0x7   :  { %v164_v21 = vadd.f32 %v1556_v4, %v93_v13  ;;  %v166_v29 = vadd.f32 %v1556_v4, %v95_v18  ;;  %v167_v31 = vadd.f32 %v1556_v4, %v96_v23  ;;  %v98_v32 = vmul.f32 %v1549_v2, %v27_v26  ;;  %v31_v42 = vld [vmem:[%s2605_s0 + $0x60] sm:$0xff]  ;;  %v36_v63 = vld [vmem:[%s2605_s0 + $0x88] sm:$0xff]  ;;  %v37_v0 = vld [vmem:[%s2605_s0 + $0x90] sm:$0xff] }
   0x8   :  { %v225_v20 = vmax.f32 %v161_v12, 0.0  ;;  %v165_v22 = vadd.f32 %v1556_v4, %v94_v14  ;;  %v226_v24 = vmax.f32 %v162_v16, 0.0  ;;  %v227_v25 = vmax.f32 %v163_v17, 0.0  ;;  %v35_v55 = vld [vmem:[%s2605_s0 + $0x80] sm:$0xff]  ;;  %v38_v3 = vld [vmem:[%s2605_s0 + $0x98] sm:$0xff]  ;;  %v52_v5 = vld [vmem:[%s2605_s0 + $0x108] sm:$0xff] }
   0x9   :  { %v228_v28 = vmax.f32 %v164_v21, 0.0  ;;  %v168_v35 = vadd.f32 %v1556_v4, %v97_v27  ;;  %v230_v36 = vmax.f32 %v166_v29, 0.0  ;;  %v231_v38 = vmax.f32 %v167_v31, 0.0  ;;  %v51_v1 = vld [vmem:[%s2605_s0 + $0x100] sm:$0xff]  ;;  %v53_v6 = vld [vmem:[%s2605_s0 + $0x110] sm:$0xff]  ;;  %v54_v12 = vld [vmem:[%s2605_s0 + $0x118] sm:$0xff] }
   0xa   :  { %1412 = vmatprep.mubr.msk.f32.mxu0 %vm290_vm1, %v225_v20  ;;  %v229_v30 = vmax.f32 %v165_v22, 0.0  ;;  %v169_v39 = vadd.f32 %v1556_v4, %v98_v32  ;;  %v100_v40 = vmul.f32 %v1549_v2, %v29_v34  ;;  %v170_v46 = vadd.f32 %v1556_v4, %v99_v37  ;;  %v39_v11 = vld [vmem:[%s2605_s0 + $0xa0] sm:$0xff]  ;;  %v40_v17 = vld [vmem:[%s2605_s0 + $0xa8] sm:$0xff]  ;;  %v41_v26 = vld [vmem:[%s2605_s0 + $0xb0] sm:$0xff] }
   0xb   :  { %1413 = vmatmul.mubr.msk.f32.vlgmr.msra.gmra.mrb[0].mxu0 %vm290_vm1, %v226_v24  ;;  %v232_v45 = vmax.f32 %v168_v35, 0.0  ;;  %v101_v47 = vmul.f32 %v1549_v2, %v30_v41  ;;  %v102_v48 = vmul.f32 %v1549_v2, %v31_v42  ;;  %v103_v49 = vmul.f32 %v1549_v2, %v32_v43  ;;  %v55_v13 = vld [vmem:[%s2605_s0 + $0x120] sm:$0xff]  ;;  %v56_v19 = vld [vmem:[%s2605_s0 + $0x128] sm:$0xff]  ;;  %v57_v24 = vld [vmem:[%s2605_s0 + $0x130] sm:$0xff] }
   0xc   :  { %1415 = vmatprep.mubr.msk.f32.mxu0 %vm290_vm1, %v227_v25  ;;  %v233_v51 = vmax.f32 %v169_v39, 0.0  ;;  %v171_v52 = vadd.f32 %v1556_v4, %v100_v40  ;;  %v104_v53 = vmul.f32 %v1549_v2, %v33_v44  ;;  %v105_v54 = vmul.f32 %v1549_v2, %v34_v50  ;;  %v42_v27 = vld [vmem:[%s2605_s0 + $0xb8] sm:$0xff]  ;;  %v59_v44 = vld [vmem:[%s2605_s0 + $0x140] sm:$0xff] }
   0xd   :  { %v234_v56 = vmax.f32 %v170_v46, 0.0  ;;  %v172_v57 = vadd.f32 %v1556_v4, %v101_v47  ;;  %v173_v58 = vadd.f32 %v1556_v4, %v102_v48  ;;  %v174_v59 = vadd.f32 %v1556_v4, %v103_v49  ;;  %v58_v39 = vld [vmem:[%s2605_s0 + $0x138] sm:$0xff]  ;;  %v43_v49 = vld [vmem:[%s2605_s0 + $0xc0] sm:$0xff] }
   0xe   :  { %v235_v60 = vmax.f32 %v171_v52, 0.0  ;;  %v1648_v61 = vadd.f32 %v1556_v4, %v104_v53  ;;  %v106_v62 = vmul.f32 %v1549_v2, %v35_v55  ;;  %v1671_v10 = vadd.f32 %v1556_v4, %v105_v54  ;;  %v44_v55 = vld [vmem:[%s2605_s0 + $0xc8] sm:$0xff] }
   0xf   :  { %1416 = vmatmul.mubr.msk.f32.gmra.mrb[2].mxu0 %vm290_vm1, %v228_v28  ;;  %v236_v7 = vmax.f32 %v172_v57, 0.0  ;;  %v237_v8 = vmax.f32 %v173_v58, 0.0  ;;  %v238_v9 = vmax.f32 %v174_v59, 0.0  ;;  %v107_v15 = vmul.f32 %v1549_v2, %v36_v63  ;;  %v60_v59 = vld [vmem:[%s2605_s0 + $0x148] sm:$0xff] }
  0x10   :  { %1418 = vmatprep.mubr.msk.f32.mxu0 %vm290_vm1, %v229_v30  ;;  %v239_v14 = vmax.f32 %v1648_v61, 0.0  ;;  %v108_v16 = vmul.f32 %v1549_v2, %v37_v0  ;;  %v122_v18 = vmul.f32 %v1549_v2, %v51_v1  ;;  %v1694_v20 = vadd.f32 %v1556_v4, %v106_v62  ;;  %v45_v0 = vld [vmem:[%s2605_s0 + $0xd0] sm:$0xff] }
  0x11   :  { %v109_v21 = vmul.f32 %v1549_v2, %v38_v3  ;;  %v123_v22 = vmul.f32 %v1549_v2, %v52_v5  ;;  %v124_v23 = vmul.f32 %v1549_v2, %v53_v6  ;;  %v110_v25 = vmul.f32 %v1549_v2, %v39_v11  ;;  %v61_v1 = vld [vmem:[%s2605_s0 + $0x150] sm:$0xff] }
  0x12   :  { %v193_v28 = vadd.f32 %v1556_v4, %v122_v18  ;;  %v125_v29 = vmul.f32 %v1549_v2, %v54_v12  ;;  %v126_v30 = vmul.f32 %v1549_v2, %v55_v13  ;;  %v111_v31 = vmul.f32 %v1549_v2, %v40_v17 }
  0x13   :  { %1419 = vmatmul.mubr.msk.f32.gmra.mrb[4].mxu0 %vm290_vm1, %v230_v36  ;;  %v194_v32 = vadd.f32 %v1556_v4, %v123_v22  ;;  %v195_v33 = vadd.f32 %v1556_v4, %v124_v23  ;;  %v127_v34 = vmul.f32 %v1549_v2, %v56_v19  ;;  %v112_v40 = vmul.f32 %v1549_v2, %v41_v26 }
  0x14   :  { %1421 = vmatprep.mubr.msk.f32.mxu0 %vm290_vm1, %v231_v38  ;;  %v257_v35 = vmax.f32 %v193_v28, 0.0  ;;  %v196_v36 = vadd.f32 %v1556_v4, %v125_v29  ;;  %v197_v37 = vadd.f32 %v1556_v4, %v126_v30  ;;  %v128_v38 = vmul.f32 %v1549_v2, %v57_v24  ;;  %v64_v30 = vld [vmem:[%s2605_s0 + $0x168] sm:$0xff] }
  0x15   :  { %v113_v41 = vmul.f32 %v1549_v2, %v42_v27  ;;  %v258_v42 = vmax.f32 %v194_v32, 0.0  ;;  %v259_v43 = vmax.f32 %v195_v33, 0.0  ;;  %v1731_v46 = vadd.f32 %v1556_v4, %v108_v16  ;;  %v74_v32 = vld [vmem:[%s2605_s0 + $0x1b8] sm:$0xff] }
  0x16   :  { %v1734_v47 = vadd.f32 %v1556_v4, %v109_v21  ;;  %v1737_v48 = vadd.f32 %v1556_v4, %v110_v25  ;;  %1460 = vmatprep.mubr.msk.f32.mxu1 %vm290_vm1, %v257_v35  ;;  %v240_v50 = vmax.f32 %v1671_v10, 0.0  ;;  %v198_v52 = vadd.f32 %v1556_v4, %v127_v34  ;;  %v47_v10 = vld [vmem:[%s2605_s0 + $0xe0] sm:$0xff]  ;;  %v73_v25 = vld [vmem:[%s2605_s0 + $0x1b0] sm:$0xff] }
  0x17   :  { %1422 = vmatmul.mubr.msk.f32.gmra.mrb[6].mxu0 %vm290_vm1, %v232_v45  ;;  %v178_v45 = vadd.f32 %v1556_v4, %v107_v15  ;;  %1461 = vmatmul.mubr.msk.f32.vlgmr.msra.gmra.mrb[0].mxu1 %vm290_vm1, %v258_v42  ;;  %v129_v53 = vmul.f32 %v1549_v2, %v58_v39  ;;  %v241_v54 = vmax.f32 %v1694_v20, 0.0  ;;  %v199_v57 = vadd.f32 %v1556_v4, %v128_v38  ;;  %v63_v15 = vld [vmem:[%s2605_s0 + $0x160] sm:$0xff]  ;;  %v72_v20 = vld [vmem:[%s2605_s0 + $0x1a8] sm:$0xff] }
  0x18   :  { %1424 = vmatprep.mubr.msk.f32.mxu0 %vm290_vm1, %v233_v51  ;;  %v260_v51 = vmax.f32 %v196_v36, 0.0  ;;  %1463 = vmatprep.mubr.msk.f32.mxu1 %vm290_vm1, %v259_v43  ;;  %v130_v58 = vmul.f32 %v1549_v2, %v59_v44  ;;  %v1763_v61 = vadd.f32 %v1556_v4, %v112_v40  ;;  %v1766_v62 = vadd.f32 %v1556_v4, %v113_v41  ;;  %v76_v42 = vld [vmem:[%s2605_s0 + $0x1c8] sm:$0xff]  ;;  %v77_v43 = vld [vmem:[%s2605_s0 + $0x1d0] sm:$0xff] }
  0x19   :  { %v114_v63 = vmul.f32 %v1549_v2, %v43_v49  ;;  %v242_v3 = vmax.f32 %v178_v45, 0.0  ;;  %v243_v5 = vmax.f32 %v1731_v46, 0.0  ;;  %v244_v6 = vmax.f32 %v1734_v47, 0.0  ;;  %v78_v49 = vld [vmem:[%s2605_s0 + $0x1d8] sm:$0xff] }
  0x1a   :  { %v262_v11 = vmax.f32 %v198_v52, 0.0  ;;  %v200_v12 = vadd.f32 %v1556_v4, %v129_v53  ;;  %v131_v13 = vmul.f32 %v1549_v2, %v60_v59  ;;  %v116_v16 = vmul.f32 %v1549_v2, %v45_v0 }
  0x1b   :  { %1425 = vmatmul.mubr.msk.f32.gmra.mrb[8].mxu0 %vm290_vm1, %v234_v56  ;;  %v261_v56 = vmax.f32 %v197_v37, 0.0  ;;  %1464 = vmatmul.mubr.msk.f32.gmra.mrb[2].mxu1 %vm290_vm1, %v260_v51  ;;  %v263_v17 = vmax.f32 %v199_v57, 0.0  ;;  %v201_v18 = vadd.f32 %v1556_v4, %v130_v58  ;;  %v132_v19 = vmul.f32 %v1549_v2, %v61_v1  ;;  %v75_v37 = vld [vmem:[%s2605_s0 + $0x1c0] sm:$0xff]  ;;  %v66_v57 = vld [vmem:[%s2605_s0 + $0x178] sm:$0xff] }
  0x1c   :  { %1427 = vmatprep.mubr.msk.f32.mxu0 %vm290_vm1, %v235_v60  ;;  %v1760_v60 = vadd.f32 %v1556_v4, %v111_v31  ;;  %v247_v22 = vmax.f32 %v1763_v61, 0.0  ;;  %v248_v23 = vmax.f32 %v1766_v62, 0.0  ;;  %v1807_v24 = vadd.f32 %v1556_v4, %v114_v63  ;;  %v65_v31 = vld [vmem:[%s2605_s0 + $0x170] sm:$0xff] }
  0x1d   :  { %1466 = vmatprep.mubr.msk.f32.mxu1 %vm290_vm1, %v261_v56  ;;  %v1816_v27 = vmul.f32 %v1549_v2, %v47_v10  ;;  %v134_v29 = vmul.f32 %v1549_v2, %v63_v15  ;;  %v264_v34 = vmax.f32 %v200_v12, 0.0  ;;  %v202_v35 = vadd.f32 %v1556_v4, %v131_v13  ;;  %v81_v63 = vld [vmem:[%s2605_s0 + $0x1f0] sm:$0xff]  ;;  %v48_v15 = vld [vmem:[%s2605_s0 + $0xe8] sm:$0xff] }
  0x1e   :  { %v246_v21 = vmax.f32 %v1760_v60, 0.0  ;;  %v143_v36 = vmul.f32 %v1549_v2, %v72_v20  ;;  %v1841_v38 = vadd.f32 %v1556_v4, %v116_v16  ;;  %v265_v39 = vmax.f32 %v201_v18, 0.0  ;;  %v49_v16 = vld [vmem:[%s2605_s0 + $0xf0] sm:$0xff] }
  0x1f   :  { %1428 = vmatmul.mubr.msk.f32.gmra.mrb[10].mxu0 %vm290_vm1, %v236_v7  ;;  %v245_v7 = vmax.f32 %v1737_v48, 0.0  ;;  %1467 = vmatmul.mubr.msk.f32.gmra.mrb[4].mxu1 %vm290_vm1, %v262_v11  ;;  %v203_v40 = vadd.f32 %v1556_v4, %v132_v19  ;;  %v144_v41 = vmul.f32 %v1549_v2, %v73_v25  ;;  %v135_v44 = vmul.f32 %v1549_v2, %v64_v30  ;;  %v67_v48 = vld [vmem:[%s2605_s0 + $0x180] sm:$0xff]  ;;  %v69_v61 = vld [vmem:[%s2605_s0 + $0x190] sm:$0xff] }
  0x20   :  { %1430 = vmatprep.mubr.msk.f32.mxu0 %vm290_vm1, %v237_v8  ;;  %v46_v8 = vld [vmem:[%s2605_s0 + $0xd8] sm:$0xff]  ;;  %1469 = vmatprep.mubr.msk.f32.mxu1 %vm290_vm1, %v263_v17  ;;  %v136_v45 = vmul.f32 %v1549_v2, %v65_v31  ;;  %v1855_v46 = vadd.f32 %v1556_v4, %v143_v36  ;;  %v145_v47 = vmul.f32 %v1549_v2, %v74_v32  ;;  %v266_v56 = vmax.f32 %v202_v35, 0.0 }
  0x21   :  { %v1813_v26 = vmul.f32 %v1549_v2, %v46_v8  ;;  %v205_v52 = vadd.f32 %v1556_v4, %v134_v29  ;;  %v1867_v53 = vadd.f32 %v1556_v4, %v144_v41  ;;  %v147_v59 = vmul.f32 %v1549_v2, %v76_v42  ;;  %v50_v36 = vld [vmem:[%s2605_s0 + $0xf8] sm:$0xff]  ;;  %v71_v41 = vld [vmem:[%s2605_s0 + $0x1a0] sm:$0xff] }
  0x22   :  { %v1879_v58 = vadd.f32 %v1556_v4, %v145_v47  ;;  %v148_v60 = vmul.f32 %v1549_v2, %v77_v43  ;;  %v267_v0 = vmax.f32 %v203_v40, 0.0  ;;  %v249_v8 = vmax.f32 %v1807_v24, 0.0  ;;  %v70_v40 = vld [vmem:[%s2605_s0 + $0x198] sm:$0xff] }
  0x23   :  { %1431 = vmatmul.mubr.msk.f32.gmra.mrb[12].mxu0 %vm290_vm1, %v238_v9  ;;  %v115_v9 = vmul.f32 %v1549_v2, %v44_v55  ;;  %v80_v55 = vld [vmem:[%s2605_s0 + $0x1e8] sm:$0xff]  ;;  %1470 = vmatmul.mubr.msk.f32.gmra.mrb[6].mxu1 %vm290_vm1, %v264_v34  ;;  %v137_v11 = vmul.f32 %v1549_v2, %v66_v57  ;;  %v206_v18 = vadd.f32 %v1556_v4, %v135_v44 }
  0x24   :  { %1433 = vmatprep.mubr.msk.f32.mxu0 %vm290_vm1, %v239_v14  ;;  %v62_v14 = vld [vmem:[%s2605_s0 + $0x158] sm:$0xff]  ;;  %1472 = vmatprep.mubr.msk.f32.mxu1 %vm290_vm1, %v265_v39  ;;  %v151_v10 = vmul.f32 %v1549_v2, %v80_v55  ;;  %v207_v24 = vadd.f32 %v1556_v4, %v136_v45  ;;  %v138_v25 = vmul.f32 %v1549_v2, %v67_v48  ;;  %v251_v39 = vmax.f32 %v1841_v38, 0.0 }
  0x25   :  { %v133_v28 = vmul.f32 %v1549_v2, %v62_v14  ;;  %v1831_v33 = vadd.f32 %v1556_v4, %v115_v9  ;;  %v1906_v9 = vadd.f32 %v1556_v4, %v148_v60  ;;  %v152_v14 = vmul.f32 %v1549_v2, %v81_v63 }
  0x26   :  { %v1927_v19 = vadd.f32 %v1556_v4, %v151_v10  ;;  %v188_v30 = vadd.f32 %v1556_v4, %v1813_v26  ;;  %v189_v31 = vadd.f32 %v1556_v4, %v1816_v27  ;;  %v119_v32 = vmul.f32 %v1549_v2, %v48_v15 }
  0x27   :  { %1434 = vmatmul.mubr.msk.f32.gmra.mrb[14].mxu0 %vm290_vm1, %v240_v50  ;;  %v79_v50 = vld [vmem:[%s2605_s0 + $0x1e0] sm:$0xff]  ;;  %v204_v51 = vadd.f32 %v1556_v4, %v133_v28  ;;  %1473 = vmatmul.mubr.msk.f32.gmra.mrb[8].mxu1 %vm290_vm1, %v266_v56  ;;  %v68_v28 = vld [vmem:[%s2605_s0 + $0x188] sm:$0xff]  ;;  %v1940_v29 = vadd.f32 %v1556_v4, %v152_v14  ;;  %v120_v34 = vmul.f32 %v1549_v2, %v49_v16  ;;  %v250_v35 = vmax.f32 %v1831_v33, 0.0 }
  0x28   :  { %1436 = vmatprep.mubr.msk.f32.mxu0 %vm290_vm1, %v241_v54  ;;  %v146_v54 = vmul.f32 %v1549_v2, %v75_v37  ;;  %1475 = vmatprep.mubr.msk.f32.mxu1 %vm290_vm1, %v267_v0  ;;  %v270_v26 = vmax.f32 %v206_v18, 0.0  ;;  %v208_v37 = vadd.f32 %v1556_v4, %v137_v11  ;;  %v139_v27 = vmul.f32 %v1549_v2, %v68_v28 }
  0x29   :  { %v268_v17 = vmax.f32 %v204_v51, 0.0  ;;  %v271_v62 = vmax.f32 %v207_v24, 0.0  ;;  %v140_v33 = vmul.f32 %v1549_v2, %v69_v61  ;;  %v190_v42 = vadd.f32 %v1556_v4, %v119_v32 }
  0x2a   :  { %v1891_v1 = vadd.f32 %v1556_v4, %v146_v54  ;;  %v191_v43 = vadd.f32 %v1556_v4, %v120_v34  ;;  %v121_v38 = vmul.f32 %v1549_v2, %v50_v36  ;;  %v252_v44 = vmax.f32 %v188_v30, 0.0 }
  0x2b   :  { %1437 = vmatmul.mubr.msk.f32.gmra.mrb[16].mxu0 %vm290_vm1, %v242_v3  ;;  %v149_v3 = vmul.f32 %v1549_v2, %v78_v49  ;;  %1476 = vmatmul.mubr.msk.f32.gmra.mrb[10].mxu1 %vm290_vm1, %v268_v17  ;;  %v272_v45 = vmax.f32 %v208_v37, 0.0  ;;  %v210_v47 = vadd.f32 %v1556_v4, %v139_v27  ;;  %v141_v49 = vmul.f32 %v1549_v2, %v70_v40 }
  0x2c   :  { %1439 = vmatprep.mubr.msk.f32.mxu0 %vm290_vm1, %v243_v5  ;;  %v150_v5 = vmul.f32 %v1549_v2, %v79_v50  ;;  %v253_v50 = vmax.f32 %v189_v31, 0.0  ;;  %v142_v54 = vmul.f32 %v1549_v2, %v71_v41  ;;  %v254_v55 = vmax.f32 %v190_v42, 0.0 }
  0x2d   :  { %v1911_v12 = vadd.f32 %v1556_v4, %v149_v3  ;;  %v192_v56 = vadd.f32 %v1556_v4, %v121_v38  ;;  %v274_v57 = vmax.f32 %v210_v47, 0.0  ;;  %v255_v60 = vmax.f32 %v191_v43, 0.0 }
  0x2e   :  { %v1914_v13 = vadd.f32 %v1556_v4, %v150_v5  ;;  %v213_v0 = vadd.f32 %v1556_v4, %v142_v54  ;;  %v281_v48 = vmax.f32 %v1891_v1, 0.0  ;;  %v286_v1 = vmax.f32 %v1927_v19, 0.0 }
  0x2f   :  { %1440 = vmatmul.mubr.msk.f32.gmra.mrb[18].mxu0 %vm290_vm1, %v244_v6  ;;  %v82_v6 = vld [vmem:[%s2605_s0 + $0x1f8] sm:$0xff] }
  0x30   :  { %1442 = vmatprep.mubr.msk.f32.mxu0 %vm290_vm1, %v245_v7  ;;  %v1903_v7 = vadd.f32 %v1556_v4, %v147_v59  ;;  %v153_v20 = vmul.f32 %v1549_v2, %v82_v6  ;;  %v212_v59 = vadd.f32 %v1556_v4, %v141_v49  ;;  %v256_v2 = vmax.f32 %v192_v56, 0.0 }
  0x31   :  { %v277_v5 = vmax.f32 %v213_v0, 0.0  ;;  %v278_v6 = vmax.f32 %v1855_v46, 0.0  ;;  %v283_v46 = vmax.f32 %v1906_v9, 0.0 }
  0x32   :  { %v276_v3 = vmax.f32 %v212_v59, 0.0  ;;  %v282_v10 = vmax.f32 %v1903_v7, 0.0  ;;  %v287_v7 = vmax.f32 %v1940_v29, 0.0 }
  0x33   :  { %1443 = vmatmul.mubr.msk.f32.gmra.mrb[20].mxu0 %vm290_vm1, %v246_v21  ;;  %v269_v21 = vmax.f32 %v205_v52, 0.0  ;;  %v211_v52 = vadd.f32 %v1556_v4, %v140_v33 }
  0x34   :  { %1445 = vmatprep.mubr.msk.f32.mxu0 %vm290_vm1, %v247_v22  ;;  %v1946_v22 = vadd.f32 %v1556_v4, %v153_v20 }
  0x35   :  { %1478 = vmatprep.mubr.msk.f32.mxu1 %vm290_vm1, %v269_v21  ;;  %v275_v63 = vmax.f32 %v211_v52, 0.0 }
  0x36   :  { %1479 = vmatmul.mubr.msk.f32.gmra.mrb[12].mxu1 %vm290_vm1, %v270_v26  ;;  %v288_v9 = vmax.f32 %v1946_v22, 0.0 }
  0x37   :  { %1446 = vmatmul.mubr.msk.f32.gmra.mrb[22].mxu0 %vm290_vm1, %v248_v23  ;;  %v209_v23 = vadd.f32 %v1556_v4, %v138_v25  ;;  %1481 = vmatprep.mubr.msk.f32.mxu1 %vm290_vm1, %v271_v62  ;;  %v279_v4 = vmax.f32 %v1867_v53, 0.0  ;;  %v284_v53 = vmax.f32 %v1911_v12, 0.0 }
  0x38   :  { %1448 = vmatprep.mubr.msk.f32.mxu0 %vm290_vm1, %v249_v8  ;;  %v280_v8 = vmax.f32 %v1879_v58, 0.0  ;;  %v285_v58 = vmax.f32 %v1914_v13, 0.0 }
  0x39   :  { %v273_v51 = vmax.f32 %v209_v23, 0.0 }
  0x3a   :  { %1482 = vmatmul.mubr.msk.f32.gmra.mrb[14].mxu1 %vm290_vm1, %v272_v45 }
  0x3b   :  { %1449 = vmatmul.mubr.msk.f32.gmra.mrb[24].mxu0 %vm290_vm1, %v250_v35  ;;  %1484 = vmatprep.mubr.msk.f32.mxu1 %vm290_vm1, %v273_v51 }
  0x3c   :  { %1451 = vmatprep.mubr.msk.f32.mxu0 %vm290_vm1, %v251_v39 }
  0x3e   :  { %1485 = vmatmul.mubr.msk.f32.gmra.mrb[16].mxu1 %vm290_vm1, %v274_v57 }
  0x3f   :  { %1452 = vmatmul.mubr.msk.f32.gmra.mrb[26].mxu0 %vm290_vm1, %v252_v44  ;;  %1487 = vmatprep.mubr.msk.f32.mxu1 %vm290_vm1, %v275_v63 }
  0x40   :  { %1454 = vmatprep.mubr.msk.f32.mxu0 %vm290_vm1, %v253_v50 }
  0x42   :  { %1488 = vmatmul.mubr.msk.f32.gmra.mrb[18].mxu1 %vm290_vm1, %v276_v3 }
  0x43   :  { %1455 = vmatmul.mubr.msk.f32.gmra.mrb[28].mxu0 %vm290_vm1, %v254_v55  ;;  %1490 = vmatprep.mubr.msk.f32.mxu1 %vm290_vm1, %v277_v5 }
  0x44   :  { %1457 = vmatprep.mubr.msk.f32.mxu0 %vm290_vm1, %v255_v60 }
  0x46   :  { %1491 = vmatmul.mubr.msk.f32.gmra.mrb[20].mxu1 %vm290_vm1, %v278_v6 }
  0x47   :  { %1458 = vmatmul.mubr.msk.f32.gmra.mrb[30].mxu0 %vm290_vm1, %v256_v2  ;;  %1493 = vmatprep.mubr.msk.f32.mxu1 %vm290_vm1, %v279_v4 }
  0x4a   :  { %1494 = vmatmul.mubr.msk.f32.gmra.mrb[22].mxu1 %vm290_vm1, %v280_v8 }
  0x4b   :  { %1496 = vmatprep.mubr.msk.f32.mxu1 %vm290_vm1, %v281_v48 }
  0x4e   :  { %1497 = vmatmul.mubr.msk.f32.gmra.mrb[24].mxu1 %vm290_vm1, %v282_v10 }
  0x4f   :  { %1499 = vmatprep.mubr.msk.f32.mxu1 %vm290_vm1, %v283_v46 }
  0x52   :  { %1500 = vmatmul.mubr.msk.f32.gmra.mrb[26].mxu1 %vm290_vm1, %v284_v53 }
  0x53   :  { %1502 = vmatprep.mubr.msk.f32.mxu1 %vm290_vm1, %v285_v58 }
  0x56   :  { %1503 = vmatmul.mubr.msk.f32.gmra.mrb[28].mxu1 %vm290_vm1, %v286_v1 }
  0x57   :  { %1505 = vmatprep.mubr.msk.f32.mxu1 %vm290_vm1, %v287_v7 }
  0x5a   :  { %1506 = vmatmul.mubr.msk.f32.gmra.mrb[30].mxu1 %vm290_vm1, %v288_v9 }
  0xde   :  { %v1414_v11 = vpop.f32.mrb[0].mxu0 }
  0xdf   :  { %874 = vst.msk [vmem:[%s2608_s4 + $0x8] sm:$0xff] %vm872_vm2, %v1414_v11  ;;  %v938_v12 = vsel %vm872_vm2, %v1414_v11, 0.0  ;;  %v1073_v13 = vmul.f32 %v1414_v11, %v1414_v11  ;;  %v553_v14 = vpop.f32.mrb[1].mxu0 }
  0xe0   :  { %873 = vst.msk [vmem:[%s2608_s4] sm:$0xff] %vm872_vm2, %v553_v14  ;;  %v937_v15 = vsel %vm872_vm2, %v553_v14, 0.0  ;;  %v1072_v16 = vmul.f32 %v553_v14, %v553_v14 }
  0xe1   :  { %v1137_v17 = vsel %vm872_vm2, %v1073_v13, 0.0  ;;  %v939_v18 = vadd.f32 %v938_v12, %v937_v15 }
  0xe2   :  { %v1136_v19 = vsel %vm872_vm2, %v1072_v16, 0.0  ;;  %v1417_v20 = vpop.f32.mrb[2].mxu0 }
  0xe3   :  { %v1138_v21 = vadd.f32 %v1137_v17, %v1136_v19  ;;  %876 = vst.msk [vmem:[%s2608_s4 + $0x18] sm:$0xff] %vm872_vm2, %v1417_v20  ;;  %v563_v24 = vpop.f32.mrb[3].mxu0  ;;  %v1075_v25 = vmul.f32 %v1417_v20, %v1417_v20  ;;  %v942_v22 = vsel %vm872_vm2, %v1417_v20, 0.0 }
  0xe4   :  { %875 = vst.msk [vmem:[%s2608_s4 + $0x10] sm:$0xff] %vm872_vm2, %v563_v24  ;;  %v940_v28 = vsel %vm872_vm2, %v563_v24, 0.0  ;;  %v1074_v29 = vmul.f32 %v563_v24, %v563_v24 }
  0xe5   :  { %v941_v61 = vadd.f32 %v940_v28, %v939_v18  ;;  %v1141_v36 = vsel %vm872_vm2, %v1075_v25, 0.0 }
  0xe6   :  { %v1139_v30 = vsel %vm872_vm2, %v1074_v29, 0.0  ;;  %v1420_v31 = vpop.f32.mrb[4].mxu0 }
  0xe7   :  { %v1140_v32 = vadd.f32 %v1139_v30, %v1138_v21  ;;  %878 = vst.msk [vmem:[%s2608_s4 + $0x28] sm:$0xff] %vm872_vm2, %v1420_v31  ;;  %v573_v34 = vpop.f32.mrb[5].mxu0  ;;  %v943_v35 = vadd.f32 %v942_v22, %v941_v61  ;;  %v1077_v26 = vmul.f32 %v1420_v31, %v1420_v31  ;;  %v946_v23 = vsel %vm872_vm2, %v1420_v31, 0.0 }
  0xe8   :  { %877 = vst.msk [vmem:[%s2608_s4 + $0x20] sm:$0xff] %vm872_vm2, %v573_v34  ;;  %v944_v37 = vsel %vm872_vm2, %v573_v34, 0.0  ;;  %v1076_v27 = vmul.f32 %v573_v34, %v573_v34 }
  0xe9   :  { %v945_v39 = vadd.f32 %v944_v37, %v943_v35  ;;  %v1142_v62 = vadd.f32 %v1141_v36, %v1140_v32  ;;  %v1145_v38 = vsel %vm872_vm2, %v1077_v26, 0.0 }
  0xea   :  { %v1143_v33 = vsel %vm872_vm2, %v1076_v27, 0.0  ;;  %v1423_v40 = vpop.f32.mrb[6].mxu0  ;;  %v2093_v14 = vpop.f32.mrb[0].mxu1 }
  0xeb   :  { %v1144_v41 = vadd.f32 %v1143_v33, %v1142_v62  ;;  %880 = vst.msk [vmem:[%s2608_s4 + $0x38] sm:$0xff] %vm872_vm2, %v1423_v40  ;;  %v583_v42 = vpop.f32.mrb[7].mxu0  ;;  %v947_v43 = vadd.f32 %v946_v23, %v945_v39  ;;  %v1079_v44 = vmul.f32 %v1423_v40, %v1423_v40  ;;  %v950_v51 = vsel %vm872_vm2, %v1423_v40, 0.0  ;;  %906 = vst.msk [vmem:[%s2608_s4 + $0x108] sm:$0xff] %vm872_vm2, %v2093_v14  ;;  %v2104_v18 = vpop.f32.mrb[1].mxu1 }
  0xec   :  { %879 = vst.msk [vmem:[%s2608_s4 + $0x30] sm:$0xff] %vm872_vm2, %v583_v42  ;;  %v948_v45 = vsel %vm872_vm2, %v583_v42, 0.0  ;;  %v1078_v47 = vmul.f32 %v583_v42, %v583_v42  ;;  %905 = vst.msk [vmem:[%s2608_s4 + $0x100] sm:$0xff] %vm872_vm2, %v2104_v18 }
  0xed   :  { %v949_v49 = vadd.f32 %v948_v45, %v947_v43  ;;  %v1146_v50 = vadd.f32 %v1145_v38, %v1144_v41  ;;  %v1149_v59 = vsel %vm872_vm2, %v1079_v44, 0.0 }
  0xee   :  { %v1147_v52 = vsel %vm872_vm2, %v1078_v47, 0.0  ;;  %v1426_v54 = vpop.f32.mrb[8].mxu0  ;;  %v2119_v30 = vpop.f32.mrb[2].mxu1 }
  0xef   :  { %v1148_v55 = vadd.f32 %v1147_v52, %v1146_v50  ;;  %882 = vst.msk [vmem:[%s2608_s4 + $0x48] sm:$0xff] %vm872_vm2, %v1426_v54  ;;  %v593_v56 = vpop.f32.mrb[9].mxu0  ;;  %v951_v57 = vadd.f32 %v950_v51, %v949_v49  ;;  %v1081_v60 = vmul.f32 %v1426_v54, %v1426_v54  ;;  %v954_v5 = vsel %vm872_vm2, %v1426_v54, 0.0  ;;  %908 = vst.msk [vmem:[%s2608_s4 + $0x118] sm:$0xff] %vm872_vm2, %v2119_v30  ;;  %v2130_v35 = vpop.f32.mrb[3].mxu1 }
  0xf0   :  { %881 = vst.msk [vmem:[%s2608_s4 + $0x40] sm:$0xff] %vm872_vm2, %v593_v56  ;;  %v952_v63 = vsel %vm872_vm2, %v593_v56, 0.0  ;;  %v1080_v0 = vmul.f32 %v593_v56, %v593_v56  ;;  %907 = vst.msk [vmem:[%s2608_s4 + $0x110] sm:$0xff] %vm872_vm2, %v2130_v35 }
  0xf1   :  { %v953_v2 = vadd.f32 %v952_v63, %v951_v57  ;;  %v1150_v3 = vadd.f32 %v1149_v59, %v1148_v55  ;;  %v1153_v46 = vsel %vm872_vm2, %v1081_v60, 0.0 }
  0xf2   :  { %v1151_v6 = vsel %vm872_vm2, %v1080_v0, 0.0  ;;  %v1429_v4 = vpop.f32.mrb[10].mxu0  ;;  %v2145_v41 = vpop.f32.mrb[4].mxu1 }
  0xf3   :  { %v1152_v8 = vadd.f32 %v1151_v6, %v1150_v3  ;;  %884 = vst.msk [vmem:[%s2608_s4 + $0x58] sm:$0xff] %vm872_vm2, %v1429_v4  ;;  %v603_v48 = vpop.f32.mrb[11].mxu0  ;;  %v955_v10 = vadd.f32 %v954_v5, %v953_v2  ;;  %v1083_v53 = vmul.f32 %v1429_v4, %v1429_v4  ;;  %v958_v11 = vsel %vm872_vm2, %v1429_v4, 0.0  ;;  %910 = vst.msk [vmem:[%s2608_s4 + $0x128] sm:$0xff] %vm872_vm2, %v2145_v41  ;;  %v2156_v44 = vpop.f32.mrb[5].mxu1 }
  0xf4   :  { %883 = vst.msk [vmem:[%s2608_s4 + $0x50] sm:$0xff] %vm872_vm2, %v603_v48  ;;  %v956_v58 = vsel %vm872_vm2, %v603_v48, 0.0  ;;  %v1082_v1 = vmul.f32 %v603_v48, %v603_v48  ;;  %909 = vst.msk [vmem:[%s2608_s4 + $0x120] sm:$0xff] %vm872_vm2, %v2156_v44 }
  0xf5   :  { %v957_v7 = vadd.f32 %v956_v58, %v955_v10  ;;  %v1154_v9 = vadd.f32 %v1153_v46, %v1152_v8  ;;  %v1157_v19 = vsel %vm872_vm2, %v1083_v53, 0.0 }
  0xf6   :  { %v1155_v12 = vsel %vm872_vm2, %v1082_v1, 0.0  ;;  %v1432_v13 = vpop.f32.mrb[12].mxu0  ;;  %v2171_v57 = vpop.f32.mrb[6].mxu1 }
  0xf7   :  { %v1156_v15 = vadd.f32 %v1155_v12, %v1154_v9  ;;  %886 = vst.msk [vmem:[%s2608_s4 + $0x68] sm:$0xff] %vm872_vm2, %v1432_v13  ;;  %v613_v16 = vpop.f32.mrb[13].mxu0  ;;  %v959_v17 = vadd.f32 %v958_v11, %v957_v7  ;;  %v1085_v20 = vmul.f32 %v1432_v13, %v1432_v13  ;;  %v962_v29 = vsel %vm872_vm2, %v1432_v13, 0.0  ;;  %912 = vst.msk [vmem:[%s2608_s4 + $0x138] sm:$0xff] %vm872_vm2, %v2171_v57  ;;  %v2182_v0 = vpop.f32.mrb[7].mxu1 }
  0xf8   :  { %885 = vst.msk [vmem:[%s2608_s4 + $0x60] sm:$0xff] %vm872_vm2, %v613_v16  ;;  %v960_v21 = vsel %vm872_vm2, %v613_v16, 0.0  ;;  %v1084_v24 = vmul.f32 %v613_v16, %v613_v16  ;;  %911 = vst.msk [vmem:[%s2608_s4 + $0x130] sm:$0xff] %vm872_vm2, %v2182_v0 }
  0xf9   :  { %v961_v25 = vadd.f32 %v960_v21, %v959_v17  ;;  %v1158_v28 = vadd.f32 %v1157_v19, %v1156_v15  ;;  %v1161_v36 = vsel %vm872_vm2, %v1085_v20, 0.0 }
  0xfa   :  { %v1159_v61 = vsel %vm872_vm2, %v1084_v24, 0.0  ;;  %v1435_v22 = vpop.f32.mrb[14].mxu0  ;;  %v2197_v53 = vpop.f32.mrb[8].mxu1 }
  0xfb   :  { %v1160_v31 = vadd.f32 %v1159_v61, %v1158_v28  ;;  %888 = vst.msk [vmem:[%s2608_s4 + $0x78] sm:$0xff] %vm872_vm2, %v1435_v22  ;;  %v623_v32 = vpop.f32.mrb[15].mxu0  ;;  %v963_v34 = vadd.f32 %v962_v29, %v961_v25  ;;  %v1087_v26 = vmul.f32 %v1435_v22, %v1435_v22  ;;  %v966_v23 = vsel %vm872_vm2, %v1435_v22, 0.0  ;;  %914 = vst.msk [vmem:[%s2608_s4 + $0x148] sm:$0xff] %vm872_vm2, %v2197_v53  ;;  %v2208_v9 = vpop.f32.mrb[9].mxu1 }
  0xfc   :  { %887 = vst.msk [vmem:[%s2608_s4 + $0x70] sm:$0xff] %vm872_vm2, %v623_v32  ;;  %v964_v37 = vsel %vm872_vm2, %v623_v32, 0.0  ;;  %v1086_v27 = vmul.f32 %v623_v32, %v623_v32  ;;  %913 = vst.msk [vmem:[%s2608_s4 + $0x140] sm:$0xff] %vm872_vm2, %v2208_v9 }
  0xfd   :  { %v965_v39 = vadd.f32 %v964_v37, %v963_v34  ;;  %v1162_v62 = vadd.f32 %v1161_v36, %v1160_v31  ;;  %v1165_v45 = vsel %vm872_vm2, %v1087_v26, 0.0 }
  0xfe   :  { %v1163_v33 = vsel %vm872_vm2, %v1086_v27, 0.0  ;;  %v1438_v40 = vpop.f32.mrb[16].mxu0  ;;  %v2223_v24 = vpop.f32.mrb[10].mxu1 }
  0xff   :  { %v1164_v42 = vadd.f32 %v1163_v33, %v1162_v62  ;;  %890 = vst.msk [vmem:[%s2608_s4 + $0x88] sm:$0xff] %vm872_vm2, %v1438_v40  ;;  %v633_v43 = vpop.f32.mrb[17].mxu0  ;;  %v967_v38 = vadd.f32 %v966_v23, %v965_v39  ;;  %v1089_v47 = vmul.f32 %v1438_v40, %v1438_v40  ;;  %v970_v54 = vsel %vm872_vm2, %v1438_v40, 0.0  ;;  %916 = vst.msk [vmem:[%s2608_s4 + $0x158] sm:$0xff] %vm872_vm2, %v2223_v24  ;;  %v2234_v61 = vpop.f32.mrb[11].mxu1 }
 0x100   :  { %889 = vst.msk [vmem:[%s2608_s4 + $0x80] sm:$0xff] %vm872_vm2, %v633_v43  ;;  %v968_v49 = vsel %vm872_vm2, %v633_v43, 0.0  ;;  %v1088_v50 = vmul.f32 %v633_v43, %v633_v43  ;;  %915 = vst.msk [vmem:[%s2608_s4 + $0x150] sm:$0xff] %vm872_vm2, %v2234_v61 }
 0x101   :  { %v969_v51 = vadd.f32 %v968_v49, %v967_v38  ;;  %v1166_v52 = vadd.f32 %v1165_v45, %v1164_v42  ;;  %v1169_v2 = vsel %vm872_vm2, %v1089_v47, 0.0 }
 0x102   :  { %v1167_v55 = vsel %vm872_vm2, %v1088_v50, 0.0  ;;  %v1441_v56 = vpop.f32.mrb[18].mxu0 }
 0x103   :  { %v1168_v59 = vadd.f32 %v1167_v55, %v1166_v52  ;;  %892 = vst.msk [vmem:[%s2608_s4 + $0x98] sm:$0xff] %vm872_vm2, %v1441_v56  ;;  %v643_v60 = vpop.f32.mrb[19].mxu0  ;;  %v971_v63 = vadd.f32 %v970_v54, %v969_v51  ;;  %v1091_v3 = vmul.f32 %v1441_v56, %v1441_v56  ;;  %v974_v48 = vsel %vm872_vm2, %v1441_v56, 0.0 }
 0x104   :  { %891 = vst.msk [vmem:[%s2608_s4 + $0x90] sm:$0xff] %vm872_vm2, %v643_v60  ;;  %v972_v5 = vsel %vm872_vm2, %v643_v60, 0.0  ;;  %v1090_v6 = vmul.f32 %v643_v60, %v643_v60 }
 0x105   :  { %v973_v4 = vadd.f32 %v972_v5, %v971_v63  ;;  %v1170_v8 = vadd.f32 %v1169_v2, %v1168_v59  ;;  %v1173_v11 = vsel %vm872_vm2, %v1091_v3, 0.0 }
 0x106   :  { %v1171_v10 = vsel %vm872_vm2, %v1090_v6, 0.0  ;;  %v1444_v46 = vpop.f32.mrb[20].mxu0 }
 0x107   :  { %v1172_v58 = vadd.f32 %v1171_v10, %v1170_v8  ;;  %894 = vst.msk [vmem:[%s2608_s4 + $0xa8] sm:$0xff] %vm872_vm2, %v1444_v46  ;;  %v653_v1 = vpop.f32.mrb[21].mxu0  ;;  %v975_v7 = vadd.f32 %v974_v48, %v973_v4  ;;  %v1093_v12 = vmul.f32 %v1444_v46, %v1444_v46  ;;  %v978_v19 = vsel %vm872_vm2, %v1444_v46, 0.0 }
 0x108   :  { %893 = vst.msk [vmem:[%s2608_s4 + $0xa0] sm:$0xff] %vm872_vm2, %v653_v1  ;;  %v976_v13 = vsel %vm872_vm2, %v653_v1, 0.0  ;;  %v1092_v15 = vmul.f32 %v653_v1, %v653_v1 }
 0x109   :  { %v977_v16 = vadd.f32 %v976_v13, %v975_v7  ;;  %v1174_v17 = vadd.f32 %v1173_v11, %v1172_v58  ;;  %v1177_v22 = vsel %vm872_vm2, %v1093_v12, 0.0  ;;  %v2249_v62 = vpop.f32.mrb[12].mxu1 }
 0x10a   :  { %v1175_v20 = vsel %vm872_vm2, %v1092_v15, 0.0  ;;  %v1447_v21 = vpop.f32.mrb[22].mxu0  ;;  %918 = vst.msk [vmem:[%s2608_s4 + $0x168] sm:$0xff] %vm872_vm2, %v2249_v62  ;;  %v2260_v42 = vpop.f32.mrb[13].mxu1 }
 0x10b   :  { %v1176_v25 = vadd.f32 %v1175_v20, %v1174_v17  ;;  %896 = vst.msk [vmem:[%s2608_s4 + $0xb8] sm:$0xff] %vm872_vm2, %v1447_v21  ;;  %v663_v28 = vpop.f32.mrb[23].mxu0  ;;  %v979_v29 = vadd.f32 %v978_v19, %v977_v16  ;;  %v1095_v31 = vmul.f32 %v1447_v21, %v1447_v21  ;;  %v982_v37 = vsel %vm872_vm2, %v1447_v21, 0.0  ;;  %917 = vst.msk [vmem:[%s2608_s4 + $0x160] sm:$0xff] %vm872_vm2, %v2260_v42 }
 0x10c   :  { %895 = vst.msk [vmem:[%s2608_s4 + $0xb0] sm:$0xff] %vm872_vm2, %v663_v28  ;;  %v980_v32 = vsel %vm872_vm2, %v663_v28, 0.0  ;;  %v1094_v34 = vmul.f32 %v663_v28, %v663_v28 }
 0x10d   :  { %v981_v36 = vadd.f32 %v980_v32, %v979_v29  ;;  %v1178_v26 = vadd.f32 %v1177_v22, %v1176_v25  ;;  %v1181_v43 = vsel %vm872_vm2, %v1095_v31, 0.0  ;;  %v2275_v55 = vpop.f32.mrb[14].mxu1 }
 0x10e   :  { %v1179_v27 = vsel %vm872_vm2, %v1094_v34, 0.0  ;;  %v1450_v39 = vpop.f32.mrb[24].mxu0  ;;  %920 = vst.msk [vmem:[%s2608_s4 + $0x178] sm:$0xff] %vm872_vm2, %v2275_v55  ;;  %v2286_v63 = vpop.f32.mrb[15].mxu1  ;;  %v1104_v34 = vmul.f32 %v2104_v18, %v2104_v18 }
 0x10f   :  { %v1180_v23 = vadd.f32 %v1179_v27, %v1178_v26  ;;  %898 = vst.msk [vmem:[%s2608_s4 + $0xc8] sm:$0xff] %vm872_vm2, %v1450_v39  ;;  %v673_v33 = vpop.f32.mrb[25].mxu0  ;;  %v983_v40 = vadd.f32 %v982_v37, %v981_v36  ;;  %v1097_v38 = vmul.f32 %v1450_v39, %v1450_v39  ;;  %v986_v51 = vsel %vm872_vm2, %v1450_v39, 0.0  ;;  %919 = vst.msk [vmem:[%s2608_s4 + $0x170] sm:$0xff] %vm872_vm2, %v2286_v63 }
 0x110   :  { %897 = vst.msk [vmem:[%s2608_s4 + $0xc0] sm:$0xff] %vm872_vm2, %v673_v33  ;;  %v984_v45 = vsel %vm872_vm2, %v673_v33, 0.0  ;;  %v1096_v47 = vmul.f32 %v673_v33, %v673_v33 }
 0x111   :  { %v985_v49 = vadd.f32 %v984_v45, %v983_v40  ;;  %v1182_v50 = vadd.f32 %v1181_v43, %v1180_v23  ;;  %v1185_v2 = vsel %vm872_vm2, %v1097_v38, 0.0  ;;  %v2301_v58 = vpop.f32.mrb[16].mxu1  ;;  %v1000_v38 = vsel %vm872_vm2, %v2104_v18, 0.0 }
 0x112   :  { %v1183_v52 = vsel %vm872_vm2, %v1096_v47, 0.0  ;;  %v1453_v54 = vpop.f32.mrb[26].mxu0  ;;  %922 = vst.msk [vmem:[%s2608_s4 + $0x188] sm:$0xff] %vm872_vm2, %v2301_v58  ;;  %v2312_v12 = vpop.f32.mrb[17].mxu1  ;;  %v1106_v18 = vmul.f32 %v2130_v35, %v2130_v35 }
 0x113   :  { %v1184_v56 = vadd.f32 %v1183_v52, %v1182_v50  ;;  %900 = vst.msk [vmem:[%s2608_s4 + $0xd8] sm:$0xff] %vm872_vm2, %v1453_v54  ;;  %v683_v59 = vpop.f32.mrb[27].mxu0  ;;  %v987_v60 = vadd.f32 %v986_v51, %v985_v49  ;;  %v1099_v3 = vmul.f32 %v1453_v54, %v1453_v54  ;;  %v990_v48 = vsel %vm872_vm2, %v1453_v54, 0.0  ;;  %921 = vst.msk [vmem:[%s2608_s4 + $0x180] sm:$0xff] %vm872_vm2, %v2312_v12 }
 0x114   :  { %899 = vst.msk [vmem:[%s2608_s4 + $0xd0] sm:$0xff] %vm872_vm2, %v683_v59  ;;  %v988_v5 = vsel %vm872_vm2, %v683_v59, 0.0  ;;  %v1098_v6 = vmul.f32 %v683_v59, %v683_v59  ;;  %v1105_v52 = vmul.f32 %v2093_v14, %v2093_v14  ;;  %v1199_v54 = vsel %vm872_vm2, %v1104_v34, 0.0 }
 0x115   :  { %v989_v4 = vadd.f32 %v988_v5, %v987_v60  ;;  %v1186_v8 = vadd.f32 %v1185_v2, %v1184_v56  ;;  %v1189_v13 = vsel %vm872_vm2, %v1099_v3, 0.0  ;;  %v2327_v29 = vpop.f32.mrb[18].mxu1  ;;  %v1002_v60 = vsel %vm872_vm2, %v2093_v14, 0.0 }
 0x116   :  { %v1187_v10 = vsel %vm872_vm2, %v1098_v6, 0.0  ;;  %v1456_v46 = vpop.f32.mrb[28].mxu0  ;;  %924 = vst.msk [vmem:[%s2608_s4 + $0x198] sm:$0xff] %vm872_vm2, %v2327_v29  ;;  %v2340_v36 = vpop.f32.mrb[19].mxu1  ;;  %v1004_v2 = vsel %vm872_vm2, %v2130_v35, 0.0  ;;  %v1107_v14 = vmul.f32 %v2119_v30, %v2119_v30  ;;  %v1108_v35 = vmul.f32 %v2156_v44, %v2156_v44 }
 0x117   :  { %v1188_v1 = vadd.f32 %v1187_v10, %v1186_v8  ;;  %902 = vst.msk [vmem:[%s2608_s4 + $0xe8] sm:$0xff] %vm872_vm2, %v1456_v46  ;;  %v693_v7 = vpop.f32.mrb[29].mxu0  ;;  %v991_v11 = vadd.f32 %v990_v48, %v989_v4  ;;  %v1101_v15 = vmul.f32 %v1456_v46, %v1456_v46  ;;  %v994_v21 = vsel %vm872_vm2, %v1456_v46, 0.0  ;;  %923 = vst.msk [vmem:[%s2608_s4 + $0x190] sm:$0xff] %vm872_vm2, %v2340_v36 }
 0x118   :  { %901 = vst.msk [vmem:[%s2608_s4 + $0xe0] sm:$0xff] %vm872_vm2, %v693_v7  ;;  %v992_v16 = vsel %vm872_vm2, %v693_v7, 0.0  ;;  %v1100_v17 = vmul.f32 %v693_v7, %v693_v7  ;;  %v1201_v8 = vsel %vm872_vm2, %v1105_v52, 0.0  ;;  %v1203_v48 = vsel %vm872_vm2, %v1106_v18, 0.0 }
 0x119   :  { %v993_v19 = vadd.f32 %v992_v16, %v991_v11  ;;  %v1190_v20 = vadd.f32 %v1189_v13, %v1188_v1  ;;  %v1193_v26 = vsel %vm872_vm2, %v1101_v15, 0.0  ;;  %v2357_v45 = vpop.f32.mrb[20].mxu1  ;;  %v1006_v1 = vsel %vm872_vm2, %v2119_v30, 0.0 }
 0x11a   :  { %v1191_v25 = vsel %vm872_vm2, %v1100_v17, 0.0  ;;  %v1459_v28 = vpop.f32.mrb[30].mxu0  ;;  %926 = vst.msk [vmem:[%s2608_s4 + $0x1a8] sm:$0xff] %vm872_vm2, %v2357_v45  ;;  %v2364_v50 = vpop.f32.mrb[21].mxu1  ;;  %v1008_v7 = vsel %vm872_vm2, %v2156_v44, 0.0  ;;  %v1205_v17 = vsel %vm872_vm2, %v1107_v14, 0.0  ;;  %v1109_v30 = vmul.f32 %v2145_v41, %v2145_v41 }
 0x11b   :  { %v1192_v22 = vadd.f32 %v1191_v25, %v1190_v20  ;;  %904 = vst.msk [vmem:[%s2608_s4 + $0xf8] sm:$0xff] %vm872_vm2, %v1459_v28  ;;  %v703_v31 = vpop.f32.mrb[31].mxu0  ;;  %v995_v32 = vadd.f32 %v994_v21, %v993_v19  ;;  %v1103_v37 = vmul.f32 %v1459_v28, %v1459_v28  ;;  %v998_v40 = vsel %vm872_vm2, %v1459_v28, 0.0  ;;  %925 = vst.msk [vmem:[%s2608_s4 + $0x1a0] sm:$0xff] %vm872_vm2, %v2364_v50 }
 0x11c   :  { %903 = vst.msk [vmem:[%s2608_s4 + $0xf0] sm:$0xff] %vm872_vm2, %v703_v31  ;;  %v996_v27 = vsel %vm872_vm2, %v703_v31, 0.0  ;;  %v1102_v39 = vmul.f32 %v703_v31, %v703_v31  ;;  %v1207_v19 = vsel %vm872_vm2, %v1108_v35, 0.0  ;;  %v1110_v44 = vmul.f32 %v2182_v0, %v2182_v0 }
 0x11d   :  { %v997_v23 = vadd.f32 %v996_v27, %v995_v32  ;;  %v1194_v33 = vadd.f32 %v1193_v26, %v1192_v22  ;;  %v1197_v51 = vsel %vm872_vm2, %v1103_v37, 0.0  ;;  %v2381_v3 = vpop.f32.mrb[22].mxu1  ;;  %v1010_v25 = vsel %vm872_vm2, %v2145_v41, 0.0 }
 0x11e   :  { %v1195_v43 = vsel %vm872_vm2, %v1102_v39, 0.0  ;;  %928 = vst.msk [vmem:[%s2608_s4 + $0x1b8] sm:$0xff] %vm872_vm2, %v2381_v3  ;;  %v2388_v4 = vpop.f32.mrb[23].mxu1  ;;  %v1012_v28 = vsel %vm872_vm2, %v2182_v0, 0.0  ;;  %v1209_v26 = vsel %vm872_vm2, %v1109_v30, 0.0  ;;  %v1111_v41 = vmul.f32 %v2171_v57, %v2171_v57 }
 0x11f   :  { %v999_v47 = vadd.f32 %v998_v40, %v997_v23  ;;  %v1196_v49 = vadd.f32 %v1195_v43, %v1194_v33  ;;  %927 = vst.msk [vmem:[%s2608_s4 + $0x1b0] sm:$0xff] %vm872_vm2, %v2388_v4  ;;  %v1211_v37 = vsel %vm872_vm2, %v1110_v44, 0.0  ;;  %v1112_v0 = vmul.f32 %v2208_v9, %v2208_v9 }
 0x120   :  { %v1014_v23 = vsel %vm872_vm2, %v2171_v57, 0.0  ;;  %v1016_v33 = vsel %vm872_vm2, %v2208_v9, 0.0  ;;  %v1113_v57 = vmul.f32 %v2197_v53, %v2197_v53  ;;  %v1114_v9 = vmul.f32 %v2234_v61, %v2234_v61 }
 0x121   :  { %v1198_v56 = vadd.f32 %v1197_v51, %v1196_v49  ;;  %v1001_v59 = vadd.f32 %v1000_v38, %v999_v47  ;;  %v2405_v11 = vpop.f32.mrb[24].mxu1  ;;  %v1213_v49 = vsel %vm872_vm2, %v1111_v41, 0.0  ;;  %v1215_v51 = vsel %vm872_vm2, %v1112_v0, 0.0 }
 0x122   :  { %930 = vst.msk [vmem:[%s2608_s4 + $0x1c8] sm:$0xff] %vm872_vm2, %v2405_v11  ;;  %v2412_v16 = vpop.f32.mrb[25].mxu1  ;;  %v1018_v18 = vsel %vm872_vm2, %v2197_v53, 0.0  ;;  %v1115_v53 = vmul.f32 %v2223_v24, %v2223_v24  ;;  %v1022_v35 = vsel %vm872_vm2, %v2223_v24, 0.0  ;;  %v1026_v24 = vsel %vm872_vm2, %v2249_v62, 0.0 }
 0x123   :  { %v1200_v5 = vadd.f32 %v1199_v54, %v1198_v56  ;;  %v1003_v6 = vadd.f32 %v1002_v60, %v1001_v59  ;;  %929 = vst.msk [vmem:[%s2608_s4 + $0x1c0] sm:$0xff] %vm872_vm2, %v2412_v16  ;;  %v1020_v56 = vsel %vm872_vm2, %v2234_v61, 0.0  ;;  %v1116_v61 = vmul.f32 %v2260_v42, %v2260_v42 }
 0x125   :  { %v1005_v10 = vadd.f32 %v1004_v2, %v1003_v6  ;;  %v1202_v46 = vadd.f32 %v1201_v8, %v1200_v5  ;;  %v2429_v22 = vpop.f32.mrb[26].mxu1  ;;  %v1217_v6 = vsel %vm872_vm2, %v1113_v57, 0.0  ;;  %v1219_v8 = vsel %vm872_vm2, %v1114_v9, 0.0 }
 0x126   :  { %932 = vst.msk [vmem:[%s2608_s4 + $0x1d8] sm:$0xff] %vm872_vm2, %v2429_v22  ;;  %v2436_v34 = vpop.f32.mrb[27].mxu1 }
 0x127   :  { %v1204_v13 = vadd.f32 %v1203_v48, %v1202_v46  ;;  %v1007_v15 = vadd.f32 %v1006_v1, %v1005_v10  ;;  %931 = vst.msk [vmem:[%s2608_s4 + $0x1d0] sm:$0xff] %vm872_vm2, %v2436_v34  ;;  %v1024_v10 = vsel %vm872_vm2, %v2260_v42, 0.0  ;;  %v1028_v42 = vsel %vm872_vm2, %v2286_v63, 0.0 }
 0x129   :  { %v1009_v20 = vadd.f32 %v1008_v7, %v1007_v15  ;;  %v1206_v21 = vadd.f32 %v1205_v17, %v1204_v13  ;;  %v2453_v40 = vpop.f32.mrb[28].mxu1  ;;  %v1221_v7 = vsel %vm872_vm2, %v1115_v53, 0.0  ;;  %v1117_v13 = vmul.f32 %v2249_v62, %v2249_v62 }
 0x12a   :  { %934 = vst.msk [vmem:[%s2608_s4 + $0x1e8] sm:$0xff] %vm872_vm2, %v2453_v40  ;;  %v2460_v47 = vpop.f32.mrb[29].mxu1  ;;  %v1223_v15 = vsel %vm872_vm2, %v1116_v61, 0.0  ;;  %v1118_v17 = vmul.f32 %v2286_v63, %v2286_v63  ;;  %v1030_v62 = vsel %vm872_vm2, %v2275_v55, 0.0  ;;  %v1032_v63 = vsel %vm872_vm2, %v2312_v12, 0.0 }
 0x12b   :  { %v1208_v31 = vadd.f32 %v1207_v19, %v1206_v21  ;;  %v1011_v32 = vadd.f32 %v1010_v25, %v1009_v20  ;;  %933 = vst.msk [vmem:[%s2608_s4 + $0x1e0] sm:$0xff] %vm872_vm2, %v2460_v47  ;;  %v1225_v21 = vsel %vm872_vm2, %v1117_v13, 0.0  ;;  %v1119_v25 = vmul.f32 %v2275_v55, %v2275_v55 }
 0x12c   :  { %v1034_v55 = vsel %vm872_vm2, %v2301_v58, 0.0 }
 0x12d   :  { %v1013_v27 = vadd.f32 %v1012_v28, %v1011_v32  ;;  %v1210_v39 = vadd.f32 %v1209_v26, %v1208_v31  ;;  %v2477_v59 = vpop.f32.mrb[30].mxu1  ;;  %v1227_v28 = vsel %vm872_vm2, %v1118_v17, 0.0  ;;  %v1120_v31 = vmul.f32 %v2312_v12, %v2312_v12 }
 0x12e   :  { %936 = vst.msk [vmem:[%s2608_s4 + $0x1f8] sm:$0xff] %vm872_vm2, %v2477_v59  ;;  %v2484_v5 = vpop.f32.mrb[31].mxu1  ;;  %v1229_v0 = vsel %vm872_vm2, %v1119_v25, 0.0  ;;  %v1036_v12 = vsel %vm872_vm2, %v2340_v36, 0.0 }
 0x12f   :  { %v1212_v43 = vadd.f32 %v1211_v37, %v1210_v39  ;;  %v1015_v38 = vadd.f32 %v1014_v23, %v1013_v27  ;;  %935 = vst.msk [vmem:[%s2608_s4 + $0x1f0] sm:$0xff] %vm872_vm2, %v2484_v5  ;;  %v1121_v27 = vmul.f32 %v2301_v58, %v2301_v58  ;;  %v1231_v39 = vsel %vm872_vm2, %v1120_v31, 0.0 }
 0x130   :  { %v1122_v23 = vmul.f32 %v2340_v36, %v2340_v36  ;;  %v1038_v58 = vsel %vm872_vm2, %v2327_v29, 0.0  ;;  %v1040_v36 = vsel %vm872_vm2, %v2364_v50, 0.0 }
 0x131   :  { %v1017_v52 = vadd.f32 %v1016_v33, %v1015_v38  ;;  %v1214_v54 = vadd.f32 %v1213_v49, %v1212_v43  ;;  %v1233_v57 = vsel %vm872_vm2, %v1121_v27, 0.0 }
 0x132   :  { %v1235_v9 = vsel %vm872_vm2, %v1122_v23, 0.0 }
 0x133   :  { %v1216_v60 = vadd.f32 %v1215_v51, %v1214_v54  ;;  %v1019_v2 = vadd.f32 %v1018_v18, %v1017_v52  ;;  %v1123_v51 = vmul.f32 %v2327_v29, %v2327_v29  ;;  %v1124_v52 = vmul.f32 %v2364_v50, %v2364_v50 }
 0x134   :  { %v1042_v29 = vsel %vm872_vm2, %v2357_v45, 0.0  ;;  %v1044_v50 = vsel %vm872_vm2, %v2388_v4, 0.0 }
 0x135   :  { %v1021_v14 = vadd.f32 %v1020_v56, %v1019_v2  ;;  %v1218_v48 = vadd.f32 %v1217_v6, %v1216_v60  ;;  %v1237_v2 = vsel %vm872_vm2, %v1123_v51, 0.0  ;;  %v1125_v6 = vmul.f32 %v2357_v45, %v2357_v45 }
 0x136   :  { %v1239_v53 = vsel %vm872_vm2, %v1124_v52, 0.0  ;;  %v1046_v45 = vsel %vm872_vm2, %v2381_v3, 0.0 }
 0x137   :  { %v1220_v46 = vadd.f32 %v1219_v8, %v1218_v48  ;;  %v1023_v1 = vadd.f32 %v1022_v35, %v1021_v14  ;;  %v1126_v8 = vmul.f32 %v2388_v4, %v2388_v4  ;;  %v1048_v4 = vsel %vm872_vm2, %v2412_v16, 0.0 }
 0x139   :  { %v1025_v30 = vadd.f32 %v1024_v10, %v1023_v1  ;;  %v1222_v19 = vadd.f32 %v1221_v7, %v1220_v46  ;;  %v1241_v10 = vsel %vm872_vm2, %v1125_v6, 0.0  ;;  %v1127_v46 = vmul.f32 %v2381_v3, %v2381_v3 }
 0x13a   :  { %v1243_v1 = vsel %vm872_vm2, %v1126_v8, 0.0  ;;  %v1128_v7 = vmul.f32 %v2412_v16, %v2412_v16  ;;  %v1050_v3 = vsel %vm872_vm2, %v2405_v11, 0.0  ;;  %v1052_v16 = vsel %vm872_vm2, %v2436_v34, 0.0 }
 0x13b   :  { %v1224_v44 = vadd.f32 %v1223_v15, %v1222_v19  ;;  %v1027_v20 = vadd.f32 %v1026_v24, %v1025_v30  ;;  %v1245_v19 = vsel %vm872_vm2, %v1127_v46, 0.0  ;;  %v1129_v24 = vmul.f32 %v2405_v11, %v2405_v11 }
 0x13c   :  { %v1054_v11 = vsel %vm872_vm2, %v2429_v22, 0.0 }
 0x13d   :  { %v1029_v32 = vadd.f32 %v1028_v42, %v1027_v20  ;;  %v1226_v26 = vadd.f32 %v1225_v21, %v1224_v44  ;;  %v1247_v42 = vsel %vm872_vm2, %v1128_v7, 0.0  ;;  %v1130_v44 = vmul.f32 %v2436_v34, %v2436_v34 }
 0x13e   :  { %v1249_v31 = vsel %vm872_vm2, %v1129_v24, 0.0  ;;  %v1056_v34 = vsel %vm872_vm2, %v2460_v47, 0.0 }
 0x13f   :  { %v1228_v41 = vadd.f32 %v1227_v28, %v1226_v26  ;;  %v1031_v37 = vadd.f32 %v1030_v62, %v1029_v32  ;;  %v1131_v32 = vmul.f32 %v2429_v22, %v2429_v22  ;;  %v1251_v26 = vsel %vm872_vm2, %v1130_v44, 0.0 }
 0x140   :  { %v1132_v62 = vmul.f32 %v2460_v47, %v2460_v47  ;;  %v1058_v22 = vsel %vm872_vm2, %v2453_v40, 0.0  ;;  %v1060_v47 = vsel %vm872_vm2, %v2484_v5, 0.0 }
 0x141   :  { %v1033_v33 = vadd.f32 %v1032_v63, %v1031_v37  ;;  %v1230_v43 = vadd.f32 %v1229_v0, %v1228_v41  ;;  %v1253_v27 = vsel %vm872_vm2, %v1131_v32, 0.0 }
 0x142   :  { %v1255_v23 = vsel %vm872_vm2, %v1132_v62, 0.0 }
 0x143   :  { %v1232_v38 = vadd.f32 %v1231_v39, %v1230_v43  ;;  %v1035_v49 = vadd.f32 %v1034_v55, %v1033_v33  ;;  %v1133_v39 = vmul.f32 %v2453_v40, %v2453_v40  ;;  %v1134_v33 = vmul.f32 %v2484_v5, %v2484_v5 }
 0x145   :  { %v1037_v54 = vadd.f32 %v1036_v12, %v1035_v49  ;;  %v1234_v18 = vadd.f32 %v1233_v57, %v1232_v38  ;;  %v1257_v49 = vsel %vm872_vm2, %v1133_v39, 0.0  ;;  %v1135_v57 = vmul.f32 %v2477_v59, %v2477_v59 }
 0x146   :  { %v1259_v51 = vsel %vm872_vm2, %v1134_v33, 0.0 }
 0x147   :  { %v1236_v56 = vadd.f32 %v1235_v9, %v1234_v18  ;;  %v1039_v60 = vadd.f32 %v1038_v58, %v1037_v54  ;;  %v1062_v54 = vsel %vm872_vm2, %v2477_v59, 0.0  ;;  %v1261_v40 = vsel %vm872_vm2, %v1135_v57, 0.0 }
 0x149   :  { %v1041_v61 = vadd.f32 %v1040_v36, %v1039_v60  ;;  %v1238_v14 = vadd.f32 %v1237_v2, %v1236_v56 }
 0x14b   :  { %v1240_v48 = vadd.f32 %v1239_v53, %v1238_v14  ;;  %v1043_v35 = vadd.f32 %v1042_v29, %v1041_v61 }
 0x14d   :  { %v1045_v13 = vadd.f32 %v1044_v50, %v1043_v35  ;;  %v1242_v15 = vadd.f32 %v1241_v10, %v1240_v48 }
 0x14f   :  { %v1244_v17 = vadd.f32 %v1243_v1, %v1242_v15  ;;  %v1047_v30 = vadd.f32 %v1046_v45, %v1045_v13 }
 0x151   :  { %v1049_v20 = vadd.f32 %v1048_v4, %v1047_v30  ;;  %v1246_v21 = vadd.f32 %v1245_v19, %v1244_v17 }
 0x153   :  { %v1248_v25 = vadd.f32 %v1247_v42, %v1246_v21  ;;  %v1051_v28 = vadd.f32 %v1050_v3, %v1049_v20 }
 0x155   :  { %v1053_v63 = vadd.f32 %v1052_v16, %v1051_v28  ;;  %v1250_v41 = vadd.f32 %v1249_v31, %v1248_v25 }
 0x157   :  { %v1252_v37 = vadd.f32 %v1251_v26, %v1250_v41  ;;  %v1055_v0 = vadd.f32 %v1054_v11, %v1053_v63 }
 0x159   :  { %v1057_v43 = vadd.f32 %v1056_v34, %v1055_v0  ;;  %v1254_v55 = vadd.f32 %v1253_v27, %v1252_v37 }
 0x15b   :  { %v1256_v12 = vadd.f32 %v1255_v23, %v1254_v55  ;;  %v1059_v38 = vadd.f32 %v1058_v22, %v1057_v43 }
 0x15d   :  { %v1061_v9 = vadd.f32 %v1060_v47, %v1059_v38  ;;  %v1258_v52 = vadd.f32 %v1257_v49, %v1256_v12 }
 0x15f   :  { %v1063_v18 = vadd.f32 %v1062_v54, %v1061_v9  ;;  %v1260_v58 = vadd.f32 %v1259_v51, %v1258_v52 }
 0x161   :  { %v1064_v36 = vrot.slane %v1063_v18, 4  ;;  %v1262_v5 = vadd.f32 %v1261_v40, %v1260_v58 }
 0x163   :  { %v1065_v56 = vadd.f32 %v1064_v36, %v1063_v18  ;;  %v1263_v60 = vrot.slane %v1262_v5, 4 }
 0x165   :  { %v1066_v2 = vrot.slane %v1065_v56, 2  ;;  %v1264_v6 = vadd.f32 %v1263_v60, %v1262_v5 }
 0x167   :  { %v1067_v53 = vadd.f32 %v1066_v2, %v1065_v56  ;;  %v1265_v8 = vrot.slane %v1264_v6, 2 }
 0x169   :  { %v1068_v61 = vrot.slane %v1067_v53, 1  ;;  %v1266_v14 = vadd.f32 %v1265_v8, %v1264_v6 }
 0x16b   :  { %v1069_v29 = vadd.f32 %v1068_v61, %v1067_v53  ;;  %v1267_v50 = vrot.slane %v1266_v14, 1 }
 0x16d   :  { %1071 = vst.msk [vmem:[%s2609_s5] sm:$0x1] %vm1070_vm3, %v1069_v29  ;;  %v1268_v59 = vadd.f32 %v1267_v50, %v1266_v14 }
 0x16f   :  { %1269 = vst.msk [vmem:[%s2609_s5 + $0x1] sm:$0x1] %vm1070_vm3, %v1268_v59 }

// kernel: resnet101_bottleneck.7
= control target key start
LH: loop header
LB: loop body
LE: loop exit
PB: predicated region body
PF: predicated region fallthrough
CT: control target
= control target key end

     0   :  { %vm288_vm0 = vcmask 1043456   ;;  %vm95_vm1 = vcmask 31744   ;;  %vm1011_vm2 = vcmask 64512   ;;  %s2430_s2 = inlined_call_operand.vmem [shape: f32[4,8], index: 2, kind: input, shape index: {}]   ;;  %s2431_s1 = inlined_call_operand.vmem [shape: f32[512,4], index: 1, kind: input, shape index: {}]   ;;  %s2432_s0 = inlined_call_operand.vmem [shape: f32[512,8], index: 0, kind: input, shape index: {}]   ;;  %s2433_s4 = inlined_call_operand.vmem [shape: f32[1,8], index: 4, kind: input, shape index: {}]   ;;  %s2434_s5 = inlined_call_operand.vmem [shape: f32[1,8], index: 5, kind: input, shape index: {}]   ;;  %s2435_s3 = inlined_call_operand.vmem [shape: f32[1,8], index: 3, kind: input, shape index: {}]   ;;  %s2436_s6 = inlined_call_operand.vmem [shape: f32[512,8], index: 6, kind: output, shape index: {}]  }
   0x1   :  { %v87_v0 = vld [vmem:[%s2430_s2] sm:$0xf]  ;;  %v24_v3 = vld [vmem:[%s2431_s1 + $0x8] sm:$0xff]  ;;  %v25_v5 = vld [vmem:[%s2431_s1 + $0x10] sm:$0xff] }
   0x2   :  { %v23_v1 = vld [vmem:[%s2431_s1] sm:$0xff]  ;;  %1213 = vmatprep.subr.msk.mxu0 %vm288_vm0, %v87_v0  ;;  %1311 = vmatprep.subr.msk.mxu1 %vm288_vm0, %v87_v0  ;;  %v56_v4 = vld [vmem:[%s2431_s1 + $0x108] sm:$0xff]  ;;  %v57_v6 = vld [vmem:[%s2431_s1 + $0x110] sm:$0xff] }
   0x3   :  { %v55_v2 = vld [vmem:[%s2431_s1 + $0x100] sm:$0xff]  ;;  %1214 = vmatpush3.msk.msra.mxu0 %vm288_vm0, %v87_v0  ;;  %1312 = vmatpush3.msk.msra.mxu1 %vm288_vm0, %v87_v0  ;;  %v26_v7 = vld [vmem:[%s2431_s1 + $0x18] sm:$0xff]  ;;  %v28_v11 = vld [vmem:[%s2431_s1 + $0x28] sm:$0xff] }
   0x4   :  { %1215 = vmatprep.mubr.msk.f32.mxu0 %vm95_vm1, %v23_v1  ;;  %1263 = vmatprep.mubr.msk.f32.mxu1 %vm95_vm1, %v55_v2  ;;  %v58_v8 = vld [vmem:[%s2431_s1 + $0x118] sm:$0xff]  ;;  %v27_v9 = vld [vmem:[%s2431_s1 + $0x20] sm:$0xff]  ;;  %v60_v12 = vld [vmem:[%s2431_s1 + $0x128] sm:$0xff] }
   0x5   :  { %1216 = vmatmul.mubr.msk.f32.vlgmr.msra.gmra.mrb[0].mxu0 %vm95_vm1, %v24_v3  ;;  %1264 = vmatmul.mubr.msk.f32.vlgmr.msra.gmra.mrb[0].mxu1 %vm95_vm1, %v56_v4  ;;  %v59_v10 = vld [vmem:[%s2431_s1 + $0x120] sm:$0xff]  ;;  %v29_v13 = vld [vmem:[%s2431_s1 + $0x30] sm:$0xff]  ;;  %v30_v15 = vld [vmem:[%s2431_s1 + $0x38] sm:$0xff] }
   0x6   :  { %1218 = vmatprep.mubr.msk.f32.mxu0 %vm95_vm1, %v25_v5  ;;  %1266 = vmatprep.mubr.msk.f32.mxu1 %vm95_vm1, %v57_v6  ;;  %v61_v14 = vld [vmem:[%s2431_s1 + $0x130] sm:$0xff]  ;;  %v62_v16 = vld [vmem:[%s2431_s1 + $0x138] sm:$0xff]  ;;  %v31_v17 = vld [vmem:[%s2431_s1 + $0x40] sm:$0xff] }
   0x7   :  { %v63_v18 = vld [vmem:[%s2431_s1 + $0x140] sm:$0xff]  ;;  %v32_v19 = vld [vmem:[%s2431_s1 + $0x48] sm:$0xff]  ;;  %v33_v21 = vld [vmem:[%s2431_s1 + $0x50] sm:$0xff] }
   0x8   :  { %v64_v20 = vld [vmem:[%s2431_s1 + $0x148] sm:$0xff]  ;;  %v65_v22 = vld [vmem:[%s2431_s1 + $0x150] sm:$0xff]  ;;  %v34_v23 = vld [vmem:[%s2431_s1 + $0x58] sm:$0xff] }
   0x9   :  { %1219 = vmatmul.mubr.msk.f32.gmra.mrb[2].mxu0 %vm95_vm1, %v26_v7  ;;  %1267 = vmatmul.mubr.msk.f32.gmra.mrb[2].mxu1 %vm95_vm1, %v58_v8  ;;  %v66_v24 = vld [vmem:[%s2431_s1 + $0x158] sm:$0xff]  ;;  %v35_v25 = vld [vmem:[%s2431_s1 + $0x60] sm:$0xff]  ;;  %v36_v27 = vld [vmem:[%s2431_s1 + $0x68] sm:$0xff] }
   0xa   :  { %1221 = vmatprep.mubr.msk.f32.mxu0 %vm95_vm1, %v27_v9  ;;  %1269 = vmatprep.mubr.msk.f32.mxu1 %vm95_vm1, %v59_v10  ;;  %v67_v26 = vld [vmem:[%s2431_s1 + $0x160] sm:$0xff]  ;;  %v68_v28 = vld [vmem:[%s2431_s1 + $0x168] sm:$0xff]  ;;  %v37_v29 = vld [vmem:[%s2431_s1 + $0x70] sm:$0xff] }
   0xb   :  { %v69_v30 = vld [vmem:[%s2431_s1 + $0x170] sm:$0xff]  ;;  %v38_v31 = vld [vmem:[%s2431_s1 + $0x78] sm:$0xff]  ;;  %v39_v33 = vld [vmem:[%s2431_s1 + $0x80] sm:$0xff] }
   0xc   :  { %v70_v32 = vld [vmem:[%s2431_s1 + $0x178] sm:$0xff]  ;;  %v71_v34 = vld [vmem:[%s2431_s1 + $0x180] sm:$0xff]  ;;  %v40_v35 = vld [vmem:[%s2431_s1 + $0x88] sm:$0xff] }
   0xd   :  { %1222 = vmatmul.mubr.msk.f32.gmra.mrb[4].mxu0 %vm95_vm1, %v28_v11  ;;  %1270 = vmatmul.mubr.msk.f32.gmra.mrb[4].mxu1 %vm95_vm1, %v60_v12  ;;  %v72_v36 = vld [vmem:[%s2431_s1 + $0x188] sm:$0xff]  ;;  %v41_v37 = vld [vmem:[%s2431_s1 + $0x90] sm:$0xff]  ;;  %v42_v39 = vld [vmem:[%s2431_s1 + $0x98] sm:$0xff] }
   0xe   :  { %1224 = vmatprep.mubr.msk.f32.mxu0 %vm95_vm1, %v29_v13  ;;  %1272 = vmatprep.mubr.msk.f32.mxu1 %vm95_vm1, %v61_v14  ;;  %v73_v38 = vld [vmem:[%s2431_s1 + $0x190] sm:$0xff]  ;;  %v74_v40 = vld [vmem:[%s2431_s1 + $0x198] sm:$0xff]  ;;  %v43_v41 = vld [vmem:[%s2431_s1 + $0xa0] sm:$0xff] }
   0xf   :  { %v75_v42 = vld [vmem:[%s2431_s1 + $0x1a0] sm:$0xff]  ;;  %v44_v43 = vld [vmem:[%s2431_s1 + $0xa8] sm:$0xff]  ;;  %v45_v45 = vld [vmem:[%s2431_s1 + $0xb0] sm:$0xff] }
  0x10   :  { %v76_v44 = vld [vmem:[%s2431_s1 + $0x1a8] sm:$0xff]  ;;  %v77_v46 = vld [vmem:[%s2431_s1 + $0x1b0] sm:$0xff]  ;;  %v46_v47 = vld [vmem:[%s2431_s1 + $0xb8] sm:$0xff] }
  0x11   :  { %1225 = vmatmul.mubr.msk.f32.gmra.mrb[6].mxu0 %vm95_vm1, %v30_v15  ;;  %1273 = vmatmul.mubr.msk.f32.gmra.mrb[6].mxu1 %vm95_vm1, %v62_v16  ;;  %v78_v48 = vld [vmem:[%s2431_s1 + $0x1b8] sm:$0xff]  ;;  %v47_v49 = vld [vmem:[%s2431_s1 + $0xc0] sm:$0xff]  ;;  %v48_v51 = vld [vmem:[%s2431_s1 + $0xc8] sm:$0xff] }
  0x12   :  { %1227 = vmatprep.mubr.msk.f32.mxu0 %vm95_vm1, %v31_v17  ;;  %1275 = vmatprep.mubr.msk.f32.mxu1 %vm95_vm1, %v63_v18  ;;  %v79_v50 = vld [vmem:[%s2431_s1 + $0x1c0] sm:$0xff]  ;;  %v80_v52 = vld [vmem:[%s2431_s1 + $0x1c8] sm:$0xff]  ;;  %v49_v53 = vld [vmem:[%s2431_s1 + $0xd0] sm:$0xff] }
  0x13   :  { %v81_v54 = vld [vmem:[%s2431_s1 + $0x1d0] sm:$0xff]  ;;  %v50_v55 = vld [vmem:[%s2431_s1 + $0xd8] sm:$0xff]  ;;  %v51_v57 = vld [vmem:[%s2431_s1 + $0xe0] sm:$0xff] }
  0x14   :  { %v82_v56 = vld [vmem:[%s2431_s1 + $0x1d8] sm:$0xff]  ;;  %v83_v58 = vld [vmem:[%s2431_s1 + $0x1e0] sm:$0xff]  ;;  %v52_v59 = vld [vmem:[%s2431_s1 + $0xe8] sm:$0xff] }
  0x15   :  { %1228 = vmatmul.mubr.msk.f32.gmra.mrb[8].mxu0 %vm95_vm1, %v32_v19  ;;  %1276 = vmatmul.mubr.msk.f32.gmra.mrb[8].mxu1 %vm95_vm1, %v64_v20  ;;  %v84_v60 = vld [vmem:[%s2431_s1 + $0x1e8] sm:$0xff]  ;;  %v53_v61 = vld [vmem:[%s2431_s1 + $0xf0] sm:$0xff]  ;;  %v54_v63 = vld [vmem:[%s2431_s1 + $0xf8] sm:$0xff] }
  0x16   :  { %1230 = vmatprep.mubr.msk.f32.mxu0 %vm95_vm1, %v33_v21  ;;  %1278 = vmatprep.mubr.msk.f32.mxu1 %vm95_vm1, %v65_v22  ;;  %v85_v62 = vld [vmem:[%s2431_s1 + $0x1f0] sm:$0xff]  ;;  %v86_v0 = vld [vmem:[%s2431_s1 + $0x1f8] sm:$0xff]  ;;  %v678_v1 = vld [vmem:[%s2432_s0 + $0x8] sm:$0xff] }
  0x17   :  { %v1613_v2 = vld [vmem:[%s2433_s4] ss:$0 sm:$0xff]  ;;  %v710_v3 = vld [vmem:[%s2432_s0 + $0x108] sm:$0xff]  ;;  %v680_v6 = vld [vmem:[%s2432_s0 + $0x18] sm:$0xff] }
  0x18   :  { %v677_v4 = vld [vmem:[%s2432_s0] sm:$0xff]  ;;  %v712_v7 = vld [vmem:[%s2432_s0 + $0x118] sm:$0xff]  ;;  %v749_v8 = vmul.f32 %v1613_v2, %v678_v1  ;;  %v781_v9 = vmul.f32 %v1613_v2, %v710_v3  ;;  %v679_v10 = vld [vmem:[%s2432_s0 + $0x10] sm:$0xff]  ;;  %v751_v17 = vmul.f32 %v1613_v2, %v680_v6 }
  0x19   :  { %1231 = vmatmul.mubr.msk.f32.gmra.mrb[10].mxu0 %vm95_vm1, %v34_v23  ;;  %1279 = vmatmul.mubr.msk.f32.gmra.mrb[10].mxu1 %vm95_vm1, %v66_v24  ;;  %v709_v5 = vld [vmem:[%s2432_s0 + $0x100] sm:$0xff]  ;;  %v711_v11 = vld [vmem:[%s2432_s0 + $0x110] sm:$0xff]  ;;  %v748_v13 = vmul.f32 %v1613_v2, %v677_v4  ;;  %v682_v15 = vld [vmem:[%s2432_s0 + $0x28] sm:$0xff]  ;;  %v783_v18 = vmul.f32 %v1613_v2, %v712_v7  ;;  %v750_v21 = vmul.f32 %v1613_v2, %v679_v10 }
  0x1a   :  { %1233 = vmatprep.mubr.msk.f32.mxu0 %vm95_vm1, %v35_v25  ;;  %1281 = vmatprep.mubr.msk.f32.mxu1 %vm95_vm1, %v67_v26  ;;  %v1641_v12 = vld [vmem:[%s2434_s5] ss:$0 sm:$0xff]  ;;  %v780_v14 = vmul.f32 %v1613_v2, %v709_v5  ;;  %v714_v16 = vld [vmem:[%s2432_s0 + $0x128] sm:$0xff]  ;;  %v782_v22 = vmul.f32 %v1613_v2, %v711_v11  ;;  %v684_v23 = vld [vmem:[%s2432_s0 + $0x38] sm:$0xff] }
  0x1b   :  { %v681_v19 = vld [vmem:[%s2432_s0 + $0x20] sm:$0xff]  ;;  %v716_v24 = vld [vmem:[%s2432_s0 + $0x138] sm:$0xff]  ;;  %v1668_v25 = vadd.f32 %v1641_v12, %v749_v8  ;;  %v1671_v26 = vadd.f32 %v1641_v12, %v781_v9 }
  0x1c   :  { %v713_v20 = vld [vmem:[%s2432_s0 + $0x120] sm:$0xff]  ;;  %v692_v8 = vld [vmem:[%s2432_s0 + $0x78] sm:$0xff] }
  0x1d   :  { %1234 = vmatmul.mubr.msk.f32.gmra.mrb[12].mxu0 %vm95_vm1, %v36_v27  ;;  %1282 = vmatmul.mubr.msk.f32.gmra.mrb[12].mxu1 %vm95_vm1, %v68_v28  ;;  %v753_v27 = vmul.f32 %v1613_v2, %v682_v15  ;;  %v785_v28 = vmul.f32 %v1613_v2, %v714_v16  ;;  %v689_v1 = vld [vmem:[%s2432_s0 + $0x60] sm:$0xff]  ;;  %v724_v9 = vld [vmem:[%s2432_s0 + $0x178] sm:$0xff]  ;;  %v691_v15 = vld [vmem:[%s2432_s0 + $0x70] sm:$0xff] }
  0x1e   :  { %1236 = vmatprep.mubr.msk.f32.mxu0 %vm95_vm1, %v37_v29  ;;  %1284 = vmatprep.mubr.msk.f32.mxu1 %vm95_vm1, %v69_v30  ;;  %v683_v29 = vld [vmem:[%s2432_s0 + $0x30] sm:$0xff]  ;;  %v721_v3 = vld [vmem:[%s2432_s0 + $0x160] sm:$0xff] }
  0x1f   :  { %v715_v30 = vld [vmem:[%s2432_s0 + $0x130] sm:$0xff] }
  0x20   :  { %v723_v16 = vld [vmem:[%s2432_s0 + $0x170] sm:$0xff] }
  0x21   :  { %1237 = vmatmul.mubr.msk.f32.gmra.mrb[14].mxu0 %vm95_vm1, %v38_v31  ;;  %1285 = vmatmul.mubr.msk.f32.gmra.mrb[14].mxu1 %vm95_vm1, %v70_v32  ;;  %v1682_v31 = vadd.f32 %v1641_v12, %v748_v13  ;;  %v1685_v32 = vadd.f32 %v1641_v12, %v780_v14 }
  0x22   :  { %1239 = vmatprep.mubr.msk.f32.mxu0 %vm95_vm1, %v39_v33  ;;  %1287 = vmatprep.mubr.msk.f32.mxu1 %vm95_vm1, %v71_v34  ;;  %v752_v33 = vmul.f32 %v1613_v2, %v681_v19  ;;  %v784_v34 = vmul.f32 %v1613_v2, %v713_v20  ;;  %v760_v19 = vmul.f32 %v1613_v2, %v689_v1 }
  0x23   :  { %v792_v20 = vmul.f32 %v1613_v2, %v721_v3 }
  0x25   :  { %1240 = vmatmul.mubr.msk.f32.gmra.mrb[16].mxu0 %vm95_vm1, %v40_v35  ;;  %1288 = vmatmul.mubr.msk.f32.gmra.mrb[16].mxu1 %vm95_vm1, %v72_v36  ;;  %v686_v35 = vld [vmem:[%s2432_s0 + $0x48] sm:$0xff] }
  0x26   :  { %1242 = vmatprep.mubr.msk.f32.mxu0 %vm95_vm1, %v41_v37  ;;  %1290 = vmatprep.mubr.msk.f32.mxu1 %vm95_vm1, %v73_v38  ;;  %v718_v36 = vld [vmem:[%s2432_s0 + $0x148] sm:$0xff]  ;;  %v1696_v37 = vadd.f32 %v1641_v12, %v751_v17  ;;  %v1699_v38 = vadd.f32 %v1641_v12, %v783_v18 }
  0x29   :  { %1243 = vmatmul.mubr.msk.f32.gmra.mrb[18].mxu0 %vm95_vm1, %v42_v39  ;;  %1291 = vmatmul.mubr.msk.f32.gmra.mrb[18].mxu1 %vm95_vm1, %v74_v40  ;;  %v755_v39 = vmul.f32 %v1613_v2, %v684_v23  ;;  %v787_v40 = vmul.f32 %v1613_v2, %v716_v24 }
  0x2a   :  { %1245 = vmatprep.mubr.msk.f32.mxu0 %vm95_vm1, %v43_v41  ;;  %1293 = vmatprep.mubr.msk.f32.mxu1 %vm95_vm1, %v75_v42  ;;  %v685_v41 = vld [vmem:[%s2432_s0 + $0x40] sm:$0xff] }
  0x2b   :  { %v717_v42 = vld [vmem:[%s2432_s0 + $0x140] sm:$0xff] }
  0x2d   :  { %1246 = vmatmul.mubr.msk.f32.gmra.mrb[20].mxu0 %vm95_vm1, %v44_v43  ;;  %1294 = vmatmul.mubr.msk.f32.gmra.mrb[20].mxu1 %vm95_vm1, %v76_v44  ;;  %v1710_v43 = vadd.f32 %v1641_v12, %v750_v21  ;;  %v1713_v44 = vadd.f32 %v1641_v12, %v782_v22  ;;  %v694_v21 = vld [vmem:[%s2432_s0 + $0x88] sm:$0xff] }
  0x2e   :  { %1248 = vmatprep.mubr.msk.f32.mxu0 %vm95_vm1, %v45_v45  ;;  %1296 = vmatprep.mubr.msk.f32.mxu1 %vm95_vm1, %v77_v46  ;;  %v754_v45 = vmul.f32 %v1613_v2, %v683_v29  ;;  %v786_v46 = vmul.f32 %v1613_v2, %v715_v30  ;;  %v726_v22 = vld [vmem:[%s2432_s0 + $0x188] sm:$0xff]  ;;  %v693_v29 = vld [vmem:[%s2432_s0 + $0x80] sm:$0xff] }
  0x2f   :  { %v725_v30 = vld [vmem:[%s2432_s0 + $0x180] sm:$0xff] }
  0x30   :  { %v1766_v4 = vadd.f32 %v1641_v12, %v754_v45  ;;  %v1769_v5 = vadd.f32 %v1641_v12, %v786_v46  ;;  %v797_v45 = vmul.f32 %v1613_v2, %v726_v22 }
  0x31   :  { %1249 = vmatmul.mubr.msk.f32.gmra.mrb[22].mxu0 %vm95_vm1, %v46_v47  ;;  %1297 = vmatmul.mubr.msk.f32.gmra.mrb[22].mxu1 %vm95_vm1, %v78_v48  ;;  %v688_v47 = vld [vmem:[%s2432_s0 + $0x58] sm:$0xff] }
  0x32   :  { %1251 = vmatprep.mubr.msk.f32.mxu0 %vm95_vm1, %v47_v49  ;;  %1299 = vmatprep.mubr.msk.f32.mxu1 %vm95_vm1, %v79_v50  ;;  %v720_v48 = vld [vmem:[%s2432_s0 + $0x158] sm:$0xff]  ;;  %v1724_v49 = vadd.f32 %v1641_v12, %v753_v27  ;;  %v1727_v50 = vadd.f32 %v1641_v12, %v785_v28  ;;  %v763_v27 = vmul.f32 %v1613_v2, %v692_v8 }
  0x33   :  { %v795_v28 = vmul.f32 %v1613_v2, %v724_v9 }
  0x35   :  { %1252 = vmatmul.mubr.msk.f32.gmra.mrb[24].mxu0 %vm95_vm1, %v48_v51  ;;  %1300 = vmatmul.mubr.msk.f32.gmra.mrb[24].mxu1 %vm95_vm1, %v80_v52  ;;  %v757_v51 = vmul.f32 %v1613_v2, %v686_v35  ;;  %v789_v52 = vmul.f32 %v1613_v2, %v718_v36  ;;  %v762_v36 = vmul.f32 %v1613_v2, %v691_v15 }
  0x36   :  { %1254 = vmatprep.mubr.msk.f32.mxu0 %vm95_vm1, %v49_v53  ;;  %1302 = vmatprep.mubr.msk.f32.mxu1 %vm95_vm1, %v81_v54  ;;  %v687_v53 = vld [vmem:[%s2432_s0 + $0x50] sm:$0xff] }
  0x37   :  { %v719_v54 = vld [vmem:[%s2432_s0 + $0x150] sm:$0xff]  ;;  %v758_v6 = vmul.f32 %v1613_v2, %v687_v53  ;;  %v1780_v10 = vadd.f32 %v1641_v12, %v757_v51  ;;  %v1783_v11 = vadd.f32 %v1641_v12, %v789_v52  ;;  %v1846_v51 = vadd.f32 %v1641_v12, %v792_v20 }
  0x38   :  { %v790_v7 = vmul.f32 %v1613_v2, %v719_v54  ;;  %v764_v52 = vmul.f32 %v1613_v2, %v693_v29  ;;  %v796_v53 = vmul.f32 %v1613_v2, %v725_v30  ;;  %v1861_v3 = vadd.f32 %v1641_v12, %v762_v36  ;;  %v695_v30 = vld [vmem:[%s2432_s0 + $0x90] sm:$0xff] }
  0x39   :  { %1255 = vmatmul.mubr.msk.f32.gmra.mrb[26].mxu0 %vm95_vm1, %v50_v55  ;;  %1303 = vmatmul.mubr.msk.f32.gmra.mrb[26].mxu1 %vm95_vm1, %v82_v56  ;;  %v1738_v55 = vadd.f32 %v1641_v12, %v752_v33  ;;  %v1741_v56 = vadd.f32 %v1641_v12, %v784_v34  ;;  %v1824_v33 = vld [vmem:[%s2435_s3] ss:$0 sm:$0xff]  ;;  %v1827_v34 = vadd.f32 %v1641_v12, %v758_v6  ;;  %v727_v36 = vld [vmem:[%s2432_s0 + $0x190] sm:$0xff] }
  0x3a   :  { %1257 = vmatprep.mubr.msk.f32.mxu0 %vm95_vm1, %v51_v57  ;;  %1305 = vmatprep.mubr.msk.f32.mxu1 %vm95_vm1, %v83_v58  ;;  %v756_v57 = vmul.f32 %v1613_v2, %v685_v41  ;;  %v788_v58 = vmul.f32 %v1613_v2, %v717_v42  ;;  %v1830_v35 = vadd.f32 %v1641_v12, %v790_v7 }
  0x3b   :  { %v765_v42 = vmul.f32 %v1613_v2, %v694_v21  ;;  %v1877_v20 = vadd.f32 %v1641_v12, %v764_v52  ;;  %v1880_v21 = vadd.f32 %v1641_v12, %v796_v53 }
  0x3c   :  { %v1794_v17 = vadd.f32 %v1641_v12, %v756_v57  ;;  %v1797_v18 = vadd.f32 %v1641_v12, %v788_v58 }
  0x3d   :  { %1258 = vmatmul.mubr.msk.f32.gmra.mrb[28].mxu0 %vm95_vm1, %v52_v59  ;;  %1306 = vmatmul.mubr.msk.f32.gmra.mrb[28].mxu1 %vm95_vm1, %v84_v60  ;;  %v690_v59 = vld [vmem:[%s2432_s0 + $0x68] sm:$0xff]  ;;  %v1869_v9 = vadd.f32 %v1641_v12, %v765_v42 }
  0x3e   :  { %1260 = vmatprep.mubr.msk.f32.mxu0 %vm95_vm1, %v53_v61  ;;  %1308 = vmatprep.mubr.msk.f32.mxu1 %vm95_vm1, %v85_v62  ;;  %v722_v60 = vld [vmem:[%s2432_s0 + $0x168] sm:$0xff]  ;;  %v1752_v61 = vadd.f32 %v1641_v12, %v755_v39  ;;  %v1755_v62 = vadd.f32 %v1641_v12, %v787_v40  ;;  %v761_v13 = vmul.f32 %v1613_v2, %v690_v59 }
  0x3f   :  { %v793_v14 = vmul.f32 %v1613_v2, %v722_v60  ;;  %v794_v39 = vmul.f32 %v1613_v2, %v723_v16  ;;  %v1853_v60 = vadd.f32 %v1641_v12, %v763_v27 }
  0x40   :  { %v1835_v40 = vadd.f32 %v1641_v12, %v761_v13  ;;  %v1872_v13 = vadd.f32 %v1641_v12, %v797_v45 }
  0x41   :  { %1261 = vmatmul.mubr.msk.f32.gmra.mrb[30].mxu0 %vm95_vm1, %v54_v63  ;;  %1309 = vmatmul.mubr.msk.f32.gmra.mrb[30].mxu1 %vm95_vm1, %v86_v0  ;;  %v759_v63 = vmul.f32 %v1613_v2, %v688_v47  ;;  %v791_v0 = vmul.f32 %v1613_v2, %v720_v48  ;;  %v1838_v41 = vadd.f32 %v1641_v12, %v793_v14 }
  0x42   :  { %v1843_v48 = vadd.f32 %v1641_v12, %v760_v19  ;;  %v1864_v6 = vadd.f32 %v1641_v12, %v794_v39 }
  0x43   :  { %v1808_v23 = vadd.f32 %v1641_v12, %v759_v63  ;;  %v1811_v24 = vadd.f32 %v1641_v12, %v791_v0  ;;  %v1856_v63 = vadd.f32 %v1641_v12, %v795_v28 }
  0xd8   :  { %v1217_v46 = vpop.f32.mrb[0].mxu0  ;;  %v1265_v47 = vpop.f32.mrb[0].mxu1 }
  0xd9   :  { %v364_v54 = vadd.f32 %v1217_v46, %v1824_v33  ;;  %v524_v57 = vadd.f32 %v1265_v47, %v1824_v33  ;;  %v358_v58 = vpop.f32.mrb[1].mxu0  ;;  %v518_v59 = vpop.f32.mrb[1].mxu1 }
  0xda   :  { %v359_v0 = vadd.f32 %v1824_v33, %v358_v58  ;;  %v519_v1 = vadd.f32 %v1824_v33, %v518_v59  ;;  %v766_v59 = vmul.f32 %v1613_v2, %v695_v30 }
  0xdb   :  { %v884_v7 = vadd.f32 %v1668_v25, %v364_v54  ;;  %v916_v8 = vadd.f32 %v1671_v26, %v524_v57  ;;  %v696_v25 = vld [vmem:[%s2432_s0 + $0x98] sm:$0xff] }
  0xdc   :  { %v883_v14 = vadd.f32 %v1682_v31, %v359_v0  ;;  %v915_v15 = vadd.f32 %v1685_v32, %v519_v1  ;;  %v1220_v16 = vpop.f32.mrb[2].mxu0  ;;  %v1268_v19 = vpop.f32.mrb[2].mxu1  ;;  %v728_v26 = vld [vmem:[%s2432_s0 + $0x198] sm:$0xff]  ;;  %v767_v53 = vmul.f32 %v1613_v2, %v696_v25  ;;  %v798_v0 = vmul.f32 %v1613_v2, %v727_v36  ;;  %v698_v36 = vld [vmem:[%s2432_s0 + $0xa8] sm:$0xff] }
  0xdd   :  { %v948_v22 = vmax.f32 %v884_v7, 0.0  ;;  %v980_v31 = vmax.f32 %v916_v8, 0.0  ;;  %v374_v32 = vadd.f32 %v1220_v16, %v1824_v33  ;;  %v534_v27 = vadd.f32 %v1268_v19, %v1824_v33  ;;  %v368_v28 = vpop.f32.mrb[3].mxu0  ;;  %v528_v29 = vpop.f32.mrb[3].mxu1 }
  0xde   :  { %v947_v39 = vmax.f32 %v883_v14, 0.0  ;;  %v979_v42 = vmax.f32 %v915_v15, 0.0  ;;  %v369_v45 = vadd.f32 %v1824_v33, %v368_v28  ;;  %v529_v46 = vadd.f32 %v1824_v33, %v528_v29 }
  0xdf   :  { %1013 = vst.msk [vmem:[%s2436_s6 + $0x8] sm:$0xff] %vm1011_vm2, %v948_v22  ;;  %1045 = vst.msk [vmem:[%s2436_s6 + $0x108] sm:$0xff] %vm1011_vm2, %v980_v31  ;;  %v886_v47 = vadd.f32 %v1696_v37, %v374_v32  ;;  %v918_v52 = vadd.f32 %v1699_v38, %v534_v27  ;;  %v799_v54 = vmul.f32 %v1613_v2, %v728_v26 }
  0xe0   :  { %1012 = vst.msk [vmem:[%s2436_s6] sm:$0xff] %vm1011_vm2, %v947_v39  ;;  %1044 = vst.msk [vmem:[%s2436_s6 + $0x100] sm:$0xff] %vm1011_vm2, %v979_v42  ;;  %v885_v57 = vadd.f32 %v1710_v43, %v369_v45  ;;  %v917_v37 = vadd.f32 %v1713_v44, %v529_v46  ;;  %v1223_v58 = vpop.f32.mrb[4].mxu0  ;;  %v1271_v38 = vpop.f32.mrb[4].mxu1  ;;  %v1937_v31 = vadd.f32 %v1641_v12, %v767_v53  ;;  %v730_v39 = vld [vmem:[%s2432_s0 + $0x1a8] sm:$0xff]  ;;  %v729_v53 = vld [vmem:[%s2432_s0 + $0x1a0] sm:$0xff] }
  0xe1   :  { %v950_v1 = vmax.f32 %v886_v47, 0.0  ;;  %v982_v7 = vmax.f32 %v918_v52, 0.0  ;;  %v384_v8 = vadd.f32 %v1223_v58, %v1824_v33  ;;  %v544_v14 = vadd.f32 %v1271_v38, %v1824_v33  ;;  %v378_v15 = vpop.f32.mrb[5].mxu0  ;;  %v538_v16 = vpop.f32.mrb[5].mxu1  ;;  %v697_v52 = vld [vmem:[%s2432_s0 + $0xa0] sm:$0xff] }
  0xe2   :  { %v949_v19 = vmax.f32 %v885_v57, 0.0  ;;  %v981_v25 = vmax.f32 %v917_v37, 0.0  ;;  %v379_v43 = vadd.f32 %v1824_v33, %v378_v15  ;;  %v539_v44 = vadd.f32 %v1824_v33, %v538_v16 }
  0xe3   :  { %1015 = vst.msk [vmem:[%s2436_s6 + $0x18] sm:$0xff] %vm1011_vm2, %v950_v1  ;;  %1047 = vst.msk [vmem:[%s2436_s6 + $0x118] sm:$0xff] %vm1011_vm2, %v982_v7  ;;  %v888_v26 = vadd.f32 %v1724_v49, %v384_v8  ;;  %v920_v22 = vadd.f32 %v1727_v50, %v544_v14  ;;  %v1940_v32 = vadd.f32 %v1641_v12, %v799_v54 }
  0xe4   :  { %1014 = vst.msk [vmem:[%s2436_s6 + $0x10] sm:$0xff] %vm1011_vm2, %v949_v19  ;;  %1046 = vst.msk [vmem:[%s2436_s6 + $0x110] sm:$0xff] %vm1011_vm2, %v981_v25  ;;  %v887_v49 = vadd.f32 %v1738_v55, %v379_v43  ;;  %v919_v50 = vadd.f32 %v1741_v56, %v539_v44  ;;  %v1226_v27 = vpop.f32.mrb[6].mxu0  ;;  %v1274_v28 = vpop.f32.mrb[6].mxu1  ;;  %v1953_v29 = vadd.f32 %v1641_v12, %v766_v59 }
  0xe5   :  { %v1956_v30 = vadd.f32 %v1641_v12, %v798_v0  ;;  %v952_v42 = vmax.f32 %v888_v26, 0.0  ;;  %v984_v55 = vmax.f32 %v920_v22, 0.0  ;;  %v394_v56 = vadd.f32 %v1226_v27, %v1824_v33  ;;  %v388_v46 = vpop.f32.mrb[7].mxu0  ;;  %v548_v47 = vpop.f32.mrb[7].mxu1 }
  0xe6   :  { %v554_v45 = vadd.f32 %v1274_v28, %v1824_v33  ;;  %v951_v54 = vmax.f32 %v887_v49, 0.0  ;;  %v983_v57 = vmax.f32 %v919_v50, 0.0  ;;  %v389_v37 = vadd.f32 %v1824_v33, %v388_v46  ;;  %v732_v46 = vld [vmem:[%s2432_s0 + $0x1b8] sm:$0xff] }
  0xe7   :  { %v549_v58 = vadd.f32 %v1824_v33, %v548_v47  ;;  %1017 = vst.msk [vmem:[%s2436_s6 + $0x28] sm:$0xff] %vm1011_vm2, %v952_v42  ;;  %1049 = vst.msk [vmem:[%s2436_s6 + $0x128] sm:$0xff] %vm1011_vm2, %v984_v55  ;;  %v890_v38 = vadd.f32 %v1752_v61, %v394_v56  ;;  %v769_v0 = vmul.f32 %v1613_v2, %v698_v36 }
  0xe8   :  { %v922_v59 = vadd.f32 %v1755_v62, %v554_v45  ;;  %v801_v1 = vmul.f32 %v1613_v2, %v730_v39  ;;  %1016 = vst.msk [vmem:[%s2436_s6 + $0x20] sm:$0xff] %vm1011_vm2, %v951_v54  ;;  %1048 = vst.msk [vmem:[%s2436_s6 + $0x120] sm:$0xff] %vm1011_vm2, %v983_v57  ;;  %v889_v7 = vadd.f32 %v1766_v4, %v389_v37  ;;  %v1229_v8 = vpop.f32.mrb[8].mxu0  ;;  %v1277_v62 = vpop.f32.mrb[8].mxu1  ;;  %v700_v45 = vld [vmem:[%s2432_s0 + $0xb8] sm:$0xff]  ;;  %v699_v57 = vld [vmem:[%s2432_s0 + $0xb0] sm:$0xff] }
  0xe9   :  { %v921_v61 = vadd.f32 %v1769_v5, %v549_v58  ;;  %v768_v14 = vmul.f32 %v1613_v2, %v697_v52  ;;  %v800_v15 = vmul.f32 %v1613_v2, %v729_v53  ;;  %v954_v16 = vmax.f32 %v890_v38, 0.0  ;;  %v398_v44 = vpop.f32.mrb[9].mxu0  ;;  %v558_v26 = vpop.f32.mrb[9].mxu1  ;;  %v731_v37 = vld [vmem:[%s2432_s0 + $0x1b0] sm:$0xff] }
  0xea   :  { %v986_v19 = vmax.f32 %v922_v59, 0.0  ;;  %v404_v25 = vadd.f32 %v1229_v8, %v1824_v33  ;;  %v564_v43 = vadd.f32 %v1277_v62, %v1824_v33  ;;  %v953_v22 = vmax.f32 %v889_v7, 0.0 }
  0xeb   :  { %v985_v49 = vmax.f32 %v921_v61, 0.0  ;;  %v399_v4 = vadd.f32 %v1824_v33, %v398_v44  ;;  %v559_v5 = vadd.f32 %v1824_v33, %v558_v26  ;;  %1019 = vst.msk [vmem:[%s2436_s6 + $0x38] sm:$0xff] %vm1011_vm2, %v954_v16  ;;  %v2013_v28 = vadd.f32 %v1641_v12, %v769_v0 }
  0xec   :  { %1051 = vst.msk [vmem:[%s2436_s6 + $0x138] sm:$0xff] %vm1011_vm2, %v986_v19  ;;  %v892_v50 = vadd.f32 %v1780_v10, %v404_v25  ;;  %v924_v27 = vadd.f32 %v1783_v11, %v564_v43  ;;  %v2016_v36 = vadd.f32 %v1641_v12, %v801_v1  ;;  %1018 = vst.msk [vmem:[%s2436_s6 + $0x30] sm:$0xff] %vm1011_vm2, %v953_v22  ;;  %v1232_v39 = vpop.f32.mrb[10].mxu0  ;;  %v1280_v42 = vpop.f32.mrb[10].mxu1 }
  0xed   :  { %1050 = vst.msk [vmem:[%s2436_s6 + $0x130] sm:$0xff] %vm1011_vm2, %v985_v49  ;;  %v891_v10 = vadd.f32 %v1794_v17, %v399_v4  ;;  %v923_v11 = vadd.f32 %v1797_v18, %v559_v5  ;;  %v2029_v55 = vadd.f32 %v1641_v12, %v768_v14  ;;  %v2032_v56 = vadd.f32 %v1641_v12, %v800_v15  ;;  %v408_v53 = vpop.f32.mrb[11].mxu0  ;;  %v568_v54 = vpop.f32.mrb[11].mxu1 }
  0xee   :  { %v956_v47 = vmax.f32 %v892_v50, 0.0  ;;  %v988_v17 = vmax.f32 %v924_v27, 0.0  ;;  %v414_v18 = vadd.f32 %v1232_v39, %v1824_v33  ;;  %v574_v52 = vadd.f32 %v1280_v42, %v1824_v33 }
  0xef   :  { %v955_v58 = vmax.f32 %v891_v10, 0.0  ;;  %v987_v38 = vmax.f32 %v923_v11, 0.0  ;;  %v409_v59 = vadd.f32 %v1824_v33, %v408_v53  ;;  %v569_v0 = vadd.f32 %v1824_v33, %v568_v54  ;;  %v701_v54 = vld [vmem:[%s2432_s0 + $0xc0] sm:$0xff] }
  0xf0   :  { %1021 = vst.msk [vmem:[%s2436_s6 + $0x48] sm:$0xff] %vm1011_vm2, %v956_v47  ;;  %1053 = vst.msk [vmem:[%s2436_s6 + $0x148] sm:$0xff] %vm1011_vm2, %v988_v17  ;;  %v894_v1 = vadd.f32 %v1808_v23, %v414_v18  ;;  %v926_v7 = vadd.f32 %v1811_v24, %v574_v52  ;;  %v771_v61 = vmul.f32 %v1613_v2, %v700_v45  ;;  %v1235_v14 = vpop.f32.mrb[12].mxu0  ;;  %v1283_v24 = vpop.f32.mrb[12].mxu1  ;;  %v734_v47 = vld [vmem:[%s2432_s0 + $0x1c8] sm:$0xff] }
  0xf1   :  { %v803_v8 = vmul.f32 %v1613_v2, %v732_v46  ;;  %1020 = vst.msk [vmem:[%s2436_s6 + $0x40] sm:$0xff] %vm1011_vm2, %v955_v58  ;;  %1052 = vst.msk [vmem:[%s2436_s6 + $0x140] sm:$0xff] %vm1011_vm2, %v987_v38  ;;  %v893_v62 = vadd.f32 %v1827_v34, %v409_v59  ;;  %v925_v23 = vadd.f32 %v1830_v35, %v569_v0  ;;  %v418_v26 = vpop.f32.mrb[13].mxu0  ;;  %v578_v22 = vpop.f32.mrb[13].mxu1  ;;  %v702_v46 = vld [vmem:[%s2432_s0 + $0xc8] sm:$0xff] }
  0xf2   :  { %v770_v15 = vmul.f32 %v1613_v2, %v699_v57  ;;  %v802_v16 = vmul.f32 %v1613_v2, %v731_v37  ;;  %v958_v19 = vmax.f32 %v894_v1, 0.0  ;;  %v990_v25 = vmax.f32 %v926_v7, 0.0  ;;  %v733_v57 = vld [vmem:[%s2432_s0 + $0x1c0] sm:$0xff] }
  0xf3   :  { %v424_v43 = vadd.f32 %v1235_v14, %v1824_v33  ;;  %v584_v44 = vadd.f32 %v1283_v24, %v1824_v33  ;;  %v957_v49 = vmax.f32 %v893_v62, 0.0  ;;  %v989_v4 = vmax.f32 %v925_v23, 0.0 }
  0xf4   :  { %v419_v34 = vadd.f32 %v1824_v33, %v418_v26  ;;  %v579_v35 = vadd.f32 %v1824_v33, %v578_v22  ;;  %1023 = vst.msk [vmem:[%s2436_s6 + $0x58] sm:$0xff] %vm1011_vm2, %v958_v19  ;;  %1055 = vst.msk [vmem:[%s2436_s6 + $0x158] sm:$0xff] %vm1011_vm2, %v990_v25  ;;  %v2089_v27 = vadd.f32 %v1641_v12, %v771_v61  ;;  %v1238_v11 = vpop.f32.mrb[14].mxu0  ;;  %v1286_v39 = vpop.f32.mrb[14].mxu1 }
  0xf5   :  { %v896_v5 = vadd.f32 %v1835_v40, %v424_v43  ;;  %v928_v50 = vadd.f32 %v1838_v41, %v584_v44  ;;  %v2092_v10 = vadd.f32 %v1641_v12, %v803_v8  ;;  %1022 = vst.msk [vmem:[%s2436_s6 + $0x50] sm:$0xff] %vm1011_vm2, %v957_v49  ;;  %1054 = vst.msk [vmem:[%s2436_s6 + $0x150] sm:$0xff] %vm1011_vm2, %v989_v4  ;;  %v428_v52 = vpop.f32.mrb[15].mxu0  ;;  %v588_v53 = vpop.f32.mrb[15].mxu1 }
  0xf6   :  { %v895_v40 = vadd.f32 %v1843_v48, %v419_v34  ;;  %v927_v41 = vadd.f32 %v1846_v51, %v579_v35  ;;  %v2105_v42 = vadd.f32 %v1641_v12, %v770_v15  ;;  %v2108_v45 = vadd.f32 %v1641_v12, %v802_v16 }
  0xf7   :  { %v960_v17 = vmax.f32 %v896_v5, 0.0  ;;  %v992_v48 = vmax.f32 %v928_v50, 0.0  ;;  %v434_v51 = vadd.f32 %v1238_v11, %v1824_v33  ;;  %v594_v18 = vadd.f32 %v1286_v39, %v1824_v33  ;;  %v736_v11 = vld [vmem:[%s2432_s0 + $0x1d8] sm:$0xff] }
  0xf8   :  { %v959_v37 = vmax.f32 %v895_v40, 0.0  ;;  %v991_v58 = vmax.f32 %v927_v41, 0.0  ;;  %v429_v38 = vadd.f32 %v1824_v33, %v428_v52  ;;  %v589_v59 = vadd.f32 %v1824_v33, %v588_v53  ;;  %v1241_v62 = vpop.f32.mrb[16].mxu0  ;;  %v704_v41 = vld [vmem:[%s2432_s0 + $0xd8] sm:$0xff] }
  0xf9   :  { %1025 = vst.msk [vmem:[%s2436_s6 + $0x68] sm:$0xff] %vm1011_vm2, %v960_v17  ;;  %1057 = vst.msk [vmem:[%s2436_s6 + $0x168] sm:$0xff] %vm1011_vm2, %v992_v48  ;;  %v898_v0 = vadd.f32 %v1853_v60, %v434_v51  ;;  %v930_v1 = vadd.f32 %v1856_v63, %v594_v18  ;;  %v773_v7 = vmul.f32 %v1613_v2, %v702_v46  ;;  %v1289_v63 = vpop.f32.mrb[16].mxu1  ;;  %v438_v25 = vpop.f32.mrb[17].mxu0  ;;  %v703_v48 = vld [vmem:[%s2432_s0 + $0xd0] sm:$0xff] }
  0xfa   :  { %v805_v61 = vmul.f32 %v1613_v2, %v734_v47  ;;  %1024 = vst.msk [vmem:[%s2436_s6 + $0x60] sm:$0xff] %vm1011_vm2, %v959_v37  ;;  %1056 = vst.msk [vmem:[%s2436_s6 + $0x160] sm:$0xff] %vm1011_vm2, %v991_v58  ;;  %v897_v8 = vadd.f32 %v1861_v3, %v429_v38  ;;  %v929_v60 = vadd.f32 %v1864_v6, %v589_v59  ;;  %v598_v43 = vpop.f32.mrb[17].mxu1  ;;  %v735_v51 = vld [vmem:[%s2432_s0 + $0x1d0] sm:$0xff] }
  0xfb   :  { %v772_v23 = vmul.f32 %v1613_v2, %v701_v54  ;;  %v804_v14 = vmul.f32 %v1613_v2, %v733_v57  ;;  %v962_v24 = vmax.f32 %v898_v0, 0.0  ;;  %v994_v15 = vmax.f32 %v930_v1, 0.0 }
  0xfc   :  { %v444_v16 = vadd.f32 %v1241_v62, %v1824_v33  ;;  %v604_v19 = vadd.f32 %v1289_v63, %v1824_v33  ;;  %v961_v44 = vmax.f32 %v897_v8, 0.0  ;;  %v993_v26 = vmax.f32 %v929_v60, 0.0  ;;  %v1244_v35 = vpop.f32.mrb[18].mxu0  ;;  %v1292_v5 = vpop.f32.mrb[18].mxu1 }
  0xfd   :  { %v439_v3 = vadd.f32 %v1824_v33, %v438_v25  ;;  %v599_v6 = vadd.f32 %v1824_v33, %v598_v43  ;;  %1027 = vst.msk [vmem:[%s2436_s6 + $0x78] sm:$0xff] %vm1011_vm2, %v962_v24  ;;  %1059 = vst.msk [vmem:[%s2436_s6 + $0x178] sm:$0xff] %vm1011_vm2, %v994_v15  ;;  %v2165_v4 = vadd.f32 %v1641_v12, %v773_v7  ;;  %v448_v47 = vpop.f32.mrb[19].mxu0  ;;  %v608_v17 = vpop.f32.mrb[19].mxu1 }
  0xfe   :  { %v900_v22 = vadd.f32 %v1869_v9, %v444_v16  ;;  %v932_v49 = vadd.f32 %v1872_v13, %v604_v19  ;;  %v2168_v34 = vadd.f32 %v1641_v12, %v805_v61  ;;  %1026 = vst.msk [vmem:[%s2436_s6 + $0x70] sm:$0xff] %vm1011_vm2, %v961_v44  ;;  %1058 = vst.msk [vmem:[%s2436_s6 + $0x170] sm:$0xff] %vm1011_vm2, %v993_v26 }
  0xff   :  { %v899_v9 = vadd.f32 %v1877_v20, %v439_v3  ;;  %v931_v13 = vadd.f32 %v1880_v21, %v599_v6  ;;  %v2181_v50 = vadd.f32 %v1641_v12, %v772_v23  ;;  %v2184_v40 = vadd.f32 %v1641_v12, %v804_v14  ;;  %v706_v6 = vld [vmem:[%s2432_s0 + $0xe8] sm:$0xff] }
 0x100   :  { %v964_v39 = vmax.f32 %v900_v22, 0.0  ;;  %v996_v20 = vmax.f32 %v932_v49, 0.0  ;;  %v454_v21 = vadd.f32 %v1244_v35, %v1824_v33  ;;  %v614_v46 = vadd.f32 %v1292_v5, %v1824_v33  ;;  %v1247_v0 = vpop.f32.mrb[20].mxu0  ;;  %v738_v22 = vld [vmem:[%s2432_s0 + $0x1e8] sm:$0xff]  ;;  %v705_v5 = vld [vmem:[%s2432_s0 + $0xe0] sm:$0xff] }
 0x101   :  { %v963_v18 = vmax.f32 %v899_v9, 0.0  ;;  %v995_v52 = vmax.f32 %v931_v13, 0.0  ;;  %v449_v53 = vadd.f32 %v1824_v33, %v448_v47  ;;  %v609_v54 = vadd.f32 %v1824_v33, %v608_v17  ;;  %v458_v63 = vpop.f32.mrb[21].mxu0 }
 0x102   :  { %1029 = vst.msk [vmem:[%s2436_s6 + $0x88] sm:$0xff] %vm1011_vm2, %v964_v39  ;;  %1061 = vst.msk [vmem:[%s2436_s6 + $0x188] sm:$0xff] %vm1011_vm2, %v996_v20  ;;  %v902_v57 = vadd.f32 %v1937_v31, %v454_v21  ;;  %v934_v37 = vadd.f32 %v1940_v32, %v614_v46  ;;  %v775_v58 = vmul.f32 %v1613_v2, %v704_v41  ;;  %v1295_v32 = vpop.f32.mrb[20].mxu1  ;;  %v737_v41 = vld [vmem:[%s2432_s0 + $0x1e0] sm:$0xff] }
 0x103   :  { %v807_v38 = vmul.f32 %v1613_v2, %v736_v11  ;;  %1028 = vst.msk [vmem:[%s2436_s6 + $0x80] sm:$0xff] %vm1011_vm2, %v963_v18  ;;  %1060 = vst.msk [vmem:[%s2436_s6 + $0x180] sm:$0xff] %vm1011_vm2, %v995_v52  ;;  %v901_v59 = vadd.f32 %v1953_v29, %v449_v53  ;;  %v933_v31 = vadd.f32 %v1956_v30, %v609_v54  ;;  %v618_v23 = vpop.f32.mrb[21].mxu1 }
 0x104   :  { %v774_v1 = vmul.f32 %v1613_v2, %v703_v48  ;;  %v806_v7 = vmul.f32 %v1613_v2, %v735_v51  ;;  %v966_v61 = vmax.f32 %v902_v57, 0.0  ;;  %v998_v8 = vmax.f32 %v934_v37, 0.0  ;;  %v1250_v43 = vpop.f32.mrb[22].mxu0  ;;  %v1298_v44 = vpop.f32.mrb[22].mxu1 }
 0x105   :  { %v464_v60 = vadd.f32 %v1247_v0, %v1824_v33  ;;  %v624_v62 = vadd.f32 %v1295_v32, %v1824_v33  ;;  %v965_v14 = vmax.f32 %v901_v59, 0.0  ;;  %v997_v24 = vmax.f32 %v933_v31, 0.0  ;;  %v468_v13 = vpop.f32.mrb[23].mxu0  ;;  %v628_v35 = vpop.f32.mrb[23].mxu1 }
 0x106   :  { %v459_v29 = vadd.f32 %v1824_v33, %v458_v63  ;;  %v619_v30 = vadd.f32 %v1824_v33, %v618_v23  ;;  %1031 = vst.msk [vmem:[%s2436_s6 + $0x98] sm:$0xff] %vm1011_vm2, %v966_v61  ;;  %1063 = vst.msk [vmem:[%s2436_s6 + $0x198] sm:$0xff] %vm1011_vm2, %v998_v8  ;;  %v2241_v19 = vadd.f32 %v1641_v12, %v775_v58  ;;  %v708_v23 = vld [vmem:[%s2432_s0 + $0xf8] sm:$0xff] }
 0x107   :  { %v904_v15 = vadd.f32 %v2013_v28, %v464_v60  ;;  %v936_v16 = vadd.f32 %v2016_v36, %v624_v62  ;;  %v2244_v25 = vadd.f32 %v1641_v12, %v807_v38  ;;  %1030 = vst.msk [vmem:[%s2436_s6 + $0x90] sm:$0xff] %vm1011_vm2, %v965_v14  ;;  %1062 = vst.msk [vmem:[%s2436_s6 + $0x190] sm:$0xff] %vm1011_vm2, %v997_v24  ;;  %v740_v14 = vld [vmem:[%s2432_s0 + $0x1f8] sm:$0xff] }
 0x108   :  { %v903_v28 = vadd.f32 %v2029_v55, %v459_v29  ;;  %v935_v36 = vadd.f32 %v2032_v56, %v619_v30  ;;  %v2257_v26 = vadd.f32 %v1641_v12, %v774_v1  ;;  %v2260_v3 = vadd.f32 %v1641_v12, %v806_v7  ;;  %v1253_v18 = vpop.f32.mrb[24].mxu0 }
 0x109   :  { %v968_v49 = vmax.f32 %v904_v15, 0.0  ;;  %v1000_v55 = vmax.f32 %v936_v16, 0.0  ;;  %v474_v56 = vadd.f32 %v1250_v43, %v1824_v33  ;;  %v634_v9 = vadd.f32 %v1298_v44, %v1824_v33  ;;  %v478_v38 = vpop.f32.mrb[25].mxu0  ;;  %v707_v16 = vld [vmem:[%s2432_s0 + $0xf0] sm:$0xff] }
 0x10a   :  { %v967_v11 = vmax.f32 %v903_v28, 0.0  ;;  %v999_v39 = vmax.f32 %v935_v36, 0.0  ;;  %v469_v20 = vadd.f32 %v1824_v33, %v468_v13  ;;  %v629_v21 = vadd.f32 %v1824_v33, %v628_v35  ;;  %v739_v28 = vld [vmem:[%s2432_s0 + $0x1f0] sm:$0xff] }
 0x10b   :  { %1033 = vst.msk [vmem:[%s2436_s6 + $0xa8] sm:$0xff] %vm1011_vm2, %v968_v49  ;;  %1065 = vst.msk [vmem:[%s2436_s6 + $0x1a8] sm:$0xff] %vm1011_vm2, %v1000_v55  ;;  %v906_v46 = vadd.f32 %v2089_v27, %v474_v56  ;;  %v938_v47 = vadd.f32 %v2092_v10, %v634_v9  ;;  %v777_v17 = vmul.f32 %v1613_v2, %v706_v6  ;;  %v1301_v10 = vpop.f32.mrb[24].mxu1 }
 0x10c   :  { %v809_v48 = vmul.f32 %v1613_v2, %v738_v22  ;;  %1032 = vst.msk [vmem:[%s2436_s6 + $0xa0] sm:$0xff] %vm1011_vm2, %v967_v11  ;;  %1064 = vst.msk [vmem:[%s2436_s6 + $0x1a0] sm:$0xff] %vm1011_vm2, %v999_v39  ;;  %v905_v51 = vadd.f32 %v2105_v42, %v469_v20  ;;  %v937_v27 = vadd.f32 %v2108_v45, %v629_v21  ;;  %v638_v59 = vpop.f32.mrb[25].mxu1  ;;  %v1256_v60 = vpop.f32.mrb[26].mxu0 }
 0x10d   :  { %v776_v52 = vmul.f32 %v1613_v2, %v705_v5  ;;  %v808_v53 = vmul.f32 %v1613_v2, %v737_v41  ;;  %v970_v54 = vmax.f32 %v906_v46, 0.0  ;;  %v1002_v57 = vmax.f32 %v938_v47, 0.0  ;;  %v488_v30 = vpop.f32.mrb[27].mxu0 }
 0x10e   :  { %v484_v37 = vadd.f32 %v1253_v18, %v1824_v33  ;;  %v644_v58 = vadd.f32 %v1301_v10, %v1824_v33  ;;  %v969_v31 = vmax.f32 %v905_v51, 0.0  ;;  %v1001_v0 = vmax.f32 %v937_v27, 0.0 }
 0x10f   :  { %v479_v42 = vadd.f32 %v1824_v33, %v478_v38  ;;  %v639_v45 = vadd.f32 %v1824_v33, %v638_v59  ;;  %1035 = vst.msk [vmem:[%s2436_s6 + $0xb8] sm:$0xff] %vm1011_vm2, %v970_v54  ;;  %1067 = vst.msk [vmem:[%s2436_s6 + $0x1b8] sm:$0xff] %vm1011_vm2, %v1002_v57  ;;  %v848_v7 = vadd.f32 %v1641_v12, %v777_v17 }
 0x110   :  { %v908_v32 = vadd.f32 %v2165_v4, %v484_v37  ;;  %v940_v1 = vadd.f32 %v2168_v34, %v644_v58  ;;  %v880_v61 = vadd.f32 %v1641_v12, %v809_v48  ;;  %1034 = vst.msk [vmem:[%s2436_s6 + $0xb0] sm:$0xff] %vm1011_vm2, %v969_v31  ;;  %1066 = vst.msk [vmem:[%s2436_s6 + $0x1b0] sm:$0xff] %vm1011_vm2, %v1001_v0  ;;  %v1304_v34 = vpop.f32.mrb[26].mxu1  ;;  %v1259_v13 = vpop.f32.mrb[28].mxu0 }
 0x111   :  { %v907_v8 = vadd.f32 %v2181_v50, %v479_v42  ;;  %v939_v4 = vadd.f32 %v2184_v40, %v639_v45  ;;  %v847_v62 = vadd.f32 %v1641_v12, %v776_v52  ;;  %v879_v63 = vadd.f32 %v1641_v12, %v808_v53  ;;  %v648_v15 = vpop.f32.mrb[27].mxu1  ;;  %v498_v21 = vpop.f32.mrb[29].mxu0 }
 0x112   :  { %v972_v24 = vmax.f32 %v908_v32, 0.0  ;;  %v1004_v29 = vmax.f32 %v940_v1, 0.0  ;;  %v494_v50 = vadd.f32 %v1256_v60, %v1824_v33  ;;  %v654_v40 = vadd.f32 %v1304_v34, %v1824_v33 }
 0x113   :  { %v971_v36 = vmax.f32 %v907_v8, 0.0  ;;  %v1003_v43 = vmax.f32 %v939_v4, 0.0  ;;  %v489_v44 = vadd.f32 %v1824_v33, %v488_v30  ;;  %v649_v6 = vadd.f32 %v1824_v33, %v648_v15 }
 0x114   :  { %1037 = vst.msk [vmem:[%s2436_s6 + $0xc8] sm:$0xff] %vm1011_vm2, %v972_v24  ;;  %1069 = vst.msk [vmem:[%s2436_s6 + $0x1c8] sm:$0xff] %vm1011_vm2, %v1004_v29  ;;  %v910_v22 = vadd.f32 %v2241_v19, %v494_v50  ;;  %v942_v49 = vadd.f32 %v2244_v25, %v654_v40  ;;  %v779_v55 = vmul.f32 %v1613_v2, %v708_v23  ;;  %v1307_v25 = vpop.f32.mrb[28].mxu1  ;;  %v1262_v52 = vpop.f32.mrb[30].mxu0 }
 0x115   :  { %v811_v56 = vmul.f32 %v1613_v2, %v740_v14  ;;  %1036 = vst.msk [vmem:[%s2436_s6 + $0xc0] sm:$0xff] %vm1011_vm2, %v971_v36  ;;  %1068 = vst.msk [vmem:[%s2436_s6 + $0x1c0] sm:$0xff] %vm1011_vm2, %v1003_v43  ;;  %v909_v9 = vadd.f32 %v2257_v26, %v489_v44  ;;  %v941_v19 = vadd.f32 %v2260_v3, %v649_v6  ;;  %v658_v46 = vpop.f32.mrb[29].mxu1  ;;  %v508_v31 = vpop.f32.mrb[31].mxu0 }
 0x116   :  { %v778_v35 = vmul.f32 %v1613_v2, %v707_v16  ;;  %v810_v5 = vmul.f32 %v1613_v2, %v739_v28  ;;  %v974_v41 = vmax.f32 %v910_v22, 0.0  ;;  %v1006_v11 = vmax.f32 %v942_v49, 0.0  ;;  %v1310_v53 = vpop.f32.mrb[30].mxu1 }
 0x117   :  { %v504_v39 = vadd.f32 %v1259_v13, %v1824_v33  ;;  %v664_v20 = vadd.f32 %v1307_v25, %v1824_v33  ;;  %v973_v47 = vmax.f32 %v909_v9, 0.0  ;;  %v1005_v17 = vmax.f32 %v941_v19, 0.0  ;;  %v668_v0 = vpop.f32.mrb[31].mxu1 }
 0x118   :  { %v499_v26 = vadd.f32 %v1824_v33, %v498_v21  ;;  %v659_v3 = vadd.f32 %v1824_v33, %v658_v46  ;;  %1039 = vst.msk [vmem:[%s2436_s6 + $0xd8] sm:$0xff] %vm1011_vm2, %v974_v41  ;;  %1071 = vst.msk [vmem:[%s2436_s6 + $0x1d8] sm:$0xff] %vm1011_vm2, %v1006_v11  ;;  %v850_v51 = vadd.f32 %v1641_v12, %v779_v55 }
 0x119   :  { %v912_v2 = vadd.f32 %v848_v7, %v504_v39  ;;  %v944_v48 = vadd.f32 %v880_v61, %v664_v20  ;;  %v882_v27 = vadd.f32 %v1641_v12, %v811_v56  ;;  %1038 = vst.msk [vmem:[%s2436_s6 + $0xd0] sm:$0xff] %vm1011_vm2, %v973_v47  ;;  %1070 = vst.msk [vmem:[%s2436_s6 + $0x1d0] sm:$0xff] %vm1011_vm2, %v1005_v17 }
 0x11a   :  { %v911_v18 = vadd.f32 %v847_v62, %v499_v26  ;;  %v943_v10 = vadd.f32 %v879_v63, %v659_v3  ;;  %v849_v54 = vadd.f32 %v1641_v12, %v778_v35  ;;  %v881_v57 = vadd.f32 %v1641_v12, %v810_v5 }
 0x11b   :  { %v976_v37 = vmax.f32 %v912_v2, 0.0  ;;  %v1008_v58 = vmax.f32 %v944_v48, 0.0  ;;  %v514_v38 = vadd.f32 %v1262_v52, %v1824_v33  ;;  %v674_v59 = vadd.f32 %v1310_v53, %v1824_v33 }
 0x11c   :  { %v975_v42 = vmax.f32 %v911_v18, 0.0  ;;  %v1007_v45 = vmax.f32 %v943_v10, 0.0  ;;  %v509_v32 = vadd.f32 %v1824_v33, %v508_v31  ;;  %v669_v1 = vadd.f32 %v1824_v33, %v668_v0 }
 0x11d   :  { %1041 = vst.msk [vmem:[%s2436_s6 + $0xe8] sm:$0xff] %vm1011_vm2, %v976_v37  ;;  %1073 = vst.msk [vmem:[%s2436_s6 + $0x1e8] sm:$0xff] %vm1011_vm2, %v1008_v58  ;;  %v914_v12 = vadd.f32 %v850_v51, %v514_v38  ;;  %v946_v7 = vadd.f32 %v882_v27, %v674_v59 }
 0x11e   :  { %1040 = vst.msk [vmem:[%s2436_s6 + $0xe0] sm:$0xff] %vm1011_vm2, %v975_v42  ;;  %1072 = vst.msk [vmem:[%s2436_s6 + $0x1e0] sm:$0xff] %vm1011_vm2, %v1007_v45  ;;  %v913_v33 = vadd.f32 %v849_v54, %v509_v32  ;;  %v945_v61 = vadd.f32 %v881_v57, %v669_v1 }
 0x11f   :  { %v978_v8 = vmax.f32 %v914_v12, 0.0  ;;  %v1010_v4 = vmax.f32 %v946_v7, 0.0 }
 0x120   :  { %v977_v60 = vmax.f32 %v913_v33, 0.0  ;;  %v1009_v34 = vmax.f32 %v945_v61, 0.0 }
 0x121   :  { %1043 = vst.msk [vmem:[%s2436_s6 + $0xf8] sm:$0xff] %vm1011_vm2, %v978_v8  ;;  %1075 = vst.msk [vmem:[%s2436_s6 + $0x1f8] sm:$0xff] %vm1011_vm2, %v1010_v4 }
 0x122   :  { %1042 = vst.msk [vmem:[%s2436_s6 + $0xf0] sm:$0xff] %vm1011_vm2, %v977_v60  ;;  %1074 = vst.msk [vmem:[%s2436_s6 + $0x1f0] sm:$0xff] %vm1011_vm2, %v1009_v34 }

// kernel: resnet101_bottleneck.5
= control target key start
LH: loop header
LB: loop body
LE: loop exit
PB: predicated region body
PF: predicated region fallthrough
CT: control target
= control target key end

     0   :  { %s2939_s18 = smov 0   ;;  %s4112_s0 = inlined_call_operand.vmem [shape: f32[2,16,16,4], index: 0, kind: input, shape index: {}]   ;;  %s4113_s1 = inlined_call_operand.vmem [shape: f32[1,4], index: 1, kind: input, shape index: {}]   ;;  %s4114_s2 = inlined_call_operand.vmem [shape: f32[1,4], index: 2, kind: input, shape index: {}]   ;;  %s4115_s3 = inlined_call_operand.vmem [shape: f32[36,4], index: 3, kind: input, shape index: {}]   ;;  %s4116_s4 = inlined_call_operand.vmem [shape: f32[2,16,16,4], index: 4, kind: output, shape index: {0}]   ;;  %s4117_s5 = inlined_call_operand.vmem [shape: f32[2,2,4], index: 5, kind: output, shape index: {1}]  }
   0x1 LB: > { %s2715_s19 = sadd.s32 4294967295, %s2898_s18   ;;  %p2719_p0 = scmp.ge.s32.totalorder %s2898_s18, 1  ;;  %s2898_s18 = sphi %s2939_s18, %s16_s18  }
   0x2   : > { %p190_p1 = scmp.lt.s32.totalorder %s2898_s18, 3 }
   0x4   : > { %p191_p2 = pnand %p2719_p0, %p190_p1 }
   0x5   : > { %vm378_vm0 = vcmask (!%p191_p2), 31744   ;;  %vm381_vm1 = vcmask (!%p191_p2), 25600   ;;  %p2949_p3 = scmp.lt.s32.totalorder (!%p191_p2), %s2715_s19, 1  ;;  %vm388_vm2 = vcmask (!%p191_p2), 24576   ;;  %v2900_v0 = vmov (!%p191_p2), 0.0   ;;  %s2901_s29 = smov (!%p191_p2), 4  }
   0x6   : > { %194 = sbr.rel (%p191_p2) target bundleno = 897 (0x381), region = 36  ;;  %379 = vst.msk [vmem:[#allocation2] sm:$0xff] (!%p191_p2), %vm378_vm0, %v2900_v0  ;;  %380 = vst.msk [vmem:[#allocation2 + $0x8] sm:$0xff] (!%p191_p2), %vm378_vm0, %v2900_v0  ;;  %v2999_v1 = vld [vmem:[%s4113_s1] ss:$0 sm:$0xff] (!%p191_p2)  ;;  %s2902_s30 = smov (!%p191_p2), 8  }
   0x7   : > { %384 = vst.msk [vmem:[#allocation2 + $0x198] sm:$0xff] (!%p191_p2), %vm378_vm0, %v2900_v0  ;;  %385 = vst.msk [vmem:[#allocation2 + $0x1a0] sm:$0xff] (!%p191_p2), %vm378_vm0, %v2900_v0  ;;  %v3011_v2 = vld [vmem:[%s4114_s2] ss:$0 sm:$0xff] (!%p191_p2)  ;;  %vm677_vm3 = vcmask (!%p191_p2), 64544   ;;  %s2903_s6 = smov (!%p191_p2), 12  }
   0x8   : > { %382 = vst.msk [vmem:[#allocation2 + $0x10] sm:$0x3] (!%p191_p2), %vm381_vm1, %v2900_v0  ;;  %386 = vst.msk [vmem:[#allocation2 + $0x1a8] sm:$0x3] (!%p191_p2), %vm381_vm1, %v2900_v0  ;;  %s2904_s7 = smov (!%p191_p2), 16   ;;  %s2905_s8 = smov (!%p191_p2), 20  }
   0x9   : > { %405 = vst.msk [vmem:[#allocation2 + $0x29] sm:$0x1] (!%p191_p2), %vm388_vm2, %v2900_v0  ;;  %389 = vst.msk [vmem:[#allocation2 + $0x18] sm:$0x1] (!%p191_p2), %vm388_vm2, %v2900_v0  ;;  %s2906_s9 = smov (!%p191_p2), 24   ;;  %s2907_s20 = smov (!%p191_p2), 28  }
   0xa   : > { %390 = vst.msk [vmem:[#allocation2 + $0x30] sm:$0x1] (!%p191_p2), %vm388_vm2, %v2900_v0  ;;  %391 = vst.msk [vmem:[#allocation2 + $0x48] sm:$0x1] (!%p191_p2), %vm388_vm2, %v2900_v0  ;;  %s2908_s22 = smov (!%p191_p2), 32   ;;  %vm2196_vm4 = vcmask (!%p191_p2), 1043456  }
   0xb   : > { %392 = vst.msk [vmem:[#allocation2 + $0x60] sm:$0x1] (!%p191_p2), %vm388_vm2, %v2900_v0  ;;  %393 = vst.msk [vmem:[#allocation2 + $0x78] sm:$0x1] (!%p191_p2), %vm388_vm2, %v2900_v0  ;;  %vm870_vm5 = vcmask (!%p191_p2), 97344   ;;  %vm1063_vm6 = vcmask (!%p191_p2), 130144  }
   0xc   : > { %394 = vst.msk [vmem:[#allocation2 + $0x90] sm:$0x1] (!%p191_p2), %vm388_vm2, %v2900_v0  ;;  %395 = vst.msk [vmem:[#allocation2 + $0xa8] sm:$0x1] (!%p191_p2), %vm388_vm2, %v2900_v0  ;;  %vm1256_vm7 = vcmask (!%p191_p2), 162944   ;;  %vm1449_vm8 = vcmask (!%p191_p2), 195744  }
   0xd   : > { %396 = vst.msk [vmem:[#allocation2 + $0xc0] sm:$0x1] %vm388_vm2, %v2900_v0  ;;  %397 = vst.msk [vmem:[#allocation2 + $0xd8] sm:$0x1] %vm388_vm2, %v2900_v0  ;;  %s4120_s19 = smov (!%p2949_p3, %s2715_s19), 1  ;;  %v517_v12 = vld [vmem:[#allocation2 + $0x1] sm:$0xff] }
   0xe   : > { %398 = vst.msk [vmem:[#allocation2 + $0xf0] sm:$0x1] %vm388_vm2, %v2900_v0  ;;  %399 = vst.msk [vmem:[#allocation2 + $0x108] sm:$0x1] %vm388_vm2, %v2900_v0  ;;  %s2762_s21 = sshll.u32 %s4120_s19, 8  ;;  %581 = vrot.lane.b32.xlu0 %v517_v12, %s2901_s29  ;;  %vm1643_vm9 = vcmask 228544  }
   0xf   : > { %400 = vst.msk [vmem:[#allocation2 + $0x120] sm:$0x1] %vm388_vm2, %v2900_v0  ;;  %401 = vst.msk [vmem:[#allocation2 + $0x138] sm:$0x1] %vm388_vm2, %v2900_v0  ;;  %s3006_s26 = scalar_lea.vmem %s4112_s0, %s2762_s21  ;;  %v518_v17 = vld [vmem:[#allocation2 + $0x9] sm:$0xff]  ;;  %vm1836_vm10 = vcmask 261344  }
  0x10   : > { %402 = vst.msk [vmem:[#allocation2 + $0x150] sm:$0x1] %vm388_vm2, %v2900_v0  ;;  %403 = vst.msk [vmem:[#allocation2 + $0x168] sm:$0x1] %vm388_vm2, %v2900_v0  ;;  %v236_v3 = vld [vmem:[%s3006_s26] sm:$0xff]  ;;  %v238_v4 = vld [vmem:[%s3006_s26 + $0x10] sm:$0xff] }
  0x11   : > { %404 = vst.msk [vmem:[#allocation2 + $0x180] sm:$0x1] %vm388_vm2, %v2900_v0  ;;  %406 = vst.msk [vmem:[#allocation2 + $0x41] sm:$0x1] %vm388_vm2, %v2900_v0  ;;  %v237_v5 = vld [vmem:[%s3006_s26 + $0x8] sm:$0xff]  ;;  %v275_v6 = vmul.f32 %v2999_v1, %v236_v3  ;;  %v277_v7 = vmul.f32 %v2999_v1, %v238_v4  ;;  %v240_v9 = vld [vmem:[%s3006_s26 + $0x20] sm:$0xff] }
  0x12   : > { %407 = vst.msk [vmem:[#allocation2 + $0x59] sm:$0x1] %vm388_vm2, %v2900_v0  ;;  %408 = vst.msk [vmem:[#allocation2 + $0x71] sm:$0x1] %vm388_vm2, %v2900_v0  ;;  %v276_v8 = vmul.f32 %v2999_v1, %v237_v5  ;;  %v239_v10 = vld [vmem:[%s3006_s26 + $0x18] sm:$0xff]  ;;  %v242_v11 = vld [vmem:[%s3006_s26 + $0x30] sm:$0xff]  ;;  %v279_v13 = vmul.f32 %v2999_v1, %v240_v9  ;;  %583 = vrot.lane.b32.xlu0 %v518_v17, %s2901_s29 }
  0x13   : > { %409 = vst.msk [vmem:[#allocation2 + $0x89] sm:$0x1] %vm388_vm2, %v2900_v0  ;;  %410 = vst.msk [vmem:[#allocation2 + $0xa1] sm:$0x1] %vm388_vm2, %v2900_v0  ;;  %v278_v14 = vmul.f32 %v2999_v1, %v239_v10  ;;  %v281_v15 = vmul.f32 %v2999_v1, %v242_v11  ;;  %v241_v16 = vld [vmem:[%s3006_s26 + $0x28] sm:$0xff]  ;;  %v314_v18 = vadd.f32 %v3011_v2, %v275_v6  ;;  %v244_v22 = vld [vmem:[%s3006_s26 + $0x40] sm:$0xff] }
  0x14   : > { %411 = vst.msk [vmem:[#allocation2 + $0xb9] sm:$0x1] %vm388_vm2, %v2900_v0  ;;  %412 = vst.msk [vmem:[#allocation2 + $0xd1] sm:$0x1] %vm388_vm2, %v2900_v0  ;;  %v316_v19 = vadd.f32 %v3011_v2, %v277_v7  ;;  %v315_v20 = vadd.f32 %v3011_v2, %v276_v8  ;;  %v280_v21 = vmul.f32 %v2999_v1, %v241_v16  ;;  %v243_v27 = vld [vmem:[%s3006_s26 + $0x38] sm:$0xff]  ;;  %v246_v28 = vld [vmem:[%s3006_s26 + $0x50] sm:$0xff] }
  0x15   : > { %413 = vst.msk [vmem:[#allocation2 + $0xe9] sm:$0x1] %vm388_vm2, %v2900_v0  ;;  %414 = vst.msk [vmem:[#allocation2 + $0x101] sm:$0x1] %vm388_vm2, %v2900_v0  ;;  %v318_v23 = vadd.f32 %v3011_v2, %v279_v13  ;;  %v317_v24 = vadd.f32 %v3011_v2, %v278_v14  ;;  %v320_v25 = vadd.f32 %v3011_v2, %v281_v15  ;;  %v245_v29 = vld [vmem:[%s3006_s26 + $0x48] sm:$0xff]  ;;  %v346_v30 = vmax.f32 %v314_v18, 0.0 }
  0x16   : > { %415 = vst.msk [vmem:[#allocation2 + $0x119] sm:$0x1] %vm388_vm2, %v2900_v0  ;;  %416 = vst.msk [vmem:[#allocation2 + $0x131] sm:$0x1] %vm388_vm2, %v2900_v0  ;;  %v283_v26 = vmul.f32 %v2999_v1, %v244_v22  ;;  %v348_v31 = vmax.f32 %v316_v19, 0.0  ;;  %v347_v32 = vmax.f32 %v315_v20, 0.0  ;;  %v319_v33 = vadd.f32 %v3011_v2, %v280_v21 }
  0x17   : > { %417 = vst.msk [vmem:[#allocation2 + $0x149] sm:$0x1] %vm388_vm2, %v2900_v0  ;;  %418 = vst.msk [vmem:[#allocation2 + $0x161] sm:$0x1] %vm388_vm2, %v2900_v0  ;;  %v248_v34 = vld [vmem:[%s3006_s26 + $0x60] sm:$0xff]  ;;  %v247_v35 = vld [vmem:[%s3006_s26 + $0x58] sm:$0xff]  ;;  %v282_v43 = vmul.f32 %v2999_v1, %v243_v27  ;;  %v285_v44 = vmul.f32 %v2999_v1, %v246_v28  ;;  %v284_v45 = vmul.f32 %v2999_v1, %v245_v29 }
  0x18   : > { %419 = vst.msk [vmem:[#allocation2 + $0x179] sm:$0x1] %vm388_vm2, %v2900_v0  ;;  %420 = vst.msk [vmem:[#allocation2 + $0x191] sm:$0x1] %vm388_vm2, %v2900_v0  ;;  %v250_v36 = vld [vmem:[%s3006_s26 + $0x70] sm:$0xff]  ;;  %v350_v37 = vmax.f32 %v318_v23, 0.0  ;;  %v322_v40 = vadd.f32 %v3011_v2, %v283_v26  ;;  %v287_v48 = vmul.f32 %v2999_v1, %v248_v34  ;;  %v286_v49 = vmul.f32 %v2999_v1, %v247_v35 }
  0x19   : > { %v349_v38 = vmax.f32 %v317_v24, 0.0  ;;  %v352_v39 = vmax.f32 %v320_v25, 0.0  ;;  %v249_v41 = vld [vmem:[%s3006_s26 + $0x68] sm:$0xff]  ;;  %421 = vst.msk [vmem:[#allocation2 + $0x19] sm:$0xff] %vm378_vm0, %v346_v30  ;;  %423 = vst.msk [vmem:[#allocation2 + $0x31] sm:$0xff] %vm378_vm0, %v348_v31  ;;  %v351_v42 = vmax.f32 %v319_v33, 0.0  ;;  %v289_v50 = vmul.f32 %v2999_v1, %v250_v36 }
  0x1a   : > { %422 = vst.msk [vmem:[#allocation2 + $0x21] sm:$0xff] %vm378_vm0, %v347_v32  ;;  %v252_v46 = vld [vmem:[%s3006_s26 + $0x80] sm:$0xff]  ;;  %425 = vst.msk [vmem:[#allocation2 + $0x49] sm:$0xff] %vm378_vm0, %v350_v37  ;;  %v354_v47 = vmax.f32 %v322_v40, 0.0  ;;  %v321_v51 = vadd.f32 %v3011_v2, %v282_v43  ;;  %v324_v52 = vadd.f32 %v3011_v2, %v285_v44  ;;  %v323_v53 = vadd.f32 %v3011_v2, %v284_v45  ;;  %v251_v55 = vld [vmem:[%s3006_s26 + $0x78] sm:$0xff] }
  0x1b   : > { %424 = vst.msk [vmem:[#allocation2 + $0x39] sm:$0xff] %vm378_vm0, %v349_v38  ;;  %427 = vst.msk [vmem:[#allocation2 + $0x61] sm:$0xff] %vm378_vm0, %v352_v39  ;;  %v288_v54 = vmul.f32 %v2999_v1, %v249_v41  ;;  %v254_v56 = vld [vmem:[%s3006_s26 + $0x90] sm:$0xff]  ;;  %v326_v57 = vadd.f32 %v3011_v2, %v287_v48  ;;  %v325_v58 = vadd.f32 %v3011_v2, %v286_v49  ;;  %v253_v61 = vld [vmem:[%s3006_s26 + $0x88] sm:$0xff]  ;;  %vm2029_vm11 = vcmask 294144  }
  0x1c   : > { %426 = vst.msk [vmem:[#allocation2 + $0x51] sm:$0xff] %vm378_vm0, %v351_v42  ;;  %429 = vst.msk [vmem:[#allocation2 + $0x79] sm:$0xff] %vm378_vm0, %v354_v47  ;;  %v328_v59 = vadd.f32 %v3011_v2, %v289_v50  ;;  %v291_v60 = vmul.f32 %v2999_v1, %v252_v46  ;;  %v256_v62 = vld [vmem:[%s3006_s26 + $0xa0] sm:$0xff]  ;;  %v255_v63 = vld [vmem:[%s3006_s26 + $0x98] sm:$0xff]  ;;  %v353_v0 = vmax.f32 %v321_v51, 0.0  ;;  %v356_v3 = vmax.f32 %v324_v52, 0.0 }
  0x1d   : > { %v355_v4 = vmax.f32 %v323_v53, 0.0  ;;  %v327_v5 = vadd.f32 %v3011_v2, %v288_v54  ;;  %v258_v6 = vld [vmem:[%s3006_s26 + $0xb0] sm:$0xff]  ;;  %v453_v7 = vld [vmem:[#allocation2] sm:$0xff]  ;;  %v454_v8 = vld [vmem:[#allocation2 + $0x8] sm:$0xff]  ;;  %v358_v9 = vmax.f32 %v326_v57, 0.0  ;;  %v357_v10 = vmax.f32 %v325_v58, 0.0 }
  0x1e   : > { %v360_v11 = vmax.f32 %v328_v59, 0.0  ;;  %v330_v12 = vadd.f32 %v3011_v2, %v291_v60  ;;  %485 = vst.msk [vmem:[#allocation3] sm:$0xff] %vm378_vm0, %v453_v7  ;;  %486 = vst.msk [vmem:[#allocation3 + $0x8] sm:$0xff] %vm378_vm0, %v454_v8  ;;  %v290_v14 = vmul.f32 %v2999_v1, %v251_v55  ;;  %v293_v15 = vmul.f32 %v2999_v1, %v254_v56  ;;  %v257_v17 = vld [vmem:[%s3006_s26 + $0xa8] sm:$0xff]  ;;  %v260_v24 = vld [vmem:[%s3006_s26 + $0xc0] sm:$0xff] }
  0x1f   : > { %428 = vst.msk [vmem:[#allocation2 + $0x69] sm:$0xff] %vm378_vm0, %v353_v0  ;;  %431 = vst.msk [vmem:[#allocation2 + $0x91] sm:$0xff] %vm378_vm0, %v356_v3  ;;  %v359_v13 = vmax.f32 %v327_v5, 0.0  ;;  %v292_v16 = vmul.f32 %v2999_v1, %v253_v61  ;;  %v295_v21 = vmul.f32 %v2999_v1, %v256_v62  ;;  %v294_v22 = vmul.f32 %v2999_v1, %v255_v63  ;;  %v259_v28 = vld [vmem:[%s3006_s26 + $0xb8] sm:$0xff]  ;;  %v262_v35 = vld [vmem:[%s3006_s26 + $0xd0] sm:$0xff] }
  0x20   : > { %430 = vst.msk [vmem:[#allocation2 + $0x81] sm:$0xff] %vm378_vm0, %v355_v4  ;;  %v3086_v18 = vld [vmem:[#allocation2 + $0x19] sm:$0xff]  ;;  %v3088_v19 = vld [vmem:[#allocation2 + $0x31] sm:$0xff]  ;;  %433 = vst.msk [vmem:[#allocation2 + $0xa9] sm:$0xff] %vm378_vm0, %v358_v9  ;;  %v362_v20 = vmax.f32 %v330_v12, 0.0  ;;  %v297_v23 = vmul.f32 %v2999_v1, %v258_v6  ;;  %v329_v25 = vadd.f32 %v3011_v2, %v290_v14  ;;  %v332_v26 = vadd.f32 %v3011_v2, %v293_v15 }
  0x21   : > { %432 = vst.msk [vmem:[#allocation2 + $0x99] sm:$0xff] %vm378_vm0, %v357_v10  ;;  %435 = vst.msk [vmem:[#allocation2 + $0xc1] sm:$0xff] %vm378_vm0, %v360_v11  ;;  %585 = vrot.lane.b32.xlu1 %v3086_v18, %s2901_s29  ;;  %589 = vrot.lane.b32.xlu0 %v3088_v19, %s2901_s29  ;;  %v331_v27 = vadd.f32 %v3011_v2, %v292_v16  ;;  %v3106_v29 = vld [vmem:[#allocation2 + $0x21] sm:$0xff]  ;;  %v3108_v30 = vld [vmem:[#allocation2 + $0x49] sm:$0xff]  ;;  %v334_v31 = vadd.f32 %v3011_v2, %v295_v21  ;;  %vm2099_vm12 = vcmask 293888  }
  0x22   : > { %434 = vst.msk [vmem:[#allocation2 + $0xb1] sm:$0xff] %vm378_vm0, %v359_v13  ;;  %437 = vst.msk [vmem:[#allocation2 + $0xd9] sm:$0xff] %vm378_vm0, %v362_v20  ;;  %v333_v32 = vadd.f32 %v3011_v2, %v294_v22  ;;  %v336_v33 = vadd.f32 %v3011_v2, %v297_v23  ;;  %v296_v34 = vmul.f32 %v2999_v1, %v257_v17  ;;  %v361_v36 = vmax.f32 %v329_v25, 0.0  ;;  %v261_v40 = vld [vmem:[%s3006_s26 + $0xc8] sm:$0xff]  ;;  %v264_v41 = vld [vmem:[%s3006_s26 + $0xe0] sm:$0xff] }
  0x23   : > { %v364_v37 = vmax.f32 %v332_v26, 0.0  ;;  %v363_v38 = vmax.f32 %v331_v27, 0.0  ;;  %v299_v39 = vmul.f32 %v2999_v1, %v260_v24  ;;  %v263_v42 = vld [vmem:[%s3006_s26 + $0xd8] sm:$0xff]  ;;  %v366_v43 = vmax.f32 %v334_v31, 0.0  ;;  %v265_v47 = vld [vmem:[%s3006_s26 + $0xe8] sm:$0xff]  ;;  %v3136_v52 = vld [vmem:[#allocation2 + $0x30] sm:$0xff] }
  0x24   : > { %v365_v44 = vmax.f32 %v333_v32, 0.0  ;;  %v368_v45 = vmax.f32 %v336_v33, 0.0  ;;  %v335_v46 = vadd.f32 %v3011_v2, %v296_v34  ;;  %v3122_v48 = vld [vmem:[#allocation2 + $0x18] sm:$0xff]  ;;  %436 = vst.msk [vmem:[#allocation2 + $0xc9] sm:$0xff] %vm378_vm0, %v361_v36  ;;  %v298_v50 = vmul.f32 %v2999_v1, %v259_v28  ;;  %v3138_v53 = vld [vmem:[#allocation2 + $0x20] sm:$0xff]  ;;  %v3140_v54 = vld [vmem:[#allocation2 + $0x48] sm:$0xff] }
  0x25   : > { %587 = vrot.lane.b32.xlu1 %v3106_v29, %s2901_s29  ;;  %593 = vrot.lane.b32.xlu0 %v3108_v30, %s2901_s29  ;;  %439 = vst.msk [vmem:[#allocation2 + $0xf1] sm:$0xff] %vm378_vm0, %v364_v37  ;;  %438 = vst.msk [vmem:[#allocation2 + $0xe1] sm:$0xff] %vm378_vm0, %v363_v38  ;;  %v338_v49 = vadd.f32 %v3011_v2, %v299_v39  ;;  %v301_v51 = vmul.f32 %v2999_v1, %v262_v35  ;;  %v3142_v55 = vld [vmem:[#allocation2 + $0x39] sm:$0xff]  ;;  %v3144_v56 = vld [vmem:[#allocation2 + $0x61] sm:$0xff] }
  0x26   : > { %487 = vst.msk [vmem:[#allocation3 + $0x10] sm:$0xff] %vm378_vm0, %v3122_v48  ;;  %441 = vst.msk [vmem:[#allocation2 + $0x109] sm:$0xff] %vm378_vm0, %v366_v43  ;;  %v367_v57 = vmax.f32 %v335_v46, 0.0  ;;  %v300_v58 = vmul.f32 %v2999_v1, %v261_v40  ;;  %v303_v59 = vmul.f32 %v2999_v1, %v264_v41  ;;  %v302_v60 = vmul.f32 %v2999_v1, %v263_v42  ;;  %v3171_v8 = vld [vmem:[#allocation2 + $0x51] sm:$0xff]  ;;  %v527_v9 = vld [vmem:[#allocation2 + $0x79] sm:$0xff] }
  0x27   : > { %440 = vst.msk [vmem:[#allocation2 + $0xf9] sm:$0xff] %vm378_vm0, %v365_v44  ;;  %443 = vst.msk [vmem:[#allocation2 + $0x121] sm:$0xff] %vm378_vm0, %v368_v45  ;;  %v370_v61 = vmax.f32 %v338_v49, 0.0  ;;  %v337_v62 = vadd.f32 %v3011_v2, %v298_v50  ;;  %v340_v63 = vadd.f32 %v3011_v2, %v301_v51  ;;  %v304_v0 = vmul.f32 %v2999_v1, %v265_v47  ;;  %v3175_v14 = vld [vmem:[#allocation2 + $0x38] sm:$0xff]  ;;  %v3177_v15 = vld [vmem:[#allocation2 + $0x60] sm:$0xff] }
  0x28   : > { %489 = vst.msk [vmem:[#allocation3 + $0x20] sm:$0xff] %vm378_vm0, %v3136_v52  ;;  %488 = vst.msk [vmem:[#allocation3 + $0x18] sm:$0xff] %vm378_vm0, %v3138_v53  ;;  %v339_v3 = vadd.f32 %v3011_v2, %v300_v58  ;;  %v342_v4 = vadd.f32 %v3011_v2, %v303_v59  ;;  %v341_v5 = vadd.f32 %v3011_v2, %v302_v60  ;;  %v529_v16 = vld [vmem:[#allocation2 + $0x91] sm:$0xff]  ;;  %v528_v21 = vld [vmem:[#allocation2 + $0x81] sm:$0xff] }
  0x29   : > { %491 = vst.msk [vmem:[#allocation3 + $0x30] sm:$0xff] %vm378_vm0, %v3140_v54  ;;  %442 = vst.msk [vmem:[#allocation2 + $0x111] sm:$0xff] %vm378_vm0, %v367_v57  ;;  %591 = vrot.lane.b32.xlu1 %v3142_v55, %s2901_s29  ;;  %597 = vrot.lane.b32.xlu0 %v3144_v56, %s2901_s29  ;;  %v369_v6 = vmax.f32 %v337_v62, 0.0  ;;  %v372_v7 = vmax.f32 %v340_v63, 0.0  ;;  %v343_v1 = vadd.f32 %v3011_v2, %v304_v0  ;;  %v3190_v2 = vld [vmem:[#allocation2 + $0x69] sm:$0xff]  ;;  %v3197_v20 = vld [vmem:[#allocation2 + $0x78] sm:$0xff] }
  0x2a   : > { %445 = vst.msk [vmem:[#allocation2 + $0x139] sm:$0xff] %vm378_vm0, %v370_v61  ;;  %v371_v10 = vmax.f32 %v339_v3, 0.0  ;;  %v374_v11 = vmax.f32 %v342_v4, 0.0  ;;  %v373_v12 = vmax.f32 %v341_v5, 0.0  ;;  %490 = vst.msk [vmem:[#allocation3 + $0x28] sm:$0xff] %vm378_vm0, %v3175_v14  ;;  %v3195_v17 = vld [vmem:[#allocation2 + $0x50] sm:$0xff] }
  0x2b   : > { %444 = vst.msk [vmem:[#allocation2 + $0x129] sm:$0xff] %vm378_vm0, %v369_v6  ;;  %447 = vst.msk [vmem:[#allocation2 + $0x151] sm:$0xff] %vm378_vm0, %v372_v7  ;;  %v375_v13 = vmax.f32 %v343_v1, 0.0  ;;  %v531_v22 = vld [vmem:[#allocation2 + $0xa9] sm:$0xff]  ;;  %v530_v23 = vld [vmem:[#allocation2 + $0x99] sm:$0xff] }
  0x2c   : > { %446 = vst.msk [vmem:[#allocation2 + $0x141] sm:$0xff] %vm378_vm0, %v371_v10  ;;  %449 = vst.msk [vmem:[#allocation2 + $0x169] sm:$0xff] %vm378_vm0, %v374_v11  ;;  %v533_v24 = vld [vmem:[#allocation2 + $0xc1] sm:$0xff]  ;;  %v3209_v26 = vld [vmem:[#allocation2 + $0x90] sm:$0xff] }
  0x2d   : > { %448 = vst.msk [vmem:[#allocation2 + $0x159] sm:$0xff] %vm378_vm0, %v373_v12  ;;  %493 = vst.msk [vmem:[#allocation3 + $0x40] sm:$0xff] %vm378_vm0, %v3177_v15  ;;  %595 = vrot.lane.b32.xlu1 %v3171_v8, %s2901_s29  ;;  %601 = vrot.lane.b32.xlu0 %v527_v9, %s2901_s29  ;;  %v3205_v25 = vld [vmem:[#allocation2 + $0x68] sm:$0xff]  ;;  %v3211_v27 = vld [vmem:[#allocation2 + $0x80] sm:$0xff] }
  0x2e   : > { %450 = vst.msk [vmem:[#allocation2 + $0x171] sm:$0xff] %vm378_vm0, %v375_v13  ;;  %492 = vst.msk [vmem:[#allocation3 + $0x38] sm:$0xff] %vm378_vm0, %v3195_v17  ;;  %v3213_v28 = vld [vmem:[#allocation2 + $0xa8] sm:$0xff]  ;;  %v532_v31 = vld [vmem:[#allocation2 + $0xb1] sm:$0xff] }
  0x2f   : > { %495 = vst.msk [vmem:[#allocation3 + $0x50] sm:$0xff] %vm378_vm0, %v3197_v20  ;;  %494 = vst.msk [vmem:[#allocation3 + $0x48] sm:$0xff] %vm378_vm0, %v3205_v25  ;;  %v535_v32 = vld [vmem:[#allocation2 + $0xd9] sm:$0xff]  ;;  %v3225_v35 = vld [vmem:[#allocation2 + $0xb0] sm:$0xff] }
  0x30   : > { %497 = vst.msk [vmem:[#allocation3 + $0x60] sm:$0xff] %vm378_vm0, %v3209_v26  ;;  %496 = vst.msk [vmem:[#allocation3 + $0x58] sm:$0xff] %vm378_vm0, %v3211_v27  ;;  %v3221_v33 = vld [vmem:[#allocation2 + $0x98] sm:$0xff]  ;;  %v3223_v34 = vld [vmem:[#allocation2 + $0xc0] sm:$0xff] }
  0x31   : > { %599 = vrot.lane.b32.xlu1 %v3190_v2, %s2901_s29  ;;  %605 = vrot.lane.b32.xlu0 %v529_v16, %s2901_s29  ;;  %499 = vst.msk [vmem:[#allocation3 + $0x70] sm:$0xff] %vm378_vm0, %v3213_v28  ;;  %498 = vst.msk [vmem:[#allocation3 + $0x68] sm:$0xff] %vm378_vm0, %v3221_v33  ;;  %v3235_v36 = vld [vmem:[#allocation2 + $0xd8] sm:$0xff]  ;;  %v3237_v37 = vld [vmem:[#allocation2 + $0xc8] sm:$0xff] }
  0x32   : > { %501 = vst.msk [vmem:[#allocation3 + $0x80] sm:$0xff] %vm378_vm0, %v3223_v34  ;;  %500 = vst.msk [vmem:[#allocation3 + $0x78] sm:$0xff] %vm378_vm0, %v3225_v35  ;;  %v3239_v38 = vld [vmem:[#allocation2 + $0xf0] sm:$0xff]  ;;  %v3247_v39 = vld [vmem:[#allocation2 + $0xe0] sm:$0xff] }
  0x33   : > { %503 = vst.msk [vmem:[#allocation3 + $0x90] sm:$0xff] %vm378_vm0, %v3235_v36  ;;  %502 = vst.msk [vmem:[#allocation3 + $0x88] sm:$0xff] %vm378_vm0, %v3237_v37  ;;  %v3249_v40 = vld [vmem:[#allocation2 + $0x108] sm:$0xff]  ;;  %v3251_v41 = vld [vmem:[#allocation2 + $0xf8] sm:$0xff] }
  0x34   : > { %505 = vst.msk [vmem:[#allocation3 + $0xa0] sm:$0xff] %vm378_vm0, %v3239_v38  ;;  %504 = vst.msk [vmem:[#allocation3 + $0x98] sm:$0xff] %vm378_vm0, %v3247_v39  ;;  %v3259_v42 = vld [vmem:[#allocation2 + $0x120] sm:$0xff]  ;;  %v3265_v43 = vld [vmem:[#allocation2 + $0x110] sm:$0xff] }
  0x35   : > { %603 = vrot.lane.b32.xlu1 %v528_v21, %s2901_s29  ;;  %609 = vrot.lane.b32.xlu0 %v531_v22, %s2901_s29  ;;  %507 = vst.msk [vmem:[#allocation3 + $0xb0] sm:$0xff] %vm378_vm0, %v3249_v40  ;;  %506 = vst.msk [vmem:[#allocation3 + $0xa8] sm:$0xff] %vm378_vm0, %v3251_v41  ;;  %v534_v44 = vld [vmem:[#allocation2 + $0xc9] sm:$0xff]  ;;  %v537_v45 = vld [vmem:[#allocation2 + $0xf1] sm:$0xff] }
  0x36   : > { %509 = vst.msk [vmem:[#allocation3 + $0xc0] sm:$0xff] %vm378_vm0, %v3259_v42  ;;  %508 = vst.msk [vmem:[#allocation3 + $0xb8] sm:$0xff] %vm378_vm0, %v3265_v43  ;;  %v479_v46 = vld [vmem:[#allocation2 + $0x138] sm:$0xff]  ;;  %v3272_v47 = vld [vmem:[#allocation2 + $0x128] sm:$0xff] }
  0x37   : > { %511 = vst.msk [vmem:[#allocation3 + $0xd0] sm:$0xff] %vm378_vm0, %v479_v46  ;;  %v536_v49 = vld [vmem:[#allocation2 + $0xe1] sm:$0xff]  ;;  %v539_v50 = vld [vmem:[#allocation2 + $0x109] sm:$0xff]  ;;  %510 = vst.msk [vmem:[#allocation3 + $0xc8] sm:$0xff] %vm378_vm0, %v3272_v47 }
  0x38   : > { %v481_v51 = vld [vmem:[#allocation2 + $0x150] sm:$0xff]  ;;  %v480_v57 = vld [vmem:[#allocation2 + $0x140] sm:$0xff]  ;;  %v483_v60 = vld [vmem:[#allocation2 + $0x168] sm:$0xff] }
  0x39   : > { %607 = vrot.lane.b32.xlu1 %v530_v23, %s2901_s29  ;;  %613 = vrot.lane.b32.xlu0 %v533_v24, %s2901_s29  ;;  %513 = vst.msk [vmem:[#allocation3 + $0xe0] sm:$0xff] %vm378_vm0, %v481_v51  ;;  %v538_v58 = vld [vmem:[#allocation2 + $0xf9] sm:$0xff]  ;;  %v541_v59 = vld [vmem:[#allocation2 + $0x121] sm:$0xff]  ;;  %512 = vst.msk [vmem:[#allocation3 + $0xd8] sm:$0xff] %vm378_vm0, %v480_v57 }
  0x3a   : > { %515 = vst.msk [vmem:[#allocation3 + $0xf0] sm:$0xff] %vm378_vm0, %v483_v60  ;;  %v482_v61 = vld [vmem:[#allocation2 + $0x158] sm:$0xff]  ;;  %v484_v0 = vld [vmem:[#allocation2 + $0x170] sm:$0xff]  ;;  %v544_v5 = vld [vmem:[#allocation2 + $0x141] sm:$0xff] }
  0x3b   : > { %v540_v62 = vld [vmem:[#allocation2 + $0x111] sm:$0xff]  ;;  %v543_v63 = vld [vmem:[#allocation2 + $0x139] sm:$0xff]  ;;  %514 = vst.msk [vmem:[#allocation3 + $0xe8] sm:$0xff] %vm378_vm0, %v482_v61  ;;  %v542_v3 = vld [vmem:[#allocation2 + $0x129] sm:$0xff] }
  0x3c   : > { %v545_v4 = vld [vmem:[#allocation2 + $0x151] sm:$0xff]  ;;  %516 = vst.msk [vmem:[#allocation3 + $0xf8] sm:$0xff] %vm378_vm0, %v484_v0  ;;  %v547_v6 = vld [vmem:[#allocation2 + $0x169] sm:$0xff]  ;;  %v546_v7 = vld [vmem:[#allocation2 + $0x159] sm:$0xff] }
  0x3d   : > { %611 = vrot.lane.b32.xlu1 %v532_v31, %s2901_s29  ;;  %617 = vrot.lane.b32.xlu0 %v535_v32, %s2901_s29  ;;  %v710_v1 = vld [vmem:[#allocation2 + $0x2] sm:$0xff]  ;;  %v548_v9 = vld [vmem:[#allocation2 + $0x171] sm:$0xff]  ;;  %v3293_v10 = vld [vmem:[#allocation2 + $0x1a] sm:$0xff] }
  0x3e   : > { %v711_v11 = vld [vmem:[#allocation2 + $0xa] sm:$0xff]  ;;  %v3298_v12 = vld [vmem:[#allocation2 + $0x32] sm:$0xff]  ;;  %v3303_v13 = vld [vmem:[#allocation2 + $0x22] sm:$0xff] }
  0x3f   : > { %v3305_v16 = vld [vmem:[#allocation2 + $0x4a] sm:$0xff]  ;;  %v3311_v21 = vld [vmem:[#allocation2 + $0x3a] sm:$0xff]  ;;  %v3313_v22 = vld [vmem:[#allocation2 + $0x62] sm:$0xff] }
  0x40   : > { %v3319_v23 = vld [vmem:[#allocation2 + $0x52] sm:$0xff]  ;;  %v3321_v24 = vld [vmem:[#allocation2 + $0x7a] sm:$0xff]  ;;  %v3327_v31 = vld [vmem:[#allocation2 + $0x6a] sm:$0xff] }
  0x41   : > { %615 = vrot.lane.b32.xlu1 %v534_v44, %s2901_s29  ;;  %621 = vrot.lane.b32.xlu0 %v537_v45, %s2901_s29  ;;  %v3329_v32 = vld [vmem:[#allocation2 + $0x92] sm:$0xff]  ;;  %v3335_v44 = vld [vmem:[#allocation2 + $0x82] sm:$0xff]  ;;  %v3337_v45 = vld [vmem:[#allocation2 + $0xaa] sm:$0xff] }
  0x42   : > { %v3343_v46 = vld [vmem:[#allocation2 + $0x9a] sm:$0xff]  ;;  %v3356_v57 = vld [vmem:[#allocation2 + $0xca] sm:$0xff]  ;;  %v733_v0 = vld [vmem:[#allocation2 + $0x112] sm:$0xff] }
  0x43   : > { %v728_v51 = vld [vmem:[#allocation2 + $0xda] sm:$0xff]  ;;  %v732_v60 = vld [vmem:[#allocation2 + $0x10a] sm:$0xff] }
  0x44   : > { %v731_v61 = vld [vmem:[#allocation2 + $0xfa] sm:$0xff] }
  0x45   : > { %619 = vrot.lane.b32.xlu1 %v536_v49, %s2901_s29  ;;  %625 = vrot.lane.b32.xlu0 %v539_v50, %s2901_s29  ;;  %v3345_v49 = vld [vmem:[#allocation2 + $0xc2] sm:$0xff]  ;;  %v3351_v50 = vld [vmem:[#allocation2 + $0xb2] sm:$0xff] }
  0x49   : > { %623 = vrot.lane.b32.xlu1 %v538_v58, %s2901_s29  ;;  %629 = vrot.lane.b32.xlu0 %v541_v59, %s2901_s29  ;;  %v730_v58 = vld [vmem:[#allocation2 + $0xf2] sm:$0xff]  ;;  %v729_v59 = vld [vmem:[#allocation2 + $0xe2] sm:$0xff] }
  0x4d   : > { %627 = vrot.lane.b32.xlu1 %v540_v62, %s2901_s29  ;;  %633 = vrot.lane.b32.xlu0 %v543_v63, %s2901_s29  ;;  %v734_v62 = vld [vmem:[#allocation2 + $0x122] sm:$0xff] }
  0x51   : > { %631 = vrot.lane.b32.xlu1 %v542_v3, %s2901_s29  ;;  %637 = vrot.lane.b32.xlu0 %v545_v4, %s2901_s29  ;;  %v736_v3 = vld [vmem:[#allocation2 + $0x13a] sm:$0xff] }
  0x55   : > { %635 = vrot.lane.b32.xlu1 %v544_v5, %s2901_s29  ;;  %641 = vrot.lane.b32.xlu0 %v547_v6, %s2901_s29  ;;  %v735_v5 = vld [vmem:[#allocation2 + $0x12a] sm:$0xff]  ;;  %v738_v6 = vld [vmem:[#allocation2 + $0x152] sm:$0xff] }
  0x59   : > { %639 = vrot.lane.b32.xlu1 %v546_v7, %s2901_s29  ;;  %774 = vrot.lane.b32.xlu0 %v710_v1, %s2902_s30  ;;  %v737_v7 = vld [vmem:[#allocation2 + $0x142] sm:$0xff]  ;;  %v740_v1 = vld [vmem:[#allocation2 + $0x16a] sm:$0xff] }
  0x5d   : > { %643 = vrot.lane.b32.xlu1 %v548_v9, %s2901_s29  ;;  %778 = vrot.lane.b32.xlu0 %v3293_v10, %s2902_s30 }
  0x61   : > { %776 = vrot.lane.b32.xlu1 %v711_v11, %s2902_s30  ;;  %782 = vrot.lane.b32.xlu0 %v3298_v12, %s2902_s30 }
  0x65   : > { %780 = vrot.lane.b32.xlu1 %v3303_v13, %s2902_s30  ;;  %786 = vrot.lane.b32.xlu0 %v3305_v16, %s2902_s30 }
  0x69   : > { %784 = vrot.lane.b32.xlu1 %v3311_v21, %s2902_s30  ;;  %790 = vrot.lane.b32.xlu0 %v3313_v22, %s2902_s30 }
  0x6d   : > { %788 = vrot.lane.b32.xlu1 %v3319_v23, %s2902_s30  ;;  %794 = vrot.lane.b32.xlu0 %v3321_v24, %s2902_s30 }
  0x71   : > { %792 = vrot.lane.b32.xlu1 %v3327_v31, %s2902_s30  ;;  %798 = vrot.lane.b32.xlu0 %v3329_v32, %s2902_s30 }
  0x75   : > { %796 = vrot.lane.b32.xlu1 %v3335_v44, %s2902_s30  ;;  %802 = vrot.lane.b32.xlu0 %v3337_v45, %s2902_s30 }
  0x79   : > { %800 = vrot.lane.b32.xlu1 %v3343_v46, %s2902_s30  ;;  %806 = vrot.lane.b32.xlu0 %v3345_v49, %s2902_s30 }
  0x7d   : > { %804 = vrot.lane.b32.xlu1 %v3351_v50, %s2902_s30  ;;  %810 = vrot.lane.b32.xlu0 %v728_v51, %s2902_s30  ;;  %v739_v51 = vld [vmem:[#allocation2 + $0x15a] sm:$0xff] }
  0x80   : > { %v582_v63 = vpop.permute.xlu0 %581 }
  0x81   : > { %808 = vrot.lane.b32.xlu1 %v3356_v57, %s2902_s30  ;;  %814 = vrot.lane.b32.xlu0 %v730_v58, %s2902_s30  ;;  %678 = vst.msk [vmem:[#allocation3] sm:$0xff] %vm677_vm3, %v582_v63 }
  0x84   : > { %v584_v4 = vpop.permute.xlu0 %583 }
  0x85   : > { %812 = vrot.lane.b32.xlu1 %v729_v59, %s2902_s30  ;;  %818 = vrot.lane.b32.xlu0 %v732_v60, %s2902_s30  ;;  %679 = vst.msk [vmem:[#allocation3 + $0x8] sm:$0xff] %vm677_vm3, %v584_v4  ;;  %v741_v60 = vld [vmem:[#allocation2 + $0x172] sm:$0xff] }
  0x89   : > { %816 = vrot.lane.b32.xlu1 %v731_v61, %s2902_s30  ;;  %822 = vrot.lane.b32.xlu0 %v734_v62, %s2902_s30 }
  0x8d   : > { %820 = vrot.lane.b32.xlu1 %v733_v0, %s2902_s30  ;;  %826 = vrot.lane.b32.xlu0 %v736_v3, %s2902_s30 }
  0x91   : > { %824 = vrot.lane.b32.xlu1 %v735_v5, %s2902_s30  ;;  %830 = vrot.lane.b32.xlu0 %v738_v6, %s2902_s30 }
  0x93   : > { %v586_v9 = vpop.permute.xlu1 %585  ;;  %v590_v11 = vpop.permute.xlu0 %589 }
  0x94   : > { %680 = vst.msk [vmem:[#allocation3 + $0x10] sm:$0xff] %vm677_vm3, %v586_v9  ;;  %682 = vst.msk [vmem:[#allocation3 + $0x20] sm:$0xff] %vm677_vm3, %v590_v11 }
  0x95   : > { %828 = vrot.lane.b32.xlu1 %v737_v7, %s2902_s30  ;;  %834 = vrot.lane.b32.xlu0 %v740_v1, %s2902_s30 }
  0x97   : > { %v588_v58 = vpop.permute.xlu1 %587  ;;  %v594_v59 = vpop.permute.xlu0 %593 }
  0x98   : > { %681 = vst.msk [vmem:[#allocation3 + $0x18] sm:$0xff] %vm677_vm3, %v588_v58  ;;  %684 = vst.msk [vmem:[#allocation3 + $0x30] sm:$0xff] %vm677_vm3, %v594_v59 }
  0x99   : > { %832 = vrot.lane.b32.xlu1 %v739_v51, %s2902_s30  ;;  %967 = vrot.lane.b32.xlu0 %v3122_v48, %s2903_s6 }
  0x9b   : > { %v592_v61 = vpop.permute.xlu1 %591  ;;  %v598_v62 = vpop.permute.xlu0 %597 }
  0x9c   : > { %683 = vst.msk [vmem:[#allocation3 + $0x28] sm:$0xff] %vm677_vm3, %v592_v61  ;;  %686 = vst.msk [vmem:[#allocation3 + $0x40] sm:$0xff] %vm677_vm3, %v598_v62  ;;  %v2096_v61 = vld [vmem:[%s4115_s3 + $0x10] sm:$0xff]  ;;  %v2097_v62 = vld [vmem:[%s4115_s3 + $0x18] sm:$0xff] }
  0x9d   : > { %836 = vrot.lane.b32.xlu1 %v741_v60, %s2902_s30  ;;  %971 = vrot.lane.b32.xlu0 %v3136_v52, %s2903_s6 }
  0x9f   : > { %v596_v63 = vpop.permute.xlu1 %595  ;;  %v602_v0 = vpop.permute.xlu0 %601 }
  0xa0   : > { %685 = vst.msk [vmem:[#allocation3 + $0x38] sm:$0xff] %vm677_vm3, %v596_v63  ;;  %688 = vst.msk [vmem:[#allocation3 + $0x50] sm:$0xff] %vm677_vm3, %v602_v0 }
  0xa1   : > { %969 = vrot.lane.b32.xlu1 %v3138_v53, %s2903_s6  ;;  %975 = vrot.lane.b32.xlu0 %v3140_v54, %s2903_s6 }
  0xa3   : > { %v600_v48 = vpop.permute.xlu1 %599  ;;  %v606_v3 = vpop.permute.xlu0 %605 }
  0xa4   : > { %687 = vst.msk [vmem:[#allocation3 + $0x48] sm:$0xff] %vm677_vm3, %v600_v48  ;;  %690 = vst.msk [vmem:[#allocation3 + $0x60] sm:$0xff] %vm677_vm3, %v606_v3 }
  0xa5   : > { %973 = vrot.lane.b32.xlu1 %v3175_v14, %s2903_s6  ;;  %979 = vrot.lane.b32.xlu0 %v3177_v15, %s2903_s6 }
  0xa7   : > { %v604_v4 = vpop.permute.xlu1 %603  ;;  %v610_v5 = vpop.permute.xlu0 %609 }
  0xa8   : > { %689 = vst.msk [vmem:[#allocation3 + $0x58] sm:$0xff] %vm677_vm3, %v604_v4  ;;  %692 = vst.msk [vmem:[#allocation3 + $0x70] sm:$0xff] %vm677_vm3, %v610_v5 }
  0xa9   : > { %977 = vrot.lane.b32.xlu1 %v3195_v17, %s2903_s6  ;;  %983 = vrot.lane.b32.xlu0 %v3197_v20, %s2903_s6 }
  0xab   : > { %v608_v53 = vpop.permute.xlu1 %607  ;;  %v614_v6 = vpop.permute.xlu0 %613 }
  0xac   : > { %691 = vst.msk [vmem:[#allocation3 + $0x68] sm:$0xff] %vm677_vm3, %v608_v53  ;;  %694 = vst.msk [vmem:[#allocation3 + $0x80] sm:$0xff] %vm677_vm3, %v614_v6 }
  0xad   : > { %981 = vrot.lane.b32.xlu1 %v3205_v25, %s2903_s6  ;;  %987 = vrot.lane.b32.xlu0 %v3209_v26, %s2903_s6 }
  0xaf   : > { %v612_v7 = vpop.permute.xlu1 %611  ;;  %v618_v1 = vpop.permute.xlu0 %617 }
  0xb0   : > { %693 = vst.msk [vmem:[#allocation3 + $0x78] sm:$0xff] %vm677_vm3, %v612_v7  ;;  %696 = vst.msk [vmem:[#allocation3 + $0x90] sm:$0xff] %vm677_vm3, %v618_v1 }
  0xb1   : > { %985 = vrot.lane.b32.xlu1 %v3211_v27, %s2903_s6  ;;  %1162 = vrot.lane.b32.xlu0 %v3106_v29, %s2904_s7 }
  0xb3   : > { %v616_v9 = vpop.permute.xlu1 %615  ;;  %v622_v11 = vpop.permute.xlu0 %621 }
  0xb4   : > { %695 = vst.msk [vmem:[#allocation3 + $0x88] sm:$0xff] %vm677_vm3, %v616_v9  ;;  %698 = vst.msk [vmem:[#allocation3 + $0xa0] sm:$0xff] %vm677_vm3, %v622_v11 }
  0xb5   : > { %1160 = vrot.lane.b32.xlu1 %v3086_v18, %s2904_s7  ;;  %1355 = vrot.lane.b32.xlu0 %v3303_v13, %s2905_s8  ;;  %v2094_v18 = vld [vmem:[%s4115_s3] sm:$0xff]  ;;  %v2095_v13 = vld [vmem:[%s4115_s3 + $0x8] sm:$0xff] }
  0xb6   : > { %v2859_v60 = vpack.c.bf16 %v2095_v13, %v2094_v18 }
  0xb7   : > { %v620_v51 = vpop.permute.xlu1 %619  ;;  %v626_v58 = vpop.permute.xlu0 %625 }
  0xb8   : > { %697 = vst.msk [vmem:[#allocation3 + $0x98] sm:$0xff] %vm677_vm3, %v620_v51  ;;  %700 = vst.msk [vmem:[#allocation3 + $0xb0] sm:$0xff] %vm677_vm3, %v626_v58  ;;  %2860 = vmatprep.subr.bf16.mxu0 %v2859_v60  ;;  %2867 = vmatprep.subr.bf16.mxu1 %v2859_v60 }
  0xb9   : > { %1353 = vrot.lane.b32.xlu1 %v3293_v10, %s2905_s8  ;;  %1549 = vrot.lane.b32.xlu0 %v3175_v14, %s2906_s9 }
  0xba   : > { %2862 = vmatpush3.bf16.msra.mxu0 %v2859_v60  ;;  %2870 = vmatpush3.bf16.msra.mxu1 %v2859_v60 }
  0xbb   : > { %v624_v29 = vpop.permute.xlu1 %623  ;;  %v630_v59 = vpop.permute.xlu0 %629 }
  0xbc   : > { %699 = vst.msk [vmem:[#allocation3 + $0xa8] sm:$0xff] %vm677_vm3, %v624_v29  ;;  %702 = vst.msk [vmem:[#allocation3 + $0xc0] sm:$0xff] %vm677_vm3, %v630_v59 }
  0xbd   : > { %1547 = vrot.lane.b32.xlu1 %v3136_v52, %s2906_s9  ;;  %1164 = vrot.lane.b32.xlu0 %v3088_v19, %s2904_s7  ;;  %v2863_v52 = vpack.c.bf16 %v2097_v62, %v2096_v61  ;;  %v1684_v62 = vld [vmem:[#allocation2 + $0x91] sm:$0xff] }
  0xbf   : > { %v628_v14 = vpop.permute.xlu1 %627  ;;  %v634_v10 = vpop.permute.xlu0 %633  ;;  %2864 = vmatprep.subr.bf16.mxu0 %v2863_v52  ;;  %2868 = vmatprep.subr.bf16.mxu1 %v2863_v52 }
  0xc0   : > { %701 = vst.msk [vmem:[#allocation3 + $0xb8] sm:$0xff] %vm677_vm3, %v628_v14  ;;  %704 = vst.msk [vmem:[#allocation3 + $0xd0] sm:$0xff] %vm677_vm3, %v634_v10  ;;  %2866 = vmatpush3.bf16.msra.mxu0 %v2863_v52  ;;  %2871 = vmatpush3.bf16.msra.mxu1 %v2863_v52  ;;  %v1685_v52 = vld [vmem:[#allocation2 + $0x99] sm:$0xff] }
  0xc1   : > { %1740 = vrot.lane.b32.xlu1 %v3088_v19, %s2907_s20  ;;  %1933 = vrot.lane.b32.xlu0 %v3298_v12, %s2908_s22  ;;  %v2098_v19 = vld [vmem:[%s4115_s3 + $0x20] sm:$0xf] }
  0xc2   : > { %2809 = vmatprep.subr.msk.mxu0 %vm2196_vm4, %v2098_v19  ;;  %2869 = vmatprep.subr.msk.mxu1 %vm2196_vm4, %v2098_v19 }
  0xc3   : > { %v632_v63 = vpop.permute.xlu1 %631  ;;  %v638_v0 = vpop.permute.xlu0 %637 }
  0xc4   : > { %703 = vst.msk [vmem:[#allocation3 + $0xc8] sm:$0xff] %vm677_vm3, %v632_v63  ;;  %706 = vst.msk [vmem:[#allocation3 + $0xe0] sm:$0xff] %vm677_vm3, %v638_v0  ;;  %2810 = vmatpush3.msk.msra.mxu0 %vm2196_vm4, %v2098_v19  ;;  %2872 = vmatpush3.msk.msra.mxu1 %vm2196_vm4, %v2098_v19 }
  0xc5   : > { %1742 = vrot.lane.b32.xlu1 %v3142_v55, %s2907_s20  ;;  %1357 = vrot.lane.b32.xlu0 %v3298_v12, %s2905_s8 }
  0xc7   : > { %v636_v48 = vpop.permute.xlu1 %635  ;;  %v642_v3 = vpop.permute.xlu0 %641 }
  0xc8   : > { %705 = vst.msk [vmem:[#allocation3 + $0xd8] sm:$0xff] %vm677_vm3, %v636_v48  ;;  %708 = vst.msk [vmem:[#allocation3 + $0xf0] sm:$0xff] %vm677_vm3, %v642_v3 }
  0xc9   : > { %1166 = vrot.lane.b32.xlu1 %v3142_v55, %s2904_s7  ;;  %1359 = vrot.lane.b32.xlu0 %v3311_v21, %s2905_s8 }
  0xcb   : > { %v640_v12 = vpop.permute.xlu1 %639  ;;  %v775_v4 = vpop.permute.xlu0 %774 }
  0xcc   : > { %707 = vst.msk [vmem:[#allocation3 + $0xe8] sm:$0xff] %vm677_vm3, %v640_v12 }
  0xcd   : > { %871 = vst.msk [vmem:[#allocation3] sm:$0xff] %vm870_vm5, %v775_v4  ;;  %1935 = vrot.lane.b32.xlu1 %v3311_v21, %s2908_s22  ;;  %1553 = vrot.lane.b32.xlu0 %v3195_v17, %s2906_s9 }
  0xcf   : > { %v644_v5 = vpop.permute.xlu1 %643  ;;  %v779_v53 = vpop.permute.xlu0 %778 }
  0xd0   : > { %709 = vst.msk [vmem:[#allocation3 + $0xf8] sm:$0xff] %vm677_vm3, %v644_v5 }
  0xd1   : > { %873 = vst.msk [vmem:[#allocation3 + $0x10] sm:$0xff] %vm870_vm5, %v779_v53  ;;  %1551 = vrot.lane.b32.xlu1 %v3140_v54, %s2906_s9  ;;  %1168 = vrot.lane.b32.xlu0 %v3108_v30, %s2904_s7 }
  0xd3   : > { %v777_v55 = vpop.permute.xlu1 %776  ;;  %v783_v6 = vpop.permute.xlu0 %782 }
  0xd4   : > { %872 = vst.msk [vmem:[#allocation3 + $0x8] sm:$0xff] %vm870_vm5, %v777_v55  ;;  %875 = vst.msk [vmem:[#allocation3 + $0x20] sm:$0xff] %vm870_vm5, %v783_v6  ;;  %v1687_v55 = vld [vmem:[#allocation2 + $0xb1] sm:$0xff] }
  0xd5   : > { %1744 = vrot.lane.b32.xlu1 %v3108_v30, %s2907_s20  ;;  %1937 = vrot.lane.b32.xlu0 %v3305_v16, %s2908_s22 }
  0xd7   : > { %v781_v17 = vpop.permute.xlu1 %780  ;;  %v787_v21 = vpop.permute.xlu0 %786 }
  0xd8   : > { %874 = vst.msk [vmem:[#allocation3 + $0x18] sm:$0xff] %vm870_vm5, %v781_v17  ;;  %877 = vst.msk [vmem:[#allocation3 + $0x30] sm:$0xff] %vm870_vm5, %v787_v21 }
  0xd9   : > { %1746 = vrot.lane.b32.xlu1 %v3171_v8, %s2907_s20  ;;  %1361 = vrot.lane.b32.xlu0 %v3305_v16, %s2905_s8 }
  0xdb   : > { %v785_v54 = vpop.permute.xlu1 %784  ;;  %v791_v7 = vpop.permute.xlu0 %790 }
  0xdc   : > { %876 = vst.msk [vmem:[#allocation3 + $0x28] sm:$0xff] %vm870_vm5, %v785_v54  ;;  %879 = vst.msk [vmem:[#allocation3 + $0x40] sm:$0xff] %vm870_vm5, %v791_v7 }
  0xdd   : > { %1170 = vrot.lane.b32.xlu1 %v3171_v8, %s2904_s7  ;;  %1363 = vrot.lane.b32.xlu0 %v3319_v23, %s2905_s8 }
  0xdf   : > { %v789_v30 = vpop.permute.xlu1 %788  ;;  %v795_v1 = vpop.permute.xlu0 %794 }
  0xe0   : > { %878 = vst.msk [vmem:[#allocation3 + $0x38] sm:$0xff] %vm870_vm5, %v789_v30  ;;  %881 = vst.msk [vmem:[#allocation3 + $0x50] sm:$0xff] %vm870_vm5, %v795_v1 }
  0xe1   : > { %1939 = vrot.lane.b32.xlu1 %v3319_v23, %s2908_s22  ;;  %1557 = vrot.lane.b32.xlu0 %v3205_v25, %s2906_s9 }
  0xe3   : > { %v793_v16 = vpop.permute.xlu1 %792  ;;  %v799_v9 = vpop.permute.xlu0 %798 }
  0xe4   : > { %880 = vst.msk [vmem:[#allocation3 + $0x48] sm:$0xff] %vm870_vm5, %v793_v16  ;;  %883 = vst.msk [vmem:[#allocation3 + $0x60] sm:$0xff] %vm870_vm5, %v799_v9 }
  0xe5   : > { %1555 = vrot.lane.b32.xlu1 %v3177_v15, %s2906_s9  ;;  %1172 = vrot.lane.b32.xlu0 %v3144_v56, %s2904_s7 }
  0xe7   : > { %v797_v8 = vpop.permute.xlu1 %796  ;;  %v803_v11 = vpop.permute.xlu0 %802 }
  0xe8   : > { %882 = vst.msk [vmem:[#allocation3 + $0x58] sm:$0xff] %vm870_vm5, %v797_v8  ;;  %885 = vst.msk [vmem:[#allocation3 + $0x70] sm:$0xff] %vm870_vm5, %v803_v11  ;;  %v1688_v8 = vld [vmem:[#allocation2 + $0xc1] sm:$0xff]  ;;  %v1689_v11 = vld [vmem:[#allocation2 + $0xc9] sm:$0xff] }
  0xe9   : > { %1748 = vrot.lane.b32.xlu1 %v3144_v56, %s2907_s20  ;;  %1941 = vrot.lane.b32.xlu0 %v3313_v22, %s2908_s22 }
  0xeb   : > { %v801_v25 = vpop.permute.xlu1 %800  ;;  %v807_v23 = vpop.permute.xlu0 %806 }
  0xec   : > { %884 = vst.msk [vmem:[#allocation3 + $0x68] sm:$0xff] %vm870_vm5, %v801_v25  ;;  %887 = vst.msk [vmem:[#allocation3 + $0x80] sm:$0xff] %vm870_vm5, %v807_v23 }
  0xed   : > { %1750 = vrot.lane.b32.xlu1 %v3190_v2, %s2907_s20  ;;  %1365 = vrot.lane.b32.xlu0 %v3313_v22, %s2905_s8  ;;  %v1104_v22 = vld [vmem:[#allocation2 + $0x79] sm:$0xff] }
  0xef   : > { %v805_v15 = vpop.permute.xlu1 %804  ;;  %v811_v51 = vpop.permute.xlu0 %810 }
  0xf0   : > { %886 = vst.msk [vmem:[#allocation3 + $0x78] sm:$0xff] %vm870_vm5, %v805_v15  ;;  %889 = vst.msk [vmem:[#allocation3 + $0x90] sm:$0xff] %vm870_vm5, %v811_v51 }
  0xf1   : > { %1174 = vrot.lane.b32.xlu1 %v3190_v2, %s2904_s7  ;;  %1367 = vrot.lane.b32.xlu0 %v3327_v31, %s2905_s8 }
  0xf3   : > { %v809_v56 = vpop.permute.xlu1 %808  ;;  %v815_v58 = vpop.permute.xlu0 %814 }
  0xf4   : > { %888 = vst.msk [vmem:[#allocation3 + $0x88] sm:$0xff] %vm870_vm5, %v809_v56  ;;  %891 = vst.msk [vmem:[#allocation3 + $0xa0] sm:$0xff] %vm870_vm5, %v815_v58 }
  0xf5   : > { %1943 = vrot.lane.b32.xlu1 %v3327_v31, %s2908_s22  ;;  %1561 = vrot.lane.b32.xlu0 %v3211_v27, %s2906_s9  ;;  %v1683_v27 = vld [vmem:[#allocation2 + $0x81] sm:$0xff] }
  0xf7   : > { %v813_v29 = vpop.permute.xlu1 %812  ;;  %v819_v59 = vpop.permute.xlu0 %818 }
  0xf8   : > { %890 = vst.msk [vmem:[#allocation3 + $0x98] sm:$0xff] %vm870_vm5, %v813_v29  ;;  %893 = vst.msk [vmem:[#allocation3 + $0xb0] sm:$0xff] %vm870_vm5, %v819_v59 }
  0xf9   : > { %1559 = vrot.lane.b32.xlu1 %v3197_v20, %s2906_s9  ;;  %1176 = vrot.lane.b32.xlu0 %v1104_v22, %s2904_s7 }
  0xfb   : > { %v817_v2 = vpop.permute.xlu1 %816  ;;  %v823_v18 = vpop.permute.xlu0 %822 }
  0xfc   : > { %892 = vst.msk [vmem:[#allocation3 + $0xa8] sm:$0xff] %vm870_vm5, %v817_v2  ;;  %895 = vst.msk [vmem:[#allocation3 + $0xc0] sm:$0xff] %vm870_vm5, %v823_v18  ;;  %v1690_v18 = vld [vmem:[#allocation2 + $0xd9] sm:$0xff] }
  0xfd   : > { %1752 = vrot.lane.b32.xlu1 %v1104_v22, %s2907_s20  ;;  %1945 = vrot.lane.b32.xlu0 %v3321_v24, %s2908_s22 }
  0xff   : > { %v821_v31 = vpop.permute.xlu1 %820  ;;  %v827_v13 = vpop.permute.xlu0 %826 }
 0x100   : > { %894 = vst.msk [vmem:[#allocation3 + $0xb8] sm:$0xff] %vm870_vm5, %v821_v31  ;;  %897 = vst.msk [vmem:[#allocation3 + $0xd0] sm:$0xff] %vm870_vm5, %v827_v13 }
 0x101   : > { %1754 = vrot.lane.b32.xlu1 %v1683_v27, %s2907_s20  ;;  %1369 = vrot.lane.b32.xlu0 %v3321_v24, %s2905_s8 }
 0x103   : > { %v825_v20 = vpop.permute.xlu1 %824  ;;  %v831_v60 = vpop.permute.xlu0 %830 }
 0x104   : > { %896 = vst.msk [vmem:[#allocation3 + $0xc8] sm:$0xff] %vm870_vm5, %v825_v20  ;;  %899 = vst.msk [vmem:[#allocation3 + $0xe0] sm:$0xff] %vm870_vm5, %v831_v60 }
 0x105   : > { %1178 = vrot.lane.b32.xlu1 %v1683_v27, %s2904_s7  ;;  %1371 = vrot.lane.b32.xlu0 %v3335_v44, %s2905_s8  ;;  %v1691_v27 = vld [vmem:[#allocation2 + $0xe1] sm:$0xff] }
 0x107   : > { %v829_v14 = vpop.permute.xlu1 %828  ;;  %v835_v10 = vpop.permute.xlu0 %834 }
 0x108   : > { %898 = vst.msk [vmem:[#allocation3 + $0xd8] sm:$0xff] %vm870_vm5, %v829_v14  ;;  %901 = vst.msk [vmem:[#allocation3 + $0xf0] sm:$0xff] %vm870_vm5, %v835_v10 }
 0x109   : > { %1947 = vrot.lane.b32.xlu1 %v3335_v44, %s2908_s22  ;;  %1565 = vrot.lane.b32.xlu0 %v3221_v33, %s2906_s9 }
 0x10b   : > { %v833_v24 = vpop.permute.xlu1 %832  ;;  %v968_v61 = vpop.permute.xlu0 %967 }
 0x10c   : > { %900 = vst.msk [vmem:[#allocation3 + $0xe8] sm:$0xff] %vm870_vm5, %v833_v24 }
 0x10d   : > { %1064 = vst.msk [vmem:[#allocation3] sm:$0xff] %vm1063_vm6, %v968_v61  ;;  %1563 = vrot.lane.b32.xlu1 %v3209_v26, %s2906_s9  ;;  %989 = vrot.lane.b32.xlu0 %v3221_v33, %s2903_s6 }
 0x10f   : > { %v837_v63 = vpop.permute.xlu1 %836  ;;  %v972_v44 = vpop.permute.xlu0 %971 }
 0x110   : > { %902 = vst.msk [vmem:[#allocation3 + $0xf8] sm:$0xff] %vm870_vm5, %v837_v63 }
 0x111   : > { %1066 = vst.msk [vmem:[#allocation3 + $0x10] sm:$0xff] %vm1063_vm6, %v972_v44  ;;  %1756 = vrot.lane.b32.xlu1 %v1684_v62, %s2907_s20  ;;  %1758 = vrot.lane.b32.xlu0 %v1685_v52, %s2907_s20  ;;  %v266_v44 = vld [vmem:[%s3006_s26 + $0xf0] sm:$0xff] }
 0x113   : > { %v970_v0 = vpop.permute.xlu1 %969  ;;  %v976_v19 = vpop.permute.xlu0 %975 }
 0x114   : > { %1065 = vst.msk [vmem:[#allocation3 + $0x8] sm:$0xff] %vm1063_vm6, %v970_v0  ;;  %1068 = vst.msk [vmem:[#allocation3 + $0x20] sm:$0xff] %vm1063_vm6, %v976_v19  ;;  %v2890_v0 = vld [vmem:[%s4113_s1] ss:$0 sm:$0xff] }
 0x115   : > { %1180 = vrot.lane.b32.xlu1 %v1684_v62, %s2904_s7  ;;  %1182 = vrot.lane.b32.xlu0 %v1685_v52, %s2904_s7  ;;  %v305_v19 = vmul.f32 %v2890_v0, %v266_v44 }
 0x117   : > { %v974_v26 = vpop.permute.xlu1 %973  ;;  %v980_v33 = vpop.permute.xlu0 %979 }
 0x118   : > { %1067 = vst.msk [vmem:[#allocation3 + $0x18] sm:$0xff] %vm1063_vm6, %v974_v26  ;;  %1070 = vst.msk [vmem:[#allocation3 + $0x30] sm:$0xff] %vm1063_vm6, %v980_v33  ;;  %v2891_v26 = vld [vmem:[%s4114_s2] ss:$0 sm:$0xff] }
 0x119   : > { %1949 = vrot.lane.b32.xlu1 %v3329_v32, %s2908_s22  ;;  %1951 = vrot.lane.b32.xlu0 %v3343_v46, %s2908_s22  ;;  %v344_v33 = vadd.f32 %v2891_v26, %v305_v19  ;;  %v1506_v19 = vld [vmem:[#allocation2 + $0x140] sm:$0xff] }
 0x11b   : > { %v978_v48 = vpop.permute.xlu1 %977  ;;  %v984_v3 = vpop.permute.xlu0 %983 }
 0x11c   : > { %1069 = vst.msk [vmem:[#allocation3 + $0x28] sm:$0xff] %vm1063_vm6, %v978_v48  ;;  %1072 = vst.msk [vmem:[#allocation3 + $0x40] sm:$0xff] %vm1063_vm6, %v984_v3 }
 0x11d   : > { %1373 = vrot.lane.b32.xlu1 %v3329_v32, %s2905_s8  ;;  %1567 = vrot.lane.b32.xlu0 %v3213_v28, %s2906_s9  ;;  %v1686_v32 = vld [vmem:[#allocation2 + $0xa9] sm:$0xff] }
 0x11f   : > { %v982_v12 = vpop.permute.xlu1 %981  ;;  %v988_v4 = vpop.permute.xlu0 %987 }
 0x120   : > { %1071 = vst.msk [vmem:[#allocation3 + $0x38] sm:$0xff] %vm1063_vm6, %v982_v12  ;;  %1074 = vst.msk [vmem:[#allocation3 + $0x50] sm:$0xff] %vm1063_vm6, %v988_v4  ;;  %v267_v12 = vld [vmem:[%s3006_s26 + $0xf8] sm:$0xff]  ;;  %v376_v4 = vmax.f32 %v344_v33, 0.0 }
 0x121   : > { %1375 = vrot.lane.b32.xlu1 %v3343_v46, %s2905_s8  ;;  %1569 = vrot.lane.b32.xlu0 %v3225_v35, %s2906_s9 }
 0x122   : > { %451 = vst.msk [vmem:[#allocation2 + $0x181] sm:$0xff] %vm378_vm0, %v376_v4  ;;  %v1699_v4 = vld [vmem:[#allocation2 + $0x141] sm:$0xff] }
 0x123   : > { %v986_v5 = vpop.permute.xlu1 %985  ;;  %v1163_v53 = vpop.permute.xlu0 %1162 }
 0x124   : > { %1073 = vst.msk [vmem:[#allocation3 + $0x48] sm:$0xff] %vm1063_vm6, %v986_v5  ;;  %v306_v5 = vmul.f32 %v2890_v0, %v267_v12 }
 0x125   : > { %1258 = vst.msk [vmem:[#allocation3 + $0x8] sm:$0xff] %vm1256_vm7, %v1163_v53  ;;  %991 = vrot.lane.b32.xlu1 %v3213_v28, %s2903_s6  ;;  %993 = vrot.lane.b32.xlu0 %v3225_v35, %s2903_s6  ;;  %v1692_v53 = vld [vmem:[#allocation2 + $0xf1] sm:$0xff] }
 0x127   : > { %v1161_v6 = vpop.permute.xlu1 %1160  ;;  %v1356_v46 = vpop.permute.xlu0 %1355 }
 0x128   : > { %1257 = vst.msk [vmem:[#allocation3] sm:$0xff] %vm1256_vm7, %v1161_v6 }
 0x129   : > { %1451 = vst.msk [vmem:[#allocation3 + $0x8] sm:$0xff] %vm1449_vm8, %v1356_v46  ;;  %1760 = vrot.lane.b32.xlu1 %v1686_v32, %s2907_s20  ;;  %1762 = vrot.lane.b32.xlu0 %v1687_v55, %s2907_s20 }
 0x12b   : > { %v1354_v17 = vpop.permute.xlu1 %1353  ;;  %v1550_v21 = vpop.permute.xlu0 %1549 }
 0x12c   : > { %1450 = vst.msk [vmem:[#allocation3] sm:$0xff] %vm1449_vm8, %v1354_v17 }
 0x12d   : > { %1645 = vst.msk [vmem:[#allocation3 + $0x8] sm:$0xff] %vm1643_vm9, %v1550_v21  ;;  %1184 = vrot.lane.b32.xlu1 %v1686_v32, %s2904_s7  ;;  %1186 = vrot.lane.b32.xlu0 %v1687_v55, %s2904_s7  ;;  %v1693_v32 = vld [vmem:[#allocation2 + $0xf9] sm:$0xff]  ;;  %v345_v55 = vadd.f32 %v2891_v26, %v306_v5 }
 0x12f   : > { %v1548_v28 = vpop.permute.xlu1 %1547  ;;  %v1165_v35 = vpop.permute.xlu0 %1164  ;;  %v377_v21 = vmax.f32 %v345_v55, 0.0 }
 0x130   : > { %1644 = vst.msk [vmem:[#allocation3] sm:$0xff] %vm1643_vm9, %v1548_v28  ;;  %v1885_v28 = vld [vmem:[#allocation2 + $0xf2] sm:$0xff] }
 0x131   : > { %1259 = vst.msk [vmem:[#allocation3 + $0x10] sm:$0xff] %vm1256_vm7, %v1165_v35  ;;  %1953 = vrot.lane.b32.xlu1 %v3337_v45, %s2908_s22  ;;  %1955 = vrot.lane.b32.xlu0 %v3351_v50, %s2908_s22  ;;  %v1886_v35 = vld [vmem:[#allocation2 + $0xfa] sm:$0xff] }
 0x132   : > { %452 = vst.msk [vmem:[#allocation2 + $0x189] sm:$0xff] %vm378_vm0, %v377_v21 }
 0x133   : > { %v1741_v54 = vpop.permute.xlu1 %1740  ;;  %v1934_v7 = vpop.permute.xlu0 %1933 }
 0x134   : > { %1837 = vst.msk [vmem:[#allocation3] sm:$0xff] %vm1836_vm10, %v1741_v54 }
 0x135   : > { %2030 = vst.msk [vmem:[#allocation3] sm:$0xff] %vm2029_vm11, %v1934_v7  ;;  %1377 = vrot.lane.b32.xlu1 %v3337_v45, %s2905_s8  ;;  %1571 = vrot.lane.b32.xlu0 %v3223_v34, %s2906_s9 }
 0x137   : > { %v1743_v30 = vpop.permute.xlu1 %1742  ;;  %v1358_v1 = vpop.permute.xlu0 %1357 }
 0x138   : > { %1838 = vst.msk [vmem:[#allocation3 + $0x8] sm:$0xff] %vm1836_vm10, %v1743_v30 }
 0x139   : > { %1452 = vst.msk [vmem:[#allocation3 + $0x10] sm:$0xff] %vm1449_vm8, %v1358_v1  ;;  %1379 = vrot.lane.b32.xlu1 %v3351_v50, %s2905_s8  ;;  %1573 = vrot.lane.b32.xlu0 %v3237_v37, %s2906_s9 }
 0x13b   : > { %v1167_v16 = vpop.permute.xlu1 %1166  ;;  %v1360_v9 = vpop.permute.xlu0 %1359 }
 0x13c   : > { %1260 = vst.msk [vmem:[#allocation3 + $0x18] sm:$0xff] %vm1256_vm7, %v1167_v16  ;;  %v2062_v45 = vld [vmem:[#allocation3] sm:$0xff] }
 0x13d   : > { %1453 = vst.msk [vmem:[#allocation3 + $0x18] sm:$0xff] %vm1449_vm8, %v1360_v9  ;;  %995 = vrot.lane.b32.xlu1 %v3223_v34, %s2903_s6  ;;  %997 = vrot.lane.b32.xlu0 %v3237_v37, %s2903_s6 }
 0x13e   : > { %2811 = vmatprep.mubr.msk.f32.mxu0 %vm2099_vm12, %v2062_v45 }
 0x13f   : > { %v1936_v50 = vpop.permute.xlu1 %1935  ;;  %v1554_v25 = vpop.permute.xlu0 %1553 }
 0x140   : > { %2031 = vst.msk [vmem:[#allocation3 + $0x8] sm:$0xff] %vm2029_vm11, %v1936_v50 }
 0x141   : > { %1647 = vst.msk [vmem:[#allocation3 + $0x18] sm:$0xff] %vm1643_vm9, %v1554_v25  ;;  %1764 = vrot.lane.b32.xlu1 %v1688_v8, %s2907_s20  ;;  %1766 = vrot.lane.b32.xlu0 %v1689_v11, %s2907_s20  ;;  %v1694_v25 = vld [vmem:[#allocation2 + $0x109] sm:$0xff] }
 0x143   : > { %v1552_v23 = vpop.permute.xlu1 %1551  ;;  %v1169_v15 = vpop.permute.xlu0 %1168 }
 0x144   : > { %1646 = vst.msk [vmem:[#allocation3 + $0x10] sm:$0xff] %vm1643_vm9, %v1552_v23  ;;  %v1695_v23 = vld [vmem:[#allocation2 + $0x111] sm:$0xff] }
 0x145   : > { %1261 = vst.msk [vmem:[#allocation3 + $0x20] sm:$0xff] %vm1256_vm7, %v1169_v15  ;;  %1188 = vrot.lane.b32.xlu1 %v1688_v8, %s2904_s7  ;;  %1190 = vrot.lane.b32.xlu0 %v1689_v11, %s2904_s7 }
 0x147   : > { %v1745_v34 = vpop.permute.xlu1 %1744  ;;  %v1938_v37 = vpop.permute.xlu0 %1937  ;;  %v2063_v51 = vld [vmem:[#allocation3 + $0x8] sm:$0xff] }
 0x148   : > { %1839 = vst.msk [vmem:[#allocation3 + $0x10] sm:$0xff] %vm1836_vm10, %v1745_v34  ;;  %2812 = vmatmul.mubr.msk.f32.vlgmr.msra.gmra.mrb[0].mxu0 %vm2099_vm12, %v2063_v51 }
 0x149   : > { %2032 = vst.msk [vmem:[#allocation3 + $0x10] sm:$0xff] %vm2029_vm11, %v1938_v37  ;;  %1957 = vrot.lane.b32.xlu1 %v3345_v49, %s2908_s22  ;;  %1959 = vrot.lane.b32.xlu0 %v3356_v57, %s2908_s22 }
 0x14b   : > { %v1747_v56 = vpop.permute.xlu1 %1746  ;;  %v1362_v58 = vpop.permute.xlu0 %1361 }
 0x14c   : > { %1840 = vst.msk [vmem:[#allocation3 + $0x18] sm:$0xff] %vm1836_vm10, %v1747_v56 }
 0x14d   : > { %1454 = vst.msk [vmem:[#allocation3 + $0x20] sm:$0xff] %vm1449_vm8, %v1362_v58  ;;  %1381 = vrot.lane.b32.xlu1 %v3345_v49, %s2905_s8  ;;  %1575 = vrot.lane.b32.xlu0 %v3235_v36, %s2906_s9 }
 0x14f   : > { %v1171_v22 = vpop.permute.xlu1 %1170  ;;  %v1364_v29 = vpop.permute.xlu0 %1363 }
 0x150   : > { %1262 = vst.msk [vmem:[#allocation3 + $0x28] sm:$0xff] %vm1256_vm7, %v1171_v22  ;;  %v2064_v59 = vld [vmem:[#allocation3 + $0x10] sm:$0xff] }
 0x151   : > { %1455 = vst.msk [vmem:[#allocation3 + $0x28] sm:$0xff] %vm1449_vm8, %v1364_v29  ;;  %1383 = vrot.lane.b32.xlu1 %v3356_v57, %s2905_s8  ;;  %1577 = vrot.lane.b32.xlu0 %v3247_v39, %s2906_s9 }
 0x152   : > { %2814 = vmatprep.mubr.msk.f32.mxu0 %vm2099_vm12, %v2064_v59 }
 0x153   : > { %v1940_v2 = vpop.permute.xlu1 %1939  ;;  %v1558_v49 = vpop.permute.xlu0 %1557 }
 0x154   : > { %2033 = vst.msk [vmem:[#allocation3 + $0x18] sm:$0xff] %vm2029_vm11, %v1940_v2 }
 0x155   : > { %1649 = vst.msk [vmem:[#allocation3 + $0x28] sm:$0xff] %vm1643_vm9, %v1558_v49  ;;  %999 = vrot.lane.b32.xlu1 %v3235_v36, %s2903_s6  ;;  %1001 = vrot.lane.b32.xlu0 %v3247_v39, %s2903_s6  ;;  %v1883_v36 = vld [vmem:[#allocation2 + $0xda] sm:$0xff]  ;;  %v1884_v39 = vld [vmem:[#allocation2 + $0xe2] sm:$0xff] }
 0x157   : > { %v1556_v57 = vpop.permute.xlu1 %1555  ;;  %v1173_v31 = vpop.permute.xlu0 %1172 }
 0x158   : > { %1648 = vst.msk [vmem:[#allocation3 + $0x20] sm:$0xff] %vm1643_vm9, %v1556_v57 }
 0x159   : > { %1263 = vst.msk [vmem:[#allocation3 + $0x30] sm:$0xff] %vm1256_vm7, %v1173_v31  ;;  %1768 = vrot.lane.b32.xlu1 %v1690_v18, %s2907_s20  ;;  %1770 = vrot.lane.b32.xlu0 %v1691_v27, %s2907_s20  ;;  %v1696_v31 = vld [vmem:[#allocation2 + $0x121] sm:$0xff] }
 0x15b   : > { %v1749_v13 = vpop.permute.xlu1 %1748  ;;  %v1942_v20 = vpop.permute.xlu0 %1941  ;;  %v2065_v60 = vld [vmem:[#allocation3 + $0x18] sm:$0xff] }
 0x15c   : > { %1841 = vst.msk [vmem:[#allocation3 + $0x20] sm:$0xff] %vm1836_vm10, %v1749_v13  ;;  %2815 = vmatmul.mubr.msk.f32.gmra.mrb[2].mxu0 %vm2099_vm12, %v2065_v60  ;;  %v1697_v60 = vld [vmem:[#allocation2 + $0x129] sm:$0xff] }
 0x15d   : > { %2034 = vst.msk [vmem:[#allocation3 + $0x20] sm:$0xff] %vm2029_vm11, %v1942_v20  ;;  %1192 = vrot.lane.b32.xlu1 %v1690_v18, %s2904_s7  ;;  %1194 = vrot.lane.b32.xlu0 %v1691_v27, %s2904_s7 }
 0x15f   : > { %v1751_v14 = vpop.permute.xlu1 %1750  ;;  %v1366_v10 = vpop.permute.xlu0 %1365 }
 0x160   : > { %1842 = vst.msk [vmem:[#allocation3 + $0x28] sm:$0xff] %vm1836_vm10, %v1751_v14 }
 0x161   : > { %1456 = vst.msk [vmem:[#allocation3 + $0x30] sm:$0xff] %vm1449_vm8, %v1366_v10  ;;  %1961 = vrot.lane.b32.xlu1 %v1883_v36, %s2908_s22  ;;  %1963 = vrot.lane.b32.xlu0 %v1884_v39, %s2908_s22  ;;  %v1890_v10 = vld [vmem:[#allocation2 + $0x12a] sm:$0xff] }
 0x163   : > { %v1175_v24 = vpop.permute.xlu1 %1174  ;;  %v1368_v61 = vpop.permute.xlu0 %1367 }
 0x164   : > { %1264 = vst.msk [vmem:[#allocation3 + $0x38] sm:$0xff] %vm1256_vm7, %v1175_v24  ;;  %v2066_v62 = vld [vmem:[#allocation3 + $0x20] sm:$0xff] }
 0x165   : > { %1457 = vst.msk [vmem:[#allocation3 + $0x38] sm:$0xff] %vm1449_vm8, %v1368_v61  ;;  %1385 = vrot.lane.b32.xlu1 %v1883_v36, %s2905_s8  ;;  %1579 = vrot.lane.b32.xlu0 %v3239_v38, %s2906_s9 }
 0x166   : > { %2817 = vmatprep.mubr.msk.f32.mxu0 %vm2099_vm12, %v2066_v62 }
 0x167   : > { %v1944_v52 = vpop.permute.xlu1 %1943  ;;  %v1562_v63 = vpop.permute.xlu0 %1561 }
 0x168   : > { %2035 = vst.msk [vmem:[#allocation3 + $0x28] sm:$0xff] %vm2029_vm11, %v1944_v52 }
 0x169   : > { %1651 = vst.msk [vmem:[#allocation3 + $0x38] sm:$0xff] %vm1643_vm9, %v1562_v63  ;;  %1387 = vrot.lane.b32.xlu1 %v1884_v39, %s2905_s8  ;;  %1581 = vrot.lane.b32.xlu0 %v3251_v41, %s2906_s9  ;;  %v1505_v63 = vld [vmem:[#allocation2 + $0x138] sm:$0xff] }
 0x16b   : > { %v1560_v48 = vpop.permute.xlu1 %1559  ;;  %v1177_v3 = vpop.permute.xlu0 %1176 }
 0x16c   : > { %1650 = vst.msk [vmem:[#allocation3 + $0x30] sm:$0xff] %vm1643_vm9, %v1560_v48  ;;  %v1698_v48 = vld [vmem:[#allocation2 + $0x139] sm:$0xff] }
 0x16d   : > { %1265 = vst.msk [vmem:[#allocation3 + $0x40] sm:$0xff] %vm1256_vm7, %v1177_v3  ;;  %1003 = vrot.lane.b32.xlu1 %v3239_v38, %s2903_s6  ;;  %1005 = vrot.lane.b32.xlu0 %v3251_v41, %s2903_s6 }
 0x16f   : > { %v1753_v6 = vpop.permute.xlu1 %1752  ;;  %v1946_v46 = vpop.permute.xlu0 %1945  ;;  %v2067_v17 = vld [vmem:[#allocation3 + $0x28] sm:$0xff] }
 0x170   : > { %1843 = vst.msk [vmem:[#allocation3 + $0x30] sm:$0xff] %vm1836_vm10, %v1753_v6  ;;  %2818 = vmatmul.mubr.msk.f32.gmra.mrb[4].mxu0 %vm2099_vm12, %v2067_v17 }
 0x171   : > { %2036 = vst.msk [vmem:[#allocation3 + $0x30] sm:$0xff] %vm2029_vm11, %v1946_v46  ;;  %1772 = vrot.lane.b32.xlu1 %v1692_v53, %s2907_s20  ;;  %1774 = vrot.lane.b32.xlu0 %v1693_v32, %s2907_s20  ;;  %v1892_v46 = vld [vmem:[#allocation2 + $0x142] sm:$0xff] }
 0x173   : > { %v1755_v38 = vpop.permute.xlu1 %1754  ;;  %v1370_v41 = vpop.permute.xlu0 %1369 }
 0x174   : > { %1844 = vst.msk [vmem:[#allocation3 + $0x38] sm:$0xff] %vm1836_vm10, %v1755_v38 }
 0x175   : > { %1458 = vst.msk [vmem:[#allocation3 + $0x40] sm:$0xff] %vm1449_vm8, %v1370_v41  ;;  %1196 = vrot.lane.b32.xlu1 %v1692_v53, %s2904_s7  ;;  %1198 = vrot.lane.b32.xlu0 %v1693_v32, %s2904_s7  ;;  %v1891_v32 = vld [vmem:[#allocation2 + $0x13a] sm:$0xff] }
 0x177   : > { %v1179_v54 = vpop.permute.xlu1 %1178  ;;  %v1372_v7 = vpop.permute.xlu0 %1371 }
 0x178   : > { %1266 = vst.msk [vmem:[#allocation3 + $0x48] sm:$0xff] %vm1256_vm7, %v1179_v54  ;;  %v2068_v30 = vld [vmem:[#allocation3 + $0x30] sm:$0xff] }
 0x179   : > { %1459 = vst.msk [vmem:[#allocation3 + $0x48] sm:$0xff] %vm1449_vm8, %v1372_v7  ;;  %1965 = vrot.lane.b32.xlu1 %v1885_v28, %s2908_s22  ;;  %1967 = vrot.lane.b32.xlu0 %v1886_v35, %s2908_s22  ;;  %v1508_v7 = vld [vmem:[#allocation2 + $0x158] sm:$0xff] }
 0x17a   : > { %2820 = vmatprep.mubr.msk.f32.mxu0 %vm2099_vm12, %v2068_v30 }
 0x17b   : > { %v1948_v1 = vpop.permute.xlu1 %1947  ;;  %v1566_v16 = vpop.permute.xlu0 %1565 }
 0x17c   : > { %2037 = vst.msk [vmem:[#allocation3 + $0x38] sm:$0xff] %vm2029_vm11, %v1948_v1 }
 0x17d   : > { %1653 = vst.msk [vmem:[#allocation3 + $0x48] sm:$0xff] %vm1643_vm9, %v1566_v16  ;;  %1389 = vrot.lane.b32.xlu1 %v1885_v28, %s2905_s8  ;;  %1583 = vrot.lane.b32.xlu0 %v3249_v40, %s2906_s9  ;;  %v1507_v28 = vld [vmem:[#allocation2 + $0x150] sm:$0xff] }
 0x17e   : > { %v1700_v16 = vld [vmem:[#allocation2 + $0x151] sm:$0xff] }
 0x17f   : > { %v1564_v9 = vpop.permute.xlu1 %1563  ;;  %v990_v45 = vpop.permute.xlu0 %989 }
 0x180   : > { %1652 = vst.msk [vmem:[#allocation3 + $0x40] sm:$0xff] %vm1643_vm9, %v1564_v9 }
 0x181   : > { %1075 = vst.msk [vmem:[#allocation3 + $0x58] sm:$0xff] %vm1063_vm6, %v990_v45  ;;  %1391 = vrot.lane.b32.xlu1 %v1886_v35, %s2905_s8  ;;  %1585 = vrot.lane.b32.xlu0 %v3265_v43, %s2906_s9 }
 0x183   : > { %v1757_v8 = vpop.permute.xlu1 %1756  ;;  %v1759_v11 = vpop.permute.xlu0 %1758  ;;  %v2069_v50 = vld [vmem:[#allocation3 + $0x38] sm:$0xff] }
 0x184   : > { %1845 = vst.msk [vmem:[#allocation3 + $0x40] sm:$0xff] %vm1836_vm10, %v1757_v8  ;;  %1846 = vst.msk [vmem:[#allocation3 + $0x48] sm:$0xff] %vm1836_vm10, %v1759_v11  ;;  %2821 = vmatmul.mubr.msk.f32.gmra.mrb[6].mxu0 %vm2099_vm12, %v2069_v50  ;;  %v1701_v8 = vld [vmem:[#allocation2 + $0x159] sm:$0xff] }
 0x185   : > { %1007 = vrot.lane.b32.xlu1 %v3249_v40, %s2903_s6  ;;  %1009 = vrot.lane.b32.xlu0 %v3265_v43, %s2903_s6  ;;  %v1887_v40 = vld [vmem:[#allocation2 + $0x10a] sm:$0xff]  ;;  %v1888_v43 = vld [vmem:[#allocation2 + $0x112] sm:$0xff] }
 0x187   : > { %v1181_v15 = vpop.permute.xlu1 %1180  ;;  %v1183_v34 = vpop.permute.xlu0 %1182 }
 0x188   : > { %1267 = vst.msk [vmem:[#allocation3 + $0x50] sm:$0xff] %vm1256_vm7, %v1181_v15  ;;  %1268 = vst.msk [vmem:[#allocation3 + $0x58] sm:$0xff] %vm1256_vm7, %v1183_v34  ;;  %v1894_v34 = vld [vmem:[#allocation2 + $0x15a] sm:$0xff] }
 0x189   : > { %1776 = vrot.lane.b32.xlu1 %v1694_v25, %s2907_s20  ;;  %1778 = vrot.lane.b32.xlu0 %v1695_v23, %s2907_s20 }
 0x18b   : > { %v1950_v37 = vpop.permute.xlu1 %1949  ;;  %v1952_v51 = vpop.permute.xlu0 %1951 }
 0x18c   : > { %2038 = vst.msk [vmem:[#allocation3 + $0x40] sm:$0xff] %vm2029_vm11, %v1950_v37  ;;  %2039 = vst.msk [vmem:[#allocation3 + $0x48] sm:$0xff] %vm2029_vm11, %v1952_v51 }
 0x18d   : > { %1200 = vrot.lane.b32.xlu1 %v1694_v25, %s2904_s7  ;;  %1202 = vrot.lane.b32.xlu0 %v1695_v23, %s2904_s7  ;;  %v1893_v25 = vld [vmem:[#allocation2 + $0x152] sm:$0xff] }
 0x18f   : > { %v1374_v56 = vpop.permute.xlu1 %1373  ;;  %v1568_v58 = vpop.permute.xlu0 %1567 }
 0x190   : > { %1460 = vst.msk [vmem:[#allocation3 + $0x50] sm:$0xff] %vm1449_vm8, %v1374_v56  ;;  %v1509_v56 = vld [vmem:[#allocation2 + $0x168] sm:$0xff] }
 0x191   : > { %1654 = vst.msk [vmem:[#allocation3 + $0x50] sm:$0xff] %vm1643_vm9, %v1568_v58  ;;  %1969 = vrot.lane.b32.xlu1 %v1887_v40, %s2908_s22  ;;  %1971 = vrot.lane.b32.xlu0 %v1888_v43, %s2908_s22 }
 0x193   : > { %v1376_v22 = vpop.permute.xlu1 %1375  ;;  %v1570_v29 = vpop.permute.xlu0 %1569  ;;  %v2070_v59 = vld [vmem:[#allocation3 + $0x40] sm:$0xff]  ;;  %v2071_v2 = vld [vmem:[#allocation3 + $0x48] sm:$0xff] }
 0x194   : > { %1461 = vst.msk [vmem:[#allocation3 + $0x58] sm:$0xff] %vm1449_vm8, %v1376_v22  ;;  %2823 = vmatprep.mubr.msk.f32.mxu0 %vm2099_vm12, %v2070_v59 }
 0x195   : > { %1655 = vst.msk [vmem:[#allocation3 + $0x58] sm:$0xff] %vm1643_vm9, %v1570_v29  ;;  %1393 = vrot.lane.b32.xlu1 %v1887_v40, %s2905_s8  ;;  %2824 = vmatmul.mubr.msk.f32.gmra.mrb[8].mxu0 %vm2099_vm12, %v2071_v2  ;;  %v1510_v29 = vld [vmem:[#allocation2 + $0x170] sm:$0xff] }
 0x196   : > { %1587 = vrot.lane.b32.xlu0 %v3259_v42, %s2906_s9 }
 0x197   : > { %v992_v49 = vpop.permute.xlu1 %991  ;;  %v994_v18 = vpop.permute.xlu0 %993 }
 0x198   : > { %1076 = vst.msk [vmem:[#allocation3 + $0x60] sm:$0xff] %vm1063_vm6, %v992_v49  ;;  %1077 = vst.msk [vmem:[#allocation3 + $0x68] sm:$0xff] %vm1063_vm6, %v994_v18  ;;  %v1702_v49 = vld [vmem:[#allocation2 + $0x169] sm:$0xff] }
 0x199   : > { %1395 = vrot.lane.b32.xlu1 %v1888_v43, %s2905_s8 }
 0x19a   : > { %1589 = vrot.lane.b32.xlu0 %v3272_v47, %s2906_s9 }
 0x19b   : > { %v1761_v27 = vpop.permute.xlu1 %1760  ;;  %v1763_v57 = vpop.permute.xlu0 %1762 }
 0x19c   : > { %1847 = vst.msk [vmem:[#allocation3 + $0x50] sm:$0xff] %vm1836_vm10, %v1761_v27  ;;  %1848 = vst.msk [vmem:[#allocation3 + $0x58] sm:$0xff] %vm1836_vm10, %v1763_v57  ;;  %v1703_v57 = vld [vmem:[#allocation2 + $0x171] sm:$0xff] }
 0x19d   : > { %1011 = vrot.lane.b32.xlu1 %v3259_v42, %s2903_s6  ;;  %v1889_v42 = vld [vmem:[#allocation2 + $0x122] sm:$0xff] }
 0x19e   : > { %1013 = vrot.lane.b32.xlu0 %v3272_v47, %s2903_s6 }
 0x19f   : > { %v1185_v13 = vpop.permute.xlu1 %1184  ;;  %v1187_v20 = vpop.permute.xlu0 %1186 }
 0x1a0   : > { %1269 = vst.msk [vmem:[#allocation3 + $0x60] sm:$0xff] %vm1256_vm7, %v1185_v13  ;;  %1270 = vst.msk [vmem:[#allocation3 + $0x68] sm:$0xff] %vm1256_vm7, %v1187_v20  ;;  %v1895_v20 = vld [vmem:[#allocation2 + $0x16a] sm:$0xff] }
 0x1a1   : > { %1780 = vrot.lane.b32.xlu1 %v1696_v31, %s2907_s20 }
 0x1a2   : > { %1782 = vrot.lane.b32.xlu0 %v1697_v60, %s2907_s20 }
 0x1a3   : > { %v1954_v36 = vpop.permute.xlu1 %1953  ;;  %v1956_v39 = vpop.permute.xlu0 %1955 }
 0x1a4   : > { %2040 = vst.msk [vmem:[#allocation3 + $0x50] sm:$0xff] %vm2029_vm11, %v1954_v36  ;;  %2041 = vst.msk [vmem:[#allocation3 + $0x58] sm:$0xff] %vm2029_vm11, %v1956_v39  ;;  %v1896_v39 = vld [vmem:[#allocation2 + $0x172] sm:$0xff] }
 0x1a5   : > { %1204 = vrot.lane.b32.xlu1 %v1696_v31, %s2904_s7 }
 0x1a6   : > { %1206 = vrot.lane.b32.xlu0 %v1697_v60, %s2904_s7 }
 0x1a7   : > { %v1378_v47 = vpop.permute.xlu1 %1377  ;;  %v1572_v14 = vpop.permute.xlu0 %1571 }
 0x1a8   : > { %1462 = vst.msk [vmem:[#allocation3 + $0x60] sm:$0xff] %vm1449_vm8, %v1378_v47 }
 0x1a9   : > { %1656 = vst.msk [vmem:[#allocation3 + $0x60] sm:$0xff] %vm1643_vm9, %v1572_v14  ;;  %1973 = vrot.lane.b32.xlu1 %v1889_v42, %s2908_s22 }
 0x1aa   : > { %1975 = vrot.lane.b32.xlu0 %v1890_v10, %s2908_s22 }
 0x1ab   : > { %v1380_v24 = vpop.permute.xlu1 %1379  ;;  %v1574_v61 = vpop.permute.xlu0 %1573  ;;  %v2072_v62 = vld [vmem:[#allocation3 + $0x50] sm:$0xff]  ;;  %v2073_v52 = vld [vmem:[#allocation3 + $0x58] sm:$0xff] }
 0x1ac   : > { %1463 = vst.msk [vmem:[#allocation3 + $0x68] sm:$0xff] %vm1449_vm8, %v1380_v24  ;;  %2826 = vmatprep.mubr.msk.f32.mxu0 %vm2099_vm12, %v2072_v62  ;;  %v1511_v24 = vld [vmem:[#allocation2 + $0x180] sm:$0xff] }
 0x1ad   : > { %1657 = vst.msk [vmem:[#allocation3 + $0x68] sm:$0xff] %vm1643_vm9, %v1574_v61  ;;  %1397 = vrot.lane.b32.xlu1 %v1889_v42, %s2905_s8  ;;  %2827 = vmatmul.mubr.msk.f32.gmra.mrb[10].mxu0 %vm2099_vm12, %v2073_v52  ;;  %v1512_v52 = vld [vmem:[#allocation2 + $0x188] sm:$0xff] }
 0x1ae   : > { %1591 = vrot.lane.b32.xlu0 %v1505_v63, %s2906_s9 }
 0x1af   : > { %v996_v44 = vpop.permute.xlu1 %995  ;;  %v998_v0 = vpop.permute.xlu0 %997 }
 0x1b0   : > { %1078 = vst.msk [vmem:[#allocation3 + $0x70] sm:$0xff] %vm1063_vm6, %v996_v44  ;;  %1079 = vst.msk [vmem:[#allocation3 + $0x78] sm:$0xff] %vm1063_vm6, %v998_v0  ;;  %v1704_v0 = vld [vmem:[#allocation2 + $0x181] sm:$0xff] }
 0x1b1   : > { %1399 = vrot.lane.b32.xlu1 %v1890_v10, %s2905_s8 }
 0x1b2   : > { %1593 = vrot.lane.b32.xlu0 %v1506_v19, %s2906_s9 }
 0x1b3   : > { %v1765_v26 = vpop.permute.xlu1 %1764  ;;  %v1767_v33 = vpop.permute.xlu0 %1766 }
 0x1b4   : > { %1849 = vst.msk [vmem:[#allocation3 + $0x60] sm:$0xff] %vm1836_vm10, %v1765_v26  ;;  %1850 = vst.msk [vmem:[#allocation3 + $0x68] sm:$0xff] %vm1836_vm10, %v1767_v33  ;;  %v1705_v33 = vld [vmem:[#allocation2 + $0x189] sm:$0xff] }
 0x1b5   : > { %1015 = vrot.lane.b32.xlu1 %v1505_v63, %s2903_s6 }
 0x1b6   : > { %1017 = vrot.lane.b32.xlu0 %v1506_v19, %s2903_s6 }
 0x1b7   : > { %v1189_v3 = vpop.permute.xlu1 %1188  ;;  %v1191_v12 = vpop.permute.xlu0 %1190 }
 0x1b8   : > { %1271 = vst.msk [vmem:[#allocation3 + $0x70] sm:$0xff] %vm1256_vm7, %v1189_v3  ;;  %1272 = vst.msk [vmem:[#allocation3 + $0x78] sm:$0xff] %vm1256_vm7, %v1191_v12  ;;  %v1897_v12 = vld [vmem:[#allocation2 + $0x182] sm:$0xff] }
 0x1b9   : > { %1784 = vrot.lane.b32.xlu1 %v1698_v48, %s2907_s20 }
 0x1ba   : > { %1786 = vrot.lane.b32.xlu0 %v1699_v4, %s2907_s20 }
 0x1bb   : > { %v1958_v5 = vpop.permute.xlu1 %1957  ;;  %v1960_v53 = vpop.permute.xlu0 %1959 }
 0x1bc   : > { %2042 = vst.msk [vmem:[#allocation3 + $0x60] sm:$0xff] %vm2029_vm11, %v1958_v5  ;;  %2043 = vst.msk [vmem:[#allocation3 + $0x68] sm:$0xff] %vm2029_vm11, %v1960_v53  ;;  %v1898_v5 = vld [vmem:[#allocation2 + $0x18a] sm:$0xff] }
 0x1bd   : > { %1208 = vrot.lane.b32.xlu1 %v1698_v48, %s2904_s7 }
 0x1be   : > { %1210 = vrot.lane.b32.xlu0 %v1699_v4, %s2904_s7 }
 0x1bf   : > { %v1382_v55 = vpop.permute.xlu1 %1381  ;;  %v1576_v6 = vpop.permute.xlu0 %1575 }
 0x1c0   : > { %1464 = vst.msk [vmem:[#allocation3 + $0x70] sm:$0xff] %vm1449_vm8, %v1382_v55 }
 0x1c1   : > { %1658 = vst.msk [vmem:[#allocation3 + $0x70] sm:$0xff] %vm1643_vm9, %v1576_v6  ;;  %1977 = vrot.lane.b32.xlu1 %v1891_v32, %s2908_s22 }
 0x1c2   : > { %1979 = vrot.lane.b32.xlu0 %v1892_v46, %s2908_s22 }
 0x1c3   : > { %v1384_v17 = vpop.permute.xlu1 %1383  ;;  %v1578_v21 = vpop.permute.xlu0 %1577  ;;  %v2074_v38 = vld [vmem:[#allocation3 + $0x60] sm:$0xff]  ;;  %v2075_v41 = vld [vmem:[#allocation3 + $0x68] sm:$0xff] }
 0x1c4   : > { %1465 = vst.msk [vmem:[#allocation3 + $0x78] sm:$0xff] %vm1449_vm8, %v1384_v17  ;;  %2829 = vmatprep.mubr.msk.f32.mxu0 %vm2099_vm12, %v2074_v38  ;;  %v1706_v38 = vld [vmem:[#allocation2 + $0x199] sm:$0xff] }
 0x1c5   : > { %1659 = vst.msk [vmem:[#allocation3 + $0x78] sm:$0xff] %vm1643_vm9, %v1578_v21  ;;  %1401 = vrot.lane.b32.xlu1 %v1891_v32, %s2905_s8  ;;  %2830 = vmatmul.mubr.msk.f32.gmra.mrb[12].mxu0 %vm2099_vm12, %v2075_v41 }
 0x1c6   : > { %1595 = vrot.lane.b32.xlu0 %v1507_v28, %s2906_s9 }
 0x1c7   : > { %v1000_v35 = vpop.permute.xlu1 %999  ;;  %v1002_v54 = vpop.permute.xlu0 %1001 }
 0x1c8   : > { %1080 = vst.msk [vmem:[#allocation3 + $0x80] sm:$0xff] %vm1063_vm6, %v1000_v35  ;;  %1081 = vst.msk [vmem:[#allocation3 + $0x88] sm:$0xff] %vm1063_vm6, %v1002_v54  ;;  %v1899_v54 = vld [vmem:[#allocation2 + $0x19a] sm:$0xff] }
 0x1c9   : > { %1403 = vrot.lane.b32.xlu1 %v1892_v46, %s2905_s8  ;;  %v1513_v46 = vld [vmem:[#allocation2 + $0x198] sm:$0xff] }
 0x1ca   : > { %1597 = vrot.lane.b32.xlu0 %v1508_v7, %s2906_s9 }
 0x1cb   : > { %v1769_v30 = vpop.permute.xlu1 %1768  ;;  %v1771_v1 = vpop.permute.xlu0 %1770 }
 0x1cc   : > { %1851 = vst.msk [vmem:[#allocation3 + $0x70] sm:$0xff] %vm1836_vm10, %v1769_v30  ;;  %1852 = vst.msk [vmem:[#allocation3 + $0x78] sm:$0xff] %vm1836_vm10, %v1771_v1  ;;  %v1707_v30 = vld [vmem:[#allocation2 + $0x1a1] sm:$0xff] }
 0x1cd   : > { %1019 = vrot.lane.b32.xlu1 %v1507_v28, %s2903_s6  ;;  %v1514_v28 = vld [vmem:[#allocation2 + $0x1a0] sm:$0xff] }
 0x1ce   : > { %1021 = vrot.lane.b32.xlu0 %v1508_v7, %s2903_s6 }
 0x1cf   : > { %v1193_v9 = vpop.permute.xlu1 %1192  ;;  %v1195_v45 = vpop.permute.xlu0 %1194 }
 0x1d0   : > { %1273 = vst.msk [vmem:[#allocation3 + $0x80] sm:$0xff] %vm1256_vm7, %v1193_v9  ;;  %1274 = vst.msk [vmem:[#allocation3 + $0x88] sm:$0xff] %vm1256_vm7, %v1195_v45  ;;  %v1900_v9 = vld [vmem:[#allocation2 + $0x1a2] sm:$0xff] }
 0x1d1   : > { %1788 = vrot.lane.b32.xlu1 %v1700_v16, %s2907_s20 }
 0x1d2   : > { %1790 = vrot.lane.b32.xlu0 %v1701_v8, %s2907_s20 }
 0x1d3   : > { %v1962_v11 = vpop.permute.xlu1 %1961  ;;  %v1964_v50 = vpop.permute.xlu0 %1963 }
 0x1d4   : > { %2044 = vst.msk [vmem:[#allocation3 + $0x70] sm:$0xff] %vm2029_vm11, %v1962_v11  ;;  %2045 = vst.msk [vmem:[#allocation3 + $0x78] sm:$0xff] %vm2029_vm11, %v1964_v50 }
 0x1d5   : > { %1212 = vrot.lane.b32.xlu1 %v1700_v16, %s2904_s7 }
 0x1d6   : > { %1214 = vrot.lane.b32.xlu0 %v1701_v8, %s2904_s7 }
 0x1d7   : > { %v1386_v23 = vpop.permute.xlu1 %1385  ;;  %v1580_v15 = vpop.permute.xlu0 %1579 }
 0x1d8   : > { %1466 = vst.msk [vmem:[#allocation3 + $0x80] sm:$0xff] %vm1449_vm8, %v1386_v23 }
 0x1d9   : > { %1660 = vst.msk [vmem:[#allocation3 + $0x80] sm:$0xff] %vm1643_vm9, %v1580_v15  ;;  %1981 = vrot.lane.b32.xlu1 %v1893_v25, %s2908_s22 }
 0x1da   : > { %1983 = vrot.lane.b32.xlu0 %v1894_v34, %s2908_s22 }
 0x1db   : > { %v1388_v37 = vpop.permute.xlu1 %1387  ;;  %v1582_v51 = vpop.permute.xlu0 %1581  ;;  %v2076_v40 = vld [vmem:[#allocation3 + $0x70] sm:$0xff]  ;;  %v2077_v43 = vld [vmem:[#allocation3 + $0x78] sm:$0xff] }
 0x1dc   : > { %1467 = vst.msk [vmem:[#allocation3 + $0x88] sm:$0xff] %vm1449_vm8, %v1388_v37  ;;  %2832 = vmatprep.mubr.msk.f32.mxu0 %vm2099_vm12, %v2076_v40 }
 0x1dd   : > { %1661 = vst.msk [vmem:[#allocation3 + $0x88] sm:$0xff] %vm1643_vm9, %v1582_v51  ;;  %1405 = vrot.lane.b32.xlu1 %v1893_v25, %s2905_s8  ;;  %2833 = vmatmul.mubr.msk.f32.gmra.mrb[14].mxu0 %vm2099_vm12, %v2077_v43 }
 0x1de   : > { %1599 = vrot.lane.b32.xlu0 %v1509_v56, %s2906_s9 }
 0x1df   : > { %v1004_v58 = vpop.permute.xlu1 %1003  ;;  %v1006_v22 = vpop.permute.xlu0 %1005 }
 0x1e0   : > { %1082 = vst.msk [vmem:[#allocation3 + $0x90] sm:$0xff] %vm1063_vm6, %v1004_v58  ;;  %1083 = vst.msk [vmem:[#allocation3 + $0x98] sm:$0xff] %vm1063_vm6, %v1006_v22 }
 0x1e1   : > { %1407 = vrot.lane.b32.xlu1 %v1894_v34, %s2905_s8 }
 0x1e2   : > { %1601 = vrot.lane.b32.xlu0 %v1510_v29, %s2906_s9 }
 0x1e3   : > { %v1773_v59 = vpop.permute.xlu1 %1772  ;;  %v1775_v2 = vpop.permute.xlu0 %1774 }
 0x1e4   : > { %1853 = vst.msk [vmem:[#allocation3 + $0x80] sm:$0xff] %vm1836_vm10, %v1773_v59  ;;  %1854 = vst.msk [vmem:[#allocation3 + $0x88] sm:$0xff] %vm1836_vm10, %v1775_v2 }
 0x1e5   : > { %1023 = vrot.lane.b32.xlu1 %v1509_v56, %s2903_s6 }
 0x1e6   : > { %1025 = vrot.lane.b32.xlu0 %v1510_v29, %s2903_s6 }
 0x1e7   : > { %v1197_v18 = vpop.permute.xlu1 %1196  ;;  %v1199_v27 = vpop.permute.xlu0 %1198 }
 0x1e8   : > { %1275 = vst.msk [vmem:[#allocation3 + $0x90] sm:$0xff] %vm1256_vm7, %v1197_v18  ;;  %1276 = vst.msk [vmem:[#allocation3 + $0x98] sm:$0xff] %vm1256_vm7, %v1199_v27 }
 0x1e9   : > { %1792 = vrot.lane.b32.xlu1 %v1702_v49, %s2907_s20 }
 0x1ea   : > { %1794 = vrot.lane.b32.xlu0 %v1703_v57, %s2907_s20 }
 0x1eb   : > { %v1966_v31 = vpop.permute.xlu1 %1965  ;;  %v1968_v13 = vpop.permute.xlu0 %1967 }
 0x1ec   : > { %2046 = vst.msk [vmem:[#allocation3 + $0x80] sm:$0xff] %vm2029_vm11, %v1966_v31  ;;  %2047 = vst.msk [vmem:[#allocation3 + $0x88] sm:$0xff] %vm2029_vm11, %v1968_v13 }
 0x1ed   : > { %1216 = vrot.lane.b32.xlu1 %v1702_v49, %s2904_s7 }
 0x1ee   : > { %1218 = vrot.lane.b32.xlu0 %v1703_v57, %s2904_s7 }
 0x1ef   : > { %v1390_v60 = vpop.permute.xlu1 %1389  ;;  %v1584_v36 = vpop.permute.xlu0 %1583 }
 0x1f0   : > { %1468 = vst.msk [vmem:[#allocation3 + $0x90] sm:$0xff] %vm1449_vm8, %v1390_v60 }
 0x1f1   : > { %1662 = vst.msk [vmem:[#allocation3 + $0x90] sm:$0xff] %vm1643_vm9, %v1584_v36  ;;  %1985 = vrot.lane.b32.xlu1 %v1895_v20, %s2908_s22 }
 0x1f2   : > { %1987 = vrot.lane.b32.xlu0 %v1896_v39, %s2908_s22 }
 0x1f3   : > { %v1392_v42 = vpop.permute.xlu1 %1391  ;;  %v1586_v47 = vpop.permute.xlu0 %1585  ;;  %v2078_v14 = vld [vmem:[#allocation3 + $0x80] sm:$0xff]  ;;  %v2079_v10 = vld [vmem:[#allocation3 + $0x88] sm:$0xff] }
 0x1f4   : > { %1469 = vst.msk [vmem:[#allocation3 + $0x98] sm:$0xff] %vm1449_vm8, %v1392_v42  ;;  %2835 = vmatprep.mubr.msk.f32.mxu1 %vm2099_vm12, %v2078_v14 }
 0x1f5   : > { %1663 = vst.msk [vmem:[#allocation3 + $0x98] sm:$0xff] %vm1643_vm9, %v1586_v47  ;;  %1409 = vrot.lane.b32.xlu1 %v1895_v20, %s2905_s8  ;;  %2836 = vmatmul.mubr.msk.f32.vlgmr.msra.gmra.mrb[0].mxu1 %vm2099_vm12, %v2079_v10 }
 0x1f6   : > { %1603 = vrot.lane.b32.xlu0 %v1511_v24, %s2906_s9 }
 0x1f7   : > { %v1008_v61 = vpop.permute.xlu1 %1007  ;;  %v1010_v62 = vpop.permute.xlu0 %1009 }
 0x1f8   : > { %1084 = vst.msk [vmem:[#allocation3 + $0xa0] sm:$0xff] %vm1063_vm6, %v1008_v61  ;;  %1085 = vst.msk [vmem:[#allocation3 + $0xa8] sm:$0xff] %vm1063_vm6, %v1010_v62 }
 0x1f9   : > { %1411 = vrot.lane.b32.xlu1 %v1896_v39, %s2905_s8 }
 0x1fa   : > { %1605 = vrot.lane.b32.xlu0 %v1512_v52, %s2906_s9 }
 0x1fb   : > { %v1777_v63 = vpop.permute.xlu1 %1776  ;;  %v1779_v44 = vpop.permute.xlu0 %1778 }
 0x1fc   : > { %1855 = vst.msk [vmem:[#allocation3 + $0x90] sm:$0xff] %vm1836_vm10, %v1777_v63  ;;  %1856 = vst.msk [vmem:[#allocation3 + $0x98] sm:$0xff] %vm1836_vm10, %v1779_v44 }
 0x1fd   : > { %1027 = vrot.lane.b32.xlu1 %v1511_v24, %s2903_s6 }
 0x1fe   : > { %1029 = vrot.lane.b32.xlu0 %v1512_v52, %s2903_s6  ;;  %s3902_s6 = scalar_lea.vmem %s4116_s4, %s2762_s21  ;;  %s2724_s21 = sshll.u32 %s4120_s19, 1 }
 0x1ff   : > { %v1201_v19 = vpop.permute.xlu1 %1200  ;;  %v1203_v26 = vpop.permute.xlu0 %1202 }
 0x200   : > { %1277 = vst.msk [vmem:[#allocation3 + $0xa0] sm:$0xff] %vm1256_vm7, %v1201_v19  ;;  %1278 = vst.msk [vmem:[#allocation3 + $0xa8] sm:$0xff] %vm1256_vm7, %v1203_v26 }
 0x201   : > { %1796 = vrot.lane.b32.xlu1 %v1704_v0, %s2907_s20 }
 0x202   : > { %1798 = vrot.lane.b32.xlu0 %v1705_v33, %s2907_s20 }
 0x203   : > { %v1970_v48 = vpop.permute.xlu1 %1969  ;;  %v1972_v3 = vpop.permute.xlu0 %1971 }
 0x204   : > { %2048 = vst.msk [vmem:[#allocation3 + $0x90] sm:$0xff] %vm2029_vm11, %v1970_v48  ;;  %2049 = vst.msk [vmem:[#allocation3 + $0x98] sm:$0xff] %vm2029_vm11, %v1972_v3 }
 0x205   : > { %1220 = vrot.lane.b32.xlu1 %v1704_v0, %s2904_s7 }
 0x206   : > { %1222 = vrot.lane.b32.xlu0 %v1705_v33, %s2904_s7 }
 0x207   : > { %v1394_v4 = vpop.permute.xlu1 %1393 }
 0x208   : > { %1470 = vst.msk [vmem:[#allocation3 + $0xa0] sm:$0xff] %vm1449_vm8, %v1394_v4  ;;  %v1588_v53 = vpop.permute.xlu0 %1587 }
 0x209   : > { %1664 = vst.msk [vmem:[#allocation3 + $0xa0] sm:$0xff] %vm1643_vm9, %v1588_v53  ;;  %1989 = vrot.lane.b32.xlu1 %v1897_v12, %s2908_s22 }
 0x20a   : > { %1991 = vrot.lane.b32.xlu0 %v1898_v5, %s2908_s22 }
 0x20b   : > { %v1396_v32 = vpop.permute.xlu1 %1395  ;;  %v2080_v55 = vld [vmem:[#allocation3 + $0x90] sm:$0xff]  ;;  %v2081_v6 = vld [vmem:[#allocation3 + $0x98] sm:$0xff] }
 0x20c   : > { %1471 = vst.msk [vmem:[#allocation3 + $0xa8] sm:$0xff] %vm1449_vm8, %v1396_v32  ;;  %v1590_v17 = vpop.permute.xlu0 %1589  ;;  %2838 = vmatprep.mubr.msk.f32.mxu1 %vm2099_vm12, %v2080_v55 }
 0x20d   : > { %1665 = vst.msk [vmem:[#allocation3 + $0xa8] sm:$0xff] %vm1643_vm9, %v1590_v17  ;;  %1413 = vrot.lane.b32.xlu1 %v1897_v12, %s2905_s8  ;;  %2839 = vmatmul.mubr.msk.f32.gmra.mrb[2].mxu1 %vm2099_vm12, %v2081_v6 }
 0x20e   : > { %1607 = vrot.lane.b32.xlu0 %v1513_v46, %s2906_s9 }
 0x20f   : > { %v1012_v21 = vpop.permute.xlu1 %1011 }
 0x210   : > { %1086 = vst.msk [vmem:[#allocation3 + $0xb0] sm:$0xff] %vm1063_vm6, %v1012_v21  ;;  %v1014_v41 = vpop.permute.xlu0 %1013 }
 0x211   : > { %1087 = vst.msk [vmem:[#allocation3 + $0xb8] sm:$0xff] %vm1063_vm6, %v1014_v41  ;;  %1415 = vrot.lane.b32.xlu1 %v1898_v5, %s2905_s8 }
 0x212   : > { %1800 = vrot.lane.b32.xlu0 %v1706_v38, %s2907_s20 }
 0x213   : > { %v1781_v35 = vpop.permute.xlu1 %1780 }
 0x214   : > { %1857 = vst.msk [vmem:[#allocation3 + $0xa0] sm:$0xff] %vm1836_vm10, %v1781_v35  ;;  %v1783_v7 = vpop.permute.xlu0 %1782 }
 0x215   : > { %1858 = vst.msk [vmem:[#allocation3 + $0xa8] sm:$0xff] %vm1836_vm10, %v1783_v7  ;;  %1609 = vrot.lane.b32.xlu1 %v1514_v28, %s2906_s9  ;;  %s235_s9 = scalar_lea.vmem %s4117_s5, %s2724_s21 }
 0x216   : > { %1993 = vrot.lane.b32.xlu0 %v1899_v54, %s2908_s22 }
 0x217   : > { %v1205_v1 = vpop.permute.xlu1 %1204 }
 0x218   : > { %1279 = vst.msk [vmem:[#allocation3 + $0xb0] sm:$0xff] %vm1256_vm7, %v1205_v1  ;;  %v1207_v16 = vpop.permute.xlu0 %1206 }
 0x219   : > { %1280 = vst.msk [vmem:[#allocation3 + $0xb8] sm:$0xff] %vm1256_vm7, %v1207_v16  ;;  %1802 = vrot.lane.b32.xlu1 %v1707_v30, %s2907_s20 }
 0x21b   : > { %v2813_v45 = vpop.f32.mrb[0].mxu0  ;;  %v1974_v8 = vpop.permute.xlu1 %1973 }
 0x21c   : > { %2426 = vst.msk [vmem:[%s3902_s6 + $0x8] sm:$0xff] %vm378_vm0, %v2813_v45  ;;  %v2458_v11 = vsel %vm378_vm0, %v2813_v45, 0.0  ;;  %v2528_v50 = vmul.f32 %v2813_v45, %v2813_v45  ;;  %v1976_v25 = vpop.permute.xlu0 %1975  ;;  %v2266_v23 = vpop.f32.mrb[1].mxu0 }
 0x21d   : > { %2050 = vst.msk [vmem:[#allocation3 + $0xa0] sm:$0xff] %vm2029_vm11, %v1974_v8  ;;  %2051 = vst.msk [vmem:[#allocation3 + $0xa8] sm:$0xff] %vm2029_vm11, %v1976_v25  ;;  %v2457_v15 = vsel %vm378_vm0, %v2266_v23, 0.0  ;;  %v2527_v34 = vmul.f32 %v2266_v23, %v2266_v23  ;;  %1995 = vrot.lane.b32.xlu1 %v1900_v9, %s2908_s22 }
 0x21e   : > { %2425 = vst.msk [vmem:[%s3902_s6] sm:$0xff] %vm378_vm0, %v2266_v23  ;;  %v2560_v37 = vsel %vm378_vm0, %v2528_v50, 0.0  ;;  %v2459_v51 = vadd.f32 %v2458_v11, %v2457_v15 }
 0x21f   : > { %v2559_v40 = vsel %vm378_vm0, %v2527_v34, 0.0  ;;  %v1398_v43 = vpop.permute.xlu1 %1397 }
 0x220   : > { %v2561_v56 = vadd.f32 %v2560_v37, %v2559_v40  ;;  %1472 = vst.msk [vmem:[#allocation3 + $0xb0] sm:$0xff] %vm1449_vm8, %v1398_v43  ;;  %v1592_v58 = vpop.permute.xlu0 %1591 }
 0x221   : > { %1666 = vst.msk [vmem:[#allocation3 + $0xb0] sm:$0xff] %vm1643_vm9, %v1592_v58 }
 0x223   : > { %v1400_v22 = vpop.permute.xlu1 %1399 }
 0x224   : > { %v2082_v29 = vld [vmem:[#allocation3 + $0xa0] sm:$0xff]  ;;  %1473 = vst.msk [vmem:[#allocation3 + $0xb8] sm:$0xff] %vm1449_vm8, %v1400_v22  ;;  %v1594_v59 = vpop.permute.xlu0 %1593  ;;  %v2083_v2 = vld [vmem:[#allocation3 + $0xa8] sm:$0xff] }
 0x225   : > { %2841 = vmatprep.mubr.msk.f32.mxu1 %vm2099_vm12, %v2082_v29  ;;  %1667 = vst.msk [vmem:[#allocation3 + $0xb8] sm:$0xff] %vm1643_vm9, %v1594_v59 }
 0x226   : > { %2842 = vmatmul.mubr.msk.f32.gmra.mrb[4].mxu1 %vm2099_vm12, %v2083_v2 }
 0x227   : > { %v1016_v49 = vpop.permute.xlu1 %1015 }
 0x228   : > { %1088 = vst.msk [vmem:[#allocation3 + $0xc0] sm:$0xff] %vm1063_vm6, %v1016_v49  ;;  %v1018_v18 = vpop.permute.xlu0 %1017 }
 0x229   : > { %1089 = vst.msk [vmem:[#allocation3 + $0xc8] sm:$0xff] %vm1063_vm6, %v1018_v18 }
 0x22b   : > { %v1785_v27 = vpop.permute.xlu1 %1784 }
 0x22c   : > { %1859 = vst.msk [vmem:[#allocation3 + $0xb0] sm:$0xff] %vm1836_vm10, %v1785_v27  ;;  %v1787_v57 = vpop.permute.xlu0 %1786 }
 0x22d   : > { %1860 = vst.msk [vmem:[#allocation3 + $0xb8] sm:$0xff] %vm1836_vm10, %v1787_v57 }
 0x22f   : > { %v1209_v31 = vpop.permute.xlu1 %1208  ;;  %v2816_v13 = vpop.f32.mrb[2].mxu0 }
 0x230   : > { %1281 = vst.msk [vmem:[#allocation3 + $0xc0] sm:$0xff] %vm1256_vm7, %v1209_v31  ;;  %v1211_v20 = vpop.permute.xlu0 %1210  ;;  %v2276_v60 = vpop.f32.mrb[3].mxu0  ;;  %v2530_v36 = vmul.f32 %v2816_v13, %v2816_v13  ;;  %v2462_v14 = vsel %vm378_vm0, %v2816_v13, 0.0 }
 0x231   : > { %2428 = vst.msk [vmem:[%s3902_s6 + $0x18] sm:$0xff] %vm378_vm0, %v2816_v13  ;;  %2427 = vst.msk [vmem:[%s3902_s6 + $0x10] sm:$0xff] %vm378_vm0, %v2276_v60  ;;  %v2460_v39 = vsel %vm378_vm0, %v2276_v60, 0.0  ;;  %v2529_v42 = vmul.f32 %v2276_v60, %v2276_v60 }
 0x232   : > { %1282 = vst.msk [vmem:[#allocation3 + $0xc8] sm:$0xff] %vm1256_vm7, %v1211_v20  ;;  %v2461_v47 = vadd.f32 %v2460_v39, %v2459_v51  ;;  %v2564_v63 = vsel %vm378_vm0, %v2530_v36, 0.0 }
 0x233   : > { %v2562_v10 = vsel %vm378_vm0, %v2529_v42, 0.0  ;;  %v1978_v24 = vpop.permute.xlu1 %1977 }
 0x234   : > { %v2563_v61 = vadd.f32 %v2562_v10, %v2561_v56  ;;  %2052 = vst.msk [vmem:[#allocation3 + $0xb0] sm:$0xff] %vm2029_vm11, %v1978_v24  ;;  %v1980_v62 = vpop.permute.xlu0 %1979  ;;  %v2463_v52 = vadd.f32 %v2462_v14, %v2461_v47 }
 0x235   : > { %2053 = vst.msk [vmem:[#allocation3 + $0xb8] sm:$0xff] %vm2029_vm11, %v1980_v62 }
 0x236   : > { %v2565_v44 = vadd.f32 %v2564_v63, %v2563_v61 }
 0x237   : > { %v1402_v0 = vpop.permute.xlu1 %1401 }
 0x238   : > { %1474 = vst.msk [vmem:[#allocation3 + $0xc0] sm:$0xff] %vm1449_vm8, %v1402_v0  ;;  %v1596_v19 = vpop.permute.xlu0 %1595 }
 0x239   : > { %1668 = vst.msk [vmem:[#allocation3 + $0xc0] sm:$0xff] %vm1643_vm9, %v1596_v19 }
 0x23b   : > { %v1404_v26 = vpop.permute.xlu1 %1403  ;;  %v2084_v33 = vld [vmem:[#allocation3 + $0xb0] sm:$0xff] }
 0x23c   : > { %1475 = vst.msk [vmem:[#allocation3 + $0xc8] sm:$0xff] %vm1449_vm8, %v1404_v26  ;;  %v1598_v48 = vpop.permute.xlu0 %1597  ;;  %2844 = vmatprep.mubr.msk.f32.mxu1 %vm2099_vm12, %v2084_v33  ;;  %v2085_v3 = vld [vmem:[#allocation3 + $0xb8] sm:$0xff] }
 0x23d   : > { %1669 = vst.msk [vmem:[#allocation3 + $0xc8] sm:$0xff] %vm1643_vm9, %v1598_v48  ;;  %2845 = vmatmul.mubr.msk.f32.gmra.mrb[6].mxu1 %vm2099_vm12, %v2085_v3 }
 0x23f   : > { %v1020_v12 = vpop.permute.xlu1 %1019 }
 0x240   : > { %1090 = vst.msk [vmem:[#allocation3 + $0xd0] sm:$0xff] %vm1063_vm6, %v1020_v12  ;;  %v1022_v4 = vpop.permute.xlu0 %1021 }
 0x241   : > { %1091 = vst.msk [vmem:[#allocation3 + $0xd8] sm:$0xff] %vm1063_vm6, %v1022_v4 }
 0x243   : > { %v1789_v5 = vpop.permute.xlu1 %1788  ;;  %v2819_v53 = vpop.f32.mrb[4].mxu0 }
 0x244   : > { %1861 = vst.msk [vmem:[#allocation3 + $0xc0] sm:$0xff] %vm1836_vm10, %v1789_v5  ;;  %v1791_v32 = vpop.permute.xlu0 %1790  ;;  %v2286_v55 = vpop.f32.mrb[5].mxu0  ;;  %v2532_v6 = vmul.f32 %v2819_v53, %v2819_v53  ;;  %v2466_v38 = vsel %vm378_vm0, %v2819_v53, 0.0 }
 0x245   : > { %2430 = vst.msk [vmem:[%s3902_s6 + $0x28] sm:$0xff] %vm378_vm0, %v2819_v53  ;;  %2429 = vst.msk [vmem:[%s3902_s6 + $0x20] sm:$0xff] %vm378_vm0, %v2286_v55  ;;  %v2464_v46 = vsel %vm378_vm0, %v2286_v55, 0.0  ;;  %v2531_v17 = vmul.f32 %v2286_v55, %v2286_v55 }
 0x246   : > { %1862 = vst.msk [vmem:[#allocation3 + $0xc8] sm:$0xff] %vm1836_vm10, %v1791_v32  ;;  %v2465_v21 = vadd.f32 %v2464_v46, %v2463_v52  ;;  %v2568_v30 = vsel %vm378_vm0, %v2532_v6, 0.0 }
 0x247   : > { %v2566_v41 = vsel %vm378_vm0, %v2531_v17, 0.0  ;;  %v1213_v28 = vpop.permute.xlu1 %1212 }
 0x248   : > { %v2567_v35 = vadd.f32 %v2566_v41, %v2565_v44  ;;  %1283 = vst.msk [vmem:[#allocation3 + $0xd0] sm:$0xff] %vm1256_vm7, %v1213_v28  ;;  %v1215_v54 = vpop.permute.xlu0 %1214  ;;  %v2467_v7 = vadd.f32 %v2466_v38, %v2465_v21 }
 0x249   : > { %1284 = vst.msk [vmem:[#allocation3 + $0xd8] sm:$0xff] %vm1256_vm7, %v1215_v54 }
 0x24a   : > { %v2569_v1 = vadd.f32 %v2568_v30, %v2567_v35 }
 0x24b   : > { %v1982_v16 = vpop.permute.xlu1 %1981 }
 0x24c   : > { %2054 = vst.msk [vmem:[#allocation3 + $0xc0] sm:$0xff] %vm2029_vm11, %v1982_v16  ;;  %v1984_v9 = vpop.permute.xlu0 %1983 }
 0x24d   : > { %2055 = vst.msk [vmem:[#allocation3 + $0xc8] sm:$0xff] %vm2029_vm11, %v1984_v9 }
 0x24f   : > { %v1406_v45 = vpop.permute.xlu1 %1405 }
 0x250   : > { %1476 = vst.msk [vmem:[#allocation3 + $0xd0] sm:$0xff] %vm1449_vm8, %v1406_v45  ;;  %v1600_v8 = vpop.permute.xlu0 %1599 }
 0x251   : > { %1670 = vst.msk [vmem:[#allocation3 + $0xd0] sm:$0xff] %vm1643_vm9, %v1600_v8 }
 0x253   : > { %v1408_v11 = vpop.permute.xlu1 %1407  ;;  %v2086_v50 = vld [vmem:[#allocation3 + $0xc0] sm:$0xff] }
 0x254   : > { %1477 = vst.msk [vmem:[#allocation3 + $0xd8] sm:$0xff] %vm1449_vm8, %v1408_v11  ;;  %v1602_v25 = vpop.permute.xlu0 %1601  ;;  %2847 = vmatprep.mubr.msk.f32.mxu1 %vm2099_vm12, %v2086_v50  ;;  %v2087_v23 = vld [vmem:[#allocation3 + $0xc8] sm:$0xff] }
 0x255   : > { %1671 = vst.msk [vmem:[#allocation3 + $0xd8] sm:$0xff] %vm1643_vm9, %v1602_v25  ;;  %2848 = vmatmul.mubr.msk.f32.gmra.mrb[8].mxu1 %vm2099_vm12, %v2087_v23 }
 0x257   : > { %v1024_v15 = vpop.permute.xlu1 %1023  ;;  %v2822_v34 = vpop.f32.mrb[6].mxu0 }
 0x258   : > { %1092 = vst.msk [vmem:[#allocation3 + $0xe0] sm:$0xff] %vm1063_vm6, %v1024_v15  ;;  %v1026_v37 = vpop.permute.xlu0 %1025  ;;  %v2296_v51 = vpop.f32.mrb[7].mxu0  ;;  %v2534_v40 = vmul.f32 %v2822_v34, %v2822_v34  ;;  %v2470_v22 = vsel %vm378_vm0, %v2822_v34, 0.0 }
 0x259   : > { %2432 = vst.msk [vmem:[%s3902_s6 + $0x38] sm:$0xff] %vm378_vm0, %v2822_v34  ;;  %2431 = vst.msk [vmem:[%s3902_s6 + $0x30] sm:$0xff] %vm378_vm0, %v2296_v51  ;;  %v2468_v43 = vsel %vm378_vm0, %v2296_v51, 0.0  ;;  %v2533_v56 = vmul.f32 %v2296_v51, %v2296_v51 }
 0x25a   : > { %1093 = vst.msk [vmem:[#allocation3 + $0xe8] sm:$0xff] %vm1063_vm6, %v1026_v37  ;;  %v2469_v58 = vadd.f32 %v2468_v43, %v2467_v7  ;;  %v2572_v27 = vsel %vm378_vm0, %v2534_v40, 0.0 }
 0x25b   : > { %v2570_v29 = vsel %vm378_vm0, %v2533_v56, 0.0  ;;  %v1793_v59 = vpop.permute.xlu1 %1792 }
 0x25c   : > { %v2571_v2 = vadd.f32 %v2570_v29, %v2569_v1  ;;  %1863 = vst.msk [vmem:[#allocation3 + $0xd0] sm:$0xff] %vm1836_vm10, %v1793_v59  ;;  %v1795_v49 = vpop.permute.xlu0 %1794  ;;  %v2471_v18 = vadd.f32 %v2470_v22, %v2469_v58 }
 0x25d   : > { %1864 = vst.msk [vmem:[#allocation3 + $0xd8] sm:$0xff] %vm1836_vm10, %v1795_v49 }
 0x25e   : > { %v2573_v57 = vadd.f32 %v2572_v27, %v2571_v2 }
 0x25f   : > { %v1217_v31 = vpop.permute.xlu1 %1216 }
 0x260   : > { %1285 = vst.msk [vmem:[#allocation3 + $0xe0] sm:$0xff] %vm1256_vm7, %v1217_v31  ;;  %v1219_v13 = vpop.permute.xlu0 %1218 }
 0x261   : > { %1286 = vst.msk [vmem:[#allocation3 + $0xe8] sm:$0xff] %vm1256_vm7, %v1219_v13 }
 0x263   : > { %v1986_v20 = vpop.permute.xlu1 %1985 }
 0x264   : > { %2056 = vst.msk [vmem:[#allocation3 + $0xd0] sm:$0xff] %vm2029_vm11, %v1986_v20  ;;  %v1988_v60 = vpop.permute.xlu0 %1987 }
 0x265   : > { %2057 = vst.msk [vmem:[#allocation3 + $0xd8] sm:$0xff] %vm2029_vm11, %v1988_v60 }
 0x267   : > { %v1410_v36 = vpop.permute.xlu1 %1409 }
 0x268   : > { %1478 = vst.msk [vmem:[#allocation3 + $0xe0] sm:$0xff] %vm1449_vm8, %v1410_v36  ;;  %v1604_v39 = vpop.permute.xlu0 %1603  ;;  %v2825_v42 = vpop.f32.mrb[8].mxu0 }
 0x269   : > { %1672 = vst.msk [vmem:[#allocation3 + $0xe0] sm:$0xff] %vm1643_vm9, %v1604_v39  ;;  %v2536_v47 = vmul.f32 %v2825_v42, %v2825_v42  ;;  %v2306_v14 = vpop.f32.mrb[9].mxu0  ;;  %v2474_v10 = vsel %vm378_vm0, %v2825_v42, 0.0 }
 0x26a   : > { %2434 = vst.msk [vmem:[%s3902_s6 + $0x48] sm:$0xff] %vm378_vm0, %v2825_v42  ;;  %2433 = vst.msk [vmem:[%s3902_s6 + $0x40] sm:$0xff] %vm378_vm0, %v2306_v14  ;;  %v2472_v24 = vsel %vm378_vm0, %v2306_v14, 0.0  ;;  %v2535_v61 = vmul.f32 %v2306_v14, %v2306_v14 }
 0x26b   : > { %v2473_v62 = vadd.f32 %v2472_v24, %v2471_v18  ;;  %v1412_v52 = vpop.permute.xlu1 %1411  ;;  %v2088_v63 = vld [vmem:[#allocation3 + $0xd0] sm:$0xff]  ;;  %v2576_v44 = vsel %vm378_vm0, %v2536_v47, 0.0 }
 0x26c   : > { %v2574_v0 = vsel %vm378_vm0, %v2535_v61, 0.0  ;;  %1479 = vst.msk [vmem:[#allocation3 + $0xe8] sm:$0xff] %vm1449_vm8, %v1412_v52  ;;  %v1606_v19 = vpop.permute.xlu0 %1605  ;;  %2850 = vmatprep.mubr.msk.f32.mxu1 %vm2099_vm12, %v2088_v63  ;;  %v2089_v26 = vld [vmem:[#allocation3 + $0xd8] sm:$0xff] }
 0x26d   : > { %v2575_v33 = vadd.f32 %v2574_v0, %v2573_v57  ;;  %1673 = vst.msk [vmem:[#allocation3 + $0xe8] sm:$0xff] %vm1643_vm9, %v1606_v19  ;;  %2851 = vmatmul.mubr.msk.f32.gmra.mrb[10].mxu1 %vm2099_vm12, %v2089_v26  ;;  %v2475_v48 = vadd.f32 %v2474_v10, %v2473_v62 }
 0x26f   : > { %v1028_v3 = vpop.permute.xlu1 %1027  ;;  %v2577_v12 = vadd.f32 %v2576_v44, %v2575_v33 }
 0x270   : > { %1094 = vst.msk [vmem:[#allocation3 + $0xf0] sm:$0xff] %vm1063_vm6, %v1028_v3  ;;  %v1030_v4 = vpop.permute.xlu0 %1029 }
 0x271   : > { %1095 = vst.msk [vmem:[#allocation3 + $0xf8] sm:$0xff] %vm1063_vm6, %v1030_v4 }
 0x273   : > { %v1797_v5 = vpop.permute.xlu1 %1796 }
 0x274   : > { %1865 = vst.msk [vmem:[#allocation3 + $0xe0] sm:$0xff] %vm1836_vm10, %v1797_v5  ;;  %v1799_v53 = vpop.permute.xlu0 %1798 }
 0x275   : > { %1866 = vst.msk [vmem:[#allocation3 + $0xe8] sm:$0xff] %vm1836_vm10, %v1799_v53 }
 0x277   : > { %v1221_v32 = vpop.permute.xlu1 %1220 }
 0x278   : > { %1287 = vst.msk [vmem:[#allocation3 + $0xf0] sm:$0xff] %vm1256_vm7, %v1221_v32  ;;  %v1223_v55 = vpop.permute.xlu0 %1222 }
 0x279   : > { %1288 = vst.msk [vmem:[#allocation3 + $0xf8] sm:$0xff] %vm1256_vm7, %v1223_v55 }
 0x27b   : > { %v1990_v6 = vpop.permute.xlu1 %1989 }
 0x27c   : > { %2058 = vst.msk [vmem:[#allocation3 + $0xe0] sm:$0xff] %vm2029_vm11, %v1990_v6  ;;  %v1992_v46 = vpop.permute.xlu0 %1991 }
 0x27d   : > { %2059 = vst.msk [vmem:[#allocation3 + $0xe8] sm:$0xff] %vm2029_vm11, %v1992_v46 }
 0x27f   : > { %v1414_v17 = vpop.permute.xlu1 %1413 }
 0x280   : > { %1480 = vst.msk [vmem:[#allocation3 + $0xf0] sm:$0xff] %vm1449_vm8, %v1414_v17  ;;  %v2828_v21 = vpop.f32.mrb[10].mxu0  ;;  %v1608_v38 = vpop.permute.xlu0 %1607 }
 0x281   : > { %2436 = vst.msk [vmem:[%s3902_s6 + $0x58] sm:$0xff] %vm378_vm0, %v2828_v21  ;;  %v2538_v41 = vmul.f32 %v2828_v21, %v2828_v21  ;;  %v2316_v28 = vpop.f32.mrb[11].mxu0  ;;  %v2478_v35 = vsel %vm378_vm0, %v2828_v21, 0.0 }
 0x282   : > { %1674 = vst.msk [vmem:[#allocation3 + $0xf0] sm:$0xff] %vm1643_vm9, %v1608_v38  ;;  %v2476_v54 = vsel %vm378_vm0, %v2316_v28, 0.0  ;;  %v2537_v7 = vmul.f32 %v2316_v28, %v2316_v28 }
 0x283   : > { %2435 = vst.msk [vmem:[%s3902_s6 + $0x50] sm:$0xff] %vm378_vm0, %v2316_v28  ;;  %v2477_v30 = vadd.f32 %v2476_v54, %v2475_v48  ;;  %v1416_v1 = vpop.permute.xlu1 %1415  ;;  %v2090_v16 = vld [vmem:[#allocation3 + $0xe0] sm:$0xff]  ;;  %v2580_v9 = vsel %vm378_vm0, %v2538_v41, 0.0 }
 0x284   : > { %v2578_v45 = vsel %vm378_vm0, %v2537_v7, 0.0  ;;  %1481 = vst.msk [vmem:[#allocation3 + $0xf8] sm:$0xff] %vm1449_vm8, %v1416_v1  ;;  %2853 = vmatprep.mubr.msk.f32.mxu1 %vm2099_vm12, %v2090_v16  ;;  %v2091_v8 = vld [vmem:[#allocation3 + $0xe8] sm:$0xff]  ;;  %v1801_v11 = vpop.permute.xlu0 %1800 }
 0x285   : > { %v2579_v50 = vadd.f32 %v2578_v45, %v2577_v12  ;;  %2854 = vmatmul.mubr.msk.f32.gmra.mrb[12].mxu1 %vm2099_vm12, %v2091_v8  ;;  %1867 = vst.msk [vmem:[#allocation3 + $0xf0] sm:$0xff] %vm1836_vm10, %v1801_v11  ;;  %v2479_v25 = vadd.f32 %v2478_v35, %v2477_v30 }
 0x287   : > { %v1610_v23 = vpop.permute.xlu1 %1609  ;;  %v2581_v15 = vadd.f32 %v2580_v9, %v2579_v50 }
 0x288   : > { %1675 = vst.msk [vmem:[#allocation3 + $0xf8] sm:$0xff] %vm1643_vm9, %v1610_v23  ;;  %v1994_v34 = vpop.permute.xlu0 %1993 }
 0x289   : > { %2060 = vst.msk [vmem:[#allocation3 + $0xf0] sm:$0xff] %vm2029_vm11, %v1994_v34 }
 0x28b   : > { %v1803_v37 = vpop.permute.xlu1 %1802 }
 0x28c   : > { %1868 = vst.msk [vmem:[#allocation3 + $0xf8] sm:$0xff] %vm1836_vm10, %v1803_v37 }
 0x28f   : > { %v1996_v51 = vpop.permute.xlu1 %1995 }
 0x290   : > { %2061 = vst.msk [vmem:[#allocation3 + $0xf8] sm:$0xff] %vm2029_vm11, %v1996_v51  ;;  %v2092_v40 = vld [vmem:[#allocation3 + $0xf0] sm:$0xff] }
 0x291   : > { %2856 = vmatprep.mubr.msk.f32.mxu1 %vm2099_vm12, %v2092_v40 }
 0x297   : > { %v2093_v43 = vld [vmem:[#allocation3 + $0xf8] sm:$0xff] }
 0x298   : > { %v2831_v56 = vpop.f32.mrb[12].mxu0  ;;  %2857 = vmatmul.mubr.msk.f32.gmra.mrb[14].mxu1 %vm2099_vm12, %v2093_v43 }
 0x299   : > { %2438 = vst.msk [vmem:[%s3902_s6 + $0x68] sm:$0xff] %vm378_vm0, %v2831_v56  ;;  %v2540_v58 = vmul.f32 %v2831_v56, %v2831_v56  ;;  %v2326_v22 = vpop.f32.mrb[13].mxu0  ;;  %v2482_v29 = vsel %vm378_vm0, %v2831_v56, 0.0 }
 0x29a   : > { %2437 = vst.msk [vmem:[%s3902_s6 + $0x60] sm:$0xff] %vm378_vm0, %v2326_v22  ;;  %v2480_v59 = vsel %vm378_vm0, %v2326_v22, 0.0  ;;  %v2539_v2 = vmul.f32 %v2326_v22, %v2326_v22 }
 0x29b   : > { %v2481_v49 = vadd.f32 %v2480_v59, %v2479_v25  ;;  %v2584_v18 = vsel %vm378_vm0, %v2540_v58, 0.0 }
 0x29c   : > { %v2582_v27 = vsel %vm378_vm0, %v2539_v2, 0.0 }
 0x29d   : > { %v2583_v57 = vadd.f32 %v2582_v27, %v2581_v15  ;;  %v2483_v31 = vadd.f32 %v2482_v29, %v2481_v49 }
 0x29f   : > { %v2585_v13 = vadd.f32 %v2584_v18, %v2583_v57 }
 0x2b0   : > { %v2834_v20 = vpop.f32.mrb[14].mxu0 }
 0x2b1   : > { %2440 = vst.msk [vmem:[%s3902_s6 + $0x78] sm:$0xff] %vm378_vm0, %v2834_v20  ;;  %v2542_v60 = vmul.f32 %v2834_v20, %v2834_v20  ;;  %v2336_v36 = vpop.f32.mrb[15].mxu0  ;;  %v2486_v39 = vsel %vm378_vm0, %v2834_v20, 0.0 }
 0x2b2   : > { %2439 = vst.msk [vmem:[%s3902_s6 + $0x70] sm:$0xff] %vm378_vm0, %v2336_v36  ;;  %v2484_v42 = vsel %vm378_vm0, %v2336_v36, 0.0  ;;  %v2541_v47 = vmul.f32 %v2336_v36, %v2336_v36 }
 0x2b3   : > { %v2485_v14 = vadd.f32 %v2484_v42, %v2483_v31  ;;  %v2588_v10 = vsel %vm378_vm0, %v2542_v60, 0.0 }
 0x2b4   : > { %v2586_v24 = vsel %vm378_vm0, %v2541_v47, 0.0 }
 0x2b5   : > { %v2487_v61 = vadd.f32 %v2486_v39, %v2485_v14  ;;  %v2587_v62 = vadd.f32 %v2586_v24, %v2585_v13 }
 0x2b7   : > { %v2589_v52 = vadd.f32 %v2588_v10, %v2587_v62 }
 0x2c8   : > { %v2837_v63 = vpop.f32.mrb[0].mxu1 }
 0x2c9   : > { %2442 = vst.msk [vmem:[%s3902_s6 + $0x88] sm:$0xff] %vm378_vm0, %v2837_v63  ;;  %v2544_v44 = vmul.f32 %v2837_v63, %v2837_v63  ;;  %v2346_v0 = vpop.f32.mrb[1].mxu1  ;;  %v2490_v19 = vsel %vm378_vm0, %v2837_v63, 0.0 }
 0x2ca   : > { %2441 = vst.msk [vmem:[%s3902_s6 + $0x80] sm:$0xff] %vm378_vm0, %v2346_v0  ;;  %v2488_v26 = vsel %vm378_vm0, %v2346_v0, 0.0  ;;  %v2543_v33 = vmul.f32 %v2346_v0, %v2346_v0 }
 0x2cb   : > { %v2489_v48 = vadd.f32 %v2488_v26, %v2487_v61  ;;  %v2592_v3 = vsel %vm378_vm0, %v2544_v44, 0.0 }
 0x2cc   : > { %v2590_v12 = vsel %vm378_vm0, %v2543_v33, 0.0 }
 0x2cd   : > { %v2591_v4 = vadd.f32 %v2590_v12, %v2589_v52  ;;  %v2491_v5 = vadd.f32 %v2490_v19, %v2489_v48 }
 0x2cf   : > { %v2593_v53 = vadd.f32 %v2592_v3, %v2591_v4 }
 0x2e0   : > { %v2840_v32 = vpop.f32.mrb[2].mxu1 }
 0x2e1   : > { %2444 = vst.msk [vmem:[%s3902_s6 + $0x98] sm:$0xff] %vm378_vm0, %v2840_v32  ;;  %v2546_v55 = vmul.f32 %v2840_v32, %v2840_v32  ;;  %v2356_v6 = vpop.f32.mrb[3].mxu1  ;;  %v2494_v46 = vsel %vm378_vm0, %v2840_v32, 0.0 }
 0x2e2   : > { %2443 = vst.msk [vmem:[%s3902_s6 + $0x90] sm:$0xff] %vm378_vm0, %v2356_v6  ;;  %v2492_v17 = vsel %vm378_vm0, %v2356_v6, 0.0  ;;  %v2545_v21 = vmul.f32 %v2356_v6, %v2356_v6 }
 0x2e3   : > { %v2493_v38 = vadd.f32 %v2492_v17, %v2491_v5  ;;  %v2596_v41 = vsel %vm378_vm0, %v2546_v55, 0.0 }
 0x2e4   : > { %v2594_v28 = vsel %vm378_vm0, %v2545_v21, 0.0 }
 0x2e5   : > { %v2595_v35 = vadd.f32 %v2594_v28, %v2593_v53  ;;  %v2495_v54 = vadd.f32 %v2494_v46, %v2493_v38 }
 0x2e7   : > { %v2597_v7 = vadd.f32 %v2596_v41, %v2595_v35 }
 0x2f9   : > { %v2843_v30 = vpop.f32.mrb[4].mxu1 }
 0x2fa   : > { %2446 = vst.msk [vmem:[%s3902_s6 + $0xa8] sm:$0xff] %vm378_vm0, %v2843_v30  ;;  %v2548_v1 = vmul.f32 %v2843_v30, %v2843_v30  ;;  %v2366_v16 = vpop.f32.mrb[5].mxu1  ;;  %v2498_v9 = vsel %vm378_vm0, %v2843_v30, 0.0 }
 0x2fb   : > { %2445 = vst.msk [vmem:[%s3902_s6 + $0xa0] sm:$0xff] %vm378_vm0, %v2366_v16  ;;  %v2496_v45 = vsel %vm378_vm0, %v2366_v16, 0.0  ;;  %v2547_v8 = vmul.f32 %v2366_v16, %v2366_v16 }
 0x2fc   : > { %v2497_v11 = vadd.f32 %v2496_v45, %v2495_v54  ;;  %v2600_v50 = vsel %vm378_vm0, %v2548_v1, 0.0 }
 0x2fd   : > { %v2598_v25 = vsel %vm378_vm0, %v2547_v8, 0.0 }
 0x2fe   : > { %v2599_v23 = vadd.f32 %v2598_v25, %v2597_v7  ;;  %v2499_v15 = vadd.f32 %v2498_v9, %v2497_v11 }
 0x300   : > { %v2601_v34 = vadd.f32 %v2600_v50, %v2599_v23 }
 0x310   : > { %v2846_v37 = vpop.f32.mrb[6].mxu1 }
 0x311   : > { %2448 = vst.msk [vmem:[%s3902_s6 + $0xb8] sm:$0xff] %vm378_vm0, %v2846_v37  ;;  %v2550_v51 = vmul.f32 %v2846_v37, %v2846_v37  ;;  %v2376_v40 = vpop.f32.mrb[7].mxu1  ;;  %v2502_v43 = vsel %vm378_vm0, %v2846_v37, 0.0 }
 0x312   : > { %2447 = vst.msk [vmem:[%s3902_s6 + $0xb0] sm:$0xff] %vm378_vm0, %v2376_v40  ;;  %v2500_v56 = vsel %vm378_vm0, %v2376_v40, 0.0  ;;  %v2549_v58 = vmul.f32 %v2376_v40, %v2376_v40 }
 0x313   : > { %v2501_v22 = vadd.f32 %v2500_v56, %v2499_v15  ;;  %v2604_v29 = vsel %vm378_vm0, %v2550_v51, 0.0 }
 0x314   : > { %v2602_v59 = vsel %vm378_vm0, %v2549_v58, 0.0 }
 0x315   : > { %v2603_v2 = vadd.f32 %v2602_v59, %v2601_v34  ;;  %v2503_v49 = vadd.f32 %v2502_v43, %v2501_v22 }
 0x317   : > { %v2605_v18 = vadd.f32 %v2604_v29, %v2603_v2 }
 0x328   : > { %v2849_v27 = vpop.f32.mrb[8].mxu1 }
 0x329   : > { %2450 = vst.msk [vmem:[%s3902_s6 + $0xc8] sm:$0xff] %vm378_vm0, %v2849_v27  ;;  %v2552_v57 = vmul.f32 %v2849_v27, %v2849_v27  ;;  %v2386_v31 = vpop.f32.mrb[9].mxu1  ;;  %v2506_v13 = vsel %vm378_vm0, %v2849_v27, 0.0 }
 0x32a   : > { %2449 = vst.msk [vmem:[%s3902_s6 + $0xc0] sm:$0xff] %vm378_vm0, %v2386_v31  ;;  %v2504_v20 = vsel %vm378_vm0, %v2386_v31, 0.0  ;;  %v2551_v60 = vmul.f32 %v2386_v31, %v2386_v31 }
 0x32b   : > { %v2505_v36 = vadd.f32 %v2504_v20, %v2503_v49  ;;  %v2608_v39 = vsel %vm378_vm0, %v2552_v57, 0.0 }
 0x32c   : > { %v2606_v42 = vsel %vm378_vm0, %v2551_v60, 0.0 }
 0x32d   : > { %v2607_v47 = vadd.f32 %v2606_v42, %v2605_v18  ;;  %v2507_v14 = vadd.f32 %v2506_v13, %v2505_v36 }
 0x32f   : > { %v2609_v10 = vadd.f32 %v2608_v39, %v2607_v47 }
 0x340   : > { %v2852_v24 = vpop.f32.mrb[10].mxu1 }
 0x341   : > { %2452 = vst.msk [vmem:[%s3902_s6 + $0xd8] sm:$0xff] %vm378_vm0, %v2852_v24  ;;  %v2554_v61 = vmul.f32 %v2852_v24, %v2852_v24  ;;  %v2396_v62 = vpop.f32.mrb[11].mxu1  ;;  %v2510_v52 = vsel %vm378_vm0, %v2852_v24, 0.0 }
 0x342   : > { %2451 = vst.msk [vmem:[%s3902_s6 + $0xd0] sm:$0xff] %vm378_vm0, %v2396_v62  ;;  %v2508_v63 = vsel %vm378_vm0, %v2396_v62, 0.0  ;;  %v2553_v44 = vmul.f32 %v2396_v62, %v2396_v62 }
 0x343   : > { %v2509_v0 = vadd.f32 %v2508_v63, %v2507_v14  ;;  %v2612_v19 = vsel %vm378_vm0, %v2554_v61, 0.0 }
 0x344   : > { %v2610_v26 = vsel %vm378_vm0, %v2553_v44, 0.0 }
 0x345   : > { %v2611_v33 = vadd.f32 %v2610_v26, %v2609_v10  ;;  %v2511_v48 = vadd.f32 %v2510_v52, %v2509_v0 }
 0x347   : > { %v2613_v3 = vadd.f32 %v2612_v19, %v2611_v33 }
 0x358   : > { %v2855_v12 = vpop.f32.mrb[12].mxu1 }
 0x359   : > { %2454 = vst.msk [vmem:[%s3902_s6 + $0xe8] sm:$0xff] %vm378_vm0, %v2855_v12  ;;  %v2556_v4 = vmul.f32 %v2855_v12, %v2855_v12  ;;  %v2406_v5 = vpop.f32.mrb[13].mxu1  ;;  %v2514_v53 = vsel %vm378_vm0, %v2855_v12, 0.0 }
 0x35a   : > { %2453 = vst.msk [vmem:[%s3902_s6 + $0xe0] sm:$0xff] %vm378_vm0, %v2406_v5  ;;  %v2512_v32 = vsel %vm378_vm0, %v2406_v5, 0.0  ;;  %v2555_v55 = vmul.f32 %v2406_v5, %v2406_v5 }
 0x35b   : > { %v2513_v6 = vadd.f32 %v2512_v32, %v2511_v48  ;;  %v2616_v46 = vsel %vm378_vm0, %v2556_v4, 0.0 }
 0x35c   : > { %v2614_v17 = vsel %vm378_vm0, %v2555_v55, 0.0 }
 0x35d   : > { %v2615_v21 = vadd.f32 %v2614_v17, %v2613_v3  ;;  %v2515_v38 = vadd.f32 %v2514_v53, %v2513_v6 }
 0x35f   : > { %v2617_v41 = vadd.f32 %v2616_v46, %v2615_v21 }
 0x36b   : > { %v2858_v28 = vpop.f32.mrb[14].mxu1 }
 0x36c   : > { %2456 = vst.msk [vmem:[%s3902_s6 + $0xf8] sm:$0xff] %vm378_vm0, %v2858_v28  ;;  %v2416_v35 = vpop.f32.mrb[15].mxu1  ;;  %v2558_v54 = vmul.f32 %v2858_v28, %v2858_v28  ;;  %v2518_v16 = vsel %vm378_vm0, %v2858_v28, 0.0 }
 0x36d   : > { %2455 = vst.msk [vmem:[%s3902_s6 + $0xf0] sm:$0xff] %vm378_vm0, %v2416_v35  ;;  %v2516_v7 = vsel %vm378_vm0, %v2416_v35, 0.0  ;;  %v2557_v30 = vmul.f32 %v2416_v35, %v2416_v35 }
 0x36e   : > { %v2517_v1 = vadd.f32 %v2516_v7, %v2515_v38  ;;  %v2620_v11 = vsel %vm378_vm0, %v2558_v54, 0.0 }
 0x36f   : > { %v2618_v9 = vsel %vm378_vm0, %v2557_v30, 0.0 }
 0x370   : > { %v2519_v45 = vadd.f32 %v2518_v16, %v2517_v1  ;;  %v2619_v8 = vadd.f32 %v2618_v9, %v2617_v41 }
 0x372   : > { %v2520_v50 = vrot.slane %v2519_v45, 4  ;;  %v2621_v25 = vadd.f32 %v2620_v11, %v2619_v8 }
 0x374   : > { %v2521_v23 = vadd.f32 %v2520_v50, %v2519_v45  ;;  %v2622_v15 = vrot.slane %v2621_v25, 4 }
 0x376   : > { %v2522_v34 = vrot.slane %v2521_v23, 2  ;;  %v2623_v37 = vadd.f32 %v2622_v15, %v2621_v25 }
 0x378   : > { %v2523_v51 = vadd.f32 %v2522_v34, %v2521_v23  ;;  %v2624_v40 = vrot.slane %v2623_v37, 2 }
 0x37a   : > { %v2524_v43 = vrot.slane %v2523_v51, 1  ;;  %v2625_v56 = vadd.f32 %v2624_v40, %v2623_v37 }
 0x37c   : > { %v2525_v58 = vadd.f32 %v2524_v43, %v2523_v51  ;;  %v2626_v22 = vrot.slane %v2625_v56, 1 }
 0x37e   : > { %2526 = vst.msk [vmem:[%s235_s9] sm:$0x1] %vm388_vm2, %v2525_v58  ;;  %v2627_v29 = vadd.f32 %v2626_v22, %v2625_v56 }
 0x380   : > { %2628 = vst.msk [vmem:[%s235_s9 + $0x1] sm:$0x1] %vm388_vm2, %v2627_v29 }
 0x381 PF: > { %s16_s18 = sadd.s32 1, %s2898_s18  }
 0x382   : > { %p13_p4 = scmp.ge.s32.totalorder %s16_s18, 4  }
 0x384   :  { %15 = sbr.rel (!%p13_p4) target bundleno = 1 (0x1), region = 81 }

</bundles_post_ra>
